<compile_context>
chip_gen: v5e
topology: v5e:2x2
jax: 0.10.0
libtpu: 0.0.40
codegen_flags: <defaults>
</compile_context>

<pallas_src>
import functools
import math

import jax
import jax.numpy as jnp
from jax.experimental import pallas as pl
from jax.experimental.pallas import tpu as pltpu

LANE = 128                       # pad output-channel dims to a multiple of the lane width
SUBLANE = 16                     # bf16 sublane packing: keep row tiles a multiple of this
ROW_TILE = 256                   # max rows per grid step (fits VMEM on v5e/v6e/v7x)
VMEM_LIMIT = 32 * 1024 * 1024    # explicit scoped-VMEM budget (safe on all three gens)


def _round_up(x, m):
    return (x + m - 1) // m * m


def _row_tile(m):
    return min(ROW_TILE, _round_up(m, SUBLANE))


# ----------------------------------------------------------------------------
# Pallas kernels
# ----------------------------------------------------------------------------
def _matmul_bias_act_kernel(x_ref, w_ref, b_ref, o_ref, *, act):
    # bf16 x bf16 -> f32 accumulation on the MXU; bias/activation in f32 vregs.
    acc = jnp.dot(x_ref[...], w_ref[...], preferred_element_type=jnp.float32)
    acc = acc + b_ref[...]                        # (1, N) broadcasts over rows
    if act == "relu":
        acc = jnp.maximum(acc, 0.0)
    elif act == "lrelu":
        acc = jnp.where(acc > 0, acc, 0.01 * acc)
    o_ref[...] = acc.astype(o_ref.dtype)


def _fc_head_kernel(x_ref, w1_ref, b1_ref, w2_ref, b2_ref, o_ref):
    # Fused fc -> LeakyReLU(0.01) -> head. Hidden stays in VMEM/vregs.
    h = jnp.dot(x_ref[...], w1_ref[...], preferred_element_type=jnp.float32)
    h = h + b1_ref[...]
    h = jnp.where(h > 0, h, 0.01 * h)             # LeakyReLU(0.01)
    q = jnp.dot(h.astype(w2_ref.dtype), w2_ref[...],
                preferred_element_type=jnp.float32)
    o_ref[...] = (q + b2_ref[...]).astype(o_ref.dtype)


# ----------------------------------------------------------------------------
# Pallas wrappers (row-tiled, parallel grid, weights resident)
# ----------------------------------------------------------------------------
def matmul_bias_act(x, w, b, *, act, out_dtype):
    """x: (M, K); w: (K, N) bf16; b: (1, N) f32 -> (M, N) out_dtype."""
    M, K = x.shape
    N = w.shape[1]
    tm = _row_tile(M)
    Mp = _round_up(M, tm)
    x = x.astype(w.dtype)
    if Mp != M:
        x = jnp.pad(x, ((0, Mp - M), (0, 0)))
    out = pl.pallas_call(
        functools.partial(_matmul_bias_act_kernel, act=act),
        out_shape=jax.ShapeDtypeStruct((Mp, N), out_dtype),
        grid=(Mp // tm,),
        in_specs=[
            pl.BlockSpec((tm, K), lambda i: (i, 0)),   # row tile, pipelined
            pl.BlockSpec((K, N), lambda i: (0, 0)),    # weight resident across grid
            pl.BlockSpec((1, N), lambda i: (0, 0)),    # bias resident
        ],
        out_specs=pl.BlockSpec((tm, N), lambda i: (i, 0)),
        compiler_params=pltpu.CompilerParams(
            dimension_semantics=("parallel",),
            vmem_limit_bytes=VMEM_LIMIT,
        ),
    )(x, w, b)
    return out if Mp == M else out[:M]


def fc_head(x, fc_w, fc_b, head_w, head_b):
    """Fused fc + LeakyReLU + head. x: (B, 3136) -> (B, N_head_padded) f32."""
    M, K = x.shape
    N1 = fc_w.shape[1]
    N2 = head_w.shape[1]
    tm = _row_tile(M)
    Mp = _round_up(M, tm)
    x = x.astype(fc_w.dtype)
    if Mp != M:
        x = jnp.pad(x, ((0, Mp - M), (0, 0)))
    q = pl.pallas_call(
        _fc_head_kernel,
        out_shape=jax.ShapeDtypeStruct((Mp, N2), jnp.float32),
        grid=(Mp // tm,),
        in_specs=[
            pl.BlockSpec((tm, K), lambda i: (i, 0)),
            pl.BlockSpec((K, N1), lambda i: (0, 0)),
            pl.BlockSpec((1, N1), lambda i: (0, 0)),
            pl.BlockSpec((N1, N2), lambda i: (0, 0)),
            pl.BlockSpec((1, N2), lambda i: (0, 0)),
        ],
        out_specs=pl.BlockSpec((tm, N2), lambda i: (i, 0)),
        compiler_params=pltpu.CompilerParams(
            dimension_semantics=("parallel",),
            vmem_limit_bytes=VMEM_LIMIT,
        ),
    )(x, fc_w, fc_b, head_w, head_b)
    return q if Mp == M else q[:M]


# ----------------------------------------------------------------------------
# Plain-JAX glue: NHWC im2col (patch element order = (kh, kw, Cin)).
# TODO(synk): forming patches inside the kernel from a VMEM-resident input tile
# would remove this HBM materialization entirely; kept in XLA for clarity.
# ----------------------------------------------------------------------------
def im2col_nhwc(x, kh, kw, stride):
    B, H, W, C = x.shape
    OH = (H - kh) // stride + 1
    OW = (W - kw) // stride + 1
    cols = []
    for i in range(kh):
        for j in range(kw):
            cols.append(x[:, i:i + stride * OH:stride, j:j + stride * OW:stride, :])
    p = jnp.stack(cols, axis=3)                  # (B, OH, OW, kh*kw, C)
    return p.reshape(B * OH * OW, kh * kw * C), OH, OW


def conv2d_relu(x, w_mat, b, *, kh, kw, stride, cout):
    """x: NHWC bf16; w_mat: (kh*kw*Cin, Cout_pad) bf16; b: (1, Cout_pad) f32."""
    B = x.shape[0]
    patches, OH, OW = im2col_nhwc(x, kh, kw, stride)
    y = matmul_bias_act(patches, w_mat, b, act="relu", out_dtype=jnp.bfloat16)
    return y[:, :cout].reshape(B, OH, OW, cout)   # drop lane padding, keep NHWC


# ----------------------------------------------------------------------------
# DQN forward (matches the torch module exactly)
# ----------------------------------------------------------------------------
def dqn_forward(params, x, *, num_actions):
    # x is NCHW (B, channels, 84, 84) float32; 84x84 forced by fc's 3136 = 64*7*7.
    x = jnp.transpose(x, (0, 2, 3, 1)).astype(jnp.bfloat16)        # one-time -> NHWC
    x = conv2d_relu(x, params["conv1_w"], params["conv1_b"], kh=8, kw=8, stride=4, cout=32)
    x = conv2d_relu(x, params["conv2_w"], params["conv2_b"], kh=4, kw=4, stride=2, cout=64)
    x = conv2d_relu(x, params["conv3_w"], params["conv3_b"], kh=3, kw=3, stride=1, cout=64)
    B = x.shape[0]
    feats = x.reshape(B, -1)     # (B, 3136) in (H, W, C) order; fc_w permuted at init
    q = fc_head(feats, params["fc_w"], params["fc_b"],
                params["head_w"], params["head_b"])
    return q[:, :num_actions]


# ----------------------------------------------------------------------------
# Parameter init (PyTorch-layout, fan-in uniform) and one-time conversion to the
# kernel layout: permutations, lane padding and bf16 casts are folded in here.
# ----------------------------------------------------------------------------
def init_torch_params(key, channels, num_actions):
    ks = jax.random.split(key, 10)

    def u(k, shape, fan_in):
        bound = 1.0 / math.sqrt(float(fan_in))
        return jax.random.uniform(k, shape, jnp.float32, -bound, bound)

    return {
        "conv1_w": u(ks[0], (32, channels, 8, 8), channels * 64),
        "conv1_b": u(ks[1], (32,), channels * 64),
        "conv2_w": u(ks[2], (64, 32, 4, 4), 32 * 16),
        "conv2_b": u(ks[3], (64,), 32 * 16),
        "conv3_w": u(ks[4], (64, 64, 3, 3), 64 * 9),
        "conv3_b": u(ks[5], (64,), 64 * 9),
        "fc_w":    u(ks[6], (512, 3136), 3136),        # torch layout, (C,H,W) flatten
        "fc_b":    u(ks[7], (512,), 3136),
        "head_w":  u(ks[8], (num_actions, 512), 512),
        "head_b":  u(ks[9], (num_actions,), 512),
    }


def prepare_params(tp):
    """Torch-layout weights -> kernel layout (done once, outside the forward path)."""
    p = {}

    def conv(w, b):
        cout, cin, kh, kw = w.shape
        # (Cout, Cin, kh, kw) -> (kh, kw, Cin, Cout) -> (kh*kw*Cin, Cout): NHWC im2col order
        wm = jnp.transpose(w, (2, 3, 1, 0)).reshape(kh * kw * cin, cout)
        npad = _round_up(cout, LANE)
        wm = jnp.pad(wm, ((0, 0), (0, npad - cout))).astype(jnp.bfloat16)
        bm = jnp.pad(b, (0, npad - cout)).reshape(1, npad).astype(jnp.float32)
        return wm, bm

    p["conv1_w"], p["conv1_b"] = conv(tp["conv1_w"], tp["conv1_b"])
    p["conv2_w"], p["conv2_b"] = conv(tp["conv2_w"], tp["conv2_b"])
    p["conv3_w"], p["conv3_b"] = conv(tp["conv3_w"], tp["conv3_b"])

    # fc: torch rows index (C,H,W)-flattened features; ours flatten NHWC as (H,W,C).
    fc_w = tp["fc_w"].reshape(512, 64, 7, 7)            # (out, c, h, w)
    fc_w = jnp.transpose(fc_w, (0, 2, 3, 1)).reshape(512, 3136)  # (out, h*w*c)
    p["fc_w"] = fc_w.T.astype(jnp.bfloat16)              # (3136, 512)
    p["fc_b"] = tp["fc_b"].reshape(1, 512).astype(jnp.float32)

    na = tp["head_w"].shape[0]
    napad = _round_up(na, LANE)
    p["head_w"] = jnp.pad(tp["head_w"].T, ((0, 0), (0, napad - na))).astype(jnp.bfloat16)
    p["head_b"] = jnp.pad(tp["head_b"], (0, napad - na)).reshape(1, napad).astype(jnp.float32)
    return p


if __name__ == "__main__":
    channels, num_actions, batch = 4, 6, 2
    key = jax.random.PRNGKey(0)
    pkey, xkey = jax.random.split(key)

    torch_params = init_torch_params(pkey, channels, num_actions)
    params = prepare_params(torch_params)

    # 84x84 spatial is required by the module (fc expects 64*7*7 = 3136 features)
    x = jax.random.normal(xkey, (batch, channels, 84, 84), jnp.float32)

    fwd = jax.jit(functools.partial(dqn_forward, num_actions=num_actions))
    q = fwd(params, x)
    q = jax.block_until_ready(q)

    assert q.shape == (batch, num_actions)
    assert q.dtype == jnp.float32
    assert bool(jnp.all(jnp.isfinite(q)))
    print("KERNEL_OK")
</pallas_src>

<mosaic_0001>
module attributes {stable_mosaic.version = 11 : i64} {
  func.func @_matmul_bias_act_kernel(%arg0: i32, %arg1: memref<256x256xbf16, #tpu.memory_space<vmem>>, %arg2: memref<256x128xbf16, #tpu.memory_space<vmem>>, %arg3: memref<1x128xf32, #tpu.memory_space<vmem>>, %arg4: memref<256x128xbf16, #tpu.memory_space<vmem>>) attributes {dimension_semantics = [#tpu.dimension_semantics<parallel>], iteration_bounds = array<i64: 4>, scalar_prefetch = 0 : i64, scratch_operands = 0 : i64, tpu.core_type = #tpu.core_type<tc>, window_params = [{transform_indices = @transform_0, window_bounds = array<i64: 256, 256>}, {pipeline_mode = #tpu.pipeline_mode<synchronous>, transform_indices = @transform_1, window_bounds = array<i64: 256, 128>}, {pipeline_mode = #tpu.pipeline_mode<synchronous>, transform_indices = @transform_2, window_bounds = array<i64: 1, 128>}, {transform_indices = @transform_3, window_bounds = array<i64: 256, 128>}]} {
    %c0 = arith.constant 0 : index
    %c0_0 = arith.constant 0 : index
    %0 = vector.load %arg1[%c0, %c0_0] : memref<256x256xbf16, #tpu.memory_space<vmem>>, vector<256x256xbf16>
    %c0_1 = arith.constant 0 : index
    %c0_2 = arith.constant 0 : index
    %1 = vector.load %arg2[%c0_1, %c0_2] : memref<256x128xbf16, #tpu.memory_space<vmem>>, vector<256x128xbf16>
    %cst = arith.constant dense<0.000000e+00> : vector<256x128xf32>
    %2 = tpu.matmul %0, %1, %cst {dimension_numbers = #tpu.dot_dimension_numbers<[1], [0], [0], [1], [0, 0, 1, 1], [], []>} : vector<256x256xbf16>, vector<256x128xbf16>, vector<256x128xf32> -> vector<256x128xf32>
    %c0_3 = arith.constant 0 : index
    %c0_4 = arith.constant 0 : index
    %3 = vector.load %arg3[%c0_3, %c0_4] : memref<1x128xf32, #tpu.memory_space<vmem>>, vector<1x128xf32>
    %4 = vector.broadcast %3 : vector<1x128xf32> to vector<256x128xf32>
    %5 = arith.addf %2, %4 : vector<256x128xf32>
    %cst_5 = arith.constant 0.000000e+00 : f32
    %6 = vector.broadcast %cst_5 : f32 to vector<256x128xf32>
    %7 = arith.maximumf %5, %6 : vector<256x128xf32>
    %8 = arith.truncf %7 : vector<256x128xf32> to vector<256x128xbf16>
    %c0_6 = arith.constant 0 : index
    %c0_7 = arith.constant 0 : index
    %9 = vector.load %arg4[%c0_6, %c0_7] : memref<256x128xbf16, #tpu.memory_space<vmem>>, vector<256x128xbf16>
    tpu.vector_store %arg4[%c0_6, %c0_7], %8 {strides = array<i32>} : memref<256x128xbf16, #tpu.memory_space<vmem>>, vector<256x128xbf16>,
    return
  }
  func.func @transform_0(%arg0: i32) -> (i32, i32) {
    %c0_i32 = arith.constant 0 : i32
    %c0_i32_0 = arith.constant 0 : i32
    return %arg0, %c0_i32 : i32, i32
  }
  func.func @transform_1(%arg0: i32) -> (i32, i32) {
    %c0_i32 = arith.constant 0 : i32
    %c0_i32_0 = arith.constant 0 : i32
    %c0_i32_1 = arith.constant 0 : i32
    return %c0_i32, %c0_i32_0 : i32, i32
  }
  func.func @transform_2(%arg0: i32) -> (i32, i32) {
    %c0_i32 = arith.constant 0 : i32
    %c0_i32_0 = arith.constant 0 : i32
    %c0_i32_1 = arith.constant 0 : i32
    return %c0_i32, %c0_i32_0 : i32, i32
  }
  func.func @transform_3(%arg0: i32) -> (i32, i32) {
    %c0_i32 = arith.constant 0 : i32
    %c0_i32_0 = arith.constant 0 : i32
    return %arg0, %c0_i32 : i32, i32
  }
}

module attributes {stable_mosaic.version = 11 : i64} {
  func.func @_matmul_bias_act_kernel(%arg0: i32, %arg1: memref<176x512xbf16, #tpu.memory_space<vmem>>, %arg2: memref<512x128xbf16, #tpu.memory_space<vmem>>, %arg3: memref<1x128xf32, #tpu.memory_space<vmem>>, %arg4: memref<176x128xbf16, #tpu.memory_space<vmem>>) attributes {dimension_semantics = [#tpu.dimension_semantics<parallel>], iteration_bounds = array<i64: 1>, scalar_prefetch = 0 : i64, scratch_operands = 0 : i64, tpu.core_type = #tpu.core_type<tc>, window_params = [{transform_indices = @transform_0, window_bounds = array<i64: 176, 512>}, {pipeline_mode = #tpu.pipeline_mode<synchronous>, transform_indices = @transform_1, window_bounds = array<i64: 512, 128>}, {pipeline_mode = #tpu.pipeline_mode<synchronous>, transform_indices = @transform_2, window_bounds = array<i64: 1, 128>}, {transform_indices = @transform_3, window_bounds = array<i64: 176, 128>}]} {
    %c0 = arith.constant 0 : index
    %c0_0 = arith.constant 0 : index
    %0 = vector.load %arg1[%c0, %c0_0] : memref<176x512xbf16, #tpu.memory_space<vmem>>, vector<176x512xbf16>
    %c0_1 = arith.constant 0 : index
    %c0_2 = arith.constant 0 : index
    %1 = vector.load %arg2[%c0_1, %c0_2] : memref<512x128xbf16, #tpu.memory_space<vmem>>, vector<512x128xbf16>
    %cst = arith.constant dense<0.000000e+00> : vector<176x128xf32>
    %2 = tpu.matmul %0, %1, %cst {dimension_numbers = #tpu.dot_dimension_numbers<[1], [0], [0], [1], [0, 0, 1, 1], [], []>} : vector<176x512xbf16>, vector<512x128xbf16>, vector<176x128xf32> -> vector<176x128xf32>
    %c0_3 = arith.constant 0 : index
    %c0_4 = arith.constant 0 : index
    %3 = vector.load %arg3[%c0_3, %c0_4] : memref<1x128xf32, #tpu.memory_space<vmem>>, vector<1x128xf32>
    %4 = vector.broadcast %3 : vector<1x128xf32> to vector<176x128xf32>
    %5 = arith.addf %2, %4 : vector<176x128xf32>
    %cst_5 = arith.constant 0.000000e+00 : f32
    %6 = vector.broadcast %cst_5 : f32 to vector<176x128xf32>
    %7 = arith.maximumf %5, %6 : vector<176x128xf32>
    %8 = arith.truncf %7 : vector<176x128xf32> to vector<176x128xbf16>
    %c0_6 = arith.constant 0 : index
    %c0_7 = arith.constant 0 : index
    %9 = vector.load %arg4[%c0_6, %c0_7] : memref<176x128xbf16, #tpu.memory_space<vmem>>, vector<176x128xbf16>
    tpu.vector_store %arg4[%c0_6, %c0_7], %8 {strides = array<i32>} : memref<176x128xbf16, #tpu.memory_space<vmem>>, vector<176x128xbf16>,
    return
  }
  func.func @transform_0(%arg0: i32) -> (i32, i32) {
    %c0_i32 = arith.constant 0 : i32
    %c0_i32_0 = arith.constant 0 : i32
    return %arg0, %c0_i32 : i32, i32
  }
  func.func @transform_1(%arg0: i32) -> (i32, i32) {
    %c0_i32 = arith.constant 0 : i32
    %c0_i32_0 = arith.constant 0 : i32
    %c0_i32_1 = arith.constant 0 : i32
    return %c0_i32, %c0_i32_0 : i32, i32
  }
  func.func @transform_2(%arg0: i32) -> (i32, i32) {
    %c0_i32 = arith.constant 0 : i32
    %c0_i32_0 = arith.constant 0 : i32
    %c0_i32_1 = arith.constant 0 : i32
    return %c0_i32, %c0_i32_0 : i32, i32
  }
  func.func @transform_3(%arg0: i32) -> (i32, i32) {
    %c0_i32 = arith.constant 0 : i32
    %c0_i32_0 = arith.constant 0 : i32
    return %arg0, %c0_i32 : i32, i32
  }
}

module attributes {stable_mosaic.version = 11 : i64} {
  func.func @_matmul_bias_act_kernel(%arg0: i32, %arg1: memref<112x576xbf16, #tpu.memory_space<vmem>>, %arg2: memref<576x128xbf16, #tpu.memory_space<vmem>>, %arg3: memref<1x128xf32, #tpu.memory_space<vmem>>, %arg4: memref<112x128xbf16, #tpu.memory_space<vmem>>) attributes {dimension_semantics = [#tpu.dimension_semantics<parallel>], iteration_bounds = array<i64: 1>, scalar_prefetch = 0 : i64, scratch_operands = 0 : i64, tpu.core_type = #tpu.core_type<tc>, window_params = [{transform_indices = @transform_0, window_bounds = array<i64: 112, 576>}, {pipeline_mode = #tpu.pipeline_mode<synchronous>, transform_indices = @transform_1, window_bounds = array<i64: 576, 128>}, {pipeline_mode = #tpu.pipeline_mode<synchronous>, transform_indices = @transform_2, window_bounds = array<i64: 1, 128>}, {transform_indices = @transform_3, window_bounds = array<i64: 112, 128>}]} {
    %c0 = arith.constant 0 : index
    %c0_0 = arith.constant 0 : index
    %0 = vector.load %arg1[%c0, %c0_0] : memref<112x576xbf16, #tpu.memory_space<vmem>>, vector<112x576xbf16>
    %c0_1 = arith.constant 0 : index
    %c0_2 = arith.constant 0 : index
    %1 = vector.load %arg2[%c0_1, %c0_2] : memref<576x128xbf16, #tpu.memory_space<vmem>>, vector<576x128xbf16>
    %cst = arith.constant dense<0.000000e+00> : vector<112x128xf32>
    %2 = tpu.matmul %0, %1, %cst {dimension_numbers = #tpu.dot_dimension_numbers<[1], [0], [0], [1], [0, 0, 1, 1], [], []>} : vector<112x576xbf16>, vector<576x128xbf16>, vector<112x128xf32> -> vector<112x128xf32>
    %c0_3 = arith.constant 0 : index
    %c0_4 = arith.constant 0 : index
    %3 = vector.load %arg3[%c0_3, %c0_4] : memref<1x128xf32, #tpu.memory_space<vmem>>, vector<1x128xf32>
    %4 = vector.broadcast %3 : vector<1x128xf32> to vector<112x128xf32>
    %5 = arith.addf %2, %4 : vector<112x128xf32>
    %cst_5 = arith.constant 0.000000e+00 : f32
    %6 = vector.broadcast %cst_5 : f32 to vector<112x128xf32>
    %7 = arith.maximumf %5, %6 : vector<112x128xf32>
    %8 = arith.truncf %7 : vector<112x128xf32> to vector<112x128xbf16>
    %c0_6 = arith.constant 0 : index
    %c0_7 = arith.constant 0 : index
    %9 = vector.load %arg4[%c0_6, %c0_7] : memref<112x128xbf16, #tpu.memory_space<vmem>>, vector<112x128xbf16>
    tpu.vector_store %arg4[%c0_6, %c0_7], %8 {strides = array<i32>} : memref<112x128xbf16, #tpu.memory_space<vmem>>, vector<112x128xbf16>,
    return
  }
  func.func @transform_0(%arg0: i32) -> (i32, i32) {
    %c0_i32 = arith.constant 0 : i32
    %c0_i32_0 = arith.constant 0 : i32
    return %arg0, %c0_i32 : i32, i32
  }
  func.func @transform_1(%arg0: i32) -> (i32, i32) {
    %c0_i32 = arith.constant 0 : i32
    %c0_i32_0 = arith.constant 0 : i32
    %c0_i32_1 = arith.constant 0 : i32
    return %c0_i32, %c0_i32_0 : i32, i32
  }
  func.func @transform_2(%arg0: i32) -> (i32, i32) {
    %c0_i32 = arith.constant 0 : i32
    %c0_i32_0 = arith.constant 0 : i32
    %c0_i32_1 = arith.constant 0 : i32
    return %c0_i32, %c0_i32_0 : i32, i32
  }
  func.func @transform_3(%arg0: i32) -> (i32, i32) {
    %c0_i32 = arith.constant 0 : i32
    %c0_i32_0 = arith.constant 0 : i32
    return %arg0, %c0_i32 : i32, i32
  }
}

module attributes {stable_mosaic.version = 11 : i64} {
  func.func @_fc_head_kernel(%arg0: i32, %arg1: memref<16x3136xbf16, #tpu.memory_space<vmem>>, %arg2: memref<3136x512xbf16, #tpu.memory_space<vmem>>, %arg3: memref<1x512xf32, #tpu.memory_space<vmem>>, %arg4: memref<512x128xbf16, #tpu.memory_space<vmem>>, %arg5: memref<1x128xf32, #tpu.memory_space<vmem>>, %arg6: memref<16x128xf32, #tpu.memory_space<vmem>>) attributes {dimension_semantics = [#tpu.dimension_semantics<parallel>], iteration_bounds = array<i64: 1>, scalar_prefetch = 0 : i64, scratch_operands = 0 : i64, tpu.core_type = #tpu.core_type<tc>, window_params = [{transform_indices = @transform_0, window_bounds = array<i64: 16, 3136>}, {pipeline_mode = #tpu.pipeline_mode<synchronous>, transform_indices = @transform_1, window_bounds = array<i64: 3136, 512>}, {pipeline_mode = #tpu.pipeline_mode<synchronous>, transform_indices = @transform_2, window_bounds = array<i64: 1, 512>}, {pipeline_mode = #tpu.pipeline_mode<synchronous>, transform_indices = @transform_3, window_bounds = array<i64: 512, 128>}, {pipeline_mode = #tpu.pipeline_mode<synchronous>, transform_indices = @transform_4, window_bounds = array<i64: 1, 128>}, {transform_indices = @transform_5, window_bounds = array<i64: 16, 128>}]} {
    %c0 = arith.constant 0 : index
    %c0_0 = arith.constant 0 : index
    %0 = vector.load %arg1[%c0, %c0_0] : memref<16x3136xbf16, #tpu.memory_space<vmem>>, vector<16x3136xbf16>
    %c0_1 = arith.constant 0 : index
    %c0_2 = arith.constant 0 : index
    %1 = vector.load %arg2[%c0_1, %c0_2] : memref<3136x512xbf16, #tpu.memory_space<vmem>>, vector<3136x512xbf16>
    %cst = arith.constant dense<0.000000e+00> : vector<16x512xf32>
    %2 = tpu.matmul %0, %1, %cst {dimension_numbers = #tpu.dot_dimension_numbers<[1], [0], [0], [1], [0, 0, 1, 1], [], []>} : vector<16x3136xbf16>, vector<3136x512xbf16>, vector<16x512xf32> -> vector<16x512xf32>
    %c0_3 = arith.constant 0 : index
    %c0_4 = arith.constant 0 : index
    %3 = vector.load %arg3[%c0_3, %c0_4] : memref<1x512xf32, #tpu.memory_space<vmem>>, vector<1x512xf32>
    %4 = vector.broadcast %3 : vector<1x512xf32> to vector<16x512xf32>
    %5 = arith.addf %2, %4 : vector<16x512xf32>
    %cst_5 = arith.constant 0.000000e+00 : f32
    %6 = vector.broadcast %cst_5 : f32 to vector<16x512xf32>
    %7 = arith.cmpf ogt, %5, %6 : vector<16x512xf32>
    %cst_6 = arith.constant 0.00999999977 : f32
    %8 = vector.broadcast %cst_6 : f32 to vector<16x512xf32>
    %9 = arith.mulf %8, %5 : vector<16x512xf32>
    %10 = arith.select %7, %5, %9 : vector<16x512xi1>, vector<16x512xf32>
    %11 = arith.truncf %10 : vector<16x512xf32> to vector<16x512xbf16>
    %c0_7 = arith.constant 0 : index
    %c0_8 = arith.constant 0 : index
    %12 = vector.load %arg4[%c0_7, %c0_8] : memref<512x128xbf16, #tpu.memory_space<vmem>>, vector<512x128xbf16>
    %cst_9 = arith.constant dense<0.000000e+00> : vector<16x128xf32>
    %13 = tpu.matmul %11, %12, %cst_9 {dimension_numbers = #tpu.dot_dimension_numbers<[1], [0], [0], [1], [0, 0, 1, 1], [], []>} : vector<16x512xbf16>, vector<512x128xbf16>, vector<16x128xf32> -> vector<16x128xf32>
    %c0_10 = arith.constant 0 : index
    %c0_11 = arith.constant 0 : index
    %14 = vector.load %arg5[%c0_10, %c0_11] : memref<1x128xf32, #tpu.memory_space<vmem>>, vector<1x128xf32>
    %15 = vector.broadcast %14 : vector<1x128xf32> to vector<16x128xf32>
    %16 = arith.addf %13, %15 : vector<16x128xf32>
    %c0_12 = arith.constant 0 : index
    %c0_13 = arith.constant 0 : index
    %17 = vector.load %arg6[%c0_12, %c0_13] : memref<16x128xf32, #tpu.memory_space<vmem>>, vector<16x128xf32>
    tpu.vector_store %arg6[%c0_12, %c0_13], %16 {strides = array<i32>} : memref<16x128xf32, #tpu.memory_space<vmem>>, vector<16x128xf32>,
    return
  }
  func.func @transform_0(%arg0: i32) -> (i32, i32) {
    %c0_i32 = arith.constant 0 : i32
    %c0_i32_0 = arith.constant 0 : i32
    return %arg0, %c0_i32 : i32, i32
  }
  func.func @transform_1(%arg0: i32) -> (i32, i32) {
    %c0_i32 = arith.constant 0 : i32
    %c0_i32_0 = arith.constant 0 : i32
    %c0_i32_1 = arith.constant 0 : i32
    return %c0_i32, %c0_i32_0 : i32, i32
  }
  func.func @transform_2(%arg0: i32) -> (i32, i32) {
    %c0_i32 = arith.constant 0 : i32
    %c0_i32_0 = arith.constant 0 : i32
    %c0_i32_1 = arith.constant 0 : i32
    return %c0_i32, %c0_i32_0 : i32, i32
  }
  func.func @transform_3(%arg0: i32) -> (i32, i32) {
    %c0_i32 = arith.constant 0 : i32
    %c0_i32_0 = arith.constant 0 : i32
    %c0_i32_1 = arith.constant 0 : i32
    return %c0_i32, %c0_i32_0 : i32, i32
  }
  func.func @transform_4(%arg0: i32) -> (i32, i32) {
    %c0_i32 = arith.constant 0 : i32
    %c0_i32_0 = arith.constant 0 : i32
    %c0_i32_1 = arith.constant 0 : i32
    return %c0_i32, %c0_i32_0 : i32, i32
  }
  func.func @transform_5(%arg0: i32) -> (i32, i32) {
    %c0_i32 = arith.constant 0 : i32
    %c0_i32_0 = arith.constant 0 : i32
    return %arg0, %c0_i32 : i32, i32
  }
}

</mosaic_0001>

<bundles_post_ra>
// kernel: dqn_forward.4
= control target key start
LH: loop header
LB: loop body
LE: loop exit
PB: predicated region body
PF: predicated region fallthrough
CT: control target
= control target key end

     0   :  { %s1232_s12 = smov 0   ;;  %s1422_s0 = inlined_call_operand.vmem [shape: bf16[1024,256], index: 0, kind: input, shape index: {}]   ;;  %s1423_s1 = inlined_call_operand.vmem [shape: bf16[256,128], index: 1, kind: input, shape index: {}]   ;;  %s1424_s2 = inlined_call_operand.vmem [shape: f32[1,128], index: 2, kind: input, shape index: {}]   ;;  %s1425_s3 = inlined_call_operand.vmem [shape: bf16[1024,128], index: 3, kind: output, shape index: {}]  }
   0x1 LB: > { %s831_s13 = sadd.s32 4294967295, %s1210_s12   ;;  %p835_p0 = scmp.ge.s32.totalorder %s1210_s12, 1  ;;  %s1210_s12 = sphi %s1232_s12, %s13_s12  }
   0x2   : > { %p139_p1 = scmp.lt.s32.totalorder %s1210_s12, 5 }
   0x4   : > { %p140_p2 = pnand %p835_p0, %p139_p1 }
   0x5   : > { %s836_s26 = sshll.u32 (!%p140_p2), %s831_s13, 5 }
   0x6   : > { %143 = sbr.rel (%p140_p2) target bundleno = 304 (0x130), region = 32  ;;  %p165_p3 = scmp.lt.s32.totalorder (!%p140_p2), %s836_s26, 127 }
   0xb   : > { %v1075_v0 = vld [vmem:[%s1423_s1 + $0x38] sm:$0xff]  ;;  %v1074_v2 = vld [vmem:[%s1423_s1 + $0x30] sm:$0xff]  ;;  %v1073_v4 = vld [vmem:[%s1423_s1 + $0x28] sm:$0xff]  ;;  %s1427_s26 = smov (!%p165_p3, %s836_s26), 127 }
   0xc   : > { %v1083_v1 = vld [vmem:[%s1423_s1 + $0x78] sm:$0xff]  ;;  %501 = vmatpush.bf16.msra.mxu0 %v1075_v0  ;;  %1179 = vmatpush.bf16.msra.mxu2 %v1075_v0  ;;  %v1082_v3 = vld [vmem:[%s1423_s1 + $0x70] sm:$0xff]  ;;  %v1081_v5 = vld [vmem:[%s1423_s1 + $0x68] sm:$0xff]  ;;  %s1035_s13 = sshll.u32 %s1427_s26, 3  ;;  %s840_s28 = sshll.u32 %s1427_s26, 2 }
   0xd   : > { %590 = vmatpush.bf16.msra.mxu1 %v1083_v1  ;;  %1187 = vmatpush.bf16.msra.mxu3 %v1083_v1  ;;  %v1072_v6 = vld [vmem:[%s1423_s1 + $0x20] sm:$0xff]  ;;  %v1071_v8 = vld [vmem:[%s1423_s1 + $0x18] sm:$0xff]  ;;  %v1070_v10 = vld [vmem:[%s1423_s1 + $0x10] sm:$0xff]  ;;  %s1285_s18 = scalar_lea.vmem %s1422_s0, %s1035_s13  ;;  %s1372_s4 = scalar_lea.vmem %s1425_s3, %s840_s28 }
   0xe   : > { %v1080_v7 = vld [vmem:[%s1423_s1 + $0x60] sm:$0xff]  ;;  %v1079_v9 = vld [vmem:[%s1423_s1 + $0x58] sm:$0xff]  ;;  %v1078_v11 = vld [vmem:[%s1423_s1 + $0x50] sm:$0xff] }
   0xf   : > { %v1069_v12 = vld [vmem:[%s1423_s1 + $0x8] sm:$0xff]  ;;  %v1068_v14 = vld [vmem:[%s1423_s1] sm:$0xff]  ;;  %v851_v28 = vld [vmem:[%s1285_s18 + $0x10] sm:$0xf] }
  0x10   : > { %502 = vmatpush.bf16.msra.mxu0 %v1074_v2  ;;  %1180 = vmatpush.bf16.msra.mxu2 %v1074_v2  ;;  %v1077_v13 = vld [vmem:[%s1423_s1 + $0x48] sm:$0xff]  ;;  %v1076_v15 = vld [vmem:[%s1423_s1 + $0x40] sm:$0xff]  ;;  %v1039_v29 = vld [vmem:[%s1285_s18 + $0x14] sm:$0xf0] }
  0x11   : > { %591 = vmatpush.bf16.msra.mxu1 %v1082_v3  ;;  %1188 = vmatpush.bf16.msra.mxu3 %v1082_v3  ;;  %v843_v16 = vld [vmem:[%s1285_s18] sm:$0xf]  ;;  %v1037_v17 = vld [vmem:[%s1285_s18 + $0x4] sm:$0xf0]  ;;  %v1036_v20 = vld [vmem:[%s1285_s18 + $0x4] sm:$0xf]  ;;  %v852_v36 = vor.u32 %v1039_v29, %v851_v28 }
  0x12   : > { %v907_v18 = vld [vmem:[%s1285_s18 + $0x80] sm:$0xf]  ;;  %v1053_v19 = vld [vmem:[%s1285_s18 + $0x84] sm:$0xf0]  ;;  %v845_v21 = vld [vmem:[%s1285_s18 + $0x8] sm:$0xf0]  ;;  %v844_v24 = vor.u32 %v1037_v17, %v843_v16 }
  0x13   : > { %v1052_v22 = vld [vmem:[%s1285_s18 + $0x84] sm:$0xf]  ;;  %v909_v23 = vld [vmem:[%s1285_s18 + $0x88] sm:$0xf0]  ;;  %v908_v25 = vor.u32 %v1053_v19, %v907_v18  ;;  %v848_v26 = vor.u32 %v1036_v20, %v845_v21  ;;  %v915_v30 = vld [vmem:[%s1285_s18 + $0x90] sm:$0xf] }
  0x14   : > { %503 = vmatpush.bf16.msra.mxu0 %v1073_v4  ;;  %1181 = vmatpush.bf16.msra.mxu2 %v1073_v4  ;;  %v912_v27 = vor.u32 %v1052_v22, %v909_v23  ;;  %v1055_v31 = vld [vmem:[%s1285_s18 + $0x94] sm:$0xf0]  ;;  %v1038_v32 = vld [vmem:[%s1285_s18 + $0x14] sm:$0xf]  ;;  %v853_v33 = vld [vmem:[%s1285_s18 + $0x18] sm:$0xf0] }
  0x15   : > { %592 = vmatpush.bf16.msra.mxu1 %v1081_v5  ;;  %1189 = vmatpush.bf16.msra.mxu3 %v1081_v5  ;;  %v1054_v34 = vld [vmem:[%s1285_s18 + $0x94] sm:$0xf]  ;;  %v917_v35 = vld [vmem:[%s1285_s18 + $0x98] sm:$0xf0]  ;;  %v916_v37 = vor.u32 %v1055_v31, %v915_v30  ;;  %v856_v38 = vor.u32 %v1038_v32, %v853_v33  ;;  %v859_v40 = vld [vmem:[%s1285_s18 + $0x20] sm:$0xf] }
  0x16   : > { %v920_v39 = vor.u32 %v1054_v34, %v917_v35  ;;  %v1041_v41 = vld [vmem:[%s1285_s18 + $0x24] sm:$0xf0]  ;;  %v923_v42 = vld [vmem:[%s1285_s18 + $0xa0] sm:$0xf]  ;;  %v1040_v44 = vld [vmem:[%s1285_s18 + $0x24] sm:$0xf] }
  0x17   : > { %v1057_v43 = vld [vmem:[%s1285_s18 + $0xa4] sm:$0xf0]  ;;  %v861_v45 = vld [vmem:[%s1285_s18 + $0x28] sm:$0xf0]  ;;  %v1056_v46 = vld [vmem:[%s1285_s18 + $0xa4] sm:$0xf]  ;;  %v860_v48 = vor.u32 %v1041_v41, %v859_v40 }
  0x18   : > { %504 = vmatpush.bf16.msra.mxu0 %v1072_v6  ;;  %1182 = vmatpush.bf16.msra.mxu2 %v1072_v6  ;;  %v925_v47 = vld [vmem:[%s1285_s18 + $0xa8] sm:$0xf0]  ;;  %v924_v49 = vor.u32 %v1057_v43, %v923_v42  ;;  %v864_v50 = vor.u32 %v1040_v44, %v861_v45  ;;  %v867_v52 = vld [vmem:[%s1285_s18 + $0x30] sm:$0xf]  ;;  %v1043_v53 = vld [vmem:[%s1285_s18 + $0x34] sm:$0xf0] }
  0x19   : > { %593 = vmatpush.bf16.msra.mxu1 %v1080_v7  ;;  %1190 = vmatpush.bf16.msra.mxu3 %v1080_v7  ;;  %v928_v51 = vor.u32 %v1056_v46, %v925_v47  ;;  %v931_v54 = vld [vmem:[%s1285_s18 + $0xb0] sm:$0xf]  ;;  %v1059_v55 = vld [vmem:[%s1285_s18 + $0xb4] sm:$0xf0]  ;;  %v1042_v56 = vld [vmem:[%s1285_s18 + $0x34] sm:$0xf]  ;;  %v868_v60 = vor.u32 %v1043_v53, %v867_v52 }
  0x1a   : > { %v869_v57 = vld [vmem:[%s1285_s18 + $0x38] sm:$0xf0]  ;;  %v1058_v58 = vld [vmem:[%s1285_s18 + $0xb4] sm:$0xf]  ;;  %v932_v61 = vor.u32 %v1059_v55, %v931_v54  ;;  %v875_v0 = vld [vmem:[%s1285_s18 + $0x40] sm:$0xf] }
  0x1b   : > { %v933_v59 = vld [vmem:[%s1285_s18 + $0xb8] sm:$0xf0]  ;;  %v872_v62 = vor.u32 %v1042_v56, %v869_v57  ;;  %v1045_v1 = vld [vmem:[%s1285_s18 + $0x44] sm:$0xf0]  ;;  %v939_v2 = vld [vmem:[%s1285_s18 + $0xc0] sm:$0xf] }
  0x1c   : > { %505 = vmatpush.bf16.msra.mxu0 %v1071_v8  ;;  %1183 = vmatpush.bf16.msra.mxu2 %v1071_v8  ;;  %v936_v63 = vor.u32 %v1058_v58, %v933_v59  ;;  %v1061_v3 = vld [vmem:[%s1285_s18 + $0xc4] sm:$0xf0]  ;;  %v1044_v4 = vld [vmem:[%s1285_s18 + $0x44] sm:$0xf]  ;;  %v877_v5 = vld [vmem:[%s1285_s18 + $0x48] sm:$0xf0]  ;;  %v876_v8 = vor.u32 %v1045_v1, %v875_v0 }
  0x1d   : > { %594 = vmatpush.bf16.msra.mxu1 %v1079_v9  ;;  %1191 = vmatpush.bf16.msra.mxu3 %v1079_v9  ;;  %v1060_v6 = vld [vmem:[%s1285_s18 + $0xc4] sm:$0xf]  ;;  %v941_v7 = vld [vmem:[%s1285_s18 + $0xc8] sm:$0xf0]  ;;  %v940_v9 = vor.u32 %v1061_v3, %v939_v2  ;;  %v1046_v16 = vld [vmem:[%s1285_s18 + $0x54] sm:$0xf] }
  0x1e   : > { %v885_v17 = vld [vmem:[%s1285_s18 + $0x58] sm:$0xf0]  ;;  %v1062_v18 = vld [vmem:[%s1285_s18 + $0xd4] sm:$0xf]  ;;  %v1048_v28 = vld [vmem:[%s1285_s18 + $0x64] sm:$0xf] }
  0x1f   : > { %v949_v19 = vld [vmem:[%s1285_s18 + $0xd8] sm:$0xf0]  ;;  %v888_v22 = vor.u32 %v1046_v16, %v885_v17  ;;  %v893_v29 = vld [vmem:[%s1285_s18 + $0x68] sm:$0xf0]  ;;  %v1064_v30 = vld [vmem:[%s1285_s18 + $0xe4] sm:$0xf] }
  0x20   : > { %506 = vmatpush.bf16.msra.mxu0 %v1070_v10  ;;  %1184 = vmatpush.bf16.msra.mxu2 %v1070_v10  ;;  %v880_v10 = vor.u32 %v1044_v4, %v877_v5  ;;  %v952_v23 = vor.u32 %v1062_v18, %v949_v19  ;;  %v957_v31 = vld [vmem:[%s1285_s18 + $0xe8] sm:$0xf0]  ;;  %v896_v34 = vor.u32 %v1048_v28, %v893_v29  ;;  %v1050_v40 = vld [vmem:[%s1285_s18 + $0x74] sm:$0xf]  ;;  %v901_v41 = vld [vmem:[%s1285_s18 + $0x78] sm:$0xf0] }
  0x21   : > { %595 = vmatpush.bf16.msra.mxu1 %v1078_v11  ;;  %1192 = vmatpush.bf16.msra.mxu3 %v1078_v11  ;;  %v944_v11 = vor.u32 %v1060_v6, %v941_v7  ;;  %v960_v35 = vor.u32 %v1064_v30, %v957_v31  ;;  %v1066_v42 = vld [vmem:[%s1285_s18 + $0xf4] sm:$0xf]  ;;  %v965_v43 = vld [vmem:[%s1285_s18 + $0xf8] sm:$0xf0]  ;;  %v904_v46 = vor.u32 %v1050_v40, %v901_v41 }
  0x22   : > { %v968_v47 = vor.u32 %v1066_v42, %v965_v43 }
  0x24   : > { %507 = vmatpush.bf16.msra.mxu0 %v1069_v12  ;;  %1185 = vmatpush.bf16.msra.mxu2 %v1069_v12  ;;  %v883_v12 = vld [vmem:[%s1285_s18 + $0x50] sm:$0xf] }
  0x25   : > { %596 = vmatpush.bf16.msra.mxu1 %v1077_v13  ;;  %1193 = vmatpush.bf16.msra.mxu3 %v1077_v13  ;;  %v1047_v13 = vld [vmem:[%s1285_s18 + $0x54] sm:$0xf0] }
  0x26   : > { %v884_v20 = vor.u32 %v1047_v13, %v883_v12 }
  0x28   : > { %508 = vmatpush.bf16.msra.mxu0 %v1068_v14  ;;  %1186 = vmatpush.bf16.msra.mxu2 %v1068_v14  ;;  %v947_v14 = vld [vmem:[%s1285_s18 + $0xd0] sm:$0xf] }
  0x29   : > { %597 = vmatpush.bf16.msra.mxu1 %v1076_v15  ;;  %1194 = vmatpush.bf16.msra.mxu3 %v1076_v15  ;;  %v1063_v15 = vld [vmem:[%s1285_s18 + $0xd4] sm:$0xf0] }
  0x2a   : > { %v948_v21 = vor.u32 %v1063_v15, %v947_v14 }
  0x2b   : > { %509 = vmatmul.bf16.vlgmr.msra.gmra.mxu0 %v844_v24  ;;  %549 = vmatmul.bf16.vlgmr.msra.gmra.mxu2 %v908_v25  ;;  %v891_v24 = vld [vmem:[%s1285_s18 + $0x60] sm:$0xf]  ;;  %v1049_v25 = vld [vmem:[%s1285_s18 + $0x64] sm:$0xf0] }
  0x2c   : > { %598 = vmatmul.bf16.vlgmr.msra.gmra.mxu1 %v848_v26  ;;  %638 = vmatmul.bf16.vlgmr.msra.gmra.mxu3 %v912_v27  ;;  %v955_v26 = vld [vmem:[%s1285_s18 + $0xe0] sm:$0xf]  ;;  %v1065_v27 = vld [vmem:[%s1285_s18 + $0xe4] sm:$0xf0]  ;;  %v892_v32 = vor.u32 %v1049_v25, %v891_v24 }
  0x2d   : > { %v956_v33 = vor.u32 %v1065_v27, %v955_v26 }
  0x3b   : > { %514 = vmatmul.bf16.gmra.mxu0 %v852_v36  ;;  %554 = vmatmul.bf16.gmra.mxu2 %v916_v37  ;;  %v899_v36 = vld [vmem:[%s1285_s18 + $0x70] sm:$0xf]  ;;  %v1051_v37 = vld [vmem:[%s1285_s18 + $0x74] sm:$0xf0] }
  0x3c   : > { %603 = vmatmul.bf16.gmra.mxu1 %v856_v38  ;;  %643 = vmatmul.bf16.gmra.mxu3 %v920_v39  ;;  %v963_v38 = vld [vmem:[%s1285_s18 + $0xf0] sm:$0xf]  ;;  %v1067_v39 = vld [vmem:[%s1285_s18 + $0xf4] sm:$0xf0]  ;;  %v900_v44 = vor.u32 %v1051_v37, %v899_v36 }
  0x3d   : > { %v964_v45 = vor.u32 %v1067_v39, %v963_v38 }
  0x4b   : > { %519 = vmatmul.bf16.gmra.mxu0 %v860_v48  ;;  %559 = vmatmul.bf16.gmra.mxu2 %v924_v49  ;;  %v1363_v49 = vld [vmem:[%s1424_s2] ss:$0 sm:$0xff] }
  0x4c   : > { %608 = vmatmul.bf16.gmra.mxu1 %v864_v50  ;;  %648 = vmatmul.bf16.gmra.mxu3 %v928_v51 }
  0x5b   : > { %524 = vmatmul.bf16.gmra.mxu0 %v868_v60  ;;  %564 = vmatmul.bf16.gmra.mxu2 %v932_v61 }
  0x5c   : > { %613 = vmatmul.bf16.gmra.mxu1 %v872_v62  ;;  %653 = vmatmul.bf16.gmra.mxu3 %v936_v63 }
  0x6b   : > { %529 = vmatmul.bf16.gmra.mxu0 %v876_v8  ;;  %569 = vmatmul.bf16.gmra.mxu2 %v940_v9 }
  0x6c   : > { %618 = vmatmul.bf16.gmra.mxu1 %v880_v10  ;;  %658 = vmatmul.bf16.gmra.mxu3 %v944_v11 }
  0x7b   : > { %534 = vmatmul.bf16.gmra.mxu0 %v884_v20  ;;  %574 = vmatmul.bf16.gmra.mxu2 %v948_v21 }
  0x7c   : > { %623 = vmatmul.bf16.gmra.mxu1 %v888_v22  ;;  %663 = vmatmul.bf16.gmra.mxu3 %v952_v23 }
  0x8b   : > { %539 = vmatmul.bf16.gmra.mxu0 %v892_v32  ;;  %579 = vmatmul.bf16.gmra.mxu2 %v956_v33 }
  0x8c   : > { %628 = vmatmul.bf16.gmra.mxu1 %v896_v34  ;;  %668 = vmatmul.bf16.gmra.mxu3 %v960_v35 }
  0x9b   : > { %544 = vmatmul.bf16.gmra.mxu0 %v900_v44  ;;  %584 = vmatmul.bf16.gmra.mxu2 %v964_v45 }
  0x9c   : > { %633 = vmatmul.bf16.gmra.mxu1 %v904_v46  ;;  %673 = vmatmul.bf16.gmra.mxu3 %v968_v47 }
  0xa8   : > { %v510_v48 = vpop.f32.mrf.mxu0 }
  0xa9   : > { %v599_v50 = vpop.f32.mrf.mxu1  ;;  %v511_v51 = vadd.f32 %v1363_v49, %v510_v48 }
  0xab   : > { %v600_v55 = vadd.f32 %v599_v50, %v511_v51 }
  0xad   : > { %v679_v60 = vmax.f32 %v600_v55, 0.0 }
  0xae   : > { %v550_v52 = vpop.f32.mrf.mxu2 }
  0xaf   : > { %v639_v53 = vpop.f32.mrf.mxu3  ;;  %v551_v58 = vadd.f32 %v1363_v49, %v550_v52 }
  0xb0   : > { %v512_v54 = vpop.f32.mrf.mxu0 }
  0xb1   : > { %v513_v56 = vadd.f32 %v1363_v49, %v512_v54  ;;  %v601_v57 = vpop.f32.mrf.mxu1  ;;  %v640_v63 = vadd.f32 %v639_v53, %v551_v58 }
  0xb3   : > { %v602_v59 = vadd.f32 %v601_v57, %v513_v56  ;;  %v695_v6 = vmax.f32 %v640_v63, 0.0 }
  0xb5   : > { %v680_v61 = vmax.f32 %v602_v59, 0.0 }
  0xb6   : > { %v552_v62 = vpop.f32.mrf.mxu2 }
  0xb7   : > { %v1087_v0 = vpack.c.bf16 %v680_v61, %v679_v60  ;;  %v553_v1 = vadd.f32 %v1363_v49, %v552_v62  ;;  %v641_v2 = vpop.f32.mrf.mxu3 }
  0xb8   : > { %v515_v3 = vpop.f32.mrf.mxu0 }
  0xb9   : > { %1088 = vst [vmem:[%s1372_s4] sm:$0xff] %v1087_v0   ;;  %v642_v4 = vadd.f32 %v641_v2, %v553_v1  ;;  %v604_v5 = vpop.f32.mrf.mxu1  ;;  %v516_v9 = vadd.f32 %v1363_v49, %v515_v3 }
  0xbb   : > { %v696_v7 = vmax.f32 %v642_v4, 0.0  ;;  %v605_v13 = vadd.f32 %v604_v5, %v516_v9 }
  0xbd   : > { %v1127_v8 = vpack.c.bf16 %v696_v7, %v695_v6  ;;  %v681_v18 = vmax.f32 %v605_v13, 0.0 }
  0xbe   : > { %v555_v10 = vpop.f32.mrf.mxu2 }
  0xbf   : > { %1171 = vst [vmem:[%s1372_s4 + $0x40] sm:$0xff] %v1127_v8   ;;  %v644_v11 = vpop.f32.mrf.mxu3  ;;  %v556_v16 = vadd.f32 %v1363_v49, %v555_v10 }
  0xc0   : > { %v517_v12 = vpop.f32.mrf.mxu0 }
  0xc1   : > { %v518_v14 = vadd.f32 %v1363_v49, %v517_v12  ;;  %v606_v15 = vpop.f32.mrf.mxu1  ;;  %v645_v21 = vadd.f32 %v644_v11, %v556_v16 }
  0xc3   : > { %v607_v17 = vadd.f32 %v606_v15, %v518_v14  ;;  %v697_v28 = vmax.f32 %v645_v21, 0.0 }
  0xc5   : > { %v682_v19 = vmax.f32 %v607_v17, 0.0 }
  0xc6   : > { %v557_v20 = vpop.f32.mrf.mxu2 }
  0xc7   : > { %v1092_v22 = vpack.c.bf16 %v682_v19, %v681_v18  ;;  %v558_v23 = vadd.f32 %v1363_v49, %v557_v20  ;;  %v646_v24 = vpop.f32.mrf.mxu3 }
  0xc8   : > { %v520_v25 = vpop.f32.mrf.mxu0 }
  0xc9   : > { %1164 = vst [vmem:[%s1372_s4 + $0x8] sm:$0xff] %v1092_v22   ;;  %v647_v26 = vadd.f32 %v646_v24, %v558_v23  ;;  %v609_v27 = vpop.f32.mrf.mxu1  ;;  %v521_v31 = vadd.f32 %v1363_v49, %v520_v25 }
  0xcb   : > { %v698_v29 = vmax.f32 %v647_v26, 0.0  ;;  %v610_v35 = vadd.f32 %v609_v27, %v521_v31 }
  0xcd   : > { %v1132_v30 = vpack.c.bf16 %v698_v29, %v697_v28  ;;  %v683_v40 = vmax.f32 %v610_v35, 0.0 }
  0xce   : > { %v560_v32 = vpop.f32.mrf.mxu2 }
  0xcf   : > { %1172 = vst [vmem:[%s1372_s4 + $0x48] sm:$0xff] %v1132_v30   ;;  %v649_v33 = vpop.f32.mrf.mxu3  ;;  %v561_v38 = vadd.f32 %v1363_v49, %v560_v32 }
  0xd0   : > { %v522_v34 = vpop.f32.mrf.mxu0 }
  0xd1   : > { %v523_v36 = vadd.f32 %v1363_v49, %v522_v34  ;;  %v611_v37 = vpop.f32.mrf.mxu1  ;;  %v650_v43 = vadd.f32 %v649_v33, %v561_v38 }
  0xd3   : > { %v612_v39 = vadd.f32 %v611_v37, %v523_v36  ;;  %v699_v51 = vmax.f32 %v650_v43, 0.0 }
  0xd5   : > { %v684_v41 = vmax.f32 %v612_v39, 0.0 }
  0xd6   : > { %v562_v42 = vpop.f32.mrf.mxu2 }
  0xd7   : > { %v1097_v44 = vpack.c.bf16 %v684_v41, %v683_v40  ;;  %v563_v45 = vadd.f32 %v1363_v49, %v562_v42  ;;  %v651_v46 = vpop.f32.mrf.mxu3 }
  0xd8   : > { %v525_v47 = vpop.f32.mrf.mxu0 }
  0xd9   : > { %1165 = vst [vmem:[%s1372_s4 + $0x10] sm:$0xff] %v1097_v44   ;;  %v652_v48 = vadd.f32 %v651_v46, %v563_v45  ;;  %v614_v50 = vpop.f32.mrf.mxu1  ;;  %v526_v54 = vadd.f32 %v1363_v49, %v525_v47 }
  0xdb   : > { %v700_v52 = vmax.f32 %v652_v48, 0.0  ;;  %v615_v58 = vadd.f32 %v614_v50, %v526_v54 }
  0xdd   : > { %v1137_v53 = vpack.c.bf16 %v700_v52, %v699_v51  ;;  %v685_v63 = vmax.f32 %v615_v58, 0.0 }
  0xde   : > { %v565_v55 = vpop.f32.mrf.mxu2 }
  0xdf   : > { %1173 = vst [vmem:[%s1372_s4 + $0x50] sm:$0xff] %v1137_v53   ;;  %v654_v56 = vpop.f32.mrf.mxu3  ;;  %v566_v61 = vadd.f32 %v1363_v49, %v565_v55 }
  0xe0   : > { %v527_v57 = vpop.f32.mrf.mxu0 }
  0xe1   : > { %v528_v59 = vadd.f32 %v1363_v49, %v527_v57  ;;  %v616_v60 = vpop.f32.mrf.mxu1  ;;  %v655_v2 = vadd.f32 %v654_v56, %v566_v61 }
  0xe3   : > { %v617_v62 = vadd.f32 %v616_v60, %v528_v59  ;;  %v701_v9 = vmax.f32 %v655_v2, 0.0 }
  0xe5   : > { %v686_v0 = vmax.f32 %v617_v62, 0.0 }
  0xe6   : > { %v567_v1 = vpop.f32.mrf.mxu2 }
  0xe7   : > { %v1102_v3 = vpack.c.bf16 %v686_v0, %v685_v63  ;;  %v568_v4 = vadd.f32 %v1363_v49, %v567_v1  ;;  %v656_v5 = vpop.f32.mrf.mxu3 }
  0xe8   : > { %v530_v6 = vpop.f32.mrf.mxu0 }
  0xe9   : > { %1166 = vst [vmem:[%s1372_s4 + $0x18] sm:$0xff] %v1102_v3   ;;  %v657_v7 = vadd.f32 %v656_v5, %v568_v4  ;;  %v619_v8 = vpop.f32.mrf.mxu1  ;;  %v531_v12 = vadd.f32 %v1363_v49, %v530_v6 }
  0xeb   : > { %v702_v10 = vmax.f32 %v657_v7, 0.0  ;;  %v620_v16 = vadd.f32 %v619_v8, %v531_v12 }
  0xed   : > { %v1142_v11 = vpack.c.bf16 %v702_v10, %v701_v9  ;;  %v687_v21 = vmax.f32 %v620_v16, 0.0 }
  0xee   : > { %v570_v13 = vpop.f32.mrf.mxu2 }
  0xef   : > { %1174 = vst [vmem:[%s1372_s4 + $0x58] sm:$0xff] %v1142_v11   ;;  %v659_v14 = vpop.f32.mrf.mxu3  ;;  %v571_v19 = vadd.f32 %v1363_v49, %v570_v13 }
  0xf0   : > { %v532_v15 = vpop.f32.mrf.mxu0 }
  0xf1   : > { %v533_v17 = vadd.f32 %v1363_v49, %v532_v15  ;;  %v621_v18 = vpop.f32.mrf.mxu1  ;;  %v660_v24 = vadd.f32 %v659_v14, %v571_v19 }
  0xf3   : > { %v622_v20 = vadd.f32 %v621_v18, %v533_v17  ;;  %v703_v31 = vmax.f32 %v660_v24, 0.0 }
  0xf5   : > { %v688_v22 = vmax.f32 %v622_v20, 0.0 }
  0xf6   : > { %v572_v23 = vpop.f32.mrf.mxu2 }
  0xf7   : > { %v1107_v25 = vpack.c.bf16 %v688_v22, %v687_v21  ;;  %v573_v26 = vadd.f32 %v1363_v49, %v572_v23  ;;  %v661_v27 = vpop.f32.mrf.mxu3 }
  0xf8   : > { %v535_v28 = vpop.f32.mrf.mxu0 }
  0xf9   : > { %1167 = vst [vmem:[%s1372_s4 + $0x20] sm:$0xff] %v1107_v25   ;;  %v662_v29 = vadd.f32 %v661_v27, %v573_v26  ;;  %v624_v30 = vpop.f32.mrf.mxu1  ;;  %v536_v34 = vadd.f32 %v1363_v49, %v535_v28 }
  0xfb   : > { %v704_v32 = vmax.f32 %v662_v29, 0.0  ;;  %v625_v38 = vadd.f32 %v624_v30, %v536_v34 }
  0xfd   : > { %v1147_v33 = vpack.c.bf16 %v704_v32, %v703_v31  ;;  %v689_v43 = vmax.f32 %v625_v38, 0.0 }
  0xfe   : > { %v575_v35 = vpop.f32.mrf.mxu2 }
  0xff   : > { %1175 = vst [vmem:[%s1372_s4 + $0x60] sm:$0xff] %v1147_v33   ;;  %v664_v36 = vpop.f32.mrf.mxu3  ;;  %v576_v41 = vadd.f32 %v1363_v49, %v575_v35 }
 0x100   : > { %v537_v37 = vpop.f32.mrf.mxu0 }
 0x101   : > { %v538_v39 = vadd.f32 %v1363_v49, %v537_v37  ;;  %v626_v40 = vpop.f32.mrf.mxu1  ;;  %v665_v46 = vadd.f32 %v664_v36, %v576_v41 }
 0x103   : > { %v627_v42 = vadd.f32 %v626_v40, %v538_v39  ;;  %v705_v54 = vmax.f32 %v665_v46, 0.0 }
 0x105   : > { %v690_v44 = vmax.f32 %v627_v42, 0.0 }
 0x106   : > { %v577_v45 = vpop.f32.mrf.mxu2 }
 0x107   : > { %v1112_v47 = vpack.c.bf16 %v690_v44, %v689_v43  ;;  %v578_v48 = vadd.f32 %v1363_v49, %v577_v45  ;;  %v666_v50 = vpop.f32.mrf.mxu3 }
 0x108   : > { %v540_v51 = vpop.f32.mrf.mxu0 }
 0x109   : > { %1168 = vst [vmem:[%s1372_s4 + $0x28] sm:$0xff] %v1112_v47   ;;  %v667_v52 = vadd.f32 %v666_v50, %v578_v48  ;;  %v629_v53 = vpop.f32.mrf.mxu1  ;;  %v541_v57 = vadd.f32 %v1363_v49, %v540_v51 }
 0x10b   : > { %v706_v55 = vmax.f32 %v667_v52, 0.0  ;;  %v630_v61 = vadd.f32 %v629_v53, %v541_v57 }
 0x10d   : > { %v1152_v56 = vpack.c.bf16 %v706_v55, %v705_v54  ;;  %v691_v2 = vmax.f32 %v630_v61, 0.0 }
 0x10e   : > { %v580_v58 = vpop.f32.mrf.mxu2 }
 0x10f   : > { %1176 = vst [vmem:[%s1372_s4 + $0x68] sm:$0xff] %v1152_v56   ;;  %v669_v59 = vpop.f32.mrf.mxu3  ;;  %v581_v0 = vadd.f32 %v1363_v49, %v580_v58 }
 0x110   : > { %v542_v60 = vpop.f32.mrf.mxu0 }
 0x111   : > { %v543_v62 = vadd.f32 %v1363_v49, %v542_v60  ;;  %v631_v63 = vpop.f32.mrf.mxu1  ;;  %v670_v5 = vadd.f32 %v669_v59, %v581_v0 }
 0x113   : > { %v632_v1 = vadd.f32 %v631_v63, %v543_v62  ;;  %v707_v12 = vmax.f32 %v670_v5, 0.0 }
 0x115   : > { %v692_v3 = vmax.f32 %v632_v1, 0.0 }
 0x116   : > { %v582_v4 = vpop.f32.mrf.mxu2 }
 0x117   : > { %v1117_v6 = vpack.c.bf16 %v692_v3, %v691_v2  ;;  %v583_v7 = vadd.f32 %v1363_v49, %v582_v4  ;;  %v671_v8 = vpop.f32.mrf.mxu3 }
 0x118   : > { %v545_v9 = vpop.f32.mrf.mxu0 }
 0x119   : > { %1169 = vst [vmem:[%s1372_s4 + $0x30] sm:$0xff] %v1117_v6   ;;  %v672_v10 = vadd.f32 %v671_v8, %v583_v7  ;;  %v634_v11 = vpop.f32.mrf.mxu1  ;;  %v546_v15 = vadd.f32 %v1363_v49, %v545_v9 }
 0x11b   : > { %v708_v13 = vmax.f32 %v672_v10, 0.0  ;;  %v635_v19 = vadd.f32 %v634_v11, %v546_v15 }
 0x11d   : > { %v1157_v14 = vpack.c.bf16 %v708_v13, %v707_v12  ;;  %v693_v24 = vmax.f32 %v635_v19, 0.0 }
 0x11e   : > { %v585_v16 = vpop.f32.mrf.mxu2 }
 0x11f   : > { %1177 = vst [vmem:[%s1372_s4 + $0x70] sm:$0xff] %v1157_v14   ;;  %v674_v17 = vpop.f32.mrf.mxu3  ;;  %v586_v22 = vadd.f32 %v1363_v49, %v585_v16 }
 0x120   : > { %v547_v18 = vpop.f32.mrf.mxu0 }
 0x121   : > { %v548_v20 = vadd.f32 %v1363_v49, %v547_v18  ;;  %v636_v21 = vpop.f32.mrf.mxu1  ;;  %v675_v27 = vadd.f32 %v674_v17, %v586_v22 }
 0x123   : > { %v637_v23 = vadd.f32 %v636_v21, %v548_v20  ;;  %v709_v32 = vmax.f32 %v675_v27, 0.0 }
 0x125   : > { %v694_v25 = vmax.f32 %v637_v23, 0.0 }
 0x126   : > { %v587_v26 = vpop.f32.mrf.mxu2 }
 0x127   : > { %v1122_v28 = vpack.c.bf16 %v694_v25, %v693_v24  ;;  %v588_v29 = vadd.f32 %v1363_v49, %v587_v26  ;;  %v676_v30 = vpop.f32.mrf.mxu3 }
 0x129   : > { %1170 = vst [vmem:[%s1372_s4 + $0x38] sm:$0xff] %v1122_v28   ;;  %v677_v31 = vadd.f32 %v676_v30, %v588_v29 }
 0x12b   : > { %v710_v33 = vmax.f32 %v677_v31, 0.0 }
 0x12d   : > { %v1162_v34 = vpack.c.bf16 %v710_v33, %v709_v32 }
 0x12f   : > { %1178 = vst [vmem:[%s1372_s4 + $0x78] sm:$0xff] %v1162_v34  }
 0x130 PF: > { %s13_s12 = sadd.s32 1, %s1210_s12  }
 0x131   : > { %p10_p4 = scmp.ge.s32.totalorder %s13_s12, 6  }
 0x133   :  { %12 = sbr.rel (!%p10_p4) target bundleno = 1 (0x1), region = 62 }

// kernel: dqn_forward.5
= control target key start
LH: loop header
LB: loop body
LE: loop exit
PB: predicated region body
PF: predicated region fallthrough
CT: control target
= control target key end

     0   :  { %s1750_s1 = inlined_call_operand.vmem [shape: bf16[512,128], index: 1, kind: input, shape index: {}]   ;;  %s1751_s2 = inlined_call_operand.vmem [shape: f32[1,128], index: 2, kind: input, shape index: {}]   ;;  %s1752_s0 = inlined_call_operand.vmem [shape: bf16[176,512], index: 0, kind: input, shape index: {}]   ;;  %s1753_s3 = inlined_call_operand.vmem [shape: bf16[176,128], index: 3, kind: output, shape index: {}]  }
   0x1   :  { %v1219_v0 = vld [vmem:[%s1750_s1 + $0x38] sm:$0xff]  ;;  %v1218_v4 = vld [vmem:[%s1750_s1 + $0x30] sm:$0xff]  ;;  %v1217_v8 = vld [vmem:[%s1750_s1 + $0x28] sm:$0xff] }
   0x2   :  { %v1227_v1 = vld [vmem:[%s1750_s1 + $0x78] sm:$0xff]  ;;  %538 = vmatpush.bf16.msra.mxu0 %v1219_v0  ;;  %v1226_v5 = vld [vmem:[%s1750_s1 + $0x70] sm:$0xff]  ;;  %v1225_v9 = vld [vmem:[%s1750_s1 + $0x68] sm:$0xff] }
   0x3   :  { %v1235_v2 = vld [vmem:[%s1750_s1 + $0xb8] sm:$0xff]  ;;  %602 = vmatpush.bf16.msra.mxu1 %v1227_v1  ;;  %v1234_v6 = vld [vmem:[%s1750_s1 + $0xb0] sm:$0xff]  ;;  %v1233_v10 = vld [vmem:[%s1750_s1 + $0xa8] sm:$0xff] }
   0x4   :  { %v1243_v3 = vld [vmem:[%s1750_s1 + $0xf8] sm:$0xff]  ;;  %666 = vmatpush.bf16.msra.mxu2 %v1235_v2  ;;  %v1242_v7 = vld [vmem:[%s1750_s1 + $0xf0] sm:$0xff]  ;;  %v1241_v11 = vld [vmem:[%s1750_s1 + $0xe8] sm:$0xff] }
   0x5   :  { %730 = vmatpush.bf16.msra.mxu3 %v1243_v3  ;;  %v1216_v12 = vld [vmem:[%s1750_s1 + $0x20] sm:$0xff]  ;;  %v1215_v16 = vld [vmem:[%s1750_s1 + $0x18] sm:$0xff]  ;;  %v1214_v20 = vld [vmem:[%s1750_s1 + $0x10] sm:$0xff] }
   0x6   :  { %539 = vmatpush.bf16.msra.mxu0 %v1218_v4  ;;  %v1224_v13 = vld [vmem:[%s1750_s1 + $0x60] sm:$0xff]  ;;  %v1223_v17 = vld [vmem:[%s1750_s1 + $0x58] sm:$0xff]  ;;  %v1222_v21 = vld [vmem:[%s1750_s1 + $0x50] sm:$0xff] }
   0x7   :  { %603 = vmatpush.bf16.msra.mxu1 %v1226_v5  ;;  %v1232_v14 = vld [vmem:[%s1750_s1 + $0xa0] sm:$0xff]  ;;  %v1231_v18 = vld [vmem:[%s1750_s1 + $0x98] sm:$0xff]  ;;  %v1230_v22 = vld [vmem:[%s1750_s1 + $0x90] sm:$0xff] }
   0x8   :  { %667 = vmatpush.bf16.msra.mxu2 %v1234_v6  ;;  %v1240_v15 = vld [vmem:[%s1750_s1 + $0xe0] sm:$0xff]  ;;  %v1239_v19 = vld [vmem:[%s1750_s1 + $0xd8] sm:$0xff]  ;;  %v1238_v23 = vld [vmem:[%s1750_s1 + $0xd0] sm:$0xff] }
   0x9   :  { %731 = vmatpush.bf16.msra.mxu3 %v1242_v7  ;;  %v1213_v24 = vld [vmem:[%s1750_s1 + $0x8] sm:$0xff]  ;;  %v1212_v28 = vld [vmem:[%s1750_s1] sm:$0xff]  ;;  %v1170_v33 = vld [vmem:[%s1752_s0 + $0xc] sm:$0xf0] }
   0xa   :  { %540 = vmatpush.bf16.msra.mxu0 %v1217_v8  ;;  %v1221_v25 = vld [vmem:[%s1750_s1 + $0x48] sm:$0xff]  ;;  %v1220_v29 = vld [vmem:[%s1750_s1 + $0x40] sm:$0xff]  ;;  %v868_v35 = vld [vmem:[%s1752_s0 + $0x10] sm:$0xf0] }
   0xb   :  { %604 = vmatpush.bf16.msra.mxu1 %v1225_v9  ;;  %v1229_v26 = vld [vmem:[%s1750_s1 + $0x88] sm:$0xff]  ;;  %v1228_v30 = vld [vmem:[%s1750_s1 + $0x80] sm:$0xff]  ;;  %v1171_v37 = vld [vmem:[%s1752_s0 + $0x14] sm:$0xf0] }
   0xc   :  { %668 = vmatpush.bf16.msra.mxu2 %v1233_v10  ;;  %v1237_v27 = vld [vmem:[%s1750_s1 + $0xc8] sm:$0xff]  ;;  %v1236_v31 = vld [vmem:[%s1750_s1 + $0xc0] sm:$0xff]  ;;  %v876_v39 = vld [vmem:[%s1752_s0 + $0x18] sm:$0xf0] }
   0xd   :  { %732 = vmatpush.bf16.msra.mxu3 %v1241_v11  ;;  %v866_v32 = vld [vmem:[%s1752_s0] sm:$0xf]  ;;  %v1168_v34 = vld [vmem:[%s1752_s0 + $0x4] sm:$0xf]  ;;  %v874_v36 = vld [vmem:[%s1752_s0 + $0x8] sm:$0xf] }
   0xe   :  { %541 = vmatpush.bf16.msra.mxu0 %v1216_v12  ;;  %v1169_v38 = vld [vmem:[%s1752_s0 + $0xc] sm:$0xf]  ;;  %v867_v40 = vor.u32 %v1170_v33, %v866_v32  ;;  %v871_v41 = vor.u32 %v1168_v34, %v868_v35  ;;  %v875_v42 = vor.u32 %v1171_v37, %v874_v36  ;;  %v882_v44 = vld [vmem:[%s1752_s0 + $0x20] sm:$0xf]  ;;  %v1174_v45 = vld [vmem:[%s1752_s0 + $0x2c] sm:$0xf0] }
   0xf   :  { %605 = vmatpush.bf16.msra.mxu1 %v1224_v13  ;;  %v879_v43 = vor.u32 %v1169_v38, %v876_v39  ;;  %v1172_v46 = vld [vmem:[%s1752_s0 + $0x24] sm:$0xf]  ;;  %v884_v47 = vld [vmem:[%s1752_s0 + $0x30] sm:$0xf0]  ;;  %v890_v48 = vld [vmem:[%s1752_s0 + $0x28] sm:$0xf]  ;;  %v883_v52 = vor.u32 %v1174_v45, %v882_v44 }
  0x10   :  { %669 = vmatpush.bf16.msra.mxu2 %v1232_v14  ;;  %v1175_v49 = vld [vmem:[%s1752_s0 + $0x34] sm:$0xf0]  ;;  %v1173_v50 = vld [vmem:[%s1752_s0 + $0x2c] sm:$0xf]  ;;  %v892_v51 = vld [vmem:[%s1752_s0 + $0x38] sm:$0xf0]  ;;  %v887_v53 = vor.u32 %v1172_v46, %v884_v47 }
  0x11   :  { %733 = vmatpush.bf16.msra.mxu3 %v1240_v15  ;;  %v891_v54 = vor.u32 %v1175_v49, %v890_v48  ;;  %v895_v55 = vor.u32 %v1173_v50, %v892_v51  ;;  %v898_v56 = vld [vmem:[%s1752_s0 + $0x40] sm:$0xf]  ;;  %v1178_v57 = vld [vmem:[%s1752_s0 + $0x4c] sm:$0xf0]  ;;  %v1176_v58 = vld [vmem:[%s1752_s0 + $0x44] sm:$0xf] }
  0x12   :  { %542 = vmatpush.bf16.msra.mxu0 %v1215_v16  ;;  %v900_v59 = vld [vmem:[%s1752_s0 + $0x50] sm:$0xf0]  ;;  %v906_v60 = vld [vmem:[%s1752_s0 + $0x48] sm:$0xf]  ;;  %v1179_v61 = vld [vmem:[%s1752_s0 + $0x54] sm:$0xf0]  ;;  %v899_v0 = vor.u32 %v1178_v57, %v898_v56 }
  0x13   :  { %606 = vmatpush.bf16.msra.mxu1 %v1223_v17  ;;  %v1177_v62 = vld [vmem:[%s1752_s0 + $0x4c] sm:$0xf]  ;;  %v908_v63 = vld [vmem:[%s1752_s0 + $0x58] sm:$0xf0]  ;;  %v903_v1 = vor.u32 %v1176_v58, %v900_v59  ;;  %v907_v2 = vor.u32 %v1179_v61, %v906_v60  ;;  %v914_v4 = vld [vmem:[%s1752_s0 + $0x60] sm:$0xf] }
  0x14   :  { %670 = vmatpush.bf16.msra.mxu2 %v1231_v18  ;;  %v911_v3 = vor.u32 %v1177_v62, %v908_v63  ;;  %v1182_v5 = vld [vmem:[%s1752_s0 + $0x6c] sm:$0xf0]  ;;  %v1180_v6 = vld [vmem:[%s1752_s0 + $0x64] sm:$0xf]  ;;  %v916_v7 = vld [vmem:[%s1752_s0 + $0x70] sm:$0xf0] }
  0x15   :  { %734 = vmatpush.bf16.msra.mxu3 %v1239_v19  ;;  %v922_v8 = vld [vmem:[%s1752_s0 + $0x68] sm:$0xf]  ;;  %v1183_v9 = vld [vmem:[%s1752_s0 + $0x74] sm:$0xf0]  ;;  %v1181_v10 = vld [vmem:[%s1752_s0 + $0x6c] sm:$0xf]  ;;  %v915_v12 = vor.u32 %v1182_v5, %v914_v4  ;;  %v919_v13 = vor.u32 %v1180_v6, %v916_v7 }
  0x16   :  { %543 = vmatpush.bf16.msra.mxu0 %v1214_v20  ;;  %v924_v11 = vld [vmem:[%s1752_s0 + $0x78] sm:$0xf0]  ;;  %v923_v14 = vor.u32 %v1183_v9, %v922_v8  ;;  %v930_v16 = vld [vmem:[%s1752_s0 + $0x80] sm:$0xf]  ;;  %v1186_v17 = vld [vmem:[%s1752_s0 + $0x8c] sm:$0xf0] }
  0x17   :  { %607 = vmatpush.bf16.msra.mxu1 %v1222_v21  ;;  %v927_v15 = vor.u32 %v1181_v10, %v924_v11  ;;  %v1184_v18 = vld [vmem:[%s1752_s0 + $0x84] sm:$0xf]  ;;  %v932_v19 = vld [vmem:[%s1752_s0 + $0x90] sm:$0xf0]  ;;  %v938_v20 = vld [vmem:[%s1752_s0 + $0x88] sm:$0xf] }
  0x18   :  { %671 = vmatpush.bf16.msra.mxu2 %v1230_v22  ;;  %v1187_v21 = vld [vmem:[%s1752_s0 + $0x94] sm:$0xf0]  ;;  %v1185_v22 = vld [vmem:[%s1752_s0 + $0x8c] sm:$0xf]  ;;  %v954_v32 = vld [vmem:[%s1752_s0 + $0xa8] sm:$0xf] }
  0x19   :  { %735 = vmatpush.bf16.msra.mxu3 %v1238_v23  ;;  %v940_v23 = vld [vmem:[%s1752_s0 + $0x98] sm:$0xf0]  ;;  %v1191_v33 = vld [vmem:[%s1752_s0 + $0xb4] sm:$0xf0]  ;;  %v1189_v34 = vld [vmem:[%s1752_s0 + $0xac] sm:$0xf] }
  0x1a   :  { %544 = vmatpush.bf16.msra.mxu0 %v1213_v24  ;;  %v931_v24 = vor.u32 %v1186_v17, %v930_v16  ;;  %v956_v35 = vld [vmem:[%s1752_s0 + $0xb8] sm:$0xf0]  ;;  %v955_v38 = vor.u32 %v1191_v33, %v954_v32  ;;  %v970_v44 = vld [vmem:[%s1752_s0 + $0xc8] sm:$0xf]  ;;  %v1195_v45 = vld [vmem:[%s1752_s0 + $0xd4] sm:$0xf0] }
  0x1b   :  { %608 = vmatpush.bf16.msra.mxu1 %v1221_v25  ;;  %v935_v25 = vor.u32 %v1184_v18, %v932_v19  ;;  %v959_v39 = vor.u32 %v1189_v34, %v956_v35  ;;  %v1193_v46 = vld [vmem:[%s1752_s0 + $0xcc] sm:$0xf]  ;;  %v972_v47 = vld [vmem:[%s1752_s0 + $0xd8] sm:$0xf0]  ;;  %v971_v50 = vor.u32 %v1195_v45, %v970_v44  ;;  %v986_v56 = vld [vmem:[%s1752_s0 + $0xe8] sm:$0xf] }
  0x1c   :  { %672 = vmatpush.bf16.msra.mxu2 %v1229_v26  ;;  %v939_v26 = vor.u32 %v1187_v21, %v938_v20  ;;  %v975_v51 = vor.u32 %v1193_v46, %v972_v47  ;;  %v1199_v57 = vld [vmem:[%s1752_s0 + $0xf4] sm:$0xf0]  ;;  %v1197_v58 = vld [vmem:[%s1752_s0 + $0xec] sm:$0xf]  ;;  %v988_v59 = vld [vmem:[%s1752_s0 + $0xf8] sm:$0xf0] }
  0x1d   :  { %736 = vmatpush.bf16.msra.mxu3 %v1237_v27  ;;  %v943_v27 = vor.u32 %v1185_v22, %v940_v23  ;;  %v987_v62 = vor.u32 %v1199_v57, %v986_v56  ;;  %v991_v63 = vor.u32 %v1197_v58, %v988_v59  ;;  %v1002_v4 = vld [vmem:[%s1752_s0 + $0x108] sm:$0xf]  ;;  %v1203_v5 = vld [vmem:[%s1752_s0 + $0x114] sm:$0xf0]  ;;  %v1201_v6 = vld [vmem:[%s1752_s0 + $0x10c] sm:$0xf] }
  0x1e   :  { %545 = vmatpush.bf16.msra.mxu0 %v1212_v28  ;;  %v946_v28 = vld [vmem:[%s1752_s0 + $0xa0] sm:$0xf]  ;;  %v1004_v7 = vld [vmem:[%s1752_s0 + $0x118] sm:$0xf0]  ;;  %v1206_v23 = vld [vmem:[%s1752_s0 + $0x12c] sm:$0xf0] }
  0x1f   :  { %609 = vmatpush.bf16.msra.mxu1 %v1220_v29  ;;  %v1190_v29 = vld [vmem:[%s1752_s0 + $0xac] sm:$0xf0]  ;;  %v1645_v10 = vld [vmem:[%s1751_s2] ss:$0 sm:$0xff]  ;;  %v1208_v56 = vld [vmem:[%s1752_s0 + $0x144] sm:$0xf] }
  0x20   :  { %673 = vmatpush.bf16.msra.mxu2 %v1228_v30  ;;  %v1188_v30 = vld [vmem:[%s1752_s0 + $0xa4] sm:$0xf]  ;;  %v947_v36 = vor.u32 %v1190_v29, %v946_v28  ;;  %v1010_v22 = vld [vmem:[%s1752_s0 + $0x120] sm:$0xf]  ;;  %v1207_v28 = vld [vmem:[%s1752_s0 + $0x134] sm:$0xf0] }
  0x21   :  { %737 = vmatpush.bf16.msra.mxu3 %v1236_v31  ;;  %546 = vmatmul.bf16.vlgmr.msra.gmra.mxu0 %v867_v40  ;;  %v948_v31 = vld [vmem:[%s1752_s0 + $0xb0] sm:$0xf0]  ;;  %v962_v40 = vld [vmem:[%s1752_s0 + $0xc0] sm:$0xf]  ;;  %v1205_v29 = vld [vmem:[%s1752_s0 + $0x12c] sm:$0xf]  ;;  %v1011_v34 = vor.u32 %v1206_v23, %v1010_v22 }
  0x22   :  { %610 = vmatmul.bf16.vlgmr.msra.gmra.mxu1 %v871_v41  ;;  %v951_v37 = vor.u32 %v1188_v30, %v948_v31  ;;  %v1194_v41 = vld [vmem:[%s1752_s0 + $0xcc] sm:$0xf0]  ;;  %v1020_v30 = vld [vmem:[%s1752_s0 + $0x138] sm:$0xf0]  ;;  %v1028_v57 = vld [vmem:[%s1752_s0 + $0x150] sm:$0xf0] }
  0x23   :  { %674 = vmatmul.bf16.vlgmr.msra.gmra.mxu2 %v875_v42  ;;  %v1192_v42 = vld [vmem:[%s1752_s0 + $0xc4] sm:$0xf]  ;;  %v963_v48 = vor.u32 %v1194_v41, %v962_v40  ;;  %v1023_v41 = vor.u32 %v1205_v29, %v1020_v30  ;;  %v1034_v58 = vld [vmem:[%s1752_s0 + $0x148] sm:$0xf]  ;;  %v1211_v59 = vld [vmem:[%s1752_s0 + $0x154] sm:$0xf0] }
  0x24   :  { %738 = vmatmul.bf16.vlgmr.msra.gmra.mxu3 %v879_v43  ;;  %v964_v43 = vld [vmem:[%s1752_s0 + $0xd0] sm:$0xf0] }
  0x25   :  { %v967_v49 = vor.u32 %v1192_v42, %v964_v43 }
  0x31   :  { %551 = vmatmul.bf16.gmra.mxu0 %v883_v52  ;;  %v978_v52 = vld [vmem:[%s1752_s0 + $0xe0] sm:$0xf] }
  0x32   :  { %615 = vmatmul.bf16.gmra.mxu1 %v887_v53  ;;  %v1198_v53 = vld [vmem:[%s1752_s0 + $0xec] sm:$0xf0] }
  0x33   :  { %679 = vmatmul.bf16.gmra.mxu2 %v891_v54  ;;  %v1196_v54 = vld [vmem:[%s1752_s0 + $0xe4] sm:$0xf]  ;;  %v979_v60 = vor.u32 %v1198_v53, %v978_v52  ;;  %v1026_v53 = vld [vmem:[%s1752_s0 + $0x140] sm:$0xf] }
  0x34   :  { %743 = vmatmul.bf16.gmra.mxu3 %v895_v55  ;;  %v980_v55 = vld [vmem:[%s1752_s0 + $0xf0] sm:$0xf0] }
  0x35   :  { %v983_v61 = vor.u32 %v1196_v54, %v980_v55  ;;  %v1210_v54 = vld [vmem:[%s1752_s0 + $0x14c] sm:$0xf0] }
  0x41   :  { %556 = vmatmul.bf16.gmra.mxu0 %v899_v0  ;;  %v994_v0 = vld [vmem:[%s1752_s0 + $0x100] sm:$0xf] }
  0x42   :  { %620 = vmatmul.bf16.gmra.mxu1 %v903_v1  ;;  %v1202_v1 = vld [vmem:[%s1752_s0 + $0x10c] sm:$0xf0] }
  0x43   :  { %684 = vmatmul.bf16.gmra.mxu2 %v907_v2  ;;  %v1200_v2 = vld [vmem:[%s1752_s0 + $0x104] sm:$0xf]  ;;  %v995_v8 = vor.u32 %v1202_v1, %v994_v0  ;;  %v1027_v1 = vor.u32 %v1210_v54, %v1026_v53 }
  0x44   :  { %748 = vmatmul.bf16.gmra.mxu3 %v911_v3  ;;  %v996_v3 = vld [vmem:[%s1752_s0 + $0x110] sm:$0xf0] }
  0x45   :  { %v999_v9 = vor.u32 %v1200_v2, %v996_v3  ;;  %v1031_v2 = vor.u32 %v1208_v56, %v1028_v57 }
  0x51   :  { %561 = vmatmul.bf16.gmra.mxu0 %v915_v12 }
  0x52   :  { %625 = vmatmul.bf16.gmra.mxu1 %v919_v13  ;;  %v1003_v13 = vor.u32 %v1203_v5, %v1002_v4 }
  0x53   :  { %689 = vmatmul.bf16.gmra.mxu2 %v923_v14  ;;  %v1007_v14 = vor.u32 %v1201_v6, %v1004_v7  ;;  %v1035_v7 = vor.u32 %v1211_v59, %v1034_v58 }
  0x54   :  { %753 = vmatmul.bf16.gmra.mxu3 %v927_v15 }
  0x61   :  { %566 = vmatmul.bf16.gmra.mxu0 %v931_v24 }
  0x62   :  { %630 = vmatmul.bf16.gmra.mxu1 %v935_v25  ;;  %v1204_v25 = vld [vmem:[%s1752_s0 + $0x124] sm:$0xf] }
  0x63   :  { %694 = vmatmul.bf16.gmra.mxu2 %v939_v26  ;;  %v1012_v26 = vld [vmem:[%s1752_s0 + $0x130] sm:$0xf0] }
  0x64   :  { %758 = vmatmul.bf16.gmra.mxu3 %v943_v27  ;;  %v1018_v27 = vld [vmem:[%s1752_s0 + $0x128] sm:$0xf]  ;;  %v1015_v35 = vor.u32 %v1204_v25, %v1012_v26 }
  0x65   :  { %v1019_v40 = vor.u32 %v1207_v28, %v1018_v27 }
  0x71   :  { %571 = vmatmul.bf16.gmra.mxu0 %v947_v36 }
  0x72   :  { %635 = vmatmul.bf16.gmra.mxu1 %v951_v37 }
  0x73   :  { %699 = vmatmul.bf16.gmra.mxu2 %v955_v38 }
  0x74   :  { %763 = vmatmul.bf16.gmra.mxu3 %v959_v39 }
  0x81   :  { %576 = vmatmul.bf16.gmra.mxu0 %v963_v48 }
  0x82   :  { %640 = vmatmul.bf16.gmra.mxu1 %v967_v49 }
  0x83   :  { %704 = vmatmul.bf16.gmra.mxu2 %v971_v50 }
  0x84   :  { %768 = vmatmul.bf16.gmra.mxu3 %v975_v51 }
  0x91   :  { %581 = vmatmul.bf16.gmra.mxu0 %v979_v60  ;;  %v1209_v60 = vld [vmem:[%s1752_s0 + $0x14c] sm:$0xf] }
  0x92   :  { %645 = vmatmul.bf16.gmra.mxu1 %v983_v61  ;;  %v1036_v61 = vld [vmem:[%s1752_s0 + $0x158] sm:$0xf0] }
  0x93   :  { %709 = vmatmul.bf16.gmra.mxu2 %v987_v62 }
  0x94   :  { %773 = vmatmul.bf16.gmra.mxu3 %v991_v63 }
  0x9e   :  { %v547_v11 = vpop.f32.mrf.mxu0 }
  0x9f   :  { %v611_v12 = vpop.f32.mrf.mxu1  ;;  %v548_v15 = vadd.f32 %v1645_v10, %v547_v11 }
  0xa1   :  { %586 = vmatmul.bf16.gmra.mxu0 %v995_v8  ;;  %v612_v18 = vadd.f32 %v611_v12, %v548_v15  ;;  %v1039_v8 = vor.u32 %v1209_v60, %v1036_v61 }
  0xa2   :  { %650 = vmatmul.bf16.gmra.mxu1 %v999_v9 }
  0xa3   :  { %714 = vmatmul.bf16.gmra.mxu2 %v1003_v13 }
  0xa4   :  { %778 = vmatmul.bf16.gmra.mxu3 %v1007_v14 }
  0xa6   :  { %v675_v16 = vpop.f32.mrf.mxu2  ;;  %v549_v19 = vpop.f32.mrf.mxu0 }
  0xa7   :  { %v739_v17 = vpop.f32.mrf.mxu3  ;;  %v613_v20 = vpop.f32.mrf.mxu1  ;;  %v550_v21 = vadd.f32 %v1645_v10, %v549_v19  ;;  %v676_v24 = vadd.f32 %v675_v16, %v612_v18 }
  0xa9   :  { %v614_v31 = vadd.f32 %v613_v20, %v550_v21  ;;  %v740_v36 = vadd.f32 %v739_v17, %v676_v24 }
  0xab   :  { %v794_v43 = vmax.f32 %v740_v36, 0.0 }
  0xae   :  { %v677_v32 = vpop.f32.mrf.mxu2  ;;  %v552_v38 = vpop.f32.mrf.mxu0 }
  0xaf   :  { %v741_v33 = vpop.f32.mrf.mxu3  ;;  %v678_v37 = vadd.f32 %v677_v32, %v614_v31  ;;  %v616_v39 = vpop.f32.mrf.mxu1  ;;  %v553_v45 = vadd.f32 %v1645_v10, %v552_v38 }
  0xb1   :  { %v742_v42 = vadd.f32 %v741_v33, %v678_v37  ;;  %591 = vmatmul.bf16.gmra.mxu0 %v1011_v34  ;;  %v617_v49 = vadd.f32 %v616_v39, %v553_v45 }
  0xb2   :  { %655 = vmatmul.bf16.gmra.mxu1 %v1015_v35 }
  0xb3   :  { %v795_v44 = vmax.f32 %v742_v42, 0.0  ;;  %719 = vmatmul.bf16.gmra.mxu2 %v1019_v40 }
  0xb4   :  { %783 = vmatmul.bf16.gmra.mxu3 %v1023_v41 }
  0xb5   :  { %v1247_v46 = vpack.c.bf16 %v795_v44, %v794_v43 }
  0xb6   :  { %v680_v47 = vpop.f32.mrf.mxu2  ;;  %v554_v50 = vpop.f32.mrf.mxu0 }
  0xb7   :  { %v744_v48 = vpop.f32.mrf.mxu3  ;;  %1248 = vst [vmem:[%s1753_s3] sm:$0xff] %v1247_v46   ;;  %v618_v51 = vpop.f32.mrf.mxu1  ;;  %v555_v52 = vadd.f32 %v1645_v10, %v554_v50  ;;  %v681_v55 = vadd.f32 %v680_v47, %v617_v49 }
  0xb9   :  { %v619_v62 = vadd.f32 %v618_v51, %v555_v52  ;;  %v745_v3 = vadd.f32 %v744_v48, %v681_v55 }
  0xbb   :  { %v796_v11 = vmax.f32 %v745_v3, 0.0 }
  0xbe   :  { %v682_v63 = vpop.f32.mrf.mxu2  ;;  %v557_v5 = vpop.f32.mrf.mxu0 }
  0xbf   :  { %v746_v0 = vpop.f32.mrf.mxu3  ;;  %v683_v4 = vadd.f32 %v682_v63, %v619_v62  ;;  %v621_v6 = vpop.f32.mrf.mxu1  ;;  %v558_v13 = vadd.f32 %v1645_v10, %v557_v5 }
  0xc1   :  { %v747_v9 = vadd.f32 %v746_v0, %v683_v4  ;;  %596 = vmatmul.bf16.gmra.mxu0 %v1027_v1  ;;  %v622_v17 = vadd.f32 %v621_v6, %v558_v13 }
  0xc2   :  { %660 = vmatmul.bf16.gmra.mxu1 %v1031_v2 }
  0xc3   :  { %v797_v12 = vmax.f32 %v747_v9, 0.0  ;;  %724 = vmatmul.bf16.gmra.mxu2 %v1035_v7 }
  0xc4   :  { %788 = vmatmul.bf16.gmra.mxu3 %v1039_v8 }
  0xc5   :  { %v1252_v14 = vpack.c.bf16 %v797_v12, %v796_v11 }
  0xc6   :  { %v685_v15 = vpop.f32.mrf.mxu2  ;;  %v559_v18 = vpop.f32.mrf.mxu0 }
  0xc7   :  { %v749_v16 = vpop.f32.mrf.mxu3  ;;  %1299 = vst [vmem:[%s1753_s3 + $0x8] sm:$0xff] %v1252_v14   ;;  %v623_v19 = vpop.f32.mrf.mxu1  ;;  %v560_v20 = vadd.f32 %v1645_v10, %v559_v18  ;;  %v686_v21 = vadd.f32 %v685_v15, %v622_v17 }
  0xc9   :  { %v624_v22 = vadd.f32 %v623_v19, %v560_v20  ;;  %v750_v25 = vadd.f32 %v749_v16, %v686_v21 }
  0xcb   :  { %v798_v30 = vmax.f32 %v750_v25, 0.0 }
  0xce   :  { %v687_v23 = vpop.f32.mrf.mxu2  ;;  %v562_v27 = vpop.f32.mrf.mxu0 }
  0xcf   :  { %v751_v24 = vpop.f32.mrf.mxu3  ;;  %v688_v26 = vadd.f32 %v687_v23, %v624_v22  ;;  %v626_v28 = vpop.f32.mrf.mxu1  ;;  %v563_v32 = vadd.f32 %v1645_v10, %v562_v27 }
  0xd1   :  { %v752_v29 = vadd.f32 %v751_v24, %v688_v26  ;;  %v627_v36 = vadd.f32 %v626_v28, %v563_v32 }
  0xd3   :  { %v799_v31 = vmax.f32 %v752_v29, 0.0 }
  0xd5   :  { %v1257_v33 = vpack.c.bf16 %v799_v31, %v798_v30 }
  0xd6   :  { %v690_v34 = vpop.f32.mrf.mxu2  ;;  %v564_v37 = vpop.f32.mrf.mxu0 }
  0xd7   :  { %v754_v35 = vpop.f32.mrf.mxu3  ;;  %1300 = vst [vmem:[%s1753_s3 + $0x10] sm:$0xff] %v1257_v33   ;;  %v628_v38 = vpop.f32.mrf.mxu1  ;;  %v565_v39 = vadd.f32 %v1645_v10, %v564_v37  ;;  %v691_v40 = vadd.f32 %v690_v34, %v627_v36 }
  0xd9   :  { %v629_v41 = vadd.f32 %v628_v38, %v565_v39  ;;  %v755_v44 = vadd.f32 %v754_v35, %v691_v40 }
  0xdb   :  { %v800_v49 = vmax.f32 %v755_v44, 0.0 }
  0xde   :  { %v692_v42 = vpop.f32.mrf.mxu2  ;;  %v567_v46 = vpop.f32.mrf.mxu0 }
  0xdf   :  { %v756_v43 = vpop.f32.mrf.mxu3  ;;  %v693_v45 = vadd.f32 %v692_v42, %v629_v41  ;;  %v631_v47 = vpop.f32.mrf.mxu1  ;;  %v568_v51 = vadd.f32 %v1645_v10, %v567_v46 }
  0xe1   :  { %v757_v48 = vadd.f32 %v756_v43, %v693_v45  ;;  %v632_v55 = vadd.f32 %v631_v47, %v568_v51 }
  0xe3   :  { %v801_v50 = vmax.f32 %v757_v48, 0.0 }
  0xe5   :  { %v1262_v52 = vpack.c.bf16 %v801_v50, %v800_v49 }
  0xe6   :  { %v695_v53 = vpop.f32.mrf.mxu2  ;;  %v569_v56 = vpop.f32.mrf.mxu0 }
  0xe7   :  { %v759_v54 = vpop.f32.mrf.mxu3  ;;  %1301 = vst [vmem:[%s1753_s3 + $0x18] sm:$0xff] %v1262_v52   ;;  %v633_v57 = vpop.f32.mrf.mxu1  ;;  %v570_v58 = vadd.f32 %v1645_v10, %v569_v56  ;;  %v696_v59 = vadd.f32 %v695_v53, %v632_v55 }
  0xe9   :  { %v634_v60 = vadd.f32 %v633_v57, %v570_v58  ;;  %v760_v63 = vadd.f32 %v759_v54, %v696_v59 }
  0xeb   :  { %v802_v4 = vmax.f32 %v760_v63, 0.0 }
  0xee   :  { %v697_v61 = vpop.f32.mrf.mxu2  ;;  %v572_v1 = vpop.f32.mrf.mxu0 }
  0xef   :  { %v761_v62 = vpop.f32.mrf.mxu3  ;;  %v698_v0 = vadd.f32 %v697_v61, %v634_v60  ;;  %v636_v2 = vpop.f32.mrf.mxu1  ;;  %v573_v6 = vadd.f32 %v1645_v10, %v572_v1 }
  0xf1   :  { %v762_v3 = vadd.f32 %v761_v62, %v698_v0  ;;  %v637_v11 = vadd.f32 %v636_v2, %v573_v6 }
  0xf3   :  { %v803_v5 = vmax.f32 %v762_v3, 0.0 }
  0xf5   :  { %v1267_v7 = vpack.c.bf16 %v803_v5, %v802_v4 }
  0xf6   :  { %v700_v8 = vpop.f32.mrf.mxu2  ;;  %v574_v12 = vpop.f32.mrf.mxu0 }
  0xf7   :  { %v764_v9 = vpop.f32.mrf.mxu3  ;;  %1302 = vst [vmem:[%s1753_s3 + $0x20] sm:$0xff] %v1267_v7   ;;  %v638_v13 = vpop.f32.mrf.mxu1  ;;  %v575_v14 = vadd.f32 %v1645_v10, %v574_v12  ;;  %v701_v15 = vadd.f32 %v700_v8, %v637_v11 }
  0xf9   :  { %v639_v16 = vadd.f32 %v638_v13, %v575_v14  ;;  %v765_v19 = vadd.f32 %v764_v9, %v701_v15 }
  0xfb   :  { %v804_v24 = vmax.f32 %v765_v19, 0.0 }
  0xfe   :  { %v702_v17 = vpop.f32.mrf.mxu2  ;;  %v577_v21 = vpop.f32.mrf.mxu0 }
  0xff   :  { %v766_v18 = vpop.f32.mrf.mxu3  ;;  %v703_v20 = vadd.f32 %v702_v17, %v639_v16  ;;  %v641_v22 = vpop.f32.mrf.mxu1  ;;  %v578_v26 = vadd.f32 %v1645_v10, %v577_v21 }
 0x101   :  { %v767_v23 = vadd.f32 %v766_v18, %v703_v20  ;;  %v642_v30 = vadd.f32 %v641_v22, %v578_v26 }
 0x103   :  { %v805_v25 = vmax.f32 %v767_v23, 0.0 }
 0x105   :  { %v1272_v27 = vpack.c.bf16 %v805_v25, %v804_v24 }
 0x106   :  { %v705_v28 = vpop.f32.mrf.mxu2  ;;  %v579_v31 = vpop.f32.mrf.mxu0 }
 0x107   :  { %v769_v29 = vpop.f32.mrf.mxu3  ;;  %1303 = vst [vmem:[%s1753_s3 + $0x28] sm:$0xff] %v1272_v27   ;;  %v643_v32 = vpop.f32.mrf.mxu1  ;;  %v580_v33 = vadd.f32 %v1645_v10, %v579_v31  ;;  %v706_v34 = vadd.f32 %v705_v28, %v642_v30 }
 0x109   :  { %v644_v35 = vadd.f32 %v643_v32, %v580_v33  ;;  %v770_v38 = vadd.f32 %v769_v29, %v706_v34 }
 0x10b   :  { %v806_v43 = vmax.f32 %v770_v38, 0.0 }
 0x10e   :  { %v707_v36 = vpop.f32.mrf.mxu2  ;;  %v582_v40 = vpop.f32.mrf.mxu0 }
 0x10f   :  { %v771_v37 = vpop.f32.mrf.mxu3  ;;  %v708_v39 = vadd.f32 %v707_v36, %v644_v35  ;;  %v646_v41 = vpop.f32.mrf.mxu1  ;;  %v583_v45 = vadd.f32 %v1645_v10, %v582_v40 }
 0x111   :  { %v772_v42 = vadd.f32 %v771_v37, %v708_v39  ;;  %v647_v49 = vadd.f32 %v646_v41, %v583_v45 }
 0x113   :  { %v807_v44 = vmax.f32 %v772_v42, 0.0 }
 0x115   :  { %v1277_v46 = vpack.c.bf16 %v807_v44, %v806_v43 }
 0x116   :  { %v710_v47 = vpop.f32.mrf.mxu2  ;;  %v584_v50 = vpop.f32.mrf.mxu0 }
 0x117   :  { %v774_v48 = vpop.f32.mrf.mxu3  ;;  %1304 = vst [vmem:[%s1753_s3 + $0x30] sm:$0xff] %v1277_v46   ;;  %v648_v51 = vpop.f32.mrf.mxu1  ;;  %v585_v52 = vadd.f32 %v1645_v10, %v584_v50  ;;  %v711_v53 = vadd.f32 %v710_v47, %v647_v49 }
 0x119   :  { %v649_v54 = vadd.f32 %v648_v51, %v585_v52  ;;  %v775_v57 = vadd.f32 %v774_v48, %v711_v53 }
 0x11b   :  { %v808_v62 = vmax.f32 %v775_v57, 0.0 }
 0x11e   :  { %v712_v55 = vpop.f32.mrf.mxu2  ;;  %v587_v59 = vpop.f32.mrf.mxu0 }
 0x11f   :  { %v776_v56 = vpop.f32.mrf.mxu3  ;;  %v713_v58 = vadd.f32 %v712_v55, %v649_v54  ;;  %v651_v60 = vpop.f32.mrf.mxu1  ;;  %v588_v0 = vadd.f32 %v1645_v10, %v587_v59 }
 0x121   :  { %v777_v61 = vadd.f32 %v776_v56, %v713_v58  ;;  %v652_v4 = vadd.f32 %v651_v60, %v588_v0 }
 0x123   :  { %v809_v63 = vmax.f32 %v777_v61, 0.0 }
 0x125   :  { %v1282_v1 = vpack.c.bf16 %v809_v63, %v808_v62 }
 0x126   :  { %v715_v2 = vpop.f32.mrf.mxu2  ;;  %v589_v5 = vpop.f32.mrf.mxu0 }
 0x127   :  { %v779_v3 = vpop.f32.mrf.mxu3  ;;  %1305 = vst [vmem:[%s1753_s3 + $0x38] sm:$0xff] %v1282_v1   ;;  %v653_v6 = vpop.f32.mrf.mxu1  ;;  %v590_v7 = vadd.f32 %v1645_v10, %v589_v5  ;;  %v716_v8 = vadd.f32 %v715_v2, %v652_v4 }
 0x129   :  { %v654_v9 = vadd.f32 %v653_v6, %v590_v7  ;;  %v780_v13 = vadd.f32 %v779_v3, %v716_v8 }
 0x12b   :  { %v810_v18 = vmax.f32 %v780_v13, 0.0 }
 0x12e   :  { %v717_v11 = vpop.f32.mrf.mxu2  ;;  %v592_v15 = vpop.f32.mrf.mxu0 }
 0x12f   :  { %v781_v12 = vpop.f32.mrf.mxu3  ;;  %v718_v14 = vadd.f32 %v717_v11, %v654_v9  ;;  %v656_v16 = vpop.f32.mrf.mxu1  ;;  %v593_v20 = vadd.f32 %v1645_v10, %v592_v15 }
 0x131   :  { %v782_v17 = vadd.f32 %v781_v12, %v718_v14  ;;  %v657_v24 = vadd.f32 %v656_v16, %v593_v20 }
 0x133   :  { %v811_v19 = vmax.f32 %v782_v17, 0.0 }
 0x135   :  { %v1287_v21 = vpack.c.bf16 %v811_v19, %v810_v18 }
 0x136   :  { %v720_v22 = vpop.f32.mrf.mxu2  ;;  %v594_v25 = vpop.f32.mrf.mxu0 }
 0x137   :  { %v784_v23 = vpop.f32.mrf.mxu3  ;;  %1306 = vst [vmem:[%s1753_s3 + $0x40] sm:$0xff] %v1287_v21   ;;  %v658_v26 = vpop.f32.mrf.mxu1  ;;  %v595_v27 = vadd.f32 %v1645_v10, %v594_v25  ;;  %v721_v28 = vadd.f32 %v720_v22, %v657_v24 }
 0x139   :  { %v659_v29 = vadd.f32 %v658_v26, %v595_v27  ;;  %v785_v32 = vadd.f32 %v784_v23, %v721_v28 }
 0x13b   :  { %v812_v37 = vmax.f32 %v785_v32, 0.0 }
 0x13e   :  { %v722_v30 = vpop.f32.mrf.mxu2  ;;  %v597_v34 = vpop.f32.mrf.mxu0 }
 0x13f   :  { %v786_v31 = vpop.f32.mrf.mxu3  ;;  %v723_v33 = vadd.f32 %v722_v30, %v659_v29  ;;  %v661_v36 = vpop.f32.mrf.mxu1  ;;  %v598_v39 = vadd.f32 %v1645_v10, %v597_v34 }
 0x141   :  { %v787_v35 = vadd.f32 %v786_v31, %v723_v33  ;;  %v662_v43 = vadd.f32 %v661_v36, %v598_v39 }
 0x143   :  { %v813_v38 = vmax.f32 %v787_v35, 0.0 }
 0x145   :  { %v1292_v40 = vpack.c.bf16 %v813_v38, %v812_v37 }
 0x146   :  { %v725_v41 = vpop.f32.mrf.mxu2  ;;  %v599_v44 = vpop.f32.mrf.mxu0 }
 0x147   :  { %v789_v42 = vpop.f32.mrf.mxu3  ;;  %1307 = vst [vmem:[%s1753_s3 + $0x48] sm:$0xff] %v1292_v40   ;;  %v600_v45 = vadd.f32 %v1645_v10, %v599_v44  ;;  %v726_v46 = vadd.f32 %v725_v41, %v662_v43  ;;  %v663_v47 = vpop.f32.mrf.mxu1 }
 0x149   :  { %v664_v48 = vadd.f32 %v663_v47, %v600_v45  ;;  %v790_v50 = vadd.f32 %v789_v42, %v726_v46 }
 0x14b   :  { %v814_v54 = vmax.f32 %v790_v50, 0.0 }
 0x14e   :  { %v727_v49 = vpop.f32.mrf.mxu2 }
 0x14f   :  { %v728_v51 = vadd.f32 %v727_v49, %v664_v48  ;;  %v791_v52 = vpop.f32.mrf.mxu3 }
 0x151   :  { %v792_v53 = vadd.f32 %v791_v52, %v728_v51 }
 0x153   :  { %v815_v55 = vmax.f32 %v792_v53, 0.0 }
 0x155   :  { %v1297_v56 = vpack.c.bf16 %v815_v55, %v814_v54 }
 0x157   :  { %1308 = vst [vmem:[%s1753_s3 + $0x50] sm:$0xff] %v1297_v56  }

// kernel: dqn_forward.6
= control target key start
LH: loop header
LB: loop body
LE: loop exit
PB: predicated region body
PF: predicated region fallthrough
CT: control target
= control target key end

     0   :  { %vm524_vm0 = vcmask 523264   ;;  %s1655_s1 = inlined_call_operand.vmem [shape: bf16[576,128], index: 1, kind: input, shape index: {}]   ;;  %s1656_s2 = inlined_call_operand.vmem [shape: f32[1,128], index: 2, kind: input, shape index: {}]   ;;  %s1657_s0 = inlined_call_operand.vmem [shape: bf16[112,576], index: 0, kind: input, shape index: {}]   ;;  %s1658_s3 = inlined_call_operand.vmem [shape: bf16[112,128], index: 3, kind: output, shape index: {}]  }
   0x1   :  { %v1145_v0 = vld [vmem:[%s1655_s1 + $0x38] sm:$0xff]  ;;  %v1144_v1 = vld [vmem:[%s1655_s1 + $0x30] sm:$0xff]  ;;  %v1143_v2 = vld [vmem:[%s1655_s1 + $0x28] sm:$0xff] }
   0x2   :  { %1215 = vmatpush.bf16.msra.mxu1 %v1145_v0  ;;  %1216 = vmatpush.bf16.msra.mxu2 %v1145_v0  ;;  %v1142_v3 = vld [vmem:[%s1655_s1 + $0x20] sm:$0xff]  ;;  %v1141_v4 = vld [vmem:[%s1655_s1 + $0x18] sm:$0xff]  ;;  %v1140_v5 = vld [vmem:[%s1655_s1 + $0x10] sm:$0xff] }
   0x3   :  { %1217 = vmatpush.bf16.msra.mxu3 %v1145_v0  ;;  %546 = vmatpush.bf16.msra.mxu0 %v1145_v0  ;;  %v1139_v6 = vld [vmem:[%s1655_s1 + $0x8] sm:$0xff]  ;;  %v1138_v7 = vld [vmem:[%s1655_s1] sm:$0xff]  ;;  %v854_v8 = vld [vmem:[%s1657_s0 + $0x50] sm:$0xf] }
   0x4   :  { %v1115_v9 = vld [vmem:[%s1657_s0 + $0x60] sm:$0xf0]  ;;  %v894_v10 = vld [vmem:[%s1657_s0 + $0xa0] sm:$0xf]  ;;  %v1125_v11 = vld [vmem:[%s1657_s0 + $0xb0] sm:$0xf0] }
   0x5   :  { %v1169_v12 = vld [vmem:[%s1655_s1 + $0xf8] sm:$0xff]  ;;  %v814_v13 = vld [vmem:[%s1657_s0] sm:$0xf]  ;;  %v1105_v14 = vld [vmem:[%s1657_s0 + $0x10] sm:$0xf0]  ;;  %v855_v18 = vor.u32 %v1115_v9, %v854_v8  ;;  %v895_v19 = vor.u32 %v1125_v11, %v894_v10 }
   0x6   :  { %1218 = vmatpush.bf16.msra.mxu1 %v1144_v1  ;;  %1219 = vmatpush.bf16.msra.mxu2 %v1144_v1  ;;  %v1161_v15 = vld [vmem:[%s1655_s1 + $0xb8] sm:$0xff]  ;;  %v934_v16 = vld [vmem:[%s1657_s0 + $0xf0] sm:$0xf]  ;;  %v1135_v17 = vld [vmem:[%s1657_s0 + $0x100] sm:$0xf0]  ;;  %v815_v21 = vor.u32 %v1105_v14, %v814_v13 }
   0x7   :  { %1220 = vmatpush.bf16.msra.mxu3 %v1144_v1  ;;  %547 = vmatpush.bf16.msra.mxu0 %v1144_v1  ;;  %v1153_v20 = vld [vmem:[%s1655_s1 + $0x78] sm:$0xff]  ;;  %v935_v22 = vor.u32 %v1135_v17, %v934_v16  ;;  %v1168_v24 = vld [vmem:[%s1655_s1 + $0xf0] sm:$0xff]  ;;  %v1167_v28 = vld [vmem:[%s1655_s1 + $0xe8] sm:$0xff] }
   0x8   :  { %v1173_v23 = vld [vmem:[%s1655_s1 + $0x118] sm:$0xff]  ;;  %v1160_v25 = vld [vmem:[%s1655_s1 + $0xb0] sm:$0xff]  ;;  %v1159_v29 = vld [vmem:[%s1655_s1 + $0xa8] sm:$0xff] }
   0x9   :  { %v1152_v26 = vld [vmem:[%s1655_s1 + $0x70] sm:$0xff]  ;;  %v1151_v30 = vld [vmem:[%s1655_s1 + $0x68] sm:$0xff]  ;;  %v1166_v32 = vld [vmem:[%s1655_s1 + $0xe0] sm:$0xff] }
   0xa   :  { %1221 = vmatpush.bf16.msra.mxu1 %v1143_v2  ;;  %1222 = vmatpush.bf16.msra.mxu2 %v1143_v2  ;;  %v1172_v27 = vld [vmem:[%s1655_s1 + $0x110] sm:$0xff]  ;;  %v1171_v31 = vld [vmem:[%s1655_s1 + $0x108] sm:$0xff]  ;;  %v1158_v33 = vld [vmem:[%s1655_s1 + $0xa0] sm:$0xff] }
   0xb   :  { %1223 = vmatpush.bf16.msra.mxu3 %v1143_v2  ;;  %548 = vmatpush.bf16.msra.mxu0 %v1143_v2  ;;  %v1150_v34 = vld [vmem:[%s1655_s1 + $0x60] sm:$0xff]  ;;  %v874_v35 = vld [vmem:[%s1657_s0 + $0x78] sm:$0xf]  ;;  %v1120_v36 = vld [vmem:[%s1657_s0 + $0x88] sm:$0xf0] }
   0xc   :  { %v914_v37 = vld [vmem:[%s1657_s0 + $0xc8] sm:$0xf]  ;;  %v1130_v38 = vld [vmem:[%s1657_s0 + $0xd8] sm:$0xf0]  ;;  %v1170_v41 = vld [vmem:[%s1655_s1 + $0x100] sm:$0xff]  ;;  %v875_v44 = vor.u32 %v1120_v36, %v874_v35 }
   0xd   :  { %v834_v39 = vld [vmem:[%s1657_s0 + $0x28] sm:$0xf]  ;;  %v1110_v40 = vld [vmem:[%s1657_s0 + $0x38] sm:$0xf0]  ;;  %v915_v45 = vor.u32 %v1130_v38, %v914_v37  ;;  %v1164_v48 = vld [vmem:[%s1655_s1 + $0xd0] sm:$0xff] }
   0xe   :  { %1224 = vmatpush.bf16.msra.mxu1 %v1142_v3  ;;  %1225 = vmatpush.bf16.msra.mxu2 %v1142_v3  ;;  %v1165_v42 = vld [vmem:[%s1655_s1 + $0xd8] sm:$0xff]  ;;  %v835_v47 = vor.u32 %v1110_v40, %v834_v39  ;;  %v1156_v49 = vld [vmem:[%s1655_s1 + $0x90] sm:$0xff]  ;;  %v1163_v51 = vld [vmem:[%s1655_s1 + $0xc8] sm:$0xff] }
   0xf   :  { %1226 = vmatpush.bf16.msra.mxu3 %v1142_v3  ;;  %549 = vmatpush.bf16.msra.mxu0 %v1142_v3  ;;  %v1157_v43 = vld [vmem:[%s1655_s1 + $0x98] sm:$0xff]  ;;  %v1148_v50 = vld [vmem:[%s1655_s1 + $0x50] sm:$0xff]  ;;  %v1155_v52 = vld [vmem:[%s1655_s1 + $0x88] sm:$0xff] }
  0x10   :  { %v1149_v46 = vld [vmem:[%s1655_s1 + $0x58] sm:$0xff]  ;;  %v1147_v53 = vld [vmem:[%s1655_s1 + $0x48] sm:$0xff]  ;;  %v1162_v54 = vld [vmem:[%s1655_s1 + $0xc0] sm:$0xff] }
  0x11   :  { %v1154_v55 = vld [vmem:[%s1655_s1 + $0x80] sm:$0xff]  ;;  %v1104_v56 = vld [vmem:[%s1657_s0 + $0xc] sm:$0xf]  ;;  %v816_v60 = vld [vmem:[%s1657_s0 + $0x14] sm:$0xf0] }
  0x12   :  { %1227 = vmatpush.bf16.msra.mxu1 %v1141_v4  ;;  %1228 = vmatpush.bf16.msra.mxu2 %v1141_v4  ;;  %v824_v57 = vld [vmem:[%s1657_s0 + $0x1c] sm:$0xf0]  ;;  %v1103_v59 = vld [vmem:[%s1657_s0 + $0x4] sm:$0xf]  ;;  %v822_v61 = vld [vmem:[%s1657_s0 + $0x8] sm:$0xf] }
  0x13   :  { %1229 = vmatpush.bf16.msra.mxu3 %v1141_v4  ;;  %550 = vmatpush.bf16.msra.mxu0 %v1141_v4  ;;  %v1146_v58 = vld [vmem:[%s1655_s1 + $0x40] sm:$0xff]  ;;  %v1106_v62 = vld [vmem:[%s1657_s0 + $0x18] sm:$0xf0]  ;;  %v827_v63 = vor.u32 %v1104_v56, %v824_v57  ;;  %v830_v0 = vld [vmem:[%s1657_s0 + $0x10] sm:$0xf]  ;;  %v819_v2 = vor.u32 %v1103_v59, %v816_v60 }
  0x14   :  { %v1107_v1 = vld [vmem:[%s1657_s0 + $0x20] sm:$0xf0]  ;;  %v823_v3 = vor.u32 %v1106_v62, %v822_v61  ;;  %v836_v8 = vld [vmem:[%s1657_s0 + $0x3c] sm:$0xf0]  ;;  %v842_v9 = vld [vmem:[%s1657_s0 + $0x30] sm:$0xf] }
  0x15   :  { %v831_v4 = vor.u32 %v1107_v1, %v830_v0  ;;  %v1111_v10 = vld [vmem:[%s1657_s0 + $0x40] sm:$0xf0]  ;;  %v1112_v13 = vld [vmem:[%s1657_s0 + $0x48] sm:$0xf0]  ;;  %v1114_v17 = vld [vmem:[%s1657_s0 + $0x5c] sm:$0xf] }
  0x16   :  { %1230 = vmatpush.bf16.msra.mxu1 %v1140_v5  ;;  %1231 = vmatpush.bf16.msra.mxu2 %v1140_v5  ;;  %v890_v36 = vld [vmem:[%s1657_s0 + $0x88] sm:$0xf]  ;;  %v1122_v37 = vld [vmem:[%s1657_s0 + $0x98] sm:$0xf0]  ;;  %v916_v56 = vld [vmem:[%s1657_s0 + $0xdc] sm:$0xf0] }
  0x17   :  { %1232 = vmatpush.bf16.msra.mxu3 %v1140_v5  ;;  %551 = vmatpush.bf16.msra.mxu0 %v1140_v5  ;;  %v1109_v5 = vld [vmem:[%s1657_s0 + $0x34] sm:$0xf]  ;;  %v891_v40 = vor.u32 %v1122_v37, %v890_v36  ;;  %v922_v57 = vld [vmem:[%s1657_s0 + $0xd0] sm:$0xf]  ;;  %v930_v60 = vld [vmem:[%s1657_s0 + $0xd8] sm:$0xf] }
  0x18   :  { %v1132_v61 = vld [vmem:[%s1657_s0 + $0xe8] sm:$0xf0]  ;;  %v1134_v1 = vld [vmem:[%s1657_s0 + $0xfc] sm:$0xf] }
  0x19   :  { %v931_v0 = vor.u32 %v1132_v61, %v930_v60 }
  0x1a   :  { %1233 = vmatpush.bf16.msra.mxu1 %v1139_v6  ;;  %1234 = vmatpush.bf16.msra.mxu2 %v1139_v6 }
  0x1b   :  { %1235 = vmatpush.bf16.msra.mxu3 %v1139_v6  ;;  %552 = vmatpush.bf16.msra.mxu0 %v1139_v6  ;;  %v844_v6 = vld [vmem:[%s1657_s0 + $0x44] sm:$0xf0] }
  0x1c   :  { %v847_v11 = vor.u32 %v1109_v5, %v844_v6  ;;  %v942_v5 = vld [vmem:[%s1657_s0 + $0xf8] sm:$0xf]  ;;  %v1136_v6 = vld [vmem:[%s1657_s0 + $0x108] sm:$0xf0] }
  0x1e   :  { %1236 = vmatpush.bf16.msra.mxu1 %v1138_v7  ;;  %1237 = vmatpush.bf16.msra.mxu2 %v1138_v7 }
  0x1f   :  { %1238 = vmatpush.bf16.msra.mxu3 %v1138_v7  ;;  %553 = vmatpush.bf16.msra.mxu0 %v1138_v7  ;;  %v1108_v7 = vld [vmem:[%s1657_s0 + $0x2c] sm:$0xf] }
  0x20   :  { %v839_v14 = vor.u32 %v1108_v7, %v836_v8  ;;  %v950_v8 = vld [vmem:[%s1657_s0 + $0x100] sm:$0xf] }
  0x21   :  { %564 = vmatmul.bf16.vlgmr.msra.gmra.mxu1 %v855_v18  ;;  %574 = vmatmul.bf16.vlgmr.msra.gmra.mxu2 %v895_v19  ;;  %v864_v18 = vld [vmem:[%s1657_s0 + $0x6c] sm:$0xf0]  ;;  %v1113_v19 = vld [vmem:[%s1657_s0 + $0x54] sm:$0xf] }
  0x22   :  { %634 = vmatpush.bf16.msrb.mxu2 %v1161_v15  ;;  %590 = vmatpush.bf16.msrb.mxu1 %v1153_v20  ;;  %v843_v15 = vor.u32 %v1111_v10, %v842_v9  ;;  %v856_v20 = vld [vmem:[%s1657_s0 + $0x64] sm:$0xf0]  ;;  %v1137_v9 = vld [vmem:[%s1657_s0 + $0x110] sm:$0xf0] }
  0x23   :  { %678 = vmatpush.bf16.msrb.mxu3 %v1169_v12  ;;  %554 = vmatmul.bf16.vlgmr.msra.gmra.mxu0 %v815_v21  ;;  %v850_v12 = vld [vmem:[%s1657_s0 + $0x38] sm:$0xf] }
  0x24   :  { %584 = vmatmul.bf16.vlgmr.msra.gmra.mxu3 %v935_v22  ;;  %726 = vmatpush.bf16.msrb.mxu0 %v1173_v23  ;;  %v851_v16 = vor.u32 %v1112_v13, %v850_v12  ;;  %v862_v21 = vld [vmem:[%s1657_s0 + $0x58] sm:$0xf]  ;;  %v1116_v22 = vld [vmem:[%s1657_s0 + $0x68] sm:$0xf0]  ;;  %v867_v23 = vor.u32 %v1114_v17, %v864_v18  ;;  %v951_v13 = vor.u32 %v1137_v9, %v950_v8 }
  0x26   :  { %635 = vmatpush.bf16.msrb.mxu2 %v1160_v25  ;;  %591 = vmatpush.bf16.msrb.mxu1 %v1152_v26  ;;  %v1117_v25 = vld [vmem:[%s1657_s0 + $0x70] sm:$0xf0]  ;;  %v859_v26 = vor.u32 %v1113_v19, %v856_v20 }
  0x27   :  { %679 = vmatpush.bf16.msrb.mxu3 %v1168_v24  ;;  %v870_v24 = vld [vmem:[%s1657_s0 + $0x60] sm:$0xf] }
  0x28   :  { %727 = vmatpush.bf16.msrb.mxu0 %v1172_v27  ;;  %v863_v27 = vor.u32 %v1116_v22, %v862_v21 }
  0x2a   :  { %636 = vmatpush.bf16.msrb.mxu2 %v1159_v29  ;;  %592 = vmatpush.bf16.msrb.mxu1 %v1151_v30  ;;  %v1119_v29 = vld [vmem:[%s1657_s0 + $0x84] sm:$0xf]  ;;  %v884_v30 = vld [vmem:[%s1657_s0 + $0x94] sm:$0xf0] }
  0x2b   :  { %680 = vmatpush.bf16.msrb.mxu3 %v1167_v28  ;;  %v871_v28 = vor.u32 %v1117_v25, %v870_v24  ;;  %v887_v35 = vor.u32 %v1119_v29, %v884_v30 }
  0x2c   :  { %728 = vmatpush.bf16.msrb.mxu0 %v1171_v31  ;;  %v1118_v31 = vld [vmem:[%s1657_s0 + $0x7c] sm:$0xf] }
  0x2e   :  { %637 = vmatpush.bf16.msrb.mxu2 %v1158_v33  ;;  %593 = vmatpush.bf16.msrb.mxu1 %v1150_v34  ;;  %v882_v33 = vld [vmem:[%s1657_s0 + $0x80] sm:$0xf]  ;;  %v1121_v34 = vld [vmem:[%s1657_s0 + $0x90] sm:$0xf0] }
  0x2f   :  { %681 = vmatpush.bf16.msrb.mxu3 %v1166_v32  ;;  %v876_v32 = vld [vmem:[%s1657_s0 + $0x8c] sm:$0xf0]  ;;  %v883_v39 = vor.u32 %v1121_v34, %v882_v33 }
  0x30   :  { %729 = vmatpush.bf16.msrb.mxu0 %v1170_v41  ;;  %v879_v38 = vor.u32 %v1118_v31, %v876_v32  ;;  %v1124_v41 = vld [vmem:[%s1657_s0 + $0xac] sm:$0xf] }
  0x31   :  { %569 = vmatmul.bf16.gmra.mxu1 %v875_v44  ;;  %579 = vmatmul.bf16.gmra.mxu2 %v915_v45  ;;  %v896_v44 = vld [vmem:[%s1657_s0 + $0xb4] sm:$0xf0]  ;;  %v902_v45 = vld [vmem:[%s1657_s0 + $0xa8] sm:$0xf] }
  0x32   :  { %638 = vmatpush.bf16.msrb.mxu2 %v1157_v43  ;;  %594 = vmatpush.bf16.msrb.mxu1 %v1149_v46  ;;  %v1123_v43 = vld [vmem:[%s1657_s0 + $0xa4] sm:$0xf]  ;;  %v1126_v46 = vld [vmem:[%s1657_s0 + $0xb8] sm:$0xf0] }
  0x33   :  { %682 = vmatpush.bf16.msrb.mxu3 %v1165_v42  ;;  %559 = vmatmul.bf16.gmra.mxu0 %v835_v47  ;;  %v904_v42 = vld [vmem:[%s1657_s0 + $0xbc] sm:$0xf0] }
  0x34   :  { %v907_v47 = vor.u32 %v1124_v41, %v904_v42 }
  0x36   :  { %639 = vmatpush.bf16.msrb.mxu2 %v1156_v49  ;;  %595 = vmatpush.bf16.msrb.mxu1 %v1148_v50  ;;  %v1127_v49 = vld [vmem:[%s1657_s0 + $0xc0] sm:$0xf0]  ;;  %v899_v50 = vor.u32 %v1123_v43, %v896_v44 }
  0x37   :  { %683 = vmatpush.bf16.msrb.mxu3 %v1164_v48  ;;  %v910_v48 = vld [vmem:[%s1657_s0 + $0xb0] sm:$0xf] }
  0x3a   :  { %640 = vmatpush.bf16.msrb.mxu2 %v1155_v52  ;;  %596 = vmatpush.bf16.msrb.mxu1 %v1147_v53  ;;  %v911_v52 = vor.u32 %v1127_v49, %v910_v48  ;;  %v1129_v53 = vld [vmem:[%s1657_s0 + $0xd4] sm:$0xf] }
  0x3b   :  { %684 = vmatpush.bf16.msrb.mxu3 %v1163_v51  ;;  %v903_v51 = vor.u32 %v1126_v46, %v902_v45 }
  0x3e   :  { %641 = vmatpush.bf16.msrb.mxu2 %v1154_v55  ;;  %597 = vmatpush.bf16.msrb.mxu1 %v1146_v58  ;;  %v1128_v55 = vld [vmem:[%s1657_s0 + $0xcc] sm:$0xf]  ;;  %v1131_v58 = vld [vmem:[%s1657_s0 + $0xe0] sm:$0xf0] }
  0x3f   :  { %685 = vmatpush.bf16.msrb.mxu3 %v1162_v54  ;;  %v924_v54 = vld [vmem:[%s1657_s0 + $0xe4] sm:$0xf0]  ;;  %v919_v62 = vor.u32 %v1128_v55, %v916_v56 }
  0x40   :  { %v927_v59 = vor.u32 %v1129_v53, %v924_v54 }
  0x41   :  { %598 = vmatmul.bf16.vlgmr.msrb.gmra.mxu1 %v819_v2  ;;  %642 = vmatmul.bf16.vlgmr.msrb.gmra.mxu2 %v823_v3  ;;  %v944_v2 = vld [vmem:[%s1657_s0 + $0x10c] sm:$0xf0]  ;;  %v1133_v3 = vld [vmem:[%s1657_s0 + $0xf4] sm:$0xf] }
  0x42   :  { %686 = vmatmul.bf16.vlgmr.msrb.gmra.mxu3 %v827_v63  ;;  %v923_v63 = vor.u32 %v1131_v58, %v922_v57  ;;  %v947_v7 = vor.u32 %v1134_v1, %v944_v2 }
  0x43   :  { %1096 = vmatmul.msk.bf16.vlgmr.msrb.gmra.mxu0 %vm524_vm0, %v831_v4  ;;  %v936_v4 = vld [vmem:[%s1657_s0 + $0x104] sm:$0xf0] }
  0x44   :  { %v939_v10 = vor.u32 %v1133_v3, %v936_v4 }
  0x51   :  { %603 = vmatmul.bf16.gmra.mxu1 %v839_v14  ;;  %647 = vmatmul.bf16.gmra.mxu2 %v843_v15  ;;  %v1590_v15 = vld [vmem:[%s1656_s2] ss:$0 sm:$0xff] }
  0x52   :  { %691 = vmatmul.bf16.gmra.mxu3 %v847_v11  ;;  %v943_v11 = vor.u32 %v1136_v6, %v942_v5 }
  0x53   :  { %1097 = vmatmul.msk.bf16.gmra.mxu0 %vm524_vm0, %v851_v16 }
  0x61   :  { %608 = vmatmul.bf16.gmra.mxu1 %v859_v26  ;;  %652 = vmatmul.bf16.gmra.mxu2 %v863_v27 }
  0x62   :  { %696 = vmatmul.bf16.gmra.mxu3 %v867_v23 }
  0x63   :  { %1098 = vmatmul.msk.bf16.gmra.mxu0 %vm524_vm0, %v871_v28 }
  0x71   :  { %613 = vmatmul.bf16.gmra.mxu1 %v879_v38  ;;  %657 = vmatmul.bf16.gmra.mxu2 %v883_v39 }
  0x72   :  { %701 = vmatmul.bf16.gmra.mxu3 %v887_v35 }
  0x73   :  { %1099 = vmatmul.msk.bf16.gmra.mxu0 %vm524_vm0, %v891_v40 }
  0x81   :  { %618 = vmatmul.bf16.gmra.mxu1 %v899_v50  ;;  %662 = vmatmul.bf16.gmra.mxu2 %v903_v51 }
  0x82   :  { %706 = vmatmul.bf16.gmra.mxu3 %v907_v47 }
  0x83   :  { %1100 = vmatmul.msk.bf16.gmra.mxu0 %vm524_vm0, %v911_v52 }
  0x91   :  { %623 = vmatmul.bf16.gmra.mxu1 %v919_v62  ;;  %667 = vmatmul.bf16.gmra.mxu2 %v923_v63 }
  0x92   :  { %711 = vmatmul.bf16.gmra.mxu3 %v927_v59 }
  0x93   :  { %1101 = vmatmul.msk.bf16.gmra.mxu0 %vm524_vm0, %v931_v0 }
  0x9e   :  { %v1584_v12 = vpop.f32.mrf.mxu1 }
  0xa0   :  { %v555_v14 = vpop.f32.mrf.mxu0 }
  0xa1   :  { %628 = vmatmul.bf16.gmra.mxu1 %v939_v10  ;;  %672 = vmatmul.bf16.gmra.mxu2 %v943_v11  ;;  %v556_v37 = vadd.f32 %v1590_v15, %v555_v14 }
  0xa2   :  { %716 = vmatmul.bf16.gmra.mxu3 %v947_v7 }
  0xa3   :  { %1102 = vmatmul.msk.bf16.gmra.mxu0 %vm524_vm0, %v951_v13  ;;  %v566_v13 = vadd.f32 %v1590_v15, %v1584_v12 }
  0xa4   :  { %v575_v16 = vpop.f32.mrf.mxu2 }
  0xa5   :  { %v1593_v17 = vadd.f32 %v1590_v15, %v575_v16 }
  0xa6   :  { %v1595_v18 = vpop.f32.mrf.mxu1 }
  0xa7   :  { %v585_v19 = vpop.f32.mrf.mxu3 }
  0xa8   :  { %v557_v20 = vpop.f32.mrf.mxu0  ;;  %v1598_v21 = vadd.f32 %v1590_v15, %v585_v19 }
  0xa9   :  { %v558_v43 = vadd.f32 %v1590_v15, %v557_v20 }
  0xac   :  { %v577_v22 = vpop.f32.mrf.mxu2 }
  0xad   :  { %v1601_v23 = vadd.f32 %v1590_v15, %v577_v22 }
  0xae   :  { %v1603_v24 = vpop.f32.mrf.mxu1 }
  0xaf   :  { %v587_v25 = vpop.f32.mrf.mxu3 }
  0xb0   :  { %v560_v26 = vpop.f32.mrf.mxu0  ;;  %v1606_v27 = vadd.f32 %v1590_v15, %v587_v25 }
  0xb1   :  { %v561_v55 = vadd.f32 %v1590_v15, %v560_v26 }
  0xb4   :  { %v580_v28 = vpop.f32.mrf.mxu2 }
  0xb5   :  { %v1609_v29 = vadd.f32 %v1590_v15, %v580_v28 }
  0xb6   :  { %v1611_v30 = vpop.f32.mrf.mxu1 }
  0xb8   :  { %v562_v31 = vpop.f32.mrf.mxu0 }
  0xb9   :  { %v563_v0 = vadd.f32 %v1590_v15, %v562_v31  ;;  %v568_v31 = vadd.f32 %v1590_v15, %v1595_v18 }
  0xbc   :  { %v582_v32 = vpop.f32.mrf.mxu2 }
  0xbd   :  { %v1614_v33 = vadd.f32 %v1590_v15, %v582_v32 }
  0xbe   :  { %v599_v34 = vpop.f32.mrf.mxu1 }
  0xbf   :  { %v600_v39 = vadd.f32 %v599_v34, %v556_v37 }
  0xc0   :  { %v731_v35 = vpop.f32.mrf.mxu0 }
  0xc4   :  { %v643_v38 = vpop.f32.mrf.mxu2 }
  0xc5   :  { %v687_v36 = vpop.f32.mrf.mxu3  ;;  %v644_v41 = vadd.f32 %v643_v38, %v600_v39 }
  0xc6   :  { %v601_v40 = vpop.f32.mrf.mxu1 }
  0xc7   :  { %v688_v45 = vadd.f32 %v687_v36, %v644_v41  ;;  %v602_v46 = vadd.f32 %v601_v40, %v558_v43  ;;  %v571_v43 = vadd.f32 %v1590_v15, %v1603_v24 }
  0xc8   :  { %v733_v42 = vpop.f32.mrf.mxu0 }
  0xc9   :  { %v732_v50 = vadd.f32 %v731_v35, %v688_v45 }
  0xcb   :  { %v766_v56 = vmax.f32 %v732_v50, 0.0 }
  0xcc   :  { %v645_v47 = vpop.f32.mrf.mxu2 }
  0xcd   :  { %v689_v44 = vpop.f32.mrf.mxu3  ;;  %v646_v48 = vadd.f32 %v645_v47, %v602_v46 }
  0xce   :  { %v604_v49 = vpop.f32.mrf.mxu1 }
  0xcf   :  { %v690_v51 = vadd.f32 %v689_v44, %v646_v48  ;;  %v605_v60 = vadd.f32 %v604_v49, %v561_v55 }
  0xd0   :  { %v736_v52 = vpop.f32.mrf.mxu0 }
  0xd1   :  { %v734_v53 = vadd.f32 %v733_v42, %v690_v51  ;;  %v573_v51 = vadd.f32 %v1590_v15, %v1611_v30 }
  0xd3   :  { %v767_v57 = vmax.f32 %v734_v53, 0.0 }
  0xd4   :  { %v648_v58 = vpop.f32.mrf.mxu2 }
  0xd5   :  { %v692_v54 = vpop.f32.mrf.mxu3  ;;  %v1177_v59 = vpack.c.bf16 %v767_v57, %v766_v56  ;;  %v649_v62 = vadd.f32 %v648_v58, %v605_v60 }
  0xd6   :  { %v606_v61 = vpop.f32.mrf.mxu1 }
  0xd7   :  { %1178 = vst [vmem:[%s1658_s3] sm:$0xff] %v1177_v59   ;;  %v693_v2 = vadd.f32 %v692_v54, %v649_v62  ;;  %v607_v3 = vadd.f32 %v606_v61, %v563_v0 }
  0xd8   :  { %v738_v63 = vpop.f32.mrf.mxu0 }
  0xd9   :  { %v737_v7 = vadd.f32 %v736_v52, %v693_v2 }
  0xdb   :  { %v768_v14 = vmax.f32 %v737_v7, 0.0 }
  0xdc   :  { %v650_v4 = vpop.f32.mrf.mxu2 }
  0xdd   :  { %v694_v1 = vpop.f32.mrf.mxu3  ;;  %v651_v5 = vadd.f32 %v650_v4, %v607_v3 }
  0xde   :  { %v609_v6 = vpop.f32.mrf.mxu1 }
  0xdf   :  { %v695_v8 = vadd.f32 %v694_v1, %v651_v5  ;;  %v610_v22 = vadd.f32 %v609_v6, %v566_v13 }
  0xe0   :  { %v741_v9 = vpop.f32.mrf.mxu0 }
  0xe1   :  { %v739_v10 = vadd.f32 %v738_v63, %v695_v8 }
  0xe3   :  { %v769_v16 = vmax.f32 %v739_v10, 0.0 }
  0xe4   :  { %v653_v19 = vpop.f32.mrf.mxu2 }
  0xe5   :  { %v697_v11 = vpop.f32.mrf.mxu3  ;;  %v1182_v20 = vpack.c.bf16 %v769_v16, %v768_v14  ;;  %v654_v26 = vadd.f32 %v653_v19, %v610_v22 }
  0xe6   :  { %v611_v25 = vpop.f32.mrf.mxu1 }
  0xe7   :  { %1209 = vst [vmem:[%s1658_s3 + $0x8] sm:$0xff] %v1182_v20   ;;  %v698_v34 = vadd.f32 %v697_v11, %v654_v26  ;;  %v612_v35 = vadd.f32 %v611_v25, %v568_v31 }
  0xe8   :  { %v743_v28 = vpop.f32.mrf.mxu0 }
  0xe9   :  { %v742_v38 = vadd.f32 %v741_v9, %v698_v34 }
  0xeb   :  { %v770_v44 = vmax.f32 %v742_v38, 0.0 }
  0xec   :  { %v655_v36 = vpop.f32.mrf.mxu2 }
  0xed   :  { %v699_v32 = vpop.f32.mrf.mxu3  ;;  %v656_v12 = vadd.f32 %v655_v36, %v612_v35 }
  0xee   :  { %v614_v37 = vpop.f32.mrf.mxu1 }
  0xef   :  { %v700_v39 = vadd.f32 %v699_v32, %v656_v12  ;;  %v615_v48 = vadd.f32 %v614_v37, %v571_v43 }
  0xf0   :  { %v746_v40 = vpop.f32.mrf.mxu0 }
  0xf1   :  { %v744_v41 = vadd.f32 %v743_v28, %v700_v39 }
  0xf3   :  { %v771_v45 = vmax.f32 %v744_v41, 0.0 }
  0xf4   :  { %v658_v46 = vpop.f32.mrf.mxu2 }
  0xf5   :  { %v702_v42 = vpop.f32.mrf.mxu3  ;;  %v1187_v47 = vpack.c.bf16 %v771_v45, %v770_v44  ;;  %v659_v49 = vadd.f32 %v658_v46, %v615_v48 }
  0xf6   :  { %v616_v18 = vpop.f32.mrf.mxu1 }
  0xf7   :  { %1210 = vst [vmem:[%s1658_s3 + $0x10] sm:$0xff] %v1187_v47   ;;  %v703_v53 = vadd.f32 %v702_v42, %v659_v49  ;;  %v617_v54 = vadd.f32 %v616_v18, %v573_v51 }
  0xf8   :  { %v748_v50 = vpop.f32.mrf.mxu0 }
  0xf9   :  { %v747_v57 = vadd.f32 %v746_v40, %v703_v53 }
  0xfb   :  { %v772_v62 = vmax.f32 %v747_v57, 0.0 }
  0xfc   :  { %v660_v55 = vpop.f32.mrf.mxu2 }
  0xfd   :  { %v704_v52 = vpop.f32.mrf.mxu3  ;;  %v661_v24 = vadd.f32 %v660_v55, %v617_v54 }
  0xfe   :  { %v619_v56 = vpop.f32.mrf.mxu1 }
  0xff   :  { %v705_v58 = vadd.f32 %v704_v52, %v661_v24  ;;  %v620_v2 = vadd.f32 %v619_v56, %v1593_v17 }
 0x100   :  { %v751_v59 = vpop.f32.mrf.mxu0 }
 0x101   :  { %v749_v60 = vadd.f32 %v748_v50, %v705_v58 }
 0x103   :  { %v773_v63 = vmax.f32 %v749_v60, 0.0 }
 0x104   :  { %v663_v0 = vpop.f32.mrf.mxu2 }
 0x105   :  { %v707_v61 = vpop.f32.mrf.mxu3  ;;  %v1192_v1 = vpack.c.bf16 %v773_v63, %v772_v62  ;;  %v664_v15 = vadd.f32 %v663_v0, %v620_v2 }
 0x106   :  { %v621_v3 = vpop.f32.mrf.mxu1 }
 0x107   :  { %1211 = vst [vmem:[%s1658_s3 + $0x18] sm:$0xff] %v1192_v1   ;;  %v708_v5 = vadd.f32 %v707_v61, %v664_v15  ;;  %v622_v6 = vadd.f32 %v621_v3, %v1601_v23 }
 0x108   :  { %v753_v30 = vpop.f32.mrf.mxu0 }
 0x109   :  { %v752_v10 = vadd.f32 %v751_v59, %v708_v5 }
 0x10b   :  { %v774_v17 = vmax.f32 %v752_v10, 0.0 }
 0x10c   :  { %v665_v7 = vpop.f32.mrf.mxu2 }
 0x10d   :  { %v709_v4 = vpop.f32.mrf.mxu3  ;;  %v666_v8 = vadd.f32 %v665_v7, %v622_v6 }
 0x10e   :  { %v624_v9 = vpop.f32.mrf.mxu1 }
 0x10f   :  { %v710_v11 = vadd.f32 %v709_v4, %v666_v8  ;;  %v625_v25 = vadd.f32 %v624_v9, %v1609_v29 }
 0x110   :  { %v756_v14 = vpop.f32.mrf.mxu0 }
 0x111   :  { %v754_v13 = vadd.f32 %v753_v30, %v710_v11 }
 0x113   :  { %v775_v19 = vmax.f32 %v754_v13, 0.0 }
 0x114   :  { %v668_v20 = vpop.f32.mrf.mxu2 }
 0x115   :  { %v712_v16 = vpop.f32.mrf.mxu3  ;;  %v1197_v22 = vpack.c.bf16 %v775_v19, %v774_v17  ;;  %v669_v23 = vadd.f32 %v668_v20, %v625_v25 }
 0x116   :  { %v626_v26 = vpop.f32.mrf.mxu1 }
 0x117   :  { %1212 = vst [vmem:[%s1658_s3 + $0x20] sm:$0xff] %v1197_v22   ;;  %v713_v31 = vadd.f32 %v712_v16, %v669_v23  ;;  %v627_v32 = vadd.f32 %v626_v26, %v1614_v33 }
 0x118   :  { %v758_v34 = vpop.f32.mrf.mxu0 }
 0x119   :  { %v757_v37 = vadd.f32 %v756_v14, %v713_v31 }
 0x11b   :  { %v776_v40 = vmax.f32 %v757_v37, 0.0 }
 0x11c   :  { %v670_v35 = vpop.f32.mrf.mxu2 }
 0x11d   :  { %v714_v28 = vpop.f32.mrf.mxu3  ;;  %v671_v36 = vadd.f32 %v670_v35, %v627_v32 }
 0x11e   :  { %v629_v12 = vpop.f32.mrf.mxu1 }
 0x11f   :  { %v715_v38 = vadd.f32 %v714_v28, %v671_v36  ;;  %v630_v44 = vadd.f32 %v629_v12, %v1598_v21 }
 0x120   :  { %v761_v45 = vpop.f32.mrf.mxu0 }
 0x121   :  { %v759_v39 = vadd.f32 %v758_v34, %v715_v38 }
 0x123   :  { %v777_v41 = vmax.f32 %v759_v39, 0.0 }
 0x124   :  { %v673_v42 = vpop.f32.mrf.mxu2 }
 0x125   :  { %v717_v29 = vpop.f32.mrf.mxu3  ;;  %v1202_v43 = vpack.c.bf16 %v777_v41, %v776_v40  ;;  %v674_v33 = vadd.f32 %v673_v42, %v630_v44 }
 0x126   :  { %v631_v46 = vpop.f32.mrf.mxu1 }
 0x127   :  { %1213 = vst [vmem:[%s1658_s3 + $0x28] sm:$0xff] %v1202_v43   ;;  %v718_v47 = vadd.f32 %v717_v29, %v674_v33  ;;  %v632_v48 = vadd.f32 %v631_v46, %v1606_v27 }
 0x128   :  { %v763_v53 = vpop.f32.mrf.mxu0 }
 0x129   :  { %v762_v51 = vadd.f32 %v761_v45, %v718_v47 }
 0x12b   :  { %v778_v55 = vmax.f32 %v762_v51, 0.0 }
 0x12c   :  { %v675_v18 = vpop.f32.mrf.mxu2 }
 0x12d   :  { %v676_v49 = vadd.f32 %v675_v18, %v632_v48  ;;  %v719_v50 = vpop.f32.mrf.mxu3 }
 0x12f   :  { %v720_v52 = vadd.f32 %v719_v50, %v676_v49 }
 0x131   :  { %v764_v54 = vadd.f32 %v763_v53, %v720_v52 }
 0x133   :  { %v779_v24 = vmax.f32 %v764_v54, 0.0 }
 0x135   :  { %v1207_v21 = vpack.c.bf16 %v779_v24, %v778_v55 }
 0x137   :  { %1214 = vst [vmem:[%s1658_s3 + $0x30] sm:$0xff] %v1207_v21  }

// kernel: dqn_forward.7
= control target key start
LH: loop header
LB: loop body
LE: loop exit
PB: predicated region body
PF: predicated region fallthrough
CT: control target
= control target key end

     0   :  { %vm4886_vm0 = vcmask 523264   ;;  %s16328_s1 = inlined_call_operand.vmem [shape: bf16[3136,512], index: 1, kind: input, shape index: {}]   ;;  %s16329_s0 = inlined_call_operand.vmem [shape: bf16[16,3136], index: 0, kind: input, shape index: {}]   ;;  %s16330_s2 = inlined_call_operand.vmem [shape: f32[1,512], index: 2, kind: input, shape index: {}]   ;;  %s16331_s3 = inlined_call_operand.vmem [shape: bf16[512,128], index: 3, kind: input, shape index: {}]   ;;  %s16332_s4 = inlined_call_operand.vmem [shape: f32[1,128], index: 4, kind: input, shape index: {}]   ;;  %s16333_s5 = inlined_call_operand.vmem [shape: f32[16,128], index: 5, kind: output, shape index: {}]  }
   0x1   :  { %v6854_v0 = vld [vmem:[%s16328_s1 + $0xe0] sm:$0xf]  ;;  %v10063_v1 = vld [vmem:[%s16328_s1 + $0xec] sm:$0xf0] }
   0x2   :  { %v6982_v2 = vld [vmem:[%s16328_s1 + $0x1e0] sm:$0xf]  ;;  %v6855_v3 = vor.u32 %v10063_v1, %v6854_v0  ;;  %v10095_v4 = vld [vmem:[%s16328_s1 + $0x1ec] sm:$0xf0] }
   0x3   :  { %v7110_v5 = vld [vmem:[%s16328_s1 + $0x2e0] sm:$0xf]  ;;  %v10127_v6 = vld [vmem:[%s16328_s1 + $0x2ec] sm:$0xf0]  ;;  %v6983_v7 = vor.u32 %v10095_v4, %v6982_v2 }
   0x4   :  { %v7111_v8 = vor.u32 %v10127_v6, %v7110_v5  ;;  %v7238_v9 = vld [vmem:[%s16328_s1 + $0x3e0] sm:$0xf]  ;;  %v10159_v10 = vld [vmem:[%s16328_s1 + $0x3ec] sm:$0xf0]  ;;  %4890 = vmatpush.bf16.msra.mxu0 %v6855_v3 }
   0x5   :  { %v6838_v11 = vld [vmem:[%s16328_s1 + $0xc0] sm:$0xf]  ;;  %v7239_v12 = vor.u32 %v10159_v10, %v7238_v9  ;;  %v10059_v13 = vld [vmem:[%s16328_s1 + $0xcc] sm:$0xf0]  ;;  %4904 = vmatpush.bf16.msra.mxu1 %v6983_v7 }
   0x6   :  { %v6966_v14 = vld [vmem:[%s16328_s1 + $0x1c0] sm:$0xf]  ;;  %v10091_v15 = vld [vmem:[%s16328_s1 + $0x1cc] sm:$0xf0]  ;;  %4918 = vmatpush.bf16.msra.mxu2 %v7111_v8  ;;  %v6839_v16 = vor.u32 %v10059_v13, %v6838_v11 }
   0x7   :  { %v6967_v17 = vor.u32 %v10091_v15, %v6966_v14  ;;  %v7094_v18 = vld [vmem:[%s16328_s1 + $0x2c0] sm:$0xf]  ;;  %v10123_v19 = vld [vmem:[%s16328_s1 + $0x2cc] sm:$0xf0]  ;;  %4932 = vmatpush.bf16.msra.mxu3 %v7239_v12 }
   0x8   :  { %v7222_v20 = vld [vmem:[%s16328_s1 + $0x3c0] sm:$0xf]  ;;  %v7095_v21 = vor.u32 %v10123_v19, %v7094_v18  ;;  %v10155_v22 = vld [vmem:[%s16328_s1 + $0x3cc] sm:$0xf0]  ;;  %4891 = vmatpush.bf16.msra.mxu0 %v6839_v16 }
   0x9   :  { %v6822_v23 = vld [vmem:[%s16328_s1 + $0xa0] sm:$0xf]  ;;  %v10055_v24 = vld [vmem:[%s16328_s1 + $0xac] sm:$0xf0]  ;;  %v7223_v25 = vor.u32 %v10155_v22, %v7222_v20  ;;  %4905 = vmatpush.bf16.msra.mxu1 %v6967_v17 }
   0xa   :  { %v6950_v26 = vld [vmem:[%s16328_s1 + $0x1a0] sm:$0xf]  ;;  %v10087_v27 = vld [vmem:[%s16328_s1 + $0x1ac] sm:$0xf0]  ;;  %v6823_v29 = vor.u32 %v10055_v24, %v6822_v23  ;;  %4919 = vmatpush.bf16.msra.mxu2 %v7095_v21 }
   0xb   :  { %v7078_v28 = vld [vmem:[%s16328_s1 + $0x2a0] sm:$0xf]  ;;  %v10119_v30 = vld [vmem:[%s16328_s1 + $0x2ac] sm:$0xf0]  ;;  %v6951_v33 = vor.u32 %v10087_v27, %v6950_v26  ;;  %4933 = vmatpush.bf16.msra.mxu3 %v7223_v25 }
   0xc   :  { %v7206_v31 = vld [vmem:[%s16328_s1 + $0x3a0] sm:$0xf]  ;;  %v10151_v32 = vld [vmem:[%s16328_s1 + $0x3ac] sm:$0xf0]  ;;  %v7079_v34 = vor.u32 %v10119_v30, %v7078_v28  ;;  %4892 = vmatpush.bf16.msra.mxu0 %v6823_v29 }
   0xd   :  { %v6806_v35 = vld [vmem:[%s16328_s1 + $0x80] sm:$0xf]  ;;  %v10051_v36 = vld [vmem:[%s16328_s1 + $0x8c] sm:$0xf0]  ;;  %v7207_v38 = vor.u32 %v10151_v32, %v7206_v31  ;;  %4906 = vmatpush.bf16.msra.mxu1 %v6951_v33 }
   0xe   :  { %v6934_v37 = vld [vmem:[%s16328_s1 + $0x180] sm:$0xf]  ;;  %v10083_v39 = vld [vmem:[%s16328_s1 + $0x18c] sm:$0xf0]  ;;  %v6807_v44 = vor.u32 %v10051_v36, %v6806_v35  ;;  %4920 = vmatpush.bf16.msra.mxu2 %v7079_v34 }
   0xf   :  { %v7062_v40 = vld [vmem:[%s16328_s1 + $0x280] sm:$0xf]  ;;  %v10115_v41 = vld [vmem:[%s16328_s1 + $0x28c] sm:$0xf0]  ;;  %v6935_v45 = vor.u32 %v10083_v39, %v6934_v37  ;;  %4934 = vmatpush.bf16.msra.mxu3 %v7207_v38 }
  0x10   :  { %v7190_v42 = vld [vmem:[%s16328_s1 + $0x380] sm:$0xf]  ;;  %v10147_v43 = vld [vmem:[%s16328_s1 + $0x38c] sm:$0xf0]  ;;  %v7063_v46 = vor.u32 %v10115_v41, %v7062_v40  ;;  %4893 = vmatpush.bf16.msra.mxu0 %v6807_v44 }
  0x11   :  { %v6790_v47 = vld [vmem:[%s16328_s1 + $0x60] sm:$0xf]  ;;  %v10047_v48 = vld [vmem:[%s16328_s1 + $0x6c] sm:$0xf0]  ;;  %v7191_v50 = vor.u32 %v10147_v43, %v7190_v42  ;;  %4907 = vmatpush.bf16.msra.mxu1 %v6935_v45 }
  0x12   :  { %v6918_v49 = vld [vmem:[%s16328_s1 + $0x160] sm:$0xf]  ;;  %v10079_v51 = vld [vmem:[%s16328_s1 + $0x16c] sm:$0xf0]  ;;  %v6791_v56 = vor.u32 %v10047_v48, %v6790_v47  ;;  %4921 = vmatpush.bf16.msra.mxu2 %v7063_v46 }
  0x13   :  { %v7046_v52 = vld [vmem:[%s16328_s1 + $0x260] sm:$0xf]  ;;  %v10111_v53 = vld [vmem:[%s16328_s1 + $0x26c] sm:$0xf0]  ;;  %v6919_v57 = vor.u32 %v10079_v51, %v6918_v49  ;;  %4935 = vmatpush.bf16.msra.mxu3 %v7191_v50 }
  0x14   :  { %v7174_v54 = vld [vmem:[%s16328_s1 + $0x360] sm:$0xf]  ;;  %v10143_v55 = vld [vmem:[%s16328_s1 + $0x36c] sm:$0xf0]  ;;  %v7047_v58 = vor.u32 %v10111_v53, %v7046_v52  ;;  %4894 = vmatpush.bf16.msra.mxu0 %v6791_v56  ;;  %v10020_v53 = vld [vmem:[%s16329_s0 + $0x60] sm:$0xf0] }
  0x15   :  { %v6774_v59 = vld [vmem:[%s16328_s1 + $0x40] sm:$0xf]  ;;  %v10043_v60 = vld [vmem:[%s16328_s1 + $0x4c] sm:$0xf0]  ;;  %v7175_v62 = vor.u32 %v10143_v55, %v7174_v54  ;;  %4908 = vmatpush.bf16.msra.mxu1 %v6919_v57  ;;  %v6650_v54 = vld [vmem:[%s16329_s0 + $0x8] sm:$0xf] }
  0x16   :  { %v6902_v61 = vld [vmem:[%s16328_s1 + $0x140] sm:$0xf]  ;;  %v10075_v63 = vld [vmem:[%s16328_s1 + $0x14c] sm:$0xf0]  ;;  %v6775_v4 = vor.u32 %v10043_v60, %v6774_v59  ;;  %4922 = vmatpush.bf16.msra.mxu2 %v7047_v58  ;;  %v10021_v59 = vld [vmem:[%s16329_s0 + $0x68] sm:$0xf0] }
  0x17   :  { %v7030_v0 = vld [vmem:[%s16328_s1 + $0x240] sm:$0xf]  ;;  %v10107_v1 = vld [vmem:[%s16328_s1 + $0x24c] sm:$0xf0]  ;;  %v6903_v5 = vor.u32 %v10075_v63, %v6902_v61  ;;  %4936 = vmatpush.bf16.msra.mxu3 %v7175_v62 }
  0x18   :  { %v7158_v2 = vld [vmem:[%s16328_s1 + $0x340] sm:$0xf]  ;;  %v10139_v3 = vld [vmem:[%s16328_s1 + $0x34c] sm:$0xf0]  ;;  %v7031_v6 = vor.u32 %v10107_v1, %v7030_v0  ;;  %4895 = vmatpush.bf16.msra.mxu0 %v6775_v4  ;;  %v11151_v1 = vor.u32 %v10021_v59, %v6650_v54 }
  0x19   :  { %v6758_v7 = vld [vmem:[%s16328_s1 + $0x20] sm:$0xf]  ;;  %v10039_v8 = vld [vmem:[%s16328_s1 + $0x2c] sm:$0xf0]  ;;  %v7159_v10 = vor.u32 %v10139_v3, %v7158_v2  ;;  %4909 = vmatpush.bf16.msra.mxu1 %v6903_v5 }
  0x1a   :  { %v6886_v9 = vld [vmem:[%s16328_s1 + $0x120] sm:$0xf]  ;;  %v10071_v11 = vld [vmem:[%s16328_s1 + $0x12c] sm:$0xf0]  ;;  %v6759_v16 = vor.u32 %v10039_v8, %v6758_v7  ;;  %4923 = vmatpush.bf16.msra.mxu2 %v7031_v6  ;;  %v10008_v6 = vld [vmem:[%s16329_s0 + $0x4] sm:$0xf] }
  0x1b   :  { %v7014_v12 = vld [vmem:[%s16328_s1 + $0x220] sm:$0xf]  ;;  %v10103_v13 = vld [vmem:[%s16328_s1 + $0x22c] sm:$0xf0]  ;;  %v6887_v19 = vor.u32 %v10071_v11, %v6886_v9  ;;  %4937 = vmatpush.bf16.msra.mxu3 %v7159_v10  ;;  %v6644_v7 = vld [vmem:[%s16329_s0 + $0x64] sm:$0xf0] }
  0x1c   :  { %v7142_v14 = vld [vmem:[%s16328_s1 + $0x320] sm:$0xf]  ;;  %v10135_v15 = vld [vmem:[%s16328_s1 + $0x32c] sm:$0xf0]  ;;  %v7015_v20 = vor.u32 %v10103_v13, %v7014_v12  ;;  %4896 = vmatpush.bf16.msra.mxu0 %v6759_v16  ;;  %v10009_v8 = vld [vmem:[%s16329_s0 + $0xc] sm:$0xf]  ;;  %v11173_v10 = vor.u32 %v10008_v6, %v6644_v7 }
  0x1d   :  { %v6742_v17 = vld [vmem:[%s16328_s1] sm:$0xf]  ;;  %v10035_v18 = vld [vmem:[%s16328_s1 + $0xc] sm:$0xf0]  ;;  %v7143_v24 = vor.u32 %v10135_v15, %v7142_v14  ;;  %4910 = vmatpush.bf16.msra.mxu1 %v6887_v19 }
  0x1e   :  { %v6870_v21 = vld [vmem:[%s16328_s1 + $0x100] sm:$0xf]  ;;  %v10067_v22 = vld [vmem:[%s16328_s1 + $0x10c] sm:$0xf0]  ;;  %v6743_v31 = vor.u32 %v10035_v18, %v6742_v17  ;;  %4924 = vmatpush.bf16.msra.mxu2 %v7015_v20 }
  0x1f   :  { %v6998_v23 = vld [vmem:[%s16328_s1 + $0x200] sm:$0xf]  ;;  %v10099_v25 = vld [vmem:[%s16328_s1 + $0x20c] sm:$0xf0]  ;;  %v6871_v35 = vor.u32 %v10067_v22, %v6870_v21  ;;  %4938 = vmatpush.bf16.msra.mxu3 %v7143_v24 }
  0x20   :  { %v7126_v26 = vld [vmem:[%s16328_s1 + $0x300] sm:$0xf]  ;;  %v10131_v27 = vld [vmem:[%s16328_s1 + $0x30c] sm:$0xf0]  ;;  %v6999_v36 = vor.u32 %v10099_v25, %v6998_v23  ;;  %4897 = vmatpush.bf16.msra.mxu0 %v6743_v31 }
  0x21   :  { %v7366_v28 = vld [vmem:[%s16328_s1 + $0x4e0] sm:$0xf]  ;;  %v10191_v29 = vld [vmem:[%s16328_s1 + $0x4ec] sm:$0xf0]  ;;  %v7127_v39 = vor.u32 %v10131_v27, %v7126_v26  ;;  %4911 = vmatpush.bf16.msra.mxu1 %v6871_v35 }
  0x22   :  { %v7494_v30 = vld [vmem:[%s16328_s1 + $0x5e0] sm:$0xf]  ;;  %v10223_v32 = vld [vmem:[%s16328_s1 + $0x5ec] sm:$0xf0]  ;;  %v7367_v40 = vor.u32 %v10191_v29, %v7366_v28  ;;  %4925 = vmatpush.bf16.msra.mxu2 %v6999_v36 }
  0x23   :  { %v7622_v33 = vld [vmem:[%s16328_s1 + $0x6e0] sm:$0xf]  ;;  %v10255_v34 = vld [vmem:[%s16328_s1 + $0x6ec] sm:$0xf0]  ;;  %v7495_v43 = vor.u32 %v10223_v32, %v7494_v30  ;;  %4939 = vmatpush.bf16.msra.mxu3 %v7127_v39 }
  0x24   :  { %v7750_v37 = vld [vmem:[%s16328_s1 + $0x7e0] sm:$0xf]  ;;  %v10287_v38 = vld [vmem:[%s16328_s1 + $0x7ec] sm:$0xf0]  ;;  %v7623_v44 = vor.u32 %v10255_v34, %v7622_v33  ;;  %4946 = vmatpush.bf16.msrb.mxu0 %v7367_v40  ;;  %4912 = vmatmul.bf16.vlgmr.msra.gmra.mxu1 %v11173_v10 }
  0x25   :  { %v7350_v41 = vld [vmem:[%s16328_s1 + $0x4c0] sm:$0xf]  ;;  %v10187_v42 = vld [vmem:[%s16328_s1 + $0x4cc] sm:$0xf0]  ;;  %v7751_v48 = vor.u32 %v10287_v38, %v7750_v37  ;;  %4960 = vmatpush.bf16.msrb.mxu1 %v7495_v43  ;;  %4926 = vmatmul.bf16.vlgmr.msra.gmra.mxu2 %v11151_v1 }
  0x26   :  { %v7478_v45 = vld [vmem:[%s16328_s1 + $0x5c0] sm:$0xf]  ;;  %v10219_v46 = vld [vmem:[%s16328_s1 + $0x5cc] sm:$0xf0]  ;;  %v7351_v55 = vor.u32 %v10187_v42, %v7350_v41  ;;  %4974 = vmatpush.bf16.msrb.mxu2 %v7623_v44 }
  0x27   :  { %v7606_v47 = vld [vmem:[%s16328_s1 + $0x6c0] sm:$0xf]  ;;  %v10251_v49 = vld [vmem:[%s16328_s1 + $0x6cc] sm:$0xf0]  ;;  %v7479_v60 = vor.u32 %v10219_v46, %v7478_v45  ;;  %4988 = vmatpush.bf16.msrb.mxu3 %v7751_v48 }
  0x28   :  { %v7734_v50 = vld [vmem:[%s16328_s1 + $0x7c0] sm:$0xf]  ;;  %v10283_v51 = vld [vmem:[%s16328_s1 + $0x7cc] sm:$0xf0]  ;;  %v7607_v61 = vor.u32 %v10251_v49, %v7606_v47  ;;  %4947 = vmatpush.bf16.msrb.mxu0 %v7351_v55 }
  0x29   :  { %v6642_v52 = vld [vmem:[%s16329_s0] sm:$0xf]  ;;  %v10183_v57 = vld [vmem:[%s16328_s1 + $0x4ac] sm:$0xf0]  ;;  %v7735_v2 = vor.u32 %v10283_v51, %v7734_v50  ;;  %4961 = vmatpush.bf16.msrb.mxu1 %v7479_v60 }
  0x2a   :  { %v7334_v56 = vld [vmem:[%s16328_s1 + $0x4a0] sm:$0xf]  ;;  %v11137_v58 = vor.u32 %v10020_v53, %v6642_v52  ;;  %v10215_v63 = vld [vmem:[%s16328_s1 + $0x5ac] sm:$0xf0]  ;;  %4975 = vmatpush.bf16.msrb.mxu2 %v7607_v61 }
  0x2b   :  { %v7462_v62 = vld [vmem:[%s16328_s1 + $0x5a0] sm:$0xf]  ;;  %v10247_v3 = vld [vmem:[%s16328_s1 + $0x6ac] sm:$0xf0]  ;;  %v7335_v9 = vor.u32 %v10183_v57, %v7334_v56  ;;  %4989 = vmatpush.bf16.msrb.mxu3 %v7735_v2 }
  0x2c   :  { %v7590_v0 = vld [vmem:[%s16328_s1 + $0x6a0] sm:$0xf]  ;;  %v10279_v5 = vld [vmem:[%s16328_s1 + $0x7ac] sm:$0xf0]  ;;  %4898 = vmatmul.bf16.vlgmr.msra.gmra.mxu0 %v11137_v58  ;;  %v7463_v12 = vor.u32 %v10215_v63, %v7462_v62 }
  0x2d   :  { %v7718_v4 = vld [vmem:[%s16328_s1 + $0x7a0] sm:$0xf]  ;;  %v6652_v11 = vld [vmem:[%s16329_s0 + $0x6c] sm:$0xf0]  ;;  %v7591_v13 = vor.u32 %v10247_v3, %v7590_v0  ;;  %4948 = vmatpush.bf16.msrb.mxu0 %v7335_v9 }
  0x2e   :  { %v7318_v14 = vld [vmem:[%s16328_s1 + $0x480] sm:$0xf]  ;;  %v10179_v15 = vld [vmem:[%s16328_s1 + $0x48c] sm:$0xf0]  ;;  %v11187_v17 = vor.u32 %v10009_v8, %v6652_v11  ;;  %v7719_v18 = vor.u32 %v10279_v5, %v7718_v4  ;;  %4962 = vmatpush.bf16.msrb.mxu1 %v7463_v12 }
  0x2f   :  { %v7446_v16 = vld [vmem:[%s16328_s1 + $0x580] sm:$0xf]  ;;  %v10211_v19 = vld [vmem:[%s16328_s1 + $0x58c] sm:$0xf0]  ;;  %v7319_v24 = vor.u32 %v10179_v15, %v7318_v14  ;;  %4976 = vmatpush.bf16.msrb.mxu2 %v7591_v13 }
  0x30   :  { %v7574_v20 = vld [vmem:[%s16328_s1 + $0x680] sm:$0xf]  ;;  %v10243_v21 = vld [vmem:[%s16328_s1 + $0x68c] sm:$0xf0]  ;;  %4940 = vmatmul.bf16.vlgmr.msra.gmra.mxu3 %v11187_v17  ;;  %v7447_v25 = vor.u32 %v10211_v19, %v7446_v16 }
  0x31   :  { %v7702_v22 = vld [vmem:[%s16328_s1 + $0x780] sm:$0xf]  ;;  %v10275_v23 = vld [vmem:[%s16328_s1 + $0x78c] sm:$0xf0]  ;;  %v7575_v26 = vor.u32 %v10243_v21, %v7574_v20  ;;  %4990 = vmatpush.bf16.msrb.mxu3 %v7719_v18  ;;  %4949 = vmatpush.bf16.msrb.mxu0 %v7319_v24 }
  0x32   :  { %v7302_v27 = vld [vmem:[%s16328_s1 + $0x460] sm:$0xf]  ;;  %v10175_v28 = vld [vmem:[%s16328_s1 + $0x46c] sm:$0xf0]  ;;  %v7703_v30 = vor.u32 %v10275_v23, %v7702_v22  ;;  %4963 = vmatpush.bf16.msrb.mxu1 %v7447_v25  ;;  %v10022_v22 = vld [vmem:[%s16329_s0 + $0x70] sm:$0xf0] }
  0x33   :  { %v7430_v29 = vld [vmem:[%s16328_s1 + $0x560] sm:$0xf]  ;;  %v10207_v31 = vld [vmem:[%s16328_s1 + $0x56c] sm:$0xf0]  ;;  %v7303_v36 = vor.u32 %v10175_v28, %v7302_v27  ;;  %4977 = vmatpush.bf16.msrb.mxu2 %v7575_v26  ;;  %v6666_v25 = vld [vmem:[%s16329_s0 + $0x18] sm:$0xf] }
  0x34   :  { %v7558_v32 = vld [vmem:[%s16328_s1 + $0x660] sm:$0xf]  ;;  %v10239_v33 = vld [vmem:[%s16328_s1 + $0x66c] sm:$0xf0]  ;;  %v7431_v37 = vor.u32 %v10207_v31, %v7430_v29  ;;  %v10023_v26 = vld [vmem:[%s16329_s0 + $0x78] sm:$0xf0] }
  0x35   :  { %v7686_v34 = vld [vmem:[%s16328_s1 + $0x760] sm:$0xf]  ;;  %v10271_v35 = vld [vmem:[%s16328_s1 + $0x76c] sm:$0xf0]  ;;  %v7559_v38 = vor.u32 %v10239_v33, %v7558_v32  ;;  %4991 = vmatpush.bf16.msrb.mxu3 %v7703_v30  ;;  %4950 = vmatpush.bf16.msrb.mxu0 %v7303_v36  ;;  %v10010_v27 = vld [vmem:[%s16329_s0 + $0x14] sm:$0xf] }
  0x36   :  { %v7286_v39 = vld [vmem:[%s16328_s1 + $0x440] sm:$0xf]  ;;  %v10171_v40 = vld [vmem:[%s16328_s1 + $0x44c] sm:$0xf0]  ;;  %v7687_v42 = vor.u32 %v10271_v35, %v7686_v34  ;;  %4964 = vmatpush.bf16.msrb.mxu1 %v7431_v37  ;;  %v6660_v30 = vld [vmem:[%s16329_s0 + $0x74] sm:$0xf0] }
  0x37   :  { %v7414_v41 = vld [vmem:[%s16328_s1 + $0x540] sm:$0xf]  ;;  %v10203_v43 = vld [vmem:[%s16328_s1 + $0x54c] sm:$0xf0]  ;;  %v7287_v48 = vor.u32 %v10171_v40, %v7286_v39  ;;  %4978 = vmatpush.bf16.msrb.mxu2 %v7559_v38  ;;  %v10011_v31 = vld [vmem:[%s16329_s0 + $0x1c] sm:$0xf] }
  0x38   :  { %v7542_v44 = vld [vmem:[%s16328_s1 + $0x640] sm:$0xf]  ;;  %v10235_v45 = vld [vmem:[%s16328_s1 + $0x64c] sm:$0xf0]  ;;  %v7415_v50 = vor.u32 %v10203_v43, %v7414_v41  ;;  %v11370_v43 = vor.u32 %v10023_v26, %v6666_v25 }
  0x39   :  { %v7670_v46 = vld [vmem:[%s16328_s1 + $0x740] sm:$0xf]  ;;  %v10267_v47 = vld [vmem:[%s16328_s1 + $0x74c] sm:$0xf0]  ;;  %v7543_v51 = vor.u32 %v10235_v45, %v7542_v44  ;;  %4992 = vmatpush.bf16.msrb.mxu3 %v7687_v42  ;;  %4951 = vmatpush.bf16.msrb.mxu0 %v7287_v48  ;;  %v11372_v44 = vor.u32 %v10010_v27, %v6660_v30 }
  0x3a   :  { %v7270_v49 = vld [vmem:[%s16328_s1 + $0x420] sm:$0xf]  ;;  %v10167_v52 = vld [vmem:[%s16328_s1 + $0x42c] sm:$0xf0]  ;;  %v7671_v55 = vor.u32 %v10267_v47, %v7670_v46  ;;  %4965 = vmatpush.bf16.msrb.mxu1 %v7415_v50 }
  0x3b   :  { %v7398_v53 = vld [vmem:[%s16328_s1 + $0x520] sm:$0xf]  ;;  %v10199_v54 = vld [vmem:[%s16328_s1 + $0x52c] sm:$0xf0]  ;;  %v7271_v63 = vor.u32 %v10167_v52, %v7270_v49  ;;  %4979 = vmatpush.bf16.msrb.mxu2 %v7543_v51 }
  0x3c   :  { %v7526_v56 = vld [vmem:[%s16328_s1 + $0x620] sm:$0xf]  ;;  %v10231_v57 = vld [vmem:[%s16328_s1 + $0x62c] sm:$0xf0]  ;;  %v7399_v5 = vor.u32 %v10199_v54, %v7398_v53 }
  0x3d   :  { %v7654_v59 = vld [vmem:[%s16328_s1 + $0x720] sm:$0xf]  ;;  %v10263_v60 = vld [vmem:[%s16328_s1 + $0x72c] sm:$0xf0]  ;;  %v7527_v6 = vor.u32 %v10231_v57, %v7526_v56  ;;  %4993 = vmatpush.bf16.msrb.mxu3 %v7671_v55  ;;  %4952 = vmatpush.bf16.msrb.mxu0 %v7271_v63 }
  0x3e   :  { %v7254_v61 = vld [vmem:[%s16328_s1 + $0x400] sm:$0xf]  ;;  %v10163_v62 = vld [vmem:[%s16328_s1 + $0x40c] sm:$0xf0]  ;;  %v7655_v11 = vor.u32 %v10263_v60, %v7654_v59  ;;  %4966 = vmatpush.bf16.msrb.mxu1 %v7399_v5 }
  0x3f   :  { %v7382_v0 = vld [vmem:[%s16328_s1 + $0x500] sm:$0xf]  ;;  %v10195_v2 = vld [vmem:[%s16328_s1 + $0x50c] sm:$0xf0]  ;;  %v7255_v19 = vor.u32 %v10163_v62, %v7254_v61  ;;  %4980 = vmatpush.bf16.msrb.mxu2 %v7527_v6 }
  0x40   :  { %v7510_v3 = vld [vmem:[%s16328_s1 + $0x600] sm:$0xf]  ;;  %v10227_v4 = vld [vmem:[%s16328_s1 + $0x60c] sm:$0xf0]  ;;  %v7383_v23 = vor.u32 %v10195_v2, %v7382_v0 }
  0x41   :  { %v7638_v7 = vld [vmem:[%s16328_s1 + $0x700] sm:$0xf]  ;;  %v10259_v8 = vld [vmem:[%s16328_s1 + $0x70c] sm:$0xf0]  ;;  %v7511_v24 = vor.u32 %v10227_v4, %v7510_v3  ;;  %4994 = vmatpush.bf16.msrb.mxu3 %v7655_v11  ;;  %4953 = vmatpush.bf16.msrb.mxu0 %v7255_v19 }
  0x42   :  { %v7878_v9 = vld [vmem:[%s16328_s1 + $0x8e0] sm:$0xf]  ;;  %v10319_v12 = vld [vmem:[%s16328_s1 + $0x8ec] sm:$0xf0]  ;;  %v7639_v28 = vor.u32 %v10259_v8, %v7638_v7  ;;  %4967 = vmatpush.bf16.msrb.mxu1 %v7383_v23 }
  0x43   :  { %v8006_v13 = vld [vmem:[%s16328_s1 + $0x9e0] sm:$0xf]  ;;  %v10351_v14 = vld [vmem:[%s16328_s1 + $0x9ec] sm:$0xf0]  ;;  %v7879_v29 = vor.u32 %v10319_v12, %v7878_v9  ;;  %4981 = vmatpush.bf16.msrb.mxu2 %v7511_v24 }
  0x44   :  { %v8134_v15 = vld [vmem:[%s16328_s1 + $0xae0] sm:$0xf]  ;;  %v10383_v16 = vld [vmem:[%s16328_s1 + $0xaec] sm:$0xf0]  ;;  %v8007_v33 = vor.u32 %v10351_v14, %v8006_v13 }
  0x45   :  { %v8262_v18 = vld [vmem:[%s16328_s1 + $0xbe0] sm:$0xf]  ;;  %v10415_v20 = vld [vmem:[%s16328_s1 + $0xbec] sm:$0xf0]  ;;  %v8135_v34 = vor.u32 %v10383_v16, %v8134_v15  ;;  %4995 = vmatpush.bf16.msrb.mxu3 %v7639_v28  ;;  %5002 = vmatpush.bf16.msra.mxu0 %v7879_v29 }
  0x46   :  { %v6658_v21 = vld [vmem:[%s16329_s0 + $0x10] sm:$0xf]  ;;  %v6668_v32 = vld [vmem:[%s16329_s0 + $0x7c] sm:$0xf0]  ;;  %v8263_v38 = vor.u32 %v10415_v20, %v8262_v18  ;;  %5016 = vmatpush.bf16.msra.mxu1 %v8007_v33  ;;  %4982 = vmatmul.bf16.vlgmr.msrb.gmra.mxu2 %v11370_v43 }
  0x47   :  { %v7862_v35 = vld [vmem:[%s16328_s1 + $0x8c0] sm:$0xf]  ;;  %v10315_v36 = vld [vmem:[%s16328_s1 + $0x8cc] sm:$0xf0]  ;;  %v11359_v39 = vor.u32 %v10022_v22, %v6658_v21  ;;  %v11380_v47 = vor.u32 %v10011_v31, %v6668_v32  ;;  %5030 = vmatpush.bf16.msra.mxu2 %v8135_v34  ;;  %4968 = vmatmul.bf16.vlgmr.msrb.gmra.mxu1 %v11372_v44 }
  0x48   :  { %v7990_v37 = vld [vmem:[%s16328_s1 + $0x9c0] sm:$0xf]  ;;  %v10347_v40 = vld [vmem:[%s16328_s1 + $0x9cc] sm:$0xf0]  ;;  %v7863_v48 = vor.u32 %v10315_v36, %v7862_v35 }
  0x49   :  { %v8118_v41 = vld [vmem:[%s16328_s1 + $0xac0] sm:$0xf]  ;;  %v10379_v42 = vld [vmem:[%s16328_s1 + $0xacc] sm:$0xf0]  ;;  %v7991_v49 = vor.u32 %v10347_v40, %v7990_v37  ;;  %5044 = vmatpush.bf16.msra.mxu3 %v8263_v38  ;;  %4954 = vmatmul.bf16.vlgmr.msrb.gmra.mxu0 %v11359_v39 }
  0x4a   :  { %v8246_v45 = vld [vmem:[%s16328_s1 + $0xbc0] sm:$0xf]  ;;  %v10411_v46 = vld [vmem:[%s16328_s1 + $0xbcc] sm:$0xf0]  ;;  %v8119_v50 = vor.u32 %v10379_v42, %v8118_v41  ;;  %4996 = vmatmul.bf16.vlgmr.msrb.gmra.mxu3 %v11380_v47  ;;  %5003 = vmatpush.bf16.msra.mxu0 %v7863_v48 }
  0x4b   :  { %v7846_v51 = vld [vmem:[%s16328_s1 + $0x8a0] sm:$0xf]  ;;  %v10311_v52 = vld [vmem:[%s16328_s1 + $0x8ac] sm:$0xf0]  ;;  %v8247_v54 = vor.u32 %v10411_v46, %v8246_v45  ;;  %5017 = vmatpush.bf16.msra.mxu1 %v7991_v49 }
  0x4c   :  { %v7974_v53 = vld [vmem:[%s16328_s1 + $0x9a0] sm:$0xf]  ;;  %v10343_v55 = vld [vmem:[%s16328_s1 + $0x9ac] sm:$0xf0]  ;;  %v7847_v61 = vor.u32 %v10311_v52, %v7846_v51  ;;  %5031 = vmatpush.bf16.msra.mxu2 %v8119_v50 }
  0x4d   :  { %v8102_v56 = vld [vmem:[%s16328_s1 + $0xaa0] sm:$0xf]  ;;  %v10375_v57 = vld [vmem:[%s16328_s1 + $0xaac] sm:$0xf0]  ;;  %v7975_v62 = vor.u32 %v10343_v55, %v7974_v53  ;;  %5045 = vmatpush.bf16.msra.mxu3 %v8247_v54 }
  0x4e   :  { %v8230_v59 = vld [vmem:[%s16328_s1 + $0xba0] sm:$0xf]  ;;  %v10407_v60 = vld [vmem:[%s16328_s1 + $0xbac] sm:$0xf0]  ;;  %v8103_v63 = vor.u32 %v10375_v57, %v8102_v56  ;;  %5004 = vmatpush.bf16.msra.mxu0 %v7847_v61 }
  0x4f   :  { %v7830_v0 = vld [vmem:[%s16328_s1 + $0x880] sm:$0xf]  ;;  %v10307_v2 = vld [vmem:[%s16328_s1 + $0x88c] sm:$0xf0]  ;;  %v8231_v4 = vor.u32 %v10407_v60, %v8230_v59  ;;  %5018 = vmatpush.bf16.msra.mxu1 %v7975_v62 }
  0x50   :  { %v7958_v3 = vld [vmem:[%s16328_s1 + $0x980] sm:$0xf]  ;;  %v10339_v5 = vld [vmem:[%s16328_s1 + $0x98c] sm:$0xf0]  ;;  %v7831_v11 = vor.u32 %v10307_v2, %v7830_v0  ;;  %5032 = vmatpush.bf16.msra.mxu2 %v8103_v63 }
  0x51   :  { %v8086_v6 = vld [vmem:[%s16328_s1 + $0xa80] sm:$0xf]  ;;  %v10371_v7 = vld [vmem:[%s16328_s1 + $0xa8c] sm:$0xf0]  ;;  %v7959_v12 = vor.u32 %v10339_v5, %v7958_v3  ;;  %5046 = vmatpush.bf16.msra.mxu3 %v8231_v4 }
  0x52   :  { %v8214_v8 = vld [vmem:[%s16328_s1 + $0xb80] sm:$0xf]  ;;  %v10403_v9 = vld [vmem:[%s16328_s1 + $0xb8c] sm:$0xf0]  ;;  %v8087_v13 = vor.u32 %v10371_v7, %v8086_v6  ;;  %5005 = vmatpush.bf16.msra.mxu0 %v7831_v11 }
  0x53   :  { %v7814_v14 = vld [vmem:[%s16328_s1 + $0x860] sm:$0xf]  ;;  %v10303_v15 = vld [vmem:[%s16328_s1 + $0x86c] sm:$0xf0]  ;;  %v8215_v18 = vor.u32 %v10403_v9, %v8214_v8  ;;  %5019 = vmatpush.bf16.msra.mxu1 %v7959_v12 }
  0x54   :  { %v7942_v16 = vld [vmem:[%s16328_s1 + $0x960] sm:$0xf]  ;;  %v10335_v19 = vld [vmem:[%s16328_s1 + $0x96c] sm:$0xf0]  ;;  %v7815_v24 = vor.u32 %v10303_v15, %v7814_v14  ;;  %5033 = vmatpush.bf16.msra.mxu2 %v8087_v13  ;;  %v10024_v13 = vld [vmem:[%s16329_s0 + $0x80] sm:$0xf0] }
  0x55   :  { %v8070_v20 = vld [vmem:[%s16328_s1 + $0xa60] sm:$0xf]  ;;  %v10367_v21 = vld [vmem:[%s16328_s1 + $0xa6c] sm:$0xf0]  ;;  %v7943_v25 = vor.u32 %v10335_v19, %v7942_v16  ;;  %5047 = vmatpush.bf16.msra.mxu3 %v8215_v18  ;;  %v6682_v16 = vld [vmem:[%s16329_s0 + $0x28] sm:$0xf] }
  0x56   :  { %v8198_v22 = vld [vmem:[%s16328_s1 + $0xb60] sm:$0xf]  ;;  %v10399_v23 = vld [vmem:[%s16328_s1 + $0xb6c] sm:$0xf0]  ;;  %v8071_v26 = vor.u32 %v10367_v21, %v8070_v20  ;;  %5006 = vmatpush.bf16.msra.mxu0 %v7815_v24  ;;  %v10025_v18 = vld [vmem:[%s16329_s0 + $0x88] sm:$0xf0] }
  0x57   :  { %v7798_v27 = vld [vmem:[%s16328_s1 + $0x840] sm:$0xf]  ;;  %v10299_v28 = vld [vmem:[%s16328_s1 + $0x84c] sm:$0xf0]  ;;  %v8199_v30 = vor.u32 %v10399_v23, %v8198_v22  ;;  %5020 = vmatpush.bf16.msra.mxu1 %v7943_v25  ;;  %v10012_v19 = vld [vmem:[%s16329_s0 + $0x24] sm:$0xf] }
  0x58   :  { %v7926_v29 = vld [vmem:[%s16328_s1 + $0x940] sm:$0xf]  ;;  %v10331_v31 = vld [vmem:[%s16328_s1 + $0x94c] sm:$0xf0]  ;;  %v7799_v36 = vor.u32 %v10299_v28, %v7798_v27  ;;  %5034 = vmatpush.bf16.msra.mxu2 %v8071_v26  ;;  %v6676_v22 = vld [vmem:[%s16329_s0 + $0x84] sm:$0xf0] }
  0x59   :  { %v8054_v32 = vld [vmem:[%s16328_s1 + $0xa40] sm:$0xf]  ;;  %v10363_v33 = vld [vmem:[%s16328_s1 + $0xa4c] sm:$0xf0]  ;;  %v7927_v38 = vor.u32 %v10331_v31, %v7926_v29  ;;  %5048 = vmatpush.bf16.msra.mxu3 %v8199_v30  ;;  %v10013_v23 = vld [vmem:[%s16329_s0 + $0x2c] sm:$0xf] }
  0x5a   :  { %v8182_v34 = vld [vmem:[%s16328_s1 + $0xb40] sm:$0xf]  ;;  %v10395_v35 = vld [vmem:[%s16328_s1 + $0xb4c] sm:$0xf0]  ;;  %v8055_v40 = vor.u32 %v10363_v33, %v8054_v32  ;;  %5007 = vmatpush.bf16.msra.mxu0 %v7799_v36  ;;  %v11600_v36 = vor.u32 %v10012_v19, %v6676_v22 }
  0x5b   :  { %v7782_v37 = vld [vmem:[%s16328_s1 + $0x820] sm:$0xf]  ;;  %v10295_v41 = vld [vmem:[%s16328_s1 + $0x82c] sm:$0xf0]  ;;  %v8183_v46 = vor.u32 %v10395_v35, %v8182_v34  ;;  %5021 = vmatpush.bf16.msra.mxu1 %v7927_v38  ;;  %v11598_v35 = vor.u32 %v10025_v18, %v6682_v16 }
  0x5c   :  { %v7910_v42 = vld [vmem:[%s16328_s1 + $0x920] sm:$0xf]  ;;  %v10327_v45 = vld [vmem:[%s16328_s1 + $0x92c] sm:$0xf0]  ;;  %v7783_v54 = vor.u32 %v10295_v41, %v7782_v37  ;;  %5035 = vmatpush.bf16.msra.mxu2 %v8055_v40 }
  0x5d   :  { %v8038_v48 = vld [vmem:[%s16328_s1 + $0xa20] sm:$0xf]  ;;  %v10359_v49 = vld [vmem:[%s16328_s1 + $0xa2c] sm:$0xf0]  ;;  %v7911_v60 = vor.u32 %v10327_v45, %v7910_v42  ;;  %5049 = vmatpush.bf16.msra.mxu3 %v8183_v46 }
  0x5e   :  { %v8166_v50 = vld [vmem:[%s16328_s1 + $0xb20] sm:$0xf]  ;;  %v10391_v51 = vld [vmem:[%s16328_s1 + $0xb2c] sm:$0xf0]  ;;  %v8039_v61 = vor.u32 %v10359_v49, %v8038_v48  ;;  %5008 = vmatpush.bf16.msra.mxu0 %v7783_v54 }
  0x5f   :  { %v7766_v52 = vld [vmem:[%s16328_s1 + $0x800] sm:$0xf]  ;;  %v10291_v53 = vld [vmem:[%s16328_s1 + $0x80c] sm:$0xf0]  ;;  %v8167_v2 = vor.u32 %v10391_v51, %v8166_v50  ;;  %5022 = vmatpush.bf16.msra.mxu1 %v7911_v60 }
  0x60   :  { %v7894_v55 = vld [vmem:[%s16328_s1 + $0x900] sm:$0xf]  ;;  %v10323_v56 = vld [vmem:[%s16328_s1 + $0x90c] sm:$0xf0]  ;;  %v7767_v9 = vor.u32 %v10291_v53, %v7766_v52  ;;  %5036 = vmatpush.bf16.msra.mxu2 %v8039_v61 }
  0x61   :  { %v8022_v57 = vld [vmem:[%s16328_s1 + $0xa00] sm:$0xf]  ;;  %v10355_v59 = vld [vmem:[%s16328_s1 + $0xa0c] sm:$0xf0]  ;;  %v7895_v14 = vor.u32 %v10323_v56, %v7894_v55  ;;  %5050 = vmatpush.bf16.msra.mxu3 %v8167_v2 }
  0x62   :  { %v8150_v62 = vld [vmem:[%s16328_s1 + $0xb00] sm:$0xf]  ;;  %v10387_v63 = vld [vmem:[%s16328_s1 + $0xb0c] sm:$0xf0]  ;;  %v8023_v15 = vor.u32 %v10355_v59, %v8022_v57  ;;  %5009 = vmatpush.bf16.msra.mxu0 %v7767_v9 }
  0x63   :  { %v8390_v0 = vld [vmem:[%s16328_s1 + $0xce0] sm:$0xf]  ;;  %v10447_v3 = vld [vmem:[%s16328_s1 + $0xcec] sm:$0xf0]  ;;  %v8151_v20 = vor.u32 %v10387_v63, %v8150_v62  ;;  %5023 = vmatpush.bf16.msra.mxu1 %v7895_v14 }
  0x64   :  { %v8518_v4 = vld [vmem:[%s16328_s1 + $0xde0] sm:$0xf]  ;;  %v10479_v5 = vld [vmem:[%s16328_s1 + $0xdec] sm:$0xf0]  ;;  %v8391_v21 = vor.u32 %v10447_v3, %v8390_v0  ;;  %5037 = vmatpush.bf16.msra.mxu2 %v8023_v15 }
  0x65   :  { %v8646_v6 = vld [vmem:[%s16328_s1 + $0xee0] sm:$0xf]  ;;  %v10511_v7 = vld [vmem:[%s16328_s1 + $0xeec] sm:$0xf0]  ;;  %v8519_v25 = vor.u32 %v10479_v5, %v8518_v4  ;;  %5051 = vmatpush.bf16.msra.mxu3 %v8151_v20 }
  0x66   :  { %v8774_v8 = vld [vmem:[%s16328_s1 + $0xfe0] sm:$0xf]  ;;  %v10543_v11 = vld [vmem:[%s16328_s1 + $0xfec] sm:$0xf0]  ;;  %v8647_v26 = vor.u32 %v10511_v7, %v8646_v6  ;;  %5058 = vmatpush.bf16.msrb.mxu0 %v8391_v21  ;;  %5024 = vmatmul.bf16.vlgmr.msra.gmra.mxu1 %v11600_v36 }
  0x67   :  { %v6674_v12 = vld [vmem:[%s16329_s0 + $0x20] sm:$0xf]  ;;  %v6684_v24 = vld [vmem:[%s16329_s0 + $0x8c] sm:$0xf0]  ;;  %v8775_v30 = vor.u32 %v10543_v11, %v8774_v8  ;;  %5072 = vmatpush.bf16.msrb.mxu1 %v8519_v25  ;;  %5038 = vmatmul.bf16.vlgmr.msra.gmra.mxu2 %v11598_v35 }
  0x68   :  { %v8374_v27 = vld [vmem:[%s16328_s1 + $0xcc0] sm:$0xf]  ;;  %v10443_v28 = vld [vmem:[%s16328_s1 + $0xccc] sm:$0xf0]  ;;  %v11587_v31 = vor.u32 %v10024_v13, %v6674_v12  ;;  %v11608_v40 = vor.u32 %v10013_v23, %v6684_v24  ;;  %5086 = vmatpush.bf16.msrb.mxu2 %v8647_v26 }
  0x69   :  { %v8502_v29 = vld [vmem:[%s16328_s1 + $0xdc0] sm:$0xf]  ;;  %v10475_v32 = vld [vmem:[%s16328_s1 + $0xdcc] sm:$0xf0]  ;;  %v8375_v41 = vor.u32 %v10443_v28, %v8374_v27  ;;  %5100 = vmatpush.bf16.msrb.mxu3 %v8775_v30 }
  0x6a   :  { %v8630_v33 = vld [vmem:[%s16328_s1 + $0xec0] sm:$0xf]  ;;  %v10507_v34 = vld [vmem:[%s16328_s1 + $0xecc] sm:$0xf0]  ;;  %v8503_v42 = vor.u32 %v10475_v32, %v8502_v29  ;;  %5010 = vmatmul.bf16.vlgmr.msra.gmra.mxu0 %v11587_v31  ;;  %5052 = vmatmul.bf16.vlgmr.msra.gmra.mxu3 %v11608_v40 }
  0x6b   :  { %v8758_v37 = vld [vmem:[%s16328_s1 + $0xfc0] sm:$0xf]  ;;  %v10539_v38 = vld [vmem:[%s16328_s1 + $0xfcc] sm:$0xf0]  ;;  %v8631_v45 = vor.u32 %v10507_v34, %v8630_v33  ;;  %5059 = vmatpush.bf16.msrb.mxu0 %v8375_v41 }
  0x6c   :  { %v8358_v46 = vld [vmem:[%s16328_s1 + $0xca0] sm:$0xf]  ;;  %v10439_v48 = vld [vmem:[%s16328_s1 + $0xcac] sm:$0xf0]  ;;  %v8759_v50 = vor.u32 %v10539_v38, %v8758_v37  ;;  %5073 = vmatpush.bf16.msrb.mxu1 %v8503_v42 }
  0x6d   :  { %v8486_v49 = vld [vmem:[%s16328_s1 + $0xda0] sm:$0xf]  ;;  %v10471_v51 = vld [vmem:[%s16328_s1 + $0xdac] sm:$0xf0]  ;;  %v8359_v56 = vor.u32 %v10439_v48, %v8358_v46  ;;  %5087 = vmatpush.bf16.msrb.mxu2 %v8631_v45 }
  0x6e   :  { %v8614_v52 = vld [vmem:[%s16328_s1 + $0xea0] sm:$0xf]  ;;  %v10503_v53 = vld [vmem:[%s16328_s1 + $0xeac] sm:$0xf0]  ;;  %v8487_v57 = vor.u32 %v10471_v51, %v8486_v49  ;;  %5101 = vmatpush.bf16.msrb.mxu3 %v8759_v50 }
  0x6f   :  { %v8742_v54 = vld [vmem:[%s16328_s1 + $0xfa0] sm:$0xf]  ;;  %v10535_v55 = vld [vmem:[%s16328_s1 + $0xfac] sm:$0xf0]  ;;  %v8615_v59 = vor.u32 %v10503_v53, %v8614_v52  ;;  %5060 = vmatpush.bf16.msrb.mxu0 %v8359_v56 }
  0x70   :  { %v8342_v60 = vld [vmem:[%s16328_s1 + $0xc80] sm:$0xf]  ;;  %v10435_v61 = vld [vmem:[%s16328_s1 + $0xc8c] sm:$0xf0]  ;;  %v8743_v63 = vor.u32 %v10535_v55, %v8742_v54  ;;  %5074 = vmatpush.bf16.msrb.mxu1 %v8487_v57 }
  0x71   :  { %v8470_v62 = vld [vmem:[%s16328_s1 + $0xd80] sm:$0xf]  ;;  %v10467_v0 = vld [vmem:[%s16328_s1 + $0xd8c] sm:$0xf0]  ;;  %v8343_v6 = vor.u32 %v10435_v61, %v8342_v60  ;;  %5088 = vmatpush.bf16.msrb.mxu2 %v8615_v59 }
  0x72   :  { %v8598_v2 = vld [vmem:[%s16328_s1 + $0xe80] sm:$0xf]  ;;  %v10499_v3 = vld [vmem:[%s16328_s1 + $0xe8c] sm:$0xf0]  ;;  %v8471_v7 = vor.u32 %v10467_v0, %v8470_v62  ;;  %5102 = vmatpush.bf16.msrb.mxu3 %v8743_v63 }
  0x73   :  { %v8726_v4 = vld [vmem:[%s16328_s1 + $0xf80] sm:$0xf]  ;;  %v10531_v5 = vld [vmem:[%s16328_s1 + $0xf8c] sm:$0xf0]  ;;  %v8599_v8 = vor.u32 %v10499_v3, %v8598_v2  ;;  %5061 = vmatpush.bf16.msrb.mxu0 %v8343_v6 }
  0x74   :  { %v8326_v9 = vld [vmem:[%s16328_s1 + $0xc60] sm:$0xf]  ;;  %v10431_v11 = vld [vmem:[%s16328_s1 + $0xc6c] sm:$0xf0]  ;;  %v8727_v13 = vor.u32 %v10531_v5, %v8726_v4  ;;  %5075 = vmatpush.bf16.msrb.mxu1 %v8471_v7 }
  0x75   :  { %v8454_v12 = vld [vmem:[%s16328_s1 + $0xd60] sm:$0xf]  ;;  %v10463_v14 = vld [vmem:[%s16328_s1 + $0xd6c] sm:$0xf0]  ;;  %v8327_v20 = vor.u32 %v10431_v11, %v8326_v9  ;;  %5089 = vmatpush.bf16.msrb.mxu2 %v8599_v8 }
  0x76   :  { %v8582_v15 = vld [vmem:[%s16328_s1 + $0xe60] sm:$0xf]  ;;  %v10495_v16 = vld [vmem:[%s16328_s1 + $0xe6c] sm:$0xf0]  ;;  %v8455_v21 = vor.u32 %v10463_v14, %v8454_v12  ;;  %5103 = vmatpush.bf16.msrb.mxu3 %v8727_v13  ;;  %v10026_v13 = vld [vmem:[%s16329_s0 + $0x90] sm:$0xf0] }
  0x77   :  { %v8710_v18 = vld [vmem:[%s16328_s1 + $0xf60] sm:$0xf]  ;;  %v10527_v19 = vld [vmem:[%s16328_s1 + $0xf6c] sm:$0xf0]  ;;  %v8583_v22 = vor.u32 %v10495_v16, %v8582_v15  ;;  %5062 = vmatpush.bf16.msrb.mxu0 %v8327_v20  ;;  %v6698_v16 = vld [vmem:[%s16329_s0 + $0x38] sm:$0xf] }
  0x78   :  { %v8310_v23 = vld [vmem:[%s16328_s1 + $0xc40] sm:$0xf]  ;;  %v10427_v24 = vld [vmem:[%s16328_s1 + $0xc4c] sm:$0xf0]  ;;  %v8711_v26 = vor.u32 %v10527_v19, %v8710_v18  ;;  %5076 = vmatpush.bf16.msrb.mxu1 %v8455_v21  ;;  %v10027_v18 = vld [vmem:[%s16329_s0 + $0x98] sm:$0xf0] }
  0x79   :  { %v8438_v25 = vld [vmem:[%s16328_s1 + $0xd40] sm:$0xf]  ;;  %v10459_v27 = vld [vmem:[%s16328_s1 + $0xd4c] sm:$0xf0]  ;;  %v8311_v33 = vor.u32 %v10427_v24, %v8310_v23  ;;  %5090 = vmatpush.bf16.msrb.mxu2 %v8583_v22  ;;  %v10014_v19 = vld [vmem:[%s16329_s0 + $0x34] sm:$0xf] }
  0x7a   :  { %v8566_v28 = vld [vmem:[%s16328_s1 + $0xe40] sm:$0xf]  ;;  %v10491_v29 = vld [vmem:[%s16328_s1 + $0xe4c] sm:$0xf0]  ;;  %v8439_v37 = vor.u32 %v10459_v27, %v8438_v25  ;;  %5104 = vmatpush.bf16.msrb.mxu3 %v8711_v26  ;;  %v6692_v22 = vld [vmem:[%s16329_s0 + $0x94] sm:$0xf0] }
  0x7b   :  { %v8694_v30 = vld [vmem:[%s16328_s1 + $0xf40] sm:$0xf]  ;;  %v10523_v32 = vld [vmem:[%s16328_s1 + $0xf4c] sm:$0xf0]  ;;  %v8567_v38 = vor.u32 %v10491_v29, %v8566_v28  ;;  %5063 = vmatpush.bf16.msrb.mxu0 %v8311_v33  ;;  %v10015_v23 = vld [vmem:[%s16329_s0 + $0x3c] sm:$0xf] }
  0x7c   :  { %v8294_v34 = vld [vmem:[%s16328_s1 + $0xc20] sm:$0xf]  ;;  %v10423_v41 = vld [vmem:[%s16328_s1 + $0xc2c] sm:$0xf0]  ;;  %v8695_v46 = vor.u32 %v10523_v32, %v8694_v30  ;;  %5077 = vmatpush.bf16.msrb.mxu1 %v8439_v37 }
  0x7d   :  { %v8422_v42 = vld [vmem:[%s16328_s1 + $0xd20] sm:$0xf]  ;;  %v10455_v45 = vld [vmem:[%s16328_s1 + $0xd2c] sm:$0xf0]  ;;  %v8295_v54 = vor.u32 %v10423_v41, %v8294_v34  ;;  %5091 = vmatpush.bf16.msrb.mxu2 %v8567_v38  ;;  %v11826_v38 = vor.u32 %v10027_v18, %v6698_v16  ;;  %v11828_v41 = vor.u32 %v10014_v19, %v6692_v22 }
  0x7e   :  { %v8550_v48 = vld [vmem:[%s16328_s1 + $0xe20] sm:$0xf]  ;;  %v10487_v49 = vld [vmem:[%s16328_s1 + $0xe2c] sm:$0xf0]  ;;  %v8423_v60 = vor.u32 %v10455_v45, %v8422_v42  ;;  %5105 = vmatpush.bf16.msrb.mxu3 %v8695_v46 }
  0x7f   :  { %v8678_v50 = vld [vmem:[%s16328_s1 + $0xf20] sm:$0xf]  ;;  %v10519_v51 = vld [vmem:[%s16328_s1 + $0xf2c] sm:$0xf0]  ;;  %v8551_v61 = vor.u32 %v10487_v49, %v8550_v48  ;;  %5064 = vmatpush.bf16.msrb.mxu0 %v8295_v54 }
  0x80   :  { %v8278_v52 = vld [vmem:[%s16328_s1 + $0xc00] sm:$0xf]  ;;  %v10419_v53 = vld [vmem:[%s16328_s1 + $0xc0c] sm:$0xf0]  ;;  %v8679_v2 = vor.u32 %v10519_v51, %v8678_v50  ;;  %5078 = vmatpush.bf16.msrb.mxu1 %v8423_v60 }
  0x81   :  { %v8406_v55 = vld [vmem:[%s16328_s1 + $0xd00] sm:$0xf]  ;;  %v10451_v56 = vld [vmem:[%s16328_s1 + $0xd0c] sm:$0xf0]  ;;  %v8279_v9 = vor.u32 %v10419_v53, %v8278_v52  ;;  %5092 = vmatpush.bf16.msrb.mxu2 %v8551_v61 }
  0x82   :  { %v8534_v57 = vld [vmem:[%s16328_s1 + $0xe00] sm:$0xf]  ;;  %v10483_v59 = vld [vmem:[%s16328_s1 + $0xe0c] sm:$0xf0]  ;;  %v8407_v14 = vor.u32 %v10451_v56, %v8406_v55  ;;  %5106 = vmatpush.bf16.msrb.mxu3 %v8679_v2 }
  0x83   :  { %v8662_v62 = vld [vmem:[%s16328_s1 + $0xf00] sm:$0xf]  ;;  %v10515_v63 = vld [vmem:[%s16328_s1 + $0xf0c] sm:$0xf0]  ;;  %v8535_v15 = vor.u32 %v10483_v59, %v8534_v57  ;;  %5065 = vmatpush.bf16.msrb.mxu0 %v8279_v9 }
  0x84   :  { %v8902_v0 = vld [vmem:[%s16328_s1 + $0x10e0] sm:$0xf]  ;;  %v10575_v3 = vld [vmem:[%s16328_s1 + $0x10ec] sm:$0xf0]  ;;  %v8663_v20 = vor.u32 %v10515_v63, %v8662_v62  ;;  %5079 = vmatpush.bf16.msrb.mxu1 %v8407_v14 }
  0x85   :  { %v9030_v4 = vld [vmem:[%s16328_s1 + $0x11e0] sm:$0xf]  ;;  %v10607_v5 = vld [vmem:[%s16328_s1 + $0x11ec] sm:$0xf0]  ;;  %v8903_v21 = vor.u32 %v10575_v3, %v8902_v0  ;;  %5093 = vmatpush.bf16.msrb.mxu2 %v8535_v15 }
  0x86   :  { %v9158_v6 = vld [vmem:[%s16328_s1 + $0x12e0] sm:$0xf]  ;;  %v10639_v7 = vld [vmem:[%s16328_s1 + $0x12ec] sm:$0xf0]  ;;  %v9031_v25 = vor.u32 %v10607_v5, %v9030_v4  ;;  %5107 = vmatpush.bf16.msrb.mxu3 %v8663_v20 }
  0x87   :  { %v9286_v8 = vld [vmem:[%s16328_s1 + $0x13e0] sm:$0xf]  ;;  %v10671_v11 = vld [vmem:[%s16328_s1 + $0x13ec] sm:$0xf0]  ;;  %v9159_v26 = vor.u32 %v10639_v7, %v9158_v6  ;;  %5114 = vmatpush.bf16.msra.mxu0 %v8903_v21  ;;  %5080 = vmatmul.bf16.vlgmr.msrb.gmra.mxu1 %v11828_v41 }
  0x88   :  { %v6690_v12 = vld [vmem:[%s16329_s0 + $0x30] sm:$0xf]  ;;  %v6700_v24 = vld [vmem:[%s16329_s0 + $0x9c] sm:$0xf0]  ;;  %v9287_v30 = vor.u32 %v10671_v11, %v9286_v8  ;;  %5128 = vmatpush.bf16.msra.mxu1 %v9031_v25  ;;  %5094 = vmatmul.bf16.vlgmr.msrb.gmra.mxu2 %v11826_v38 }
  0x89   :  { %v8886_v27 = vld [vmem:[%s16328_s1 + $0x10c0] sm:$0xf]  ;;  %v10571_v28 = vld [vmem:[%s16328_s1 + $0x10cc] sm:$0xf0]  ;;  %v11815_v32 = vor.u32 %v10026_v13, %v6690_v12  ;;  %v11836_v46 = vor.u32 %v10015_v23, %v6700_v24  ;;  %5142 = vmatpush.bf16.msra.mxu2 %v9159_v26 }
  0x8a   :  { %v9014_v29 = vld [vmem:[%s16328_s1 + $0x11c0] sm:$0xf]  ;;  %v10603_v33 = vld [vmem:[%s16328_s1 + $0x11cc] sm:$0xf0]  ;;  %v8887_v48 = vor.u32 %v10571_v28, %v8886_v27  ;;  %5156 = vmatpush.bf16.msra.mxu3 %v9287_v30 }
  0x8b   :  { %v9142_v34 = vld [vmem:[%s16328_s1 + $0x12c0] sm:$0xf]  ;;  %v10635_v37 = vld [vmem:[%s16328_s1 + $0x12cc] sm:$0xf0]  ;;  %v9015_v49 = vor.u32 %v10603_v33, %v9014_v29  ;;  %5066 = vmatmul.bf16.vlgmr.msrb.gmra.mxu0 %v11815_v32  ;;  %5108 = vmatmul.bf16.vlgmr.msrb.gmra.mxu3 %v11836_v46 }
  0x8c   :  { %v9270_v42 = vld [vmem:[%s16328_s1 + $0x13c0] sm:$0xf]  ;;  %v10667_v45 = vld [vmem:[%s16328_s1 + $0x13cc] sm:$0xf0]  ;;  %v9143_v50 = vor.u32 %v10635_v37, %v9142_v34  ;;  %5115 = vmatpush.bf16.msra.mxu0 %v8887_v48 }
  0x8d   :  { %v8870_v51 = vld [vmem:[%s16328_s1 + $0x10a0] sm:$0xf]  ;;  %v10567_v52 = vld [vmem:[%s16328_s1 + $0x10ac] sm:$0xf0]  ;;  %v9271_v54 = vor.u32 %v10667_v45, %v9270_v42  ;;  %5129 = vmatpush.bf16.msra.mxu1 %v9015_v49 }
  0x8e   :  { %v8998_v53 = vld [vmem:[%s16328_s1 + $0x11a0] sm:$0xf]  ;;  %v10599_v55 = vld [vmem:[%s16328_s1 + $0x11ac] sm:$0xf0]  ;;  %v8871_v61 = vor.u32 %v10567_v52, %v8870_v51  ;;  %5143 = vmatpush.bf16.msra.mxu2 %v9143_v50 }
  0x8f   :  { %v9126_v56 = vld [vmem:[%s16328_s1 + $0x12a0] sm:$0xf]  ;;  %v10631_v57 = vld [vmem:[%s16328_s1 + $0x12ac] sm:$0xf0]  ;;  %v8999_v62 = vor.u32 %v10599_v55, %v8998_v53  ;;  %5157 = vmatpush.bf16.msra.mxu3 %v9271_v54 }
  0x90   :  { %v9254_v59 = vld [vmem:[%s16328_s1 + $0x13a0] sm:$0xf]  ;;  %v10663_v60 = vld [vmem:[%s16328_s1 + $0x13ac] sm:$0xf0]  ;;  %v9127_v63 = vor.u32 %v10631_v57, %v9126_v56  ;;  %5116 = vmatpush.bf16.msra.mxu0 %v8871_v61 }
  0x91   :  { %v8854_v0 = vld [vmem:[%s16328_s1 + $0x1080] sm:$0xf]  ;;  %v10563_v2 = vld [vmem:[%s16328_s1 + $0x108c] sm:$0xf0]  ;;  %v9255_v4 = vor.u32 %v10663_v60, %v9254_v59  ;;  %5130 = vmatpush.bf16.msra.mxu1 %v8999_v62 }
  0x92   :  { %v8982_v3 = vld [vmem:[%s16328_s1 + $0x1180] sm:$0xf]  ;;  %v10595_v5 = vld [vmem:[%s16328_s1 + $0x118c] sm:$0xf0]  ;;  %v8855_v11 = vor.u32 %v10563_v2, %v8854_v0  ;;  %5144 = vmatpush.bf16.msra.mxu2 %v9127_v63 }
  0x93   :  { %v9110_v6 = vld [vmem:[%s16328_s1 + $0x1280] sm:$0xf]  ;;  %v10627_v7 = vld [vmem:[%s16328_s1 + $0x128c] sm:$0xf0]  ;;  %v8983_v12 = vor.u32 %v10595_v5, %v8982_v3  ;;  %5158 = vmatpush.bf16.msra.mxu3 %v9255_v4 }
  0x94   :  { %v9238_v8 = vld [vmem:[%s16328_s1 + $0x1380] sm:$0xf]  ;;  %v10659_v9 = vld [vmem:[%s16328_s1 + $0x138c] sm:$0xf0]  ;;  %v9111_v13 = vor.u32 %v10627_v7, %v9110_v6  ;;  %5117 = vmatpush.bf16.msra.mxu0 %v8855_v11 }
  0x95   :  { %v8838_v14 = vld [vmem:[%s16328_s1 + $0x1060] sm:$0xf]  ;;  %v10559_v15 = vld [vmem:[%s16328_s1 + $0x106c] sm:$0xf0]  ;;  %v9239_v18 = vor.u32 %v10659_v9, %v9238_v8  ;;  %5131 = vmatpush.bf16.msra.mxu1 %v8983_v12 }
  0x96   :  { %v8966_v16 = vld [vmem:[%s16328_s1 + $0x1160] sm:$0xf]  ;;  %v10591_v19 = vld [vmem:[%s16328_s1 + $0x116c] sm:$0xf0]  ;;  %v8839_v24 = vor.u32 %v10559_v15, %v8838_v14  ;;  %5145 = vmatpush.bf16.msra.mxu2 %v9111_v13 }
  0x97   :  { %v9094_v20 = vld [vmem:[%s16328_s1 + $0x1260] sm:$0xf]  ;;  %v10623_v21 = vld [vmem:[%s16328_s1 + $0x126c] sm:$0xf0]  ;;  %v8967_v25 = vor.u32 %v10591_v19, %v8966_v16  ;;  %5159 = vmatpush.bf16.msra.mxu3 %v9239_v18 }
  0x98   :  { %v9222_v22 = vld [vmem:[%s16328_s1 + $0x1360] sm:$0xf]  ;;  %v10655_v23 = vld [vmem:[%s16328_s1 + $0x136c] sm:$0xf0]  ;;  %v9095_v26 = vor.u32 %v10623_v21, %v9094_v20  ;;  %5118 = vmatpush.bf16.msra.mxu0 %v8839_v24 }
  0x99   :  { %v8822_v27 = vld [vmem:[%s16328_s1 + $0x1040] sm:$0xf]  ;;  %v10555_v28 = vld [vmem:[%s16328_s1 + $0x104c] sm:$0xf0]  ;;  %v9223_v30 = vor.u32 %v10655_v23, %v9222_v22  ;;  %5132 = vmatpush.bf16.msra.mxu1 %v8967_v25  ;;  %v10028_v22 = vld [vmem:[%s16329_s0 + $0xa0] sm:$0xf0] }
  0x9a   :  { %v8950_v29 = vld [vmem:[%s16328_s1 + $0x1140] sm:$0xf]  ;;  %v10587_v33 = vld [vmem:[%s16328_s1 + $0x114c] sm:$0xf0]  ;;  %v8823_v48 = vor.u32 %v10555_v28, %v8822_v27  ;;  %5146 = vmatpush.bf16.msra.mxu2 %v9095_v26  ;;  %v6714_v25 = vld [vmem:[%s16329_s0 + $0x48] sm:$0xf] }
  0x9b   :  { %v9078_v34 = vld [vmem:[%s16328_s1 + $0x1240] sm:$0xf]  ;;  %v10619_v37 = vld [vmem:[%s16328_s1 + $0x124c] sm:$0xf0]  ;;  %v8951_v50 = vor.u32 %v10587_v33, %v8950_v29  ;;  %5160 = vmatpush.bf16.msra.mxu3 %v9223_v30  ;;  %v10029_v26 = vld [vmem:[%s16329_s0 + $0xa8] sm:$0xf0] }
  0x9c   :  { %v9206_v42 = vld [vmem:[%s16328_s1 + $0x1340] sm:$0xf]  ;;  %v10651_v45 = vld [vmem:[%s16328_s1 + $0x134c] sm:$0xf0]  ;;  %v9079_v51 = vor.u32 %v10619_v37, %v9078_v34  ;;  %5119 = vmatpush.bf16.msra.mxu0 %v8823_v48  ;;  %v10016_v27 = vld [vmem:[%s16329_s0 + $0x44] sm:$0xf] }
  0x9d   :  { %v8806_v49 = vld [vmem:[%s16328_s1 + $0x1020] sm:$0xf]  ;;  %v10551_v52 = vld [vmem:[%s16328_s1 + $0x102c] sm:$0xf0]  ;;  %v9207_v55 = vor.u32 %v10651_v45, %v9206_v42  ;;  %5133 = vmatpush.bf16.msra.mxu1 %v8951_v50  ;;  %v6708_v30 = vld [vmem:[%s16329_s0 + $0xa4] sm:$0xf0] }
  0x9e   :  { %v8934_v53 = vld [vmem:[%s16328_s1 + $0x1120] sm:$0xf]  ;;  %v10583_v54 = vld [vmem:[%s16328_s1 + $0x112c] sm:$0xf0]  ;;  %v8807_v63 = vor.u32 %v10551_v52, %v8806_v49  ;;  %5147 = vmatpush.bf16.msra.mxu2 %v9079_v51  ;;  %v10017_v33 = vld [vmem:[%s16329_s0 + $0x4c] sm:$0xf] }
  0x9f   :  { %v9062_v56 = vld [vmem:[%s16328_s1 + $0x1220] sm:$0xf]  ;;  %v10615_v57 = vld [vmem:[%s16328_s1 + $0x122c] sm:$0xf0]  ;;  %v8935_v5 = vor.u32 %v10583_v54, %v8934_v53  ;;  %5161 = vmatpush.bf16.msra.mxu3 %v9207_v55  ;;  %v12054_v55 = vor.u32 %v10029_v26, %v6714_v25 }
  0xa0   :  { %v9190_v59 = vld [vmem:[%s16328_s1 + $0x1320] sm:$0xf]  ;;  %v10647_v60 = vld [vmem:[%s16328_s1 + $0x132c] sm:$0xf0]  ;;  %v9063_v6 = vor.u32 %v10615_v57, %v9062_v56  ;;  %5120 = vmatpush.bf16.msra.mxu0 %v8807_v63  ;;  %v12056_v56 = vor.u32 %v10016_v27, %v6708_v30 }
  0xa1   :  { %v8790_v61 = vld [vmem:[%s16328_s1 + $0x1000] sm:$0xf]  ;;  %v10547_v62 = vld [vmem:[%s16328_s1 + $0x100c] sm:$0xf0]  ;;  %v9191_v11 = vor.u32 %v10647_v60, %v9190_v59  ;;  %5134 = vmatpush.bf16.msra.mxu1 %v8935_v5 }
  0xa2   :  { %v8918_v0 = vld [vmem:[%s16328_s1 + $0x1100] sm:$0xf]  ;;  %v10579_v2 = vld [vmem:[%s16328_s1 + $0x110c] sm:$0xf0]  ;;  %v8791_v19 = vor.u32 %v10547_v62, %v8790_v61  ;;  %5148 = vmatpush.bf16.msra.mxu2 %v9063_v6 }
  0xa3   :  { %v9046_v3 = vld [vmem:[%s16328_s1 + $0x1200] sm:$0xf]  ;;  %v10611_v4 = vld [vmem:[%s16328_s1 + $0x120c] sm:$0xf0]  ;;  %v8919_v23 = vor.u32 %v10579_v2, %v8918_v0  ;;  %5162 = vmatpush.bf16.msra.mxu3 %v9191_v11 }
  0xa4   :  { %v9174_v7 = vld [vmem:[%s16328_s1 + $0x1300] sm:$0xf]  ;;  %v10643_v8 = vld [vmem:[%s16328_s1 + $0x130c] sm:$0xf0]  ;;  %v9047_v24 = vor.u32 %v10611_v4, %v9046_v3  ;;  %5121 = vmatpush.bf16.msra.mxu0 %v8791_v19 }
  0xa5   :  { %v9414_v9 = vld [vmem:[%s16328_s1 + $0x14e0] sm:$0xf]  ;;  %v10703_v12 = vld [vmem:[%s16328_s1 + $0x14ec] sm:$0xf0]  ;;  %v9175_v28 = vor.u32 %v10643_v8, %v9174_v7  ;;  %5135 = vmatpush.bf16.msra.mxu1 %v8919_v23 }
  0xa6   :  { %v9542_v13 = vld [vmem:[%s16328_s1 + $0x15e0] sm:$0xf]  ;;  %v10735_v14 = vld [vmem:[%s16328_s1 + $0x15ec] sm:$0xf0]  ;;  %v9415_v29 = vor.u32 %v10703_v12, %v9414_v9  ;;  %5149 = vmatpush.bf16.msra.mxu2 %v9047_v24 }
  0xa7   :  { %v9670_v15 = vld [vmem:[%s16328_s1 + $0x16e0] sm:$0xf]  ;;  %v10767_v16 = vld [vmem:[%s16328_s1 + $0x16ec] sm:$0xf0]  ;;  %v9543_v37 = vor.u32 %v10735_v14, %v9542_v13  ;;  %5163 = vmatpush.bf16.msra.mxu3 %v9175_v28 }
  0xa8   :  { %v9798_v18 = vld [vmem:[%s16328_s1 + $0x17e0] sm:$0xf]  ;;  %v10799_v20 = vld [vmem:[%s16328_s1 + $0x17ec] sm:$0xf0]  ;;  %v9671_v42 = vor.u32 %v10767_v16, %v9670_v15  ;;  %5170 = vmatpush.bf16.msrb.mxu0 %v9415_v29  ;;  %5136 = vmatmul.bf16.vlgmr.msra.gmra.mxu1 %v12056_v56 }
  0xa9   :  { %v6706_v21 = vld [vmem:[%s16329_s0 + $0x40] sm:$0xf]  ;;  %v6716_v34 = vld [vmem:[%s16329_s0 + $0xac] sm:$0xf0]  ;;  %v9799_v50 = vor.u32 %v10799_v20, %v9798_v18  ;;  %5184 = vmatpush.bf16.msrb.mxu1 %v9543_v37  ;;  %5150 = vmatmul.bf16.vlgmr.msra.gmra.mxu2 %v12054_v55  ;;  %v4899_v26 = vpop.f32.mrf.mxu0 }
  0xaa   :  { %v9398_v45 = vld [vmem:[%s16328_s1 + $0x14c0] sm:$0xf]  ;;  %v10699_v48 = vld [vmem:[%s16328_s1 + $0x14cc] sm:$0xf0]  ;;  %v12043_v51 = vor.u32 %v10028_v22, %v6706_v21  ;;  %v12064_v60 = vor.u32 %v10017_v33, %v6716_v34  ;;  %5198 = vmatpush.bf16.msrb.mxu2 %v9671_v42 }
  0xab   :  { %v9526_v49 = vld [vmem:[%s16328_s1 + $0x15c0] sm:$0xf]  ;;  %v10731_v52 = vld [vmem:[%s16328_s1 + $0x15cc] sm:$0xf0]  ;;  %v9399_v61 = vor.u32 %v10699_v48, %v9398_v45  ;;  %5212 = vmatpush.bf16.msrb.mxu3 %v9799_v50 }
  0xac   :  { %v9654_v53 = vld [vmem:[%s16328_s1 + $0x16c0] sm:$0xf]  ;;  %v10763_v54 = vld [vmem:[%s16328_s1 + $0x16cc] sm:$0xf0]  ;;  %v9527_v63 = vor.u32 %v10731_v52, %v9526_v49  ;;  %5122 = vmatmul.bf16.vlgmr.msra.gmra.mxu0 %v12043_v51  ;;  %5164 = vmatmul.bf16.vlgmr.msra.gmra.mxu3 %v12064_v60 }
  0xad   :  { %v9782_v57 = vld [vmem:[%s16328_s1 + $0x17c0] sm:$0xf]  ;;  %v10795_v59 = vld [vmem:[%s16328_s1 + $0x17cc] sm:$0xf0]  ;;  %v9655_v0 = vor.u32 %v10763_v54, %v9654_v53  ;;  %5171 = vmatpush.bf16.msrb.mxu0 %v9399_v61  ;;  %v4913_v53 = vpop.f32.mrf.mxu1 }
  0xae   :  { %v9382_v62 = vld [vmem:[%s16328_s1 + $0x14a0] sm:$0xf]  ;;  %v10695_v2 = vld [vmem:[%s16328_s1 + $0x14ac] sm:$0xf0]  ;;  %v9783_v5 = vor.u32 %v10795_v59, %v9782_v57  ;;  %5185 = vmatpush.bf16.msrb.mxu1 %v9527_v63 }
  0xaf   :  { %v9510_v3 = vld [vmem:[%s16328_s1 + $0x15a0] sm:$0xf]  ;;  %v10727_v6 = vld [vmem:[%s16328_s1 + $0x15ac] sm:$0xf0]  ;;  %v9383_v12 = vor.u32 %v10695_v2, %v9382_v62  ;;  %5199 = vmatpush.bf16.msrb.mxu2 %v9655_v0 }
  0xb0   :  { %v12078_v4 = vld [vmem:[%s16330_s2] sm:$0xf]  ;;  %v10759_v8 = vld [vmem:[%s16328_s1 + $0x16ac] sm:$0xf0]  ;;  %v9511_v14 = vor.u32 %v10727_v6, %v9510_v3  ;;  %5213 = vmatpush.bf16.msrb.mxu3 %v9783_v5 }
  0xb1   :  { %v9638_v7 = vld [vmem:[%s16328_s1 + $0x16a0] sm:$0xf]  ;;  %v10791_v11 = vld [vmem:[%s16328_s1 + $0x17ac] sm:$0xf0]  ;;  %v16334_v13 = vperm.slane %v12078_v4, 0  ;;  %5172 = vmatpush.bf16.msrb.mxu0 %v9383_v12 }
  0xb2   :  { %v9766_v9 = vld [vmem:[%s16328_s1 + $0x17a0] sm:$0xf]  ;;  %v9639_v15 = vor.u32 %v10759_v8, %v9638_v7  ;;  %v10691_v18 = vld [vmem:[%s16328_s1 + $0x148c] sm:$0xf0]  ;;  %5186 = vmatpush.bf16.msrb.mxu1 %v9511_v14  ;;  %v4927_v7 = vpop.f32.mrf.mxu2 }
  0xb3   :  { %v9366_v16 = vld [vmem:[%s16328_s1 + $0x1480] sm:$0xf]  ;;  %v9767_v20 = vor.u32 %v10791_v11, %v9766_v9  ;;  %v10723_v21 = vld [vmem:[%s16328_s1 + $0x158c] sm:$0xf0]  ;;  %v4900_v28 = vadd.f32 %v4899_v26, %v16334_v13  ;;  %v10429_v13 = vld [vmem:[%s16328_s1 + $0xc64] sm:$0xf] }
  0xb4   :  { %v9494_v19 = vld [vmem:[%s16328_s1 + $0x1580] sm:$0xf]  ;;  %v10755_v23 = vld [vmem:[%s16328_s1 + $0x168c] sm:$0xf0]  ;;  %v9367_v27 = vor.u32 %v10691_v18, %v9366_v16  ;;  %5200 = vmatpush.bf16.msrb.mxu2 %v9639_v15 }
  0xb5   :  { %v9622_v22 = vld [vmem:[%s16328_s1 + $0x1680] sm:$0xf]  ;;  %v10787_v25 = vld [vmem:[%s16328_s1 + $0x178c] sm:$0xf0]  ;;  %v9495_v29 = vor.u32 %v10723_v21, %v9494_v19  ;;  %5214 = vmatpush.bf16.msrb.mxu3 %v9767_v20  ;;  %v4914_v57 = vadd.f32 %v4913_v53, %v4900_v28 }
  0xb6   :  { %v9750_v24 = vld [vmem:[%s16328_s1 + $0x1780] sm:$0xf]  ;;  %v9623_v30 = vor.u32 %v10755_v23, %v9622_v22  ;;  %v10687_v34 = vld [vmem:[%s16328_s1 + $0x146c] sm:$0xf0]  ;;  %5173 = vmatpush.bf16.msrb.mxu0 %v9367_v27 }
  0xb7   :  { %v9350_v33 = vld [vmem:[%s16328_s1 + $0x1460] sm:$0xf]  ;;  %v9751_v42 = vor.u32 %v10787_v25, %v9750_v24  ;;  %v10719_v45 = vld [vmem:[%s16328_s1 + $0x156c] sm:$0xf0]  ;;  %5187 = vmatpush.bf16.msrb.mxu1 %v9495_v29  ;;  %v4928_v11 = vadd.f32 %v4927_v7, %v4914_v57  ;;  %v4941_v25 = vpop.f32.mrf.mxu3  ;;  %v10061_v57 = vld [vmem:[%s16328_s1 + $0xe4] sm:$0xf] }
  0xb8   :  { %v9478_v37 = vld [vmem:[%s16328_s1 + $0x1560] sm:$0xf]  ;;  %v10751_v49 = vld [vmem:[%s16328_s1 + $0x166c] sm:$0xf0]  ;;  %v9351_v54 = vor.u32 %v10687_v34, %v9350_v33  ;;  %5201 = vmatpush.bf16.msrb.mxu2 %v9623_v30 }
  0xb9   :  { %v9606_v48 = vld [vmem:[%s16328_s1 + $0x1660] sm:$0xf]  ;;  %v10783_v52 = vld [vmem:[%s16328_s1 + $0x176c] sm:$0xf0]  ;;  %v9479_v59 = vor.u32 %v10719_v45, %v9478_v37  ;;  %5215 = vmatpush.bf16.msrb.mxu3 %v9751_v42  ;;  %v12204_v29 = vadd.f32 %v4941_v25, %v4928_v11  ;;  %v10018_v11 = vld [vmem:[%s16329_s0 + $0x54] sm:$0xf] }
  0xba   :  { %v9734_v50 = vld [vmem:[%s16328_s1 + $0x1760] sm:$0xf]  ;;  %v9607_v61 = vor.u32 %v10751_v49, %v9606_v48  ;;  %v10683_v63 = vld [vmem:[%s16328_s1 + $0x144c] sm:$0xf0]  ;;  %5174 = vmatpush.bf16.msrb.mxu0 %v9351_v54 }
  0xbb   :  { %v9334_v62 = vld [vmem:[%s16328_s1 + $0x1440] sm:$0xf]  ;;  %v9735_v2 = vor.u32 %v10783_v52, %v9734_v50  ;;  %v10715_v3 = vld [vmem:[%s16328_s1 + $0x154c] sm:$0xf0]  ;;  %5188 = vmatpush.bf16.msrb.mxu1 %v9479_v59  ;;  %v6856_v59 = vld [vmem:[%s16328_s1 + $0xf0] sm:$0xf0] }
  0xbc   :  { %v9462_v0 = vld [vmem:[%s16328_s1 + $0x1540] sm:$0xf]  ;;  %v10747_v6 = vld [vmem:[%s16328_s1 + $0x164c] sm:$0xf0]  ;;  %v9335_v12 = vor.u32 %v10683_v63, %v9334_v62  ;;  %5202 = vmatpush.bf16.msrb.mxu2 %v9607_v61  ;;  %v10093_v61 = vld [vmem:[%s16328_s1 + $0x1e4] sm:$0xf] }
  0xbd   :  { %v9590_v5 = vld [vmem:[%s16328_s1 + $0x1640] sm:$0xf]  ;;  %v10779_v9 = vld [vmem:[%s16328_s1 + $0x174c] sm:$0xf0]  ;;  %v9463_v15 = vor.u32 %v10715_v3, %v9462_v0  ;;  %5216 = vmatpush.bf16.msrb.mxu3 %v9735_v2  ;;  %v6984_v62 = vld [vmem:[%s16328_s1 + $0x1f0] sm:$0xf0] }
  0xbe   :  { %v9718_v8 = vld [vmem:[%s16328_s1 + $0x1740] sm:$0xf]  ;;  %v9591_v16 = vor.u32 %v10747_v6, %v9590_v5  ;;  %v10679_v18 = vld [vmem:[%s16328_s1 + $0x142c] sm:$0xf0]  ;;  %5175 = vmatpush.bf16.msrb.mxu0 %v9335_v12  ;;  %v10125_v63 = vld [vmem:[%s16328_s1 + $0x2e4] sm:$0xf] }
  0xbf   :  { %v9318_v14 = vld [vmem:[%s16328_s1 + $0x1420] sm:$0xf]  ;;  %v10711_v20 = vld [vmem:[%s16328_s1 + $0x152c] sm:$0xf0]  ;;  %v9719_v21 = vor.u32 %v10779_v9, %v9718_v8  ;;  %5189 = vmatpush.bf16.msrb.mxu1 %v9463_v15  ;;  %v7112_v2 = vld [vmem:[%s16328_s1 + $0x2f0] sm:$0xf0] }
  0xc0   :  { %v9446_v19 = vld [vmem:[%s16328_s1 + $0x1520] sm:$0xf]  ;;  %v10743_v23 = vld [vmem:[%s16328_s1 + $0x162c] sm:$0xf0]  ;;  %v9319_v30 = vor.u32 %v10679_v18, %v9318_v14  ;;  %5203 = vmatpush.bf16.msrb.mxu2 %v9591_v16  ;;  %v10030_v5 = vld [vmem:[%s16329_s0 + $0xb0] sm:$0xf0]  ;;  %v7115_v25 = vor.u32 %v10125_v63, %v7112_v2 }
  0xc1   :  { %v9574_v22 = vld [vmem:[%s16328_s1 + $0x1620] sm:$0xf]  ;;  %v10775_v26 = vld [vmem:[%s16328_s1 + $0x172c] sm:$0xf0]  ;;  %v9447_v45 = vor.u32 %v10711_v20, %v9446_v19  ;;  %5217 = vmatpush.bf16.msrb.mxu3 %v9719_v21  ;;  %v6730_v8 = vld [vmem:[%s16329_s0 + $0x58] sm:$0xf]  ;;  %v6859_v19 = vor.u32 %v10061_v57, %v6856_v59  ;;  %v6987_v20 = vor.u32 %v10093_v61, %v6984_v62  ;;  %v12272_v21 = vpop.f32.mrf.mxu0 }
  0xc2   :  { %v9702_v24 = vld [vmem:[%s16328_s1 + $0x1720] sm:$0xf]  ;;  %v10675_v28 = vld [vmem:[%s16328_s1 + $0x140c] sm:$0xf0]  ;;  %v9575_v48 = vor.u32 %v10743_v23, %v9574_v22  ;;  %5176 = vmatpush.bf16.msrb.mxu0 %v9319_v30  ;;  %v10031_v9 = vld [vmem:[%s16329_s0 + $0xb8] sm:$0xf0] }
  0xc3   :  { %v9302_v27 = vld [vmem:[%s16328_s1 + $0x1400] sm:$0xf]  ;;  %v10707_v34 = vld [vmem:[%s16328_s1 + $0x150c] sm:$0xf0]  ;;  %v9703_v53 = vor.u32 %v10775_v26, %v9702_v24  ;;  %5190 = vmatpush.bf16.msrb.mxu1 %v9447_v45  ;;  %v6724_v15 = vld [vmem:[%s16329_s0 + $0xb4] sm:$0xf0]  ;;  %v12304_v45 = vpop.f32.mrf.mxu1 }
  0xc4   :  { %v9430_v33 = vld [vmem:[%s16328_s1 + $0x1500] sm:$0xf]  ;;  %v10739_v42 = vld [vmem:[%s16328_s1 + $0x160c] sm:$0xf0]  ;;  %v9303_v0 = vor.u32 %v10675_v28, %v9302_v27  ;;  %5204 = vmatpush.bf16.msrb.mxu2 %v9575_v48  ;;  %v10019_v16 = vld [vmem:[%s16329_s0 + $0x5c] sm:$0xf] }
  0xc5   :  { %v9558_v37 = vld [vmem:[%s16328_s1 + $0x1600] sm:$0xf]  ;;  %v10771_v50 = vld [vmem:[%s16328_s1 + $0x170c] sm:$0xf0]  ;;  %v9431_v6 = vor.u32 %v10707_v34, %v9430_v33  ;;  %5218 = vmatpush.bf16.msrb.mxu3 %v9703_v53  ;;  %v10057_v24 = vld [vmem:[%s16328_s1 + $0xc4] sm:$0xf]  ;;  %v12294_v33 = vor.u32 %v10031_v9, %v6730_v8  ;;  %v12296_v34 = vor.u32 %v10018_v11, %v6724_v15  ;;  %v12350_v15 = vpop.f32.mrf.mxu3 }
  0xc6   :  { %v9686_v49 = vld [vmem:[%s16328_s1 + $0x1700] sm:$0xf]  ;;  %v10815_v54 = vld [vmem:[%s16328_s1 + $0x186c] sm:$0xf0]  ;;  %v9559_v7 = vor.u32 %v10739_v42, %v9558_v37  ;;  %5177 = vmatpush.bf16.msrb.mxu0 %v9303_v0  ;;  %v6840_v27 = vld [vmem:[%s16328_s1 + $0xd0] sm:$0xf0] }
  0xc7   :  { %v9862_v52 = vld [vmem:[%s16328_s1 + $0x1860] sm:$0xf]  ;;  %v6722_v3 = vld [vmem:[%s16329_s0 + $0x50] sm:$0xf]  ;;  %v9687_v12 = vor.u32 %v10771_v50, %v9686_v49  ;;  %v10089_v28 = vld [vmem:[%s16328_s1 + $0x1c4] sm:$0xf]  ;;  %5191 = vmatpush.bf16.msrb.mxu1 %v9431_v6  ;;  %v6843_v50 = vor.u32 %v10057_v24, %v6840_v27 }
  0xc8   :  { %v9863_v14 = vor.u32 %v10815_v54, %v9862_v52  ;;  %v6732_v18 = vld [vmem:[%s16329_s0 + $0xbc] sm:$0xf0]  ;;  %v10811_v23 = vld [vmem:[%s16328_s1 + $0x184c] sm:$0xf0]  ;;  %v12283_v26 = vor.u32 %v10030_v5, %v6722_v3  ;;  %v6968_v30 = vld [vmem:[%s16328_s1 + $0x1d0] sm:$0xf0]  ;;  %5205 = vmatpush.bf16.msrb.mxu2 %v9559_v7  ;;  %v12336_v5 = vpop.f32.mrf.mxu2 }
  0xc9   :  { %v9846_v22 = vld [vmem:[%s16328_s1 + $0x1840] sm:$0xf]  ;;  %v10121_v37 = vld [vmem:[%s16328_s1 + $0x2c4] sm:$0xf]  ;;  %v7096_v42 = vld [vmem:[%s16328_s1 + $0x2d0] sm:$0xf0]  ;;  %5219 = vmatpush.bf16.msrb.mxu3 %v9687_v12  ;;  %v12306_v48 = vor.u32 %v10019_v16, %v6732_v18  ;;  %v6971_v52 = vor.u32 %v10089_v28, %v6968_v30 }
  0xca   :  { %5230 = vmatpush.bf16.msra.mxu0 %v9863_v14  ;;  %v9847_v49 = vor.u32 %v10811_v23, %v9846_v22  ;;  %v9830_v53 = vld [vmem:[%s16328_s1 + $0x1820] sm:$0xf]  ;;  %v10807_v54 = vld [vmem:[%s16328_s1 + $0x182c] sm:$0xf0]  ;;  %v10053_v57 = vld [vmem:[%s16328_s1 + $0xa4] sm:$0xf]  ;;  %v7099_v59 = vor.u32 %v10121_v37, %v7096_v42  ;;  %5192 = vmatmul.bf16.vlgmr.msrb.gmra.mxu1 %v12296_v34 }
  0xcb   :  { %5240 = vmatpush.bf16.msra.mxu1 %v6859_v19  ;;  %5178 = vmatmul.bf16.vlgmr.msrb.gmra.mxu0 %v12283_v26  ;;  %v6824_v61 = vld [vmem:[%s16328_s1 + $0xb0] sm:$0xf0]  ;;  %v10085_v62 = vld [vmem:[%s16328_s1 + $0x1a4] sm:$0xf]  ;;  %v9831_v3 = vor.u32 %v10807_v54, %v9830_v53  ;;  %v9814_v6 = vld [vmem:[%s16328_s1 + $0x1800] sm:$0xf]  ;;  %v4969_v37 = vpop.f32.mrf.mxu1 }
  0xcc   :  { %5254 = vmatpush.bf16.msra.mxu2 %v6987_v20  ;;  %v6952_v63 = vld [vmem:[%s16328_s1 + $0x1b0] sm:$0xf0]  ;;  %v10117_v0 = vld [vmem:[%s16328_s1 + $0x2a4] sm:$0xf]  ;;  %5220 = vmatmul.bf16.vlgmr.msrb.gmra.mxu3 %v12306_v48  ;;  %v6827_v7 = vor.u32 %v10053_v57, %v6824_v61  ;;  %v10803_v9 = vld [vmem:[%s16328_s1 + $0x180c] sm:$0xf0]  ;;  %v4955_v20 = vpop.f32.mrf.mxu0 }
  0xcd   :  { %5268 = vmatpush.bf16.msra.mxu3 %v7115_v25  ;;  %5206 = vmatmul.bf16.vlgmr.msrb.gmra.mxu2 %v12294_v33  ;;  %v7080_v2 = vld [vmem:[%s16328_s1 + $0x2b0] sm:$0xf0]  ;;  %v6955_v8 = vor.u32 %v10085_v62, %v6952_v63  ;;  %v10049_v11 = vld [vmem:[%s16328_s1 + $0x84] sm:$0xf]  ;;  %v4956_v25 = vadd.f32 %v4955_v20, %v12204_v29  ;;  %v9815_v27 = vor.u32 %v10803_v9, %v9814_v6  ;;  %v6738_v63 = vld [vmem:[%s16329_s0 + $0x60] sm:$0xf] }
  0xce   :  { %5231 = vmatpush.bf16.msra.mxu0 %v9847_v49  ;;  %v6808_v12 = vld [vmem:[%s16328_s1 + $0x90] sm:$0xf0]  ;;  %v7083_v14 = vor.u32 %v10117_v0, %v7080_v2  ;;  %v10081_v16 = vld [vmem:[%s16328_s1 + $0x184] sm:$0xf] }
  0xcf   :  { %5241 = vmatpush.bf16.msra.mxu1 %v6843_v50  ;;  %v6936_v18 = vld [vmem:[%s16328_s1 + $0x190] sm:$0xf0]  ;;  %v10113_v19 = vld [vmem:[%s16328_s1 + $0x284] sm:$0xf]  ;;  %v6811_v28 = vor.u32 %v10049_v11, %v6808_v12 }
  0xd0   :  { %5255 = vmatpush.bf16.msra.mxu2 %v6971_v52  ;;  %v7064_v22 = vld [vmem:[%s16328_s1 + $0x290] sm:$0xf0]  ;;  %v10157_v23 = vld [vmem:[%s16328_s1 + $0x3e4] sm:$0xf]  ;;  %v6939_v30 = vor.u32 %v10081_v16, %v6936_v18  ;;  %v4970_v52 = vadd.f32 %v4969_v37, %v4956_v25  ;;  %v4983_v9 = vpop.f32.mrf.mxu2 }
  0xd1   :  { %5269 = vmatpush.bf16.msra.mxu3 %v7099_v59  ;;  %v7240_v24 = vld [vmem:[%s16328_s1 + $0x3f0] sm:$0xf0]  ;;  %v10045_v42 = vld [vmem:[%s16328_s1 + $0x64] sm:$0xf]  ;;  %v7067_v50 = vor.u32 %v10113_v19, %v7064_v22 }
  0xd2   :  { %5232 = vmatpush.bf16.msra.mxu0 %v9831_v3  ;;  %v6792_v49 = vld [vmem:[%s16328_s1 + $0x70] sm:$0xf0]  ;;  %v7243_v53 = vor.u32 %v10157_v23, %v7240_v24  ;;  %v10077_v29 = vld [vmem:[%s16328_s1 + $0x164] sm:$0xf]  ;;  %v4984_v18 = vadd.f32 %v4983_v9, %v4970_v52  ;;  %v4997_v24 = vpop.f32.mrf.mxu3 }
  0xd3   :  { %5242 = vmatpush.bf16.msra.mxu1 %v6827_v7  ;;  %v6920_v54 = vld [vmem:[%s16328_s1 + $0x170] sm:$0xf0]  ;;  %v10109_v57 = vld [vmem:[%s16328_s1 + $0x264] sm:$0xf]  ;;  %v6795_v2 = vor.u32 %v10045_v42, %v6792_v49 }
  0xd4   :  { %5256 = vmatpush.bf16.msra.mxu2 %v6955_v8  ;;  %v7048_v59 = vld [vmem:[%s16328_s1 + $0x270] sm:$0xf0]  ;;  %v10153_v61 = vld [vmem:[%s16328_s1 + $0x3c4] sm:$0xf]  ;;  %v6923_v3 = vor.u32 %v10077_v29, %v6920_v54  ;;  %v12427_v25 = vadd.f32 %v4997_v24, %v4984_v18 }
  0xd5   :  { %5270 = vmatpush.bf16.msra.mxu3 %v7083_v14  ;;  %v7224_v62 = vld [vmem:[%s16328_s1 + $0x3d0] sm:$0xf0]  ;;  %v10032_v0 = vld [vmem:[%s16329_s0 + $0xc0] sm:$0xf0]  ;;  %v7051_v8 = vor.u32 %v10109_v57, %v7048_v59 }
  0xd6   :  { %5233 = vmatpush.bf16.msra.mxu0 %v9815_v27  ;;  %v10041_v6 = vld [vmem:[%s16328_s1 + $0x44] sm:$0xf]  ;;  %v6776_v7 = vld [vmem:[%s16328_s1 + $0x50] sm:$0xf0]  ;;  %v7227_v11 = vor.u32 %v10153_v61, %v7224_v62  ;;  %v12416_v19 = vor.u32 %v10032_v0, %v6738_v63 }
  0xd7   :  { %5243 = vmatpush.bf16.msra.mxu1 %v6811_v28  ;;  %v10073_v12 = vld [vmem:[%s16328_s1 + $0x144] sm:$0xf]  ;;  %v6904_v14 = vld [vmem:[%s16328_s1 + $0x150] sm:$0xf0]  ;;  %v6779_v27 = vor.u32 %v10041_v6, %v6776_v7 }
  0xd8   :  { %5257 = vmatpush.bf16.msra.mxu2 %v6939_v30  ;;  %v10105_v16 = vld [vmem:[%s16328_s1 + $0x244] sm:$0xf]  ;;  %16339 = vst [vmem:[#allocation2_spill] sm:$0xff] %v12416_v19  ;;  %v7032_v20 = vld [vmem:[%s16328_s1 + $0x250] sm:$0xf0]  ;;  %v6907_v28 = vor.u32 %v10073_v12, %v6904_v14 }
  0xd9   :  { %5271 = vmatpush.bf16.msra.mxu3 %v7067_v50  ;;  %v10149_v22 = vld [vmem:[%s16328_s1 + $0x3a4] sm:$0xf]  ;;  %v7208_v23 = vld [vmem:[%s16328_s1 + $0x3b0] sm:$0xf0]  ;;  %v7035_v42 = vor.u32 %v10105_v16, %v7032_v20 }
  0xda   :  { %5282 = vmatpush.bf16.msrb.mxu0 %v7243_v53  ;;  %v10037_v30 = vld [vmem:[%s16328_s1 + $0x24] sm:$0xf]  ;;  %v6760_v37 = vld [vmem:[%s16328_s1 + $0x30] sm:$0xf0]  ;;  %v7211_v49 = vor.u32 %v10149_v22, %v7208_v23 }
  0xdb   :  { %5244 = vmatpush.bf16.msra.mxu1 %v6795_v2  ;;  %v10069_v50 = vld [vmem:[%s16328_s1 + $0x124] sm:$0xf]  ;;  %v6888_v52 = vld [vmem:[%s16328_s1 + $0x130] sm:$0xf0]  ;;  %9876 = vmatmul.msk.bf16.vlgmr.msra.gmra.mxu0 %vm4886_vm0, %v12416_v19  ;;  %v6763_v59 = vor.u32 %v10037_v30, %v6760_v37 }
  0xdc   :  { %5258 = vmatpush.bf16.msra.mxu2 %v6923_v3  ;;  %v10101_v53 = vld [vmem:[%s16328_s1 + $0x224] sm:$0xf]  ;;  %v7016_v29 = vld [vmem:[%s16328_s1 + $0x230] sm:$0xf0]  ;;  %v6891_v61 = vor.u32 %v10069_v50, %v6888_v52 }
  0xdd   :  { %5272 = vmatpush.bf16.msra.mxu3 %v7051_v8  ;;  %v10145_v54 = vld [vmem:[%s16328_s1 + $0x384] sm:$0xf]  ;;  %v7192_v57 = vld [vmem:[%s16328_s1 + $0x390] sm:$0xf0]  ;;  %v7019_v2 = vor.u32 %v10101_v53, %v7016_v29 }
  0xde   :  { %5283 = vmatpush.bf16.msrb.mxu0 %v7227_v11  ;;  %v10033_v62 = vld [vmem:[%s16328_s1 + $0x4] sm:$0xf]  ;;  %v6744_v63 = vld [vmem:[%s16328_s1 + $0x10] sm:$0xf0]  ;;  %v7195_v3 = vor.u32 %v10145_v54, %v7192_v57  ;;  %v12515_v57 = vpop.f32.mrf.mxu0 }
  0xdf   :  { %5245 = vmatpush.bf16.msra.mxu1 %v6779_v27  ;;  %v10065_v0 = vld [vmem:[%s16328_s1 + $0x104] sm:$0xf]  ;;  %v6872_v6 = vld [vmem:[%s16328_s1 + $0x110] sm:$0xf0]  ;;  %v6747_v20 = vor.u32 %v10033_v62, %v6744_v63  ;;  %v12523_v62 = vpop.f32.mrf.mxu1 }
  0xe0   :  { %5259 = vmatpush.bf16.msra.mxu2 %v6907_v28  ;;  %v10097_v7 = vld [vmem:[%s16328_s1 + $0x204] sm:$0xf]  ;;  %v7000_v8 = vld [vmem:[%s16328_s1 + $0x210] sm:$0xf0]  ;;  %v6875_v22 = vor.u32 %v10065_v0, %v6872_v6 }
  0xe1   :  { %5273 = vmatpush.bf16.msra.mxu3 %v7035_v42  ;;  %v10141_v9 = vld [vmem:[%s16328_s1 + $0x364] sm:$0xf]  ;;  %v7176_v11 = vld [vmem:[%s16328_s1 + $0x370] sm:$0xf0]  ;;  %v7003_v27 = vor.u32 %v10097_v7, %v7000_v8 }
  0xe2   :  { %5284 = vmatpush.bf16.msrb.mxu0 %v7211_v49  ;;  %v10189_v12 = vld [vmem:[%s16328_s1 + $0x4e4] sm:$0xf]  ;;  %v7368_v14 = vld [vmem:[%s16328_s1 + $0x4f0] sm:$0xf0]  ;;  %v7179_v28 = vor.u32 %v10141_v9, %v7176_v11 }
  0xe3   :  { %v10221_v16 = vld [vmem:[%s16328_s1 + $0x5e4] sm:$0xf]  ;;  %v7496_v18 = vld [vmem:[%s16328_s1 + $0x5f0] sm:$0xf0]  ;;  %5246 = vmatpush.bf16.msra.mxu1 %v6763_v59  ;;  %v7371_v30 = vor.u32 %v10189_v12, %v7368_v14 }
  0xe4   :  { %5260 = vmatpush.bf16.msra.mxu2 %v6891_v61  ;;  %v10253_v23 = vld [vmem:[%s16328_s1 + $0x6e4] sm:$0xf]  ;;  %v7624_v24 = vld [vmem:[%s16328_s1 + $0x6f0] sm:$0xf0]  ;;  %v7499_v37 = vor.u32 %v10221_v16, %v7496_v18 }
  0xe5   :  { %5274 = vmatpush.bf16.msra.mxu3 %v7019_v2  ;;  %v10137_v42 = vld [vmem:[%s16328_s1 + $0x344] sm:$0xf]  ;;  %v7160_v49 = vld [vmem:[%s16328_s1 + $0x350] sm:$0xf0]  ;;  %v7627_v52 = vor.u32 %v10253_v23, %v7624_v24 }
  0xe6   :  { %5285 = vmatpush.bf16.msrb.mxu0 %v7195_v3  ;;  %v10185_v50 = vld [vmem:[%s16328_s1 + $0x4c4] sm:$0xf]  ;;  %v7352_v53 = vld [vmem:[%s16328_s1 + $0x4d0] sm:$0xf0]  ;;  %v7163_v63 = vor.u32 %v10137_v42, %v7160_v49 }
  0xe7   :  { %v10217_v29 = vld [vmem:[%s16328_s1 + $0x5c4] sm:$0xf]  ;;  %v7480_v54 = vld [vmem:[%s16328_s1 + $0x5d0] sm:$0xf0]  ;;  %5247 = vmatpush.bf16.msra.mxu1 %v6747_v20  ;;  %v7355_v0 = vor.u32 %v10185_v50, %v7352_v53  ;;  %v5011_v53 = vpop.f32.mrf.mxu0 }
  0xe8   :  { %5261 = vmatpush.bf16.msra.mxu2 %v6875_v22  ;;  %v10249_v59 = vld [vmem:[%s16328_s1 + $0x6c4] sm:$0xf]  ;;  %v7608_v61 = vld [vmem:[%s16328_s1 + $0x6d0] sm:$0xf0]  ;;  %v7483_v2 = vor.u32 %v10217_v29, %v7480_v54 }
  0xe9   :  { %5275 = vmatpush.bf16.msra.mxu3 %v7003_v27  ;;  %v10133_v3 = vld [vmem:[%s16328_s1 + $0x324] sm:$0xf]  ;;  %v7144_v6 = vld [vmem:[%s16328_s1 + $0x330] sm:$0xf0]  ;;  %v7611_v8 = vor.u32 %v10249_v59, %v7608_v61  ;;  %v5012_v61 = vadd.f32 %v5011_v53, %v12427_v25 }
  0xea   :  { %5286 = vmatpush.bf16.msrb.mxu0 %v7179_v28  ;;  %v10181_v7 = vld [vmem:[%s16328_s1 + $0x4a4] sm:$0xf]  ;;  %v7336_v9 = vld [vmem:[%s16328_s1 + $0x4b0] sm:$0xf0]  ;;  %5248 = vmatmul.bf16.vlgmr.msra.gmra.mxu1 %v11137_v58  ;;  %v7147_v18 = vor.u32 %v10133_v3, %v7144_v6 }
  0xeb   :  { %5296 = vmatpush.bf16.msrb.mxu1 %v7371_v30  ;;  %v10213_v11 = vld [vmem:[%s16328_s1 + $0x5a4] sm:$0xf]  ;;  %v7464_v12 = vld [vmem:[%s16328_s1 + $0x5b0] sm:$0xf0]  ;;  %5262 = vmatmul.bf16.vlgmr.msra.gmra.mxu2 %v11173_v10  ;;  %v7339_v22 = vor.u32 %v10181_v7, %v7336_v9  ;;  %v12564_v30 = vpop.f32.mrf.mxu2 }
  0xec   :  { %5310 = vmatpush.bf16.msrb.mxu2 %v7499_v37  ;;  %v10245_v14 = vld [vmem:[%s16328_s1 + $0x6a4] sm:$0xf]  ;;  %v7592_v16 = vld [vmem:[%s16328_s1 + $0x6b0] sm:$0xf0]  ;;  %5276 = vmatmul.bf16.vlgmr.msra.gmra.mxu3 %v11151_v1  ;;  %v7467_v23 = vor.u32 %v10213_v11, %v7464_v12 }
  0xed   :  { %5324 = vmatpush.bf16.msrb.mxu3 %v7627_v52  ;;  %v10129_v20 = vld [vmem:[%s16328_s1 + $0x304] sm:$0xf]  ;;  %v7128_v24 = vld [vmem:[%s16328_s1 + $0x310] sm:$0xf0]  ;;  %v7595_v37 = vor.u32 %v10245_v14, %v7592_v16  ;;  %v12575_v52 = vpop.f32.mrf.mxu3 }
  0xee   :  { %5287 = vmatpush.bf16.msrb.mxu0 %v7163_v63  ;;  %v10177_v27 = vld [vmem:[%s16328_s1 + $0x484] sm:$0xf]  ;;  %v7320_v28 = vld [vmem:[%s16328_s1 + $0x490] sm:$0xf0]  ;;  %v7131_v63 = vor.u32 %v10129_v20, %v7128_v24 }
  0xef   :  { %5297 = vmatpush.bf16.msrb.mxu1 %v7355_v0  ;;  %v10209_v42 = vld [vmem:[%s16328_s1 + $0x584] sm:$0xf]  ;;  %v7448_v49 = vld [vmem:[%s16328_s1 + $0x590] sm:$0xf0]  ;;  %v5025_v0 = vpop.f32.mrf.mxu1 }
  0xf0   :  { %5311 = vmatpush.bf16.msrb.mxu2 %v7483_v2  ;;  %v10241_v50 = vld [vmem:[%s16328_s1 + $0x684] sm:$0xf]  ;;  %v7576_v29 = vld [vmem:[%s16328_s1 + $0x690] sm:$0xf0]  ;;  %v7323_v2 = vor.u32 %v10177_v27, %v7320_v28  ;;  %v7451_v3 = vor.u32 %v10209_v42, %v7448_v49  ;;  %v5026_v9 = vadd.f32 %v5025_v0, %v5012_v61 }
  0xf1   :  { %5325 = vmatpush.bf16.msrb.mxu3 %v7611_v8  ;;  %v10285_v54 = vld [vmem:[%s16328_s1 + $0x7e4] sm:$0xf]  ;;  %v7752_v59 = vld [vmem:[%s16328_s1 + $0x7f0] sm:$0xf0]  ;;  %v7579_v8 = vor.u32 %v10241_v50, %v7576_v29 }
  0xf2   :  { %5288 = vmatpush.bf16.msrb.mxu0 %v7147_v18  ;;  %v10173_v6 = vld [vmem:[%s16328_s1 + $0x464] sm:$0xf]  ;;  %v7304_v7 = vld [vmem:[%s16328_s1 + $0x470] sm:$0xf0]  ;;  %v7755_v11 = vor.u32 %v10285_v54, %v7752_v59 }
  0xf3   :  { %5298 = vmatpush.bf16.msrb.mxu1 %v7339_v22  ;;  %v10205_v25 = vld [vmem:[%s16328_s1 + $0x564] sm:$0xf]  ;;  %v7432_v12 = vld [vmem:[%s16328_s1 + $0x570] sm:$0xf0]  ;;  %v7307_v22 = vor.u32 %v10173_v6, %v7304_v7 }
  0xf4   :  { %5312 = vmatpush.bf16.msrb.mxu2 %v7467_v23  ;;  %v10237_v14 = vld [vmem:[%s16328_s1 + $0x664] sm:$0xf]  ;;  %v7560_v16 = vld [vmem:[%s16328_s1 + $0x670] sm:$0xf0]  ;;  %v7435_v23 = vor.u32 %v10205_v25, %v7432_v12 }
  0xf5   :  { %5326 = vmatpush.bf16.msrb.mxu3 %v7595_v37  ;;  %v10281_v18 = vld [vmem:[%s16328_s1 + $0x7c4] sm:$0xf]  ;;  %v7736_v20 = vld [vmem:[%s16328_s1 + $0x7d0] sm:$0xf0]  ;;  %v7563_v28 = vor.u32 %v10237_v14, %v7560_v16  ;;  %v5039_v37 = vpop.f32.mrf.mxu2  ;;  %v5053_v54 = vpop.f32.mrf.mxu3 }
  0xf6   :  { %5289 = vmatpush.bf16.msrb.mxu0 %v7131_v63  ;;  %v10169_v24 = vld [vmem:[%s16328_s1 + $0x444] sm:$0xf]  ;;  %v7288_v27 = vld [vmem:[%s16328_s1 + $0x450] sm:$0xf0]  ;;  %v7739_v42 = vor.u32 %v10281_v18, %v7736_v20  ;;  %v5040_v29 = vadd.f32 %v5039_v37, %v5026_v9 }
  0xf7   :  { %5299 = vmatpush.bf16.msrb.mxu1 %v7323_v2  ;;  %v10201_v49 = vld [vmem:[%s16328_s1 + $0x544] sm:$0xf]  ;;  %v7416_v50 = vld [vmem:[%s16328_s1 + $0x550] sm:$0xf0]  ;;  %v7291_v2 = vor.u32 %v10169_v24, %v7288_v27 }
  0xf8   :  { %5313 = vmatpush.bf16.msrb.mxu2 %v7451_v3  ;;  %v10233_v53 = vld [vmem:[%s16328_s1 + $0x644] sm:$0xf]  ;;  %v7544_v59 = vld [vmem:[%s16328_s1 + $0x650] sm:$0xf0]  ;;  %v12636_v0 = vadd.f32 %v5053_v54, %v5040_v29  ;;  %v7419_v3 = vor.u32 %v10201_v49, %v7416_v50 }
  0xf9   :  { %5327 = vmatpush.bf16.msrb.mxu3 %v7579_v8  ;;  %v10277_v61 = vld [vmem:[%s16328_s1 + $0x7a4] sm:$0xf]  ;;  %v7720_v63 = vld [vmem:[%s16328_s1 + $0x7b0] sm:$0xf0]  ;;  %5290 = vmatmul.bf16.vlgmr.msrb.gmra.mxu0 %v11187_v17  ;;  %v7547_v8 = vor.u32 %v10233_v53, %v7544_v59 }
  0xfa   :  { %5338 = vmatpush.bf16.msra.mxu0 %v7755_v11  ;;  %v10165_v6 = vld [vmem:[%s16328_s1 + $0x424] sm:$0xf]  ;;  %v7272_v7 = vld [vmem:[%s16328_s1 + $0x430] sm:$0xf0]  ;;  %v7723_v9 = vor.u32 %v10277_v61, %v7720_v63 }
  0xfb   :  { %5300 = vmatpush.bf16.msrb.mxu1 %v7307_v22  ;;  %v10197_v11 = vld [vmem:[%s16328_s1 + $0x524] sm:$0xf]  ;;  %v7400_v25 = vld [vmem:[%s16328_s1 + $0x530] sm:$0xf0]  ;;  %v7275_v20 = vor.u32 %v10165_v6, %v7272_v7 }
  0xfc   :  { %5314 = vmatpush.bf16.msrb.mxu2 %v7435_v23  ;;  %v10229_v12 = vld [vmem:[%s16328_s1 + $0x624] sm:$0xf]  ;;  %v7528_v14 = vld [vmem:[%s16328_s1 + $0x630] sm:$0xf0]  ;;  %v7403_v22 = vor.u32 %v10197_v11, %v7400_v25 }
  0xfd   :  { %5328 = vmatpush.bf16.msrb.mxu3 %v7563_v28  ;;  %v10273_v16 = vld [vmem:[%s16328_s1 + $0x784] sm:$0xf]  ;;  %v7704_v18 = vld [vmem:[%s16328_s1 + $0x790] sm:$0xf0]  ;;  %v7531_v28 = vor.u32 %v10229_v12, %v7528_v14 }
  0xfe   :  { %5339 = vmatpush.bf16.msra.mxu0 %v7739_v42  ;;  %v10161_v23 = vld [vmem:[%s16328_s1 + $0x404] sm:$0xf]  ;;  %v7256_v24 = vld [vmem:[%s16328_s1 + $0x410] sm:$0xf0]  ;;  %v7707_v37 = vor.u32 %v10273_v16, %v7704_v18 }
  0xff   :  { %5301 = vmatpush.bf16.msrb.mxu1 %v7291_v2  ;;  %v10193_v27 = vld [vmem:[%s16328_s1 + $0x504] sm:$0xf]  ;;  %v7384_v42 = vld [vmem:[%s16328_s1 + $0x510] sm:$0xf0]  ;;  %v7259_v2 = vor.u32 %v10161_v23, %v7256_v24  ;;  %v12722_v24 = vpop.f32.mrf.mxu0 }
 0x100   :  { %5315 = vmatpush.bf16.msrb.mxu2 %v7419_v3  ;;  %v10225_v49 = vld [vmem:[%s16328_s1 + $0x604] sm:$0xf]  ;;  %v7512_v50 = vld [vmem:[%s16328_s1 + $0x610] sm:$0xf0]  ;;  %v7387_v3 = vor.u32 %v10193_v27, %v7384_v42  ;;  %16340 = vst [vmem:[#allocation3_spill] sm:$0xff] %v12722_v24 }
 0x101   :  { %5329 = vmatpush.bf16.msrb.mxu3 %v7547_v8  ;;  %v10269_v53 = vld [vmem:[%s16328_s1 + $0x764] sm:$0xf]  ;;  %v7688_v29 = vld [vmem:[%s16328_s1 + $0x770] sm:$0xf0]  ;;  %v7515_v8 = vor.u32 %v10225_v49, %v7512_v50 }
 0x102   :  { %5340 = vmatpush.bf16.msra.mxu0 %v7723_v9  ;;  %v10317_v54 = vld [vmem:[%s16328_s1 + $0x8e4] sm:$0xf]  ;;  %v7880_v59 = vld [vmem:[%s16328_s1 + $0x8f0] sm:$0xf0]  ;;  %v7691_v9 = vor.u32 %v10269_v53, %v7688_v29 }
 0x103   :  { %v10349_v61 = vld [vmem:[%s16328_s1 + $0x9e4] sm:$0xf]  ;;  %v8008_v63 = vld [vmem:[%s16328_s1 + $0x9f0] sm:$0xf0]  ;;  %5302 = vmatpush.bf16.msrb.mxu1 %v7275_v20  ;;  %v7883_v11 = vor.u32 %v10317_v54, %v7880_v59 }
 0x104   :  { %5316 = vmatpush.bf16.msrb.mxu2 %v7403_v22  ;;  %v10381_v6 = vld [vmem:[%s16328_s1 + $0xae4] sm:$0xf]  ;;  %v8136_v7 = vld [vmem:[%s16328_s1 + $0xaf0] sm:$0xf0]  ;;  %v8011_v25 = vor.u32 %v10349_v61, %v8008_v63 }
 0x105   :  { %5330 = vmatpush.bf16.msrb.mxu3 %v7531_v28  ;;  %v10265_v12 = vld [vmem:[%s16328_s1 + $0x744] sm:$0xf]  ;;  %v7672_v14 = vld [vmem:[%s16328_s1 + $0x750] sm:$0xf0]  ;;  %v8139_v18 = vor.u32 %v10381_v6, %v8136_v7 }
 0x106   :  { %5341 = vmatpush.bf16.msra.mxu0 %v7707_v37  ;;  %v10313_v16 = vld [vmem:[%s16328_s1 + $0x8c4] sm:$0xf]  ;;  %v7864_v20 = vld [vmem:[%s16328_s1 + $0x8d0] sm:$0xf0]  ;;  %v12730_v37 = vpop.f32.mrf.mxu1  ;;  %v7675_v42 = vor.u32 %v10265_v12, %v7672_v14 }
 0x107   :  { %v10345_v22 = vld [vmem:[%s16328_s1 + $0x9c4] sm:$0xf]  ;;  %v7992_v23 = vld [vmem:[%s16328_s1 + $0x9d0] sm:$0xf0]  ;;  %5303 = vmatpush.bf16.msrb.mxu1 %v7259_v2  ;;  %16341 = vst [vmem:[#allocation4_spill] sm:$0xff] %v12730_v37  ;;  %v7867_v49 = vor.u32 %v10313_v16, %v7864_v20  ;;  %v12771_v16 = vpop.f32.mrf.mxu2 }
 0x108   :  { %5317 = vmatpush.bf16.msrb.mxu2 %v7387_v3  ;;  %v10377_v27 = vld [vmem:[%s16328_s1 + $0xac4] sm:$0xf]  ;;  %v8120_v28 = vld [vmem:[%s16328_s1 + $0xad0] sm:$0xf0]  ;;  %v7995_v50 = vor.u32 %v10345_v22, %v7992_v23  ;;  %16342 = vst [vmem:[#allocation5_spill] sm:$0xff] %v12771_v16 }
 0x109   :  { %5331 = vmatpush.bf16.msrb.mxu3 %v7515_v8  ;;  %v10261_v53 = vld [vmem:[%s16328_s1 + $0x724] sm:$0xf]  ;;  %v7656_v29 = vld [vmem:[%s16328_s1 + $0x730] sm:$0xf0]  ;;  %v8123_v59 = vor.u32 %v10377_v27, %v8120_v28  ;;  %v12782_v27 = vpop.f32.mrf.mxu3  ;;  %v5067_v28 = vpop.f32.mrf.mxu0 }
 0x10a   :  { %5342 = vmatpush.bf16.msra.mxu0 %v7691_v9  ;;  %v10309_v54 = vld [vmem:[%s16328_s1 + $0x8a4] sm:$0xf]  ;;  %5304 = vmatmul.bf16.vlgmr.msrb.gmra.mxu1 %v11359_v39  ;;  %v7848_v61 = vld [vmem:[%s16328_s1 + $0x8b0] sm:$0xf0]  ;;  %v7659_v7 = vor.u32 %v10261_v53, %v7656_v29  ;;  %16343 = vst [vmem:[#allocation6_spill] sm:$0xff] %v12782_v27  ;;  %v5068_v53 = vadd.f32 %v5067_v28, %v12636_v0 }
 0x10b   :  { %5352 = vmatpush.bf16.msra.mxu1 %v7883_v11  ;;  %v10341_v63 = vld [vmem:[%s16328_s1 + $0x9a4] sm:$0xf]  ;;  %v7976_v2 = vld [vmem:[%s16328_s1 + $0x9b0] sm:$0xf0]  ;;  %5318 = vmatmul.bf16.vlgmr.msrb.gmra.mxu2 %v11372_v44  ;;  %v7851_v9 = vor.u32 %v10309_v54, %v7848_v61 }
 0x10c   :  { %5366 = vmatpush.bf16.msra.mxu2 %v8011_v25  ;;  %5332 = vmatmul.bf16.vlgmr.msrb.gmra.mxu3 %v11370_v43  ;;  %v10373_v3 = vld [vmem:[%s16328_s1 + $0xaa4] sm:$0xf]  ;;  %v8104_v6 = vld [vmem:[%s16328_s1 + $0xab0] sm:$0xf0]  ;;  %v7979_v11 = vor.u32 %v10341_v63, %v7976_v2 }
 0x10d   :  { %5380 = vmatpush.bf16.msra.mxu3 %v8139_v18  ;;  %v10257_v8 = vld [vmem:[%s16328_s1 + $0x704] sm:$0xf]  ;;  %v7640_v25 = vld [vmem:[%s16328_s1 + $0x710] sm:$0xf0]  ;;  %v8107_v18 = vor.u32 %v10373_v3, %v8104_v6 }
 0x10e   :  { %5343 = vmatpush.bf16.msra.mxu0 %v7675_v42  ;;  %v10305_v12 = vld [vmem:[%s16328_s1 + $0x884] sm:$0xf]  ;;  %v7832_v14 = vld [vmem:[%s16328_s1 + $0x890] sm:$0xf0]  ;;  %v7643_v29 = vor.u32 %v10257_v8, %v7640_v25  ;;  %v5081_v54 = vpop.f32.mrf.mxu1 }
 0x10f   :  { %5353 = vmatpush.bf16.msra.mxu1 %v7867_v49  ;;  %v10337_v20 = vld [vmem:[%s16328_s1 + $0x984] sm:$0xf]  ;;  %v7960_v22 = vld [vmem:[%s16328_s1 + $0x990] sm:$0xf0]  ;;  %v5082_v6 = vadd.f32 %v5081_v54, %v5068_v53  ;;  %v5095_v28 = vpop.f32.mrf.mxu2 }
 0x110   :  { %5367 = vmatpush.bf16.msra.mxu2 %v7995_v50  ;;  %v10369_v23 = vld [vmem:[%s16328_s1 + $0xa84] sm:$0xf]  ;;  %v8088_v42 = vld [vmem:[%s16328_s1 + $0xa90] sm:$0xf0]  ;;  %v7963_v61 = vor.u32 %v10337_v20, %v7960_v22 }
 0x111   :  { %5381 = vmatpush.bf16.msra.mxu3 %v8123_v59  ;;  %v10413_v49 = vld [vmem:[%s16328_s1 + $0xbe4] sm:$0xf]  ;;  %v8264_v50 = vld [vmem:[%s16328_s1 + $0xbf0] sm:$0xf0]  ;;  %v7835_v59 = vor.u32 %v10305_v12, %v7832_v14  ;;  %v8091_v3 = vor.u32 %v10369_v23, %v8088_v42  ;;  %v5109_v54 = vpop.f32.mrf.mxu3 }
 0x112   :  { %5344 = vmatpush.bf16.msra.mxu0 %v7659_v7  ;;  %v10301_v63 = vld [vmem:[%s16328_s1 + $0x864] sm:$0xf]  ;;  %v7816_v2 = vld [vmem:[%s16328_s1 + $0x870] sm:$0xf0]  ;;  %v8267_v7 = vor.u32 %v10413_v49, %v8264_v50 }
 0x113   :  { %5354 = vmatpush.bf16.msra.mxu1 %v7851_v9  ;;  %v10333_v0 = vld [vmem:[%s16328_s1 + $0x964] sm:$0xf]  ;;  %v7944_v8 = vld [vmem:[%s16328_s1 + $0x970] sm:$0xf0]  ;;  %v7819_v14 = vor.u32 %v10301_v63, %v7816_v2 }
 0x114   :  { %5368 = vmatpush.bf16.msra.mxu2 %v7979_v11  ;;  %v10365_v9 = vld [vmem:[%s16328_s1 + $0xa64] sm:$0xf]  ;;  %v8072_v11 = vld [vmem:[%s16328_s1 + $0xa70] sm:$0xf0] }
 0x115   :  { %5382 = vmatpush.bf16.msra.mxu3 %v8107_v18  ;;  %v10409_v25 = vld [vmem:[%s16328_s1 + $0xbc4] sm:$0xf]  ;;  %v8248_v12 = vld [vmem:[%s16328_s1 + $0xbd0] sm:$0xf0]  ;;  %v7947_v18 = vor.u32 %v10333_v0, %v7944_v8  ;;  %v8075_v23 = vor.u32 %v10365_v9, %v8072_v11 }
 0x116   :  { %5345 = vmatpush.bf16.msra.mxu0 %v7643_v29  ;;  %v10297_v20 = vld [vmem:[%s16328_s1 + $0x844] sm:$0xf]  ;;  %v7800_v22 = vld [vmem:[%s16328_s1 + $0x850] sm:$0xf0]  ;;  %v8251_v42 = vor.u32 %v10409_v25, %v8248_v12  ;;  %v5096_v29 = vadd.f32 %v5095_v28, %v5082_v6 }
 0x117   :  { %5355 = vmatpush.bf16.msra.mxu1 %v7835_v59  ;;  %v10329_v49 = vld [vmem:[%s16328_s1 + $0x944] sm:$0xf]  ;;  %v7928_v50 = vld [vmem:[%s16328_s1 + $0x950] sm:$0xf0] }
 0x118   :  { %5369 = vmatpush.bf16.msra.mxu2 %v7963_v61  ;;  %v10361_v53 = vld [vmem:[%s16328_s1 + $0xa44] sm:$0xf]  ;;  %v8056_v59 = vld [vmem:[%s16328_s1 + $0xa50] sm:$0xf0]  ;;  %v12843_v2 = vadd.f32 %v5109_v54, %v5096_v29 }
 0x119   :  { %5383 = vmatpush.bf16.msra.mxu3 %v8091_v3  ;;  %5346 = vmatmul.bf16.vlgmr.msra.gmra.mxu0 %v11380_v47  ;;  %v10405_v61 = vld [vmem:[%s16328_s1 + $0xba4] sm:$0xf]  ;;  %v8232_v63 = vld [vmem:[%s16328_s1 + $0xbb0] sm:$0xf0]  ;;  %v7803_v3 = vor.u32 %v10297_v20, %v7800_v22  ;;  %v8059_v8 = vor.u32 %v10361_v53, %v8056_v59 }
 0x11a   :  { %5394 = vmatpush.bf16.msrb.mxu0 %v8267_v7  ;;  %v7931_v7 = vor.u32 %v10329_v49, %v7928_v50  ;;  %v10293_v6 = vld [vmem:[%s16328_s1 + $0x824] sm:$0xf]  ;;  %v7784_v0 = vld [vmem:[%s16328_s1 + $0x830] sm:$0xf0]  ;;  %v8235_v9 = vor.u32 %v10405_v61, %v8232_v63 }
 0x11b   :  { %5356 = vmatpush.bf16.msra.mxu1 %v7819_v14  ;;  %v10325_v11 = vld [vmem:[%s16328_s1 + $0x924] sm:$0xf]  ;;  %v7912_v25 = vld [vmem:[%s16328_s1 + $0x930] sm:$0xf0]  ;;  %v7787_v22 = vor.u32 %v10293_v6, %v7784_v0 }
 0x11c   :  { %5370 = vmatpush.bf16.msra.mxu2 %v7947_v18  ;;  %v10357_v12 = vld [vmem:[%s16328_s1 + $0xa24] sm:$0xf]  ;;  %v8040_v14 = vld [vmem:[%s16328_s1 + $0xa30] sm:$0xf0] }
 0x11d   :  { %5384 = vmatpush.bf16.msra.mxu3 %v8075_v23  ;;  %v10401_v18 = vld [vmem:[%s16328_s1 + $0xb84] sm:$0xf]  ;;  %v8216_v20 = vld [vmem:[%s16328_s1 + $0xb90] sm:$0xf0]  ;;  %v7915_v23 = vor.u32 %v10325_v11, %v7912_v25  ;;  %v8043_v50 = vor.u32 %v10357_v12, %v8040_v14 }
 0x11e   :  { %5395 = vmatpush.bf16.msrb.mxu0 %v8251_v42  ;;  %v10289_v28 = vld [vmem:[%s16328_s1 + $0x804] sm:$0xf]  ;;  %v7768_v42 = vld [vmem:[%s16328_s1 + $0x810] sm:$0xf0]  ;;  %v8219_v53 = vor.u32 %v10401_v18, %v8216_v20 }
 0x11f   :  { %5357 = vmatpush.bf16.msra.mxu1 %v7803_v3  ;;  %v10321_v49 = vld [vmem:[%s16328_s1 + $0x904] sm:$0xf]  ;;  %v7896_v29 = vld [vmem:[%s16328_s1 + $0x910] sm:$0xf0] }
 0x120   :  { %5371 = vmatpush.bf16.msra.mxu2 %v7931_v7  ;;  %v10353_v54 = vld [vmem:[%s16328_s1 + $0xa04] sm:$0xf]  ;;  %v8024_v59 = vld [vmem:[%s16328_s1 + $0xa10] sm:$0xf0] }
 0x121   :  { %5385 = vmatpush.bf16.msra.mxu3 %v8059_v8  ;;  %v10397_v61 = vld [vmem:[%s16328_s1 + $0xb64] sm:$0xf]  ;;  %v8200_v63 = vld [vmem:[%s16328_s1 + $0xb70] sm:$0xf0]  ;;  %v7771_v8 = vor.u32 %v10289_v28, %v7768_v42  ;;  %v8027_v12 = vor.u32 %v10353_v54, %v8024_v59 }
 0x122   :  { %5396 = vmatpush.bf16.msrb.mxu0 %v8235_v9  ;;  %v10445_v3 = vld [vmem:[%s16328_s1 + $0xce4] sm:$0xf]  ;;  %v8392_v7 = vld [vmem:[%s16328_s1 + $0xcf0] sm:$0xf0]  ;;  %v7899_v9 = vor.u32 %v10321_v49, %v7896_v29  ;;  %v8203_v14 = vor.u32 %v10397_v61, %v8200_v63  ;;  %v12929_v29 = vpop.f32.mrf.mxu0  ;;  %v12937_v61 = vpop.f32.mrf.mxu1 }
 0x123   :  { %v10477_v6 = vld [vmem:[%s16328_s1 + $0xde4] sm:$0xf]  ;;  %v8520_v0 = vld [vmem:[%s16328_s1 + $0xdf0] sm:$0xf0]  ;;  %5358 = vmatpush.bf16.msra.mxu1 %v7787_v22  ;;  %v8395_v18 = vor.u32 %v10445_v3, %v8392_v7  ;;  %16344 = vst [vmem:[#allocation7_spill] sm:$0xff] %v12929_v29 }
 0x124   :  { %5372 = vmatpush.bf16.msra.mxu2 %v7915_v23  ;;  %v10509_v11 = vld [vmem:[%s16328_s1 + $0xee4] sm:$0xf]  ;;  %v8648_v25 = vld [vmem:[%s16328_s1 + $0xef0] sm:$0xf0]  ;;  %v8523_v20 = vor.u32 %v10477_v6, %v8520_v0  ;;  %16345 = vst [vmem:[#allocation8_spill] sm:$0xff] %v12937_v61 }
 0x125   :  { %5386 = vmatpush.bf16.msra.mxu3 %v8043_v50  ;;  %v10393_v22 = vld [vmem:[%s16328_s1 + $0xb44] sm:$0xf]  ;;  %v8184_v23 = vld [vmem:[%s16328_s1 + $0xb50] sm:$0xf0]  ;;  %v8651_v42 = vor.u32 %v10509_v11, %v8648_v25 }
 0x126   :  { %5397 = vmatpush.bf16.msrb.mxu0 %v8219_v53  ;;  %v10441_v28 = vld [vmem:[%s16328_s1 + $0xcc4] sm:$0xf]  ;;  %v8376_v49 = vld [vmem:[%s16328_s1 + $0xcd0] sm:$0xf0]  ;;  %v8187_v63 = vor.u32 %v10393_v22, %v8184_v23 }
 0x127   :  { %v10473_v50 = vld [vmem:[%s16328_s1 + $0xdc4] sm:$0xf]  ;;  %v8504_v53 = vld [vmem:[%s16328_s1 + $0xdd0] sm:$0xf0]  ;;  %5359 = vmatpush.bf16.msra.mxu1 %v7771_v8  ;;  %v8379_v3 = vor.u32 %v10441_v28, %v8376_v49 }
 0x128   :  { %5373 = vmatpush.bf16.msra.mxu2 %v7899_v9  ;;  %v10505_v54 = vld [vmem:[%s16328_s1 + $0xec4] sm:$0xf]  ;;  %v8632_v59 = vld [vmem:[%s16328_s1 + $0xed0] sm:$0xf0]  ;;  %v8507_v7 = vor.u32 %v10473_v50, %v8504_v53  ;;  %v12978_v53 = vpop.f32.mrf.mxu2 }
 0x129   :  { %5387 = vmatpush.bf16.msra.mxu3 %v8027_v12  ;;  %v10389_v6 = vld [vmem:[%s16328_s1 + $0xb24] sm:$0xf]  ;;  %v8168_v0 = vld [vmem:[%s16328_s1 + $0xb30] sm:$0xf0]  ;;  %v8635_v9 = vor.u32 %v10505_v54, %v8632_v59  ;;  %16346 = vst [vmem:[#allocation9_spill] sm:$0xff] %v12978_v53 }
 0x12a   :  { %5398 = vmatpush.bf16.msrb.mxu0 %v8203_v14  ;;  %v10437_v8 = vld [vmem:[%s16328_s1 + $0xca4] sm:$0xf]  ;;  %5360 = vmatmul.bf16.vlgmr.msra.gmra.mxu1 %v11587_v31  ;;  %v8360_v11 = vld [vmem:[%s16328_s1 + $0xcb0] sm:$0xf0] }
 0x12b   :  { %5408 = vmatpush.bf16.msrb.mxu1 %v8395_v18  ;;  %v10469_v25 = vld [vmem:[%s16328_s1 + $0xda4] sm:$0xf]  ;;  %v8488_v12 = vld [vmem:[%s16328_s1 + $0xdb0] sm:$0xf0]  ;;  %5374 = vmatmul.bf16.vlgmr.msra.gmra.mxu2 %v11600_v36  ;;  %v8363_v23 = vor.u32 %v10437_v8, %v8360_v11 }
 0x12c   :  { %5422 = vmatpush.bf16.msrb.mxu2 %v8523_v20  ;;  %5388 = vmatmul.bf16.vlgmr.msra.gmra.mxu3 %v11598_v35  ;;  %v10501_v14 = vld [vmem:[%s16328_s1 + $0xea4] sm:$0xf]  ;;  %v8616_v18 = vld [vmem:[%s16328_s1 + $0xeb0] sm:$0xf0]  ;;  %v8171_v20 = vor.u32 %v10389_v6, %v8168_v0  ;;  %v8491_v28 = vor.u32 %v10469_v25, %v8488_v12  ;;  %v5123_v6 = vpop.f32.mrf.mxu0  ;;  %v5137_v12 = vpop.f32.mrf.mxu1 }
 0x12d   :  { %5436 = vmatpush.bf16.msrb.mxu3 %v8651_v42  ;;  %v10385_v22 = vld [vmem:[%s16328_s1 + $0xb04] sm:$0xf]  ;;  %v8152_v42 = vld [vmem:[%s16328_s1 + $0xb10] sm:$0xf0]  ;;  %v8619_v54 = vor.u32 %v10501_v14, %v8616_v18  ;;  %v5124_v11 = vadd.f32 %v5123_v6, %v12843_v2 }
 0x12e   :  { %5399 = vmatpush.bf16.msrb.mxu0 %v8187_v63  ;;  %v10433_v49 = vld [vmem:[%s16328_s1 + $0xc84] sm:$0xf]  ;;  %v8344_v50 = vld [vmem:[%s16328_s1 + $0xc90] sm:$0xf0]  ;;  %v8155_v25 = vor.u32 %v10385_v22, %v8152_v42 }
 0x12f   :  { %5409 = vmatpush.bf16.msrb.mxu1 %v8379_v3  ;;  %v10465_v59 = vld [vmem:[%s16328_s1 + $0xd84] sm:$0xf]  ;;  %v8472_v63 = vld [vmem:[%s16328_s1 + $0xd90] sm:$0xf0]  ;;  %v8347_v14 = vor.u32 %v10433_v49, %v8344_v50  ;;  %v5138_v61 = vadd.f32 %v5137_v12, %v5124_v11 }
 0x130   :  { %5423 = vmatpush.bf16.msrb.mxu2 %v8507_v7  ;;  %v10497_v3 = vld [vmem:[%s16328_s1 + $0xe84] sm:$0xf]  ;;  %v12989_v7 = vpop.f32.mrf.mxu3  ;;  %v8600_v0 = vld [vmem:[%s16328_s1 + $0xe90] sm:$0xf0]  ;;  %v8475_v18 = vor.u32 %v10465_v59, %v8472_v63  ;;  %v5151_v6 = vpop.f32.mrf.mxu2 }
 0x131   :  { %5437 = vmatpush.bf16.msrb.mxu3 %v8635_v9  ;;  %16347 = vst [vmem:[#allocation10_spill] sm:$0xff] %v12989_v7  ;;  %v10541_v8 = vld [vmem:[%s16328_s1 + $0xfe4] sm:$0xf]  ;;  %v8776_v9 = vld [vmem:[%s16328_s1 + $0xff0] sm:$0xf0]  ;;  %v8603_v53 = vor.u32 %v10497_v3, %v8600_v0 }
 0x132   :  { %5400 = vmatpush.bf16.msrb.mxu0 %v8171_v20  ;;  %v8328_v7 = vld [vmem:[%s16328_s1 + $0xc70] sm:$0xf0]  ;;  %v8779_v20 = vor.u32 %v10541_v8, %v8776_v9  ;;  %v10461_v2 = vld [vmem:[%s16328_s1 + $0xd64] sm:$0xf]  ;;  %v5152_v9 = vadd.f32 %v5151_v6, %v5138_v61 }
 0x133   :  { %5410 = vmatpush.bf16.msrb.mxu1 %v8363_v23  ;;  %v8456_v22 = vld [vmem:[%s16328_s1 + $0xd70] sm:$0xf0]  ;;  %v10493_v23 = vld [vmem:[%s16328_s1 + $0xe64] sm:$0xf]  ;;  %v8331_v50 = vor.u32 %v10429_v13, %v8328_v7 }
 0x134   :  { %5424 = vmatpush.bf16.msrb.mxu2 %v8491_v28  ;;  %v8584_v28 = vld [vmem:[%s16328_s1 + $0xe70] sm:$0xf0]  ;;  %v10537_v42 = vld [vmem:[%s16328_s1 + $0xfc4] sm:$0xf] }
 0x135   :  { %5438 = vmatpush.bf16.msrb.mxu3 %v8619_v54  ;;  %v8760_v49 = vld [vmem:[%s16328_s1 + $0xfd0] sm:$0xf0]  ;;  %v8459_v54 = vor.u32 %v10461_v2, %v8456_v22  ;;  %v10425_v59 = vld [vmem:[%s16328_s1 + $0xc44] sm:$0xf]  ;;  %v8587_v3 = vor.u32 %v10493_v23, %v8584_v28 }
 0x136   :  { %5401 = vmatpush.bf16.msrb.mxu0 %v8155_v25  ;;  %v8312_v63 = vld [vmem:[%s16328_s1 + $0xc50] sm:$0xf0]  ;;  %v8763_v0 = vor.u32 %v10537_v42, %v8760_v49  ;;  %v10457_v8 = vld [vmem:[%s16328_s1 + $0xd44] sm:$0xf] }
 0x137   :  { %5411 = vmatpush.bf16.msrb.mxu1 %v8347_v14  ;;  %v8440_v13 = vld [vmem:[%s16328_s1 + $0xd50] sm:$0xf0]  ;;  %v10489_v7 = vld [vmem:[%s16328_s1 + $0xe44] sm:$0xf] }
 0x138   :  { %5425 = vmatpush.bf16.msrb.mxu2 %v8475_v18  ;;  %v8568_v11 = vld [vmem:[%s16328_s1 + $0xe50] sm:$0xf0]  ;;  %v10533_v25 = vld [vmem:[%s16328_s1 + $0xfa4] sm:$0xf]  ;;  %v8315_v18 = vor.u32 %v10425_v59, %v8312_v63 }
 0x139   :  { %5439 = vmatpush.bf16.msrb.mxu3 %v8603_v53  ;;  %5402 = vmatmul.bf16.vlgmr.msrb.gmra.mxu0 %v11608_v40  ;;  %v5165_v53 = vpop.f32.mrf.mxu3  ;;  %v8744_v12 = vld [vmem:[%s16328_s1 + $0xfb0] sm:$0xf0]  ;;  %v10421_v61 = vld [vmem:[%s16328_s1 + $0xc24] sm:$0xf]  ;;  %v8571_v22 = vor.u32 %v10489_v7, %v8568_v11 }
 0x13a   :  { %5450 = vmatpush.bf16.msra.mxu0 %v8779_v20  ;;  %v13050_v14 = vadd.f32 %v5165_v53, %v5152_v9  ;;  %v8443_v20 = vor.u32 %v10457_v8, %v8440_v13  ;;  %v8296_v2 = vld [vmem:[%s16328_s1 + $0xc30] sm:$0xf0]  ;;  %v8747_v23 = vor.u32 %v10533_v25, %v8744_v12  ;;  %v10453_v28 = vld [vmem:[%s16328_s1 + $0xd24] sm:$0xf] }
 0x13b   :  { %5412 = vmatpush.bf16.msrb.mxu1 %v8331_v50  ;;  %v8424_v42 = vld [vmem:[%s16328_s1 + $0xd30] sm:$0xf0]  ;;  %v10485_v49 = vld [vmem:[%s16328_s1 + $0xe24] sm:$0xf]  ;;  %v8299_v63 = vor.u32 %v10421_v61, %v8296_v2 }
 0x13c   :  { %5426 = vmatpush.bf16.msrb.mxu2 %v8459_v54  ;;  %v8552_v50 = vld [vmem:[%s16328_s1 + $0xe30] sm:$0xf0]  ;;  %v10529_v54 = vld [vmem:[%s16328_s1 + $0xf84] sm:$0xf] }
 0x13d   :  { %5440 = vmatpush.bf16.msrb.mxu3 %v8587_v3  ;;  %v8728_v59 = vld [vmem:[%s16328_s1 + $0xf90] sm:$0xf0]  ;;  %v8427_v3 = vor.u32 %v10453_v28, %v8424_v42  ;;  %v10417_v6 = vld [vmem:[%s16328_s1 + $0xc04] sm:$0xf]  ;;  %v8555_v13 = vor.u32 %v10485_v49, %v8552_v50 }
 0x13e   :  { %5451 = vmatpush.bf16.msra.mxu0 %v8763_v0  ;;  %v8280_v0 = vld [vmem:[%s16328_s1 + $0xc10] sm:$0xf0]  ;;  %v10449_v8 = vld [vmem:[%s16328_s1 + $0xd04] sm:$0xf]  ;;  %v8731_v7 = vor.u32 %v10529_v54, %v8728_v59 }
 0x13f   :  { %5413 = vmatpush.bf16.msrb.mxu1 %v8315_v18  ;;  %v8408_v9 = vld [vmem:[%s16328_s1 + $0xd10] sm:$0xf0]  ;;  %v10481_v53 = vld [vmem:[%s16328_s1 + $0xe04] sm:$0xf] }
 0x140   :  { %5427 = vmatpush.bf16.msrb.mxu2 %v8443_v20  ;;  %v8536_v11 = vld [vmem:[%s16328_s1 + $0xe10] sm:$0xf0]  ;;  %v10525_v25 = vld [vmem:[%s16328_s1 + $0xf64] sm:$0xf] }
 0x141   :  { %5441 = vmatpush.bf16.msrb.mxu3 %v8571_v22  ;;  %v8712_v12 = vld [vmem:[%s16328_s1 + $0xf70] sm:$0xf0]  ;;  %v10573_v18 = vld [vmem:[%s16328_s1 + $0x10e4] sm:$0xf]  ;;  %v8283_v22 = vor.u32 %v10417_v6, %v8280_v0  ;;  %v8539_v49 = vor.u32 %v10481_v53, %v8536_v11 }
 0x142   :  { %5452 = vmatpush.bf16.msra.mxu0 %v8747_v23  ;;  %v8904_v20 = vld [vmem:[%s16328_s1 + $0x10f0] sm:$0xf0]  ;;  %v10605_v61 = vld [vmem:[%s16328_s1 + $0x11e4] sm:$0xf]  ;;  %v8411_v23 = vor.u32 %v10449_v8, %v8408_v9  ;;  %v8715_v50 = vor.u32 %v10525_v25, %v8712_v12  ;;  %v13136_v9 = vpop.f32.mrf.mxu0  ;;  %v13144_v25 = vpop.f32.mrf.mxu1 }
 0x143   :  { %v9032_v2 = vld [vmem:[%s16328_s1 + $0x11f0] sm:$0xf0]  ;;  %5414 = vmatpush.bf16.msrb.mxu1 %v8299_v63  ;;  %v10637_v28 = vld [vmem:[%s16328_s1 + $0x12e4] sm:$0xf]  ;;  %v8907_v54 = vor.u32 %v10573_v18, %v8904_v20  ;;  %16348 = vst [vmem:[#allocation11_spill] sm:$0xff] %v13136_v9 }
 0x144   :  { %5428 = vmatpush.bf16.msrb.mxu2 %v8427_v3  ;;  %v9160_v42 = vld [vmem:[%s16328_s1 + $0x12f0] sm:$0xf0]  ;;  %v9035_v59 = vor.u32 %v10605_v61, %v9032_v2  ;;  %v10521_v63 = vld [vmem:[%s16328_s1 + $0xf44] sm:$0xf]  ;;  %16349 = vst [vmem:[#allocation12_spill] sm:$0xff] %v13144_v25 }
 0x145   :  { %5442 = vmatpush.bf16.msrb.mxu3 %v8555_v13  ;;  %v8696_v3 = vld [vmem:[%s16328_s1 + $0xf50] sm:$0xf0]  ;;  %v10569_v6 = vld [vmem:[%s16328_s1 + $0x10c4] sm:$0xf]  ;;  %v9163_v0 = vor.u32 %v10637_v28, %v9160_v42 }
 0x146   :  { %5453 = vmatpush.bf16.msra.mxu0 %v8731_v7  ;;  %v8888_v8 = vld [vmem:[%s16328_s1 + $0x10d0] sm:$0xf0]  ;;  %v10601_v13 = vld [vmem:[%s16328_s1 + $0x11c4] sm:$0xf]  ;;  %v8699_v12 = vor.u32 %v10521_v63, %v8696_v3 }
 0x147   :  { %v9016_v7 = vld [vmem:[%s16328_s1 + $0x11d0] sm:$0xf0]  ;;  %5415 = vmatpush.bf16.msrb.mxu1 %v8283_v22  ;;  %v10633_v53 = vld [vmem:[%s16328_s1 + $0x12c4] sm:$0xf]  ;;  %v8891_v18 = vor.u32 %v10569_v6, %v8888_v8 }
 0x148   :  { %5429 = vmatpush.bf16.msrb.mxu2 %v8411_v23  ;;  %v9144_v11 = vld [vmem:[%s16328_s1 + $0x12d0] sm:$0xf0]  ;;  %v9019_v20 = vor.u32 %v10601_v13, %v9016_v7  ;;  %v10517_v61 = vld [vmem:[%s16328_s1 + $0xf24] sm:$0xf]  ;;  %v13185_v7 = vpop.f32.mrf.mxu2 }
 0x149   :  { %5443 = vmatpush.bf16.msrb.mxu3 %v8539_v49  ;;  %v8680_v2 = vld [vmem:[%s16328_s1 + $0xf30] sm:$0xf0]  ;;  %v10565_v22 = vld [vmem:[%s16328_s1 + $0x10a4] sm:$0xf]  ;;  %v9147_v23 = vor.u32 %v10633_v53, %v9144_v11  ;;  %16350 = vst [vmem:[#allocation13_spill] sm:$0xff] %v13185_v7 }
 0x14a   :  { %5454 = vmatpush.bf16.msra.mxu0 %v8715_v50  ;;  %5416 = vmatmul.bf16.vlgmr.msrb.gmra.mxu1 %v11815_v32  ;;  %v8872_v28 = vld [vmem:[%s16328_s1 + $0x10b0] sm:$0xf0]  ;;  %v10597_v42 = vld [vmem:[%s16328_s1 + $0x11a4] sm:$0xf] }
 0x14b   :  { %5464 = vmatpush.bf16.msra.mxu1 %v8907_v54  ;;  %v9000_v49 = vld [vmem:[%s16328_s1 + $0x11b0] sm:$0xf0]  ;;  %5430 = vmatmul.bf16.vlgmr.msrb.gmra.mxu2 %v11828_v41  ;;  %v10629_v50 = vld [vmem:[%s16328_s1 + $0x12a4] sm:$0xf]  ;;  %v8875_v3 = vor.u32 %v10565_v22, %v8872_v28 }
 0x14c   :  { %5478 = vmatpush.bf16.msra.mxu2 %v9035_v59  ;;  %5444 = vmatmul.bf16.vlgmr.msrb.gmra.mxu3 %v11826_v38  ;;  %v9128_v54 = vld [vmem:[%s16328_s1 + $0x12b0] sm:$0xf0]  ;;  %v8683_v59 = vor.u32 %v10517_v61, %v8680_v2  ;;  %v10513_v63 = vld [vmem:[%s16328_s1 + $0xf04] sm:$0xf]  ;;  %v9003_v6 = vor.u32 %v10597_v42, %v9000_v49  ;;  %v5179_v61 = vpop.f32.mrf.mxu0  ;;  %v5193_v49 = vpop.f32.mrf.mxu1 }
 0x14d   :  { %5492 = vmatpush.bf16.msra.mxu3 %v9163_v0  ;;  %v8664_v0 = vld [vmem:[%s16328_s1 + $0xf10] sm:$0xf0]  ;;  %v10561_v8 = vld [vmem:[%s16328_s1 + $0x1084] sm:$0xf]  ;;  %v9131_v53 = vor.u32 %v10629_v50, %v9128_v54  ;;  %v5180_v28 = vadd.f32 %v5179_v61, %v13050_v14 }
 0x14e   :  { %5455 = vmatpush.bf16.msra.mxu0 %v8699_v12  ;;  %v8856_v13 = vld [vmem:[%s16328_s1 + $0x1090] sm:$0xf0]  ;;  %v10593_v11 = vld [vmem:[%s16328_s1 + $0x1184] sm:$0xf]  ;;  %v8667_v42 = vor.u32 %v10513_v63, %v8664_v0 }
 0x14f   :  { %5465 = vmatpush.bf16.msra.mxu1 %v8891_v18  ;;  %v8984_v12 = vld [vmem:[%s16328_s1 + $0x1190] sm:$0xf0]  ;;  %v10625_v18 = vld [vmem:[%s16328_s1 + $0x1284] sm:$0xf]  ;;  %v8859_v50 = vor.u32 %v10561_v8, %v8856_v13  ;;  %v5194_v9 = vadd.f32 %v5193_v49, %v5180_v28 }
 0x150   :  { %5479 = vmatpush.bf16.msra.mxu2 %v9019_v20  ;;  %v13196_v20 = vpop.f32.mrf.mxu3  ;;  %v9112_v2 = vld [vmem:[%s16328_s1 + $0x1290] sm:$0xf0]  ;;  %v10669_v22 = vld [vmem:[%s16328_s1 + $0x13e4] sm:$0xf]  ;;  %v8987_v54 = vor.u32 %v10593_v11, %v8984_v12  ;;  %v5207_v61 = vpop.f32.mrf.mxu2 }
 0x151   :  { %5493 = vmatpush.bf16.msra.mxu3 %v9147_v23  ;;  %16351 = vst [vmem:[#allocation14_spill] sm:$0xff] %v13196_v20  ;;  %v9288_v23 = vld [vmem:[%s16328_s1 + $0x13f0] sm:$0xf0]  ;;  %v10557_v20 = vld [vmem:[%s16328_s1 + $0x1064] sm:$0xf]  ;;  %v9115_v25 = vor.u32 %v10625_v18, %v9112_v2 }
 0x152   :  { %5456 = vmatpush.bf16.msra.mxu0 %v8683_v59  ;;  %v8840_v7 = vld [vmem:[%s16328_s1 + $0x1070] sm:$0xf0]  ;;  %v9291_v59 = vor.u32 %v10669_v22, %v9288_v23  ;;  %v10589_v14 = vld [vmem:[%s16328_s1 + $0x1164] sm:$0xf]  ;;  %v5208_v23 = vadd.f32 %v5207_v61, %v5194_v9 }
 0x153   :  { %5466 = vmatpush.bf16.msra.mxu1 %v8875_v3  ;;  %v8968_v63 = vld [vmem:[%s16328_s1 + $0x1170] sm:$0xf0]  ;;  %v10621_v3 = vld [vmem:[%s16328_s1 + $0x1264] sm:$0xf]  ;;  %v8843_v13 = vor.u32 %v10557_v20, %v8840_v7 }
 0x154   :  { %5480 = vmatpush.bf16.msra.mxu2 %v9003_v6  ;;  %v9096_v6 = vld [vmem:[%s16328_s1 + $0x1270] sm:$0xf0]  ;;  %v10665_v0 = vld [vmem:[%s16328_s1 + $0x13c4] sm:$0xf] }
 0x155   :  { %5494 = vmatpush.bf16.msra.mxu3 %v9131_v53  ;;  %v9272_v8 = vld [vmem:[%s16328_s1 + $0x13d0] sm:$0xf0]  ;;  %v8971_v53 = vor.u32 %v10589_v14, %v8968_v63  ;;  %v10553_v11 = vld [vmem:[%s16328_s1 + $0x1044] sm:$0xf]  ;;  %v9099_v18 = vor.u32 %v10621_v3, %v9096_v6 }
 0x156   :  { %5457 = vmatpush.bf16.msra.mxu0 %v8667_v42  ;;  %v8824_v12 = vld [vmem:[%s16328_s1 + $0x1050] sm:$0xf0]  ;;  %v9275_v2 = vor.u32 %v10665_v0, %v9272_v8  ;;  %v10585_v22 = vld [vmem:[%s16328_s1 + $0x1144] sm:$0xf] }
 0x157   :  { %5467 = vmatpush.bf16.msra.mxu1 %v8859_v50  ;;  %v8952_v7 = vld [vmem:[%s16328_s1 + $0x1150] sm:$0xf0]  ;;  %v10617_v20 = vld [vmem:[%s16328_s1 + $0x1244] sm:$0xf] }
 0x158   :  { %5481 = vmatpush.bf16.msra.mxu2 %v8987_v54  ;;  %v5221_v28 = vpop.f32.mrf.mxu3  ;;  %v9080_v42 = vld [vmem:[%s16328_s1 + $0x1250] sm:$0xf0]  ;;  %v10661_v49 = vld [vmem:[%s16328_s1 + $0x13a4] sm:$0xf]  ;;  %v8955_v9 = vor.u32 %v10585_v22, %v8952_v7 }
 0x159   :  { %5495 = vmatpush.bf16.msra.mxu3 %v9115_v25  ;;  %5458 = vmatmul.bf16.vlgmr.msra.gmra.mxu0 %v11836_v46  ;;  %v13248_v25 = vpop.f32.mrf.mxu0  ;;  %v9256_v50 = vld [vmem:[%s16328_s1 + $0x13b0] sm:$0xf0]  ;;  %v5222_v54 = vadd.f32 %v5221_v28, %v5208_v23  ;;  %v10549_v14 = vld [vmem:[%s16328_s1 + $0x1024] sm:$0xf]  ;;  %v9083_v3 = vor.u32 %v10617_v20, %v9080_v42 }
 0x15a   :  { %5506 = vmatpush.bf16.msrb.mxu0 %v9291_v59  ;;  %16352 = vst [vmem:[#allocation15_spill] sm:$0xff] %v13248_v25  ;;  %v8827_v59 = vor.u32 %v10553_v11, %v8824_v12  ;;  %v8808_v63 = vld [vmem:[%s16328_s1 + $0x1030] sm:$0xf0]  ;;  %v9259_v6 = vor.u32 %v10661_v49, %v9256_v50  ;;  %v10581_v0 = vld [vmem:[%s16328_s1 + $0x1124] sm:$0xf] }
 0x15b   :  { %5468 = vmatpush.bf16.msra.mxu1 %v8843_v13  ;;  %v8936_v8 = vld [vmem:[%s16328_s1 + $0x1130] sm:$0xf0]  ;;  %v10613_v13 = vld [vmem:[%s16328_s1 + $0x1224] sm:$0xf] }
 0x15c   :  { %5482 = vmatpush.bf16.msra.mxu2 %v8971_v53  ;;  %v9064_v53 = vld [vmem:[%s16328_s1 + $0x1230] sm:$0xf0]  ;;  %v10657_v11 = vld [vmem:[%s16328_s1 + $0x1384] sm:$0xf]  ;;  %v8939_v61 = vor.u32 %v10581_v0, %v8936_v8 }
 0x15d   :  { %5496 = vmatpush.bf16.msra.mxu3 %v9099_v18  ;;  %v9240_v12 = vld [vmem:[%s16328_s1 + $0x1390] sm:$0xf0]  ;;  %v8811_v18 = vor.u32 %v10549_v14, %v8808_v63  ;;  %v10577_v7 = vld [vmem:[%s16328_s1 + $0x1104] sm:$0xf]  ;;  %v9067_v20 = vor.u32 %v10613_v13, %v9064_v53 }
 0x15e   :  { %5507 = vmatpush.bf16.msrb.mxu0 %v9275_v2  ;;  %v10545_v2 = vld [vmem:[%s16328_s1 + $0x1004] sm:$0xf]  ;;  %v8792_v22 = vld [vmem:[%s16328_s1 + $0x1010] sm:$0xf0]  ;;  %v9243_v23 = vor.u32 %v10657_v11, %v9240_v12 }
 0x15f   :  { %5469 = vmatpush.bf16.msra.mxu1 %v8827_v59  ;;  %v8920_v28 = vld [vmem:[%s16328_s1 + $0x1110] sm:$0xf0]  ;;  %v10609_v42 = vld [vmem:[%s16328_s1 + $0x1204] sm:$0xf]  ;;  %v8795_v8 = vor.u32 %v10545_v2, %v8792_v22 }
 0x160   :  { %5483 = vmatpush.bf16.msra.mxu2 %v8955_v9  ;;  %v9048_v49 = vld [vmem:[%s16328_s1 + $0x1210] sm:$0xf0]  ;;  %v10653_v50 = vld [vmem:[%s16328_s1 + $0x1364] sm:$0xf]  ;;  %v8923_v13 = vor.u32 %v10577_v7, %v8920_v28 }
 0x161   :  { %5497 = vmatpush.bf16.msra.mxu3 %v9083_v3  ;;  %v9224_v59 = vld [vmem:[%s16328_s1 + $0x1370] sm:$0xf0]  ;;  %v10701_v9 = vld [vmem:[%s16328_s1 + $0x14e4] sm:$0xf]  ;;  %v5235_v14 = vpop.f32.mrf.mxu0  ;;  %v9051_v12 = vor.u32 %v10609_v42, %v9048_v49 }
 0x162   :  { %5508 = vmatpush.bf16.msrb.mxu0 %v9259_v6  ;;  %v9416_v63 = vld [vmem:[%s16328_s1 + $0x14f0] sm:$0xf0]  ;;  %v10733_v3 = vld [vmem:[%s16328_s1 + $0x15e4] sm:$0xf]  ;;  %v13319_v0 = vadd.f32 %v5235_v14, %v5222_v54  ;;  %v9227_v25 = vor.u32 %v10653_v50, %v9224_v59 }
 0x163   :  { %v9544_v6 = vld [vmem:[%s16328_s1 + $0x15f0] sm:$0xf0]  ;;  %5470 = vmatpush.bf16.msra.mxu1 %v8811_v18  ;;  %v10765_v53 = vld [vmem:[%s16328_s1 + $0x16e4] sm:$0xf]  ;;  %v9419_v29 = vor.u32 %v10701_v9, %v9416_v63  ;;  %v13360_v63 = vpop.f32.mrf.mxu1 }
 0x164   :  { %5484 = vmatpush.bf16.msra.mxu2 %v8939_v61  ;;  %16353 = vst [vmem:[#allocation16_spill] sm:$0xff] %v13319_v0  ;;  %v9672_v11 = vld [vmem:[%s16328_s1 + $0x16f0] sm:$0xf0]  ;;  %v9547_v27 = vor.u32 %v10733_v3, %v9544_v6  ;;  %v10649_v54 = vld [vmem:[%s16328_s1 + $0x1344] sm:$0xf] }
 0x165   :  { %5498 = vmatpush.bf16.msra.mxu3 %v9067_v20  ;;  %v9208_v18 = vld [vmem:[%s16328_s1 + $0x1350] sm:$0xf0]  ;;  %v10697_v61 = vld [vmem:[%s16328_s1 + $0x14c4] sm:$0xf]  ;;  %v9675_v2 = vor.u32 %v10765_v53, %v9672_v11  ;;  %16354 = vst [vmem:[#allocation17_spill] sm:$0xff] %v13360_v63 }
 0x166   :  { %5509 = vmatpush.bf16.msrb.mxu0 %v9243_v23  ;;  %v9400_v22 = vld [vmem:[%s16328_s1 + $0x14d0] sm:$0xf0]  ;;  %v10729_v7 = vld [vmem:[%s16328_s1 + $0x15c4] sm:$0xf]  ;;  %v9211_v42 = vor.u32 %v10649_v54, %v9208_v18 }
 0x167   :  { %v9528_v20 = vld [vmem:[%s16328_s1 + $0x15d0] sm:$0xf0]  ;;  %5471 = vmatpush.bf16.msra.mxu1 %v8795_v8  ;;  %v10761_v23 = vld [vmem:[%s16328_s1 + $0x16c4] sm:$0xf]  ;;  %v9403_v49 = vor.u32 %v10697_v61, %v9400_v22  ;;  %v13395_v22 = vpop.f32.mrf.mxu2 }
 0x168   :  { %5485 = vmatpush.bf16.msra.mxu2 %v8923_v13  ;;  %v9656_v28 = vld [vmem:[%s16328_s1 + $0x16d0] sm:$0xf0]  ;;  %v9531_v50 = vor.u32 %v10729_v7, %v9528_v20  ;;  %v10645_v59 = vld [vmem:[%s16328_s1 + $0x1324] sm:$0xf]  ;;  %16355 = vst [vmem:[#allocation18_spill] sm:$0xff] %v13395_v22 }
 0x169   :  { %5499 = vmatpush.bf16.msra.mxu3 %v9051_v12  ;;  %v9192_v9 = vld [vmem:[%s16328_s1 + $0x1330] sm:$0xf0]  ;;  %v10693_v14 = vld [vmem:[%s16328_s1 + $0x14a4] sm:$0xf] }
 0x16a   :  { %5510 = vmatpush.bf16.msrb.mxu0 %v9227_v25  ;;  %5472 = vmatmul.bf16.vlgmr.msra.gmra.mxu1 %v12043_v51  ;;  %v10725_v25 = vld [vmem:[%s16328_s1 + $0x15a4] sm:$0xf]  ;;  %v9512_v3 = vld [vmem:[%s16328_s1 + $0x15b0] sm:$0xf0]  ;;  %v9195_v13 = vor.u32 %v10645_v59, %v9192_v9  ;;  %v13418_v9 = vpop.f32.mrf.mxu3 }
 0x16b   :  { %5520 = vmatpush.bf16.msrb.mxu1 %v9419_v29  ;;  %v9384_v29 = vld [vmem:[%s16328_s1 + $0x14b0] sm:$0xf0]  ;;  %5486 = vmatmul.bf16.vlgmr.msra.gmra.mxu2 %v12056_v56  ;;  %v10757_v6 = vld [vmem:[%s16328_s1 + $0x16a4] sm:$0xf]  ;;  %v9515_v54 = vor.u32 %v10725_v25, %v9512_v3  ;;  %16356 = vst [vmem:[#allocation19_spill] sm:$0xff] %v13418_v9 }
 0x16c   :  { %5534 = vmatpush.bf16.msrb.mxu2 %v9547_v27  ;;  %v9659_v27 = vor.u32 %v10761_v23, %v9656_v28  ;;  %5500 = vmatmul.bf16.vlgmr.msra.gmra.mxu3 %v12054_v55  ;;  %v9640_v8 = vld [vmem:[%s16328_s1 + $0x16b0] sm:$0xf0]  ;;  %v10641_v53 = vld [vmem:[%s16328_s1 + $0x1304] sm:$0xf]  ;;  %v9387_v12 = vor.u32 %v10693_v14, %v9384_v29 }
 0x16d   :  { %5548 = vmatpush.bf16.msrb.mxu3 %v9675_v2  ;;  %v9176_v11 = vld [vmem:[%s16328_s1 + $0x1310] sm:$0xf0]  ;;  %v10689_v18 = vld [vmem:[%s16328_s1 + $0x1484] sm:$0xf]  ;;  %v9643_v7 = vor.u32 %v10757_v6, %v9640_v8 }
 0x16e   :  { %5511 = vmatpush.bf16.msrb.mxu0 %v9211_v42  ;;  %v9368_v61 = vld [vmem:[%s16328_s1 + $0x1490] sm:$0xf0]  ;;  %v10721_v2 = vld [vmem:[%s16328_s1 + $0x1584] sm:$0xf]  ;;  %v9179_v14 = vor.u32 %v10641_v53, %v9176_v11 }
 0x16f   :  { %5521 = vmatpush.bf16.msrb.mxu1 %v9403_v49  ;;  %v9496_v20 = vld [vmem:[%s16328_s1 + $0x1590] sm:$0xf0]  ;;  %v10753_v23 = vld [vmem:[%s16328_s1 + $0x1684] sm:$0xf] }
 0x170   :  { %5535 = vmatpush.bf16.msrb.mxu2 %v9531_v50  ;;  %v9624_v28 = vld [vmem:[%s16328_s1 + $0x1690] sm:$0xf0]  ;;  %v10797_v42 = vld [vmem:[%s16328_s1 + $0x17e4] sm:$0xf]  ;;  %v13415_v50 = vld [vmem:[%s16330_s2] sm:$0xf]  ;;  %v9499_v29 = vor.u32 %v10721_v2, %v9496_v20 }
 0x171   :  { %5549 = vmatpush.bf16.msrb.mxu3 %v9659_v27  ;;  %v9800_v49 = vld [vmem:[%s16328_s1 + $0x17f0] sm:$0xf0]  ;;  %v16336_v59 = vperm.slane %v13415_v50, 1  ;;  %v9371_v27 = vor.u32 %v10689_v18, %v9368_v61  ;;  %v10685_v25 = vld [vmem:[%s16328_s1 + $0x1464] sm:$0xf]  ;;  %v9627_v6 = vor.u32 %v10753_v23, %v9624_v28 }
 0x172   :  { %5512 = vmatpush.bf16.msrb.mxu0 %v9195_v13  ;;  %v9352_v3 = vld [vmem:[%s16328_s1 + $0x1470] sm:$0xf0]  ;;  %v9803_v8 = vor.u32 %v10797_v42, %v9800_v49  ;;  %v10717_v13 = vld [vmem:[%s16328_s1 + $0x1564] sm:$0xf] }
 0x173   :  { %5522 = vmatpush.bf16.msrb.mxu1 %v9387_v12  ;;  %v9480_v53 = vld [vmem:[%s16328_s1 + $0x1570] sm:$0xf0]  ;;  %v10749_v11 = vld [vmem:[%s16328_s1 + $0x1664] sm:$0xf]  ;;  %v5249_v12 = vpop.f32.mrf.mxu1  ;;  %v9355_v20 = vor.u32 %v10685_v25, %v9352_v3  ;;  %v5263_v25 = vpop.f32.mrf.mxu2 }
 0x174   :  { %5536 = vmatpush.bf16.msrb.mxu2 %v9515_v54  ;;  %v9608_v54 = vld [vmem:[%s16328_s1 + $0x1670] sm:$0xf0]  ;;  %v10793_v18 = vld [vmem:[%s16328_s1 + $0x17c4] sm:$0xf]  ;;  %v5250_v2 = vadd.f32 %v5249_v12, %v16336_v59  ;;  %v9483_v23 = vor.u32 %v10717_v13, %v9480_v53  ;;  %v5277_v53 = vpop.f32.mrf.mxu3 }
 0x175   :  { %5550 = vmatpush.bf16.msrb.mxu3 %v9643_v7  ;;  %v9784_v61 = vld [vmem:[%s16328_s1 + $0x17d0] sm:$0xf0]  ;;  %v13446_v7 = vpop.f32.mrf.mxu0  ;;  %v10681_v28 = vld [vmem:[%s16328_s1 + $0x1444] sm:$0xf]  ;;  %v9611_v49 = vor.u32 %v10749_v11, %v9608_v54 }
 0x176   :  { %16357 = vst [vmem:[#allocation20_spill] sm:$0xff] %v13446_v7  ;;  %5513 = vmatpush.bf16.msrb.mxu0 %v9179_v14  ;;  %v9336_v42 = vld [vmem:[%s16328_s1 + $0x1450] sm:$0xf0]  ;;  %v9787_v0 = vor.u32 %v10793_v18, %v9784_v61  ;;  %v10713_v14 = vld [vmem:[%s16328_s1 + $0x1544] sm:$0xf]  ;;  %v5264_v13 = vadd.f32 %v5263_v25, %v5250_v2 }
 0x177   :  { %5523 = vmatpush.bf16.msrb.mxu1 %v9371_v27  ;;  %v9464_v27 = vld [vmem:[%s16328_s1 + $0x1550] sm:$0xf0]  ;;  %v9339_v11 = vor.u32 %v10681_v28, %v9336_v42  ;;  %v10677_v54 = vld [vmem:[%s16328_s1 + $0x1424] sm:$0xf] }
 0x178   :  { %5537 = vmatpush.bf16.msrb.mxu2 %v9499_v29  ;;  %v10745_v29 = vld [vmem:[%s16328_s1 + $0x1644] sm:$0xf]  ;;  %v9592_v3 = vld [vmem:[%s16328_s1 + $0x1650] sm:$0xf0]  ;;  %v9467_v12 = vor.u32 %v10713_v14, %v9464_v27  ;;  %v5278_v61 = vadd.f32 %v5277_v53, %v5264_v13 }
 0x179   :  { %5551 = vmatpush.bf16.msrb.mxu3 %v9627_v6  ;;  %5514 = vmatmul.bf16.vlgmr.msrb.gmra.mxu0 %v12064_v60  ;;  %v10789_v6 = vld [vmem:[%s16328_s1 + $0x17a4] sm:$0xf]  ;;  %v9320_v18 = vld [vmem:[%s16328_s1 + $0x1430] sm:$0xf0]  ;;  %v9595_v59 = vor.u32 %v10745_v29, %v9592_v3 }
 0x17a   :  { %5562 = vmatpush.bf16.msra.mxu0 %v9803_v8  ;;  %v9768_v8 = vld [vmem:[%s16328_s1 + $0x17b0] sm:$0xf0]  ;;  %v10709_v2 = vld [vmem:[%s16328_s1 + $0x1524] sm:$0xf]  ;;  %v9323_v14 = vor.u32 %v10677_v54, %v9320_v18 }
 0x17b   :  { %5524 = vmatpush.bf16.msrb.mxu1 %v9355_v20  ;;  %v9771_v7 = vor.u32 %v10789_v6, %v9768_v8  ;;  %v9448_v20 = vld [vmem:[%s16328_s1 + $0x1530] sm:$0xf0]  ;;  %v10673_v29 = vld [vmem:[%s16328_s1 + $0x1404] sm:$0xf]  ;;  %v13541_v63 = vpop.f32.mrf.mxu1 }
 0x17c   :  { %5538 = vmatpush.bf16.msrb.mxu2 %v9483_v23  ;;  %v10741_v23 = vld [vmem:[%s16328_s1 + $0x1624] sm:$0xf]  ;;  %v9576_v28 = vld [vmem:[%s16328_s1 + $0x1630] sm:$0xf0]  ;;  %v9451_v27 = vor.u32 %v10709_v2, %v9448_v20  ;;  %v10064_v2 = vld [vmem:[%s16328_s1 + $0xf4] sm:$0xf0] }
 0x17d   :  { %5552 = vmatpush.bf16.msrb.mxu3 %v9611_v49  ;;  %v9752_v42 = vld [vmem:[%s16328_s1 + $0x1790] sm:$0xf0]  ;;  %v5291_v49 = vpop.f32.mrf.mxu0  ;;  %v10705_v3 = vld [vmem:[%s16328_s1 + $0x1504] sm:$0xf]  ;;  %v9579_v8 = vor.u32 %v10741_v23, %v9576_v28  ;;  %v6990_v28 = vld [vmem:[%s16328_s1 + $0x1e8] sm:$0xf] }
 0x17e   :  { %5563 = vmatpush.bf16.msra.mxu0 %v9787_v0  ;;  %v10785_v0 = vld [vmem:[%s16328_s1 + $0x1784] sm:$0xf]  ;;  %v9304_v25 = vld [vmem:[%s16328_s1 + $0x1410] sm:$0xf0]  ;;  %v13506_v6 = vadd.f32 %v5291_v49, %v5278_v61  ;;  %v6862_v61 = vld [vmem:[%s16328_s1 + $0xe8] sm:$0xf] }
 0x17f   :  { %5525 = vmatpush.bf16.msrb.mxu1 %v9339_v11  ;;  %v9755_v13 = vor.u32 %v10785_v0, %v9752_v42  ;;  %v9432_v53 = vld [vmem:[%s16328_s1 + $0x1510] sm:$0xf0]  ;;  %v10737_v11 = vld [vmem:[%s16328_s1 + $0x1604] sm:$0xf]  ;;  %v9307_v20 = vor.u32 %v10673_v29, %v9304_v25  ;;  %v10096_v0 = vld [vmem:[%s16328_s1 + $0x1f4] sm:$0xf0]  ;;  %v6863_v22 = vor.u32 %v10064_v2, %v6862_v61 }
 0x180   :  { %5539 = vmatpush.bf16.msrb.mxu2 %v9467_v12  ;;  %v9560_v12 = vld [vmem:[%s16328_s1 + $0x1610] sm:$0xf0]  ;;  %v10781_v54 = vld [vmem:[%s16328_s1 + $0x1764] sm:$0xf]  ;;  %v9435_v23 = vor.u32 %v10705_v3, %v9432_v53  ;;  %v6991_v25 = vor.u32 %v10096_v0, %v6990_v28  ;;  %v6974_v53 = vld [vmem:[%s16328_s1 + $0x1c8] sm:$0xf] }
 0x181   :  { %5553 = vmatpush.bf16.msrb.mxu3 %v9595_v59  ;;  %v9736_v59 = vld [vmem:[%s16328_s1 + $0x1770] sm:$0xf0]  ;;  %v9563_v42 = vor.u32 %v10737_v11, %v9560_v12  ;;  %v10809_v29 = vld [vmem:[%s16328_s1 + $0x1844] sm:$0xf]  ;;  %v10092_v11 = vld [vmem:[%s16328_s1 + $0x1d4] sm:$0xf0] }
 0x182   :  { %5564 = vmatpush.bf16.msra.mxu0 %v9771_v7  ;;  %v10813_v7 = vld [vmem:[%s16328_s1 + $0x1864] sm:$0xf]  ;;  %v9864_v18 = vld [vmem:[%s16328_s1 + $0x1870] sm:$0xf0]  ;;  %v9739_v49 = vor.u32 %v10781_v54, %v9736_v59  ;;  %v6975_v2 = vor.u32 %v10092_v11, %v6974_v53  ;;  %v10088_v28 = vld [vmem:[%s16328_s1 + $0x1b4] sm:$0xf0] }
 0x183   :  { %5526 = vmatpush.bf16.msrb.mxu1 %v9323_v14  ;;  %v9867_v9 = vor.u32 %v10813_v7, %v9864_v18  ;;  %v10777_v14 = vld [vmem:[%s16328_s1 + $0x1744] sm:$0xf]  ;;  %v9848_v3 = vld [vmem:[%s16328_s1 + $0x1850] sm:$0xf0]  ;;  %v6814_v53 = vld [vmem:[%s16328_s1 + $0x88] sm:$0xf] }
 0x184   :  { %5540 = vmatpush.bf16.msrb.mxu2 %v9451_v27  ;;  %v9720_v27 = vld [vmem:[%s16328_s1 + $0x1750] sm:$0xf0]  ;;  %v9851_v54 = vor.u32 %v10809_v29, %v9848_v3  ;;  %v10773_v7 = vld [vmem:[%s16328_s1 + $0x1724] sm:$0xf]  ;;  %v10052_v11 = vld [vmem:[%s16328_s1 + $0x94] sm:$0xf0] }
 0x185   :  { %5554 = vmatpush.bf16.msrb.mxu3 %v9579_v8  ;;  %v6846_v8 = vld [vmem:[%s16328_s1 + $0xc8] sm:$0xf]  ;;  %v9723_v12 = vor.u32 %v10777_v14, %v9720_v27  ;;  %v9704_v18 = vld [vmem:[%s16328_s1 + $0x1730] sm:$0xf0]  ;;  %v10805_v61 = vld [vmem:[%s16328_s1 + $0x1824] sm:$0xf]  ;;  %v13635_v37 = vpop.f32.mrf.mxu0 }
 0x186   :  { %5565 = vmatpush.bf16.msra.mxu0 %v9755_v13  ;;  %v10060_v13 = vld [vmem:[%s16328_s1 + $0xd4] sm:$0xf0]  ;;  %v9707_v0 = vor.u32 %v10773_v7, %v9704_v18  ;;  %v9688_v29 = vld [vmem:[%s16328_s1 + $0x1710] sm:$0xf0]  ;;  %v7118_v7 = vld [vmem:[%s16328_s1 + $0x2e8] sm:$0xf] }
 0x187   :  { %5527 = vmatpush.bf16.msrb.mxu1 %v9307_v20  ;;  %v6847_v59 = vor.u32 %v10060_v13, %v6846_v8  ;;  %v10056_v20 = vld [vmem:[%s16328_s1 + $0xb4] sm:$0xf0]  ;;  %v9816_v3 = vld [vmem:[%s16328_s1 + $0x1810] sm:$0xf0]  ;;  %v13608_v13 = vpop.f32.mrf.mxu3 }
 0x188   :  { %5541 = vmatpush.bf16.msrb.mxu2 %v9435_v23  ;;  %v6958_v23 = vld [vmem:[%s16328_s1 + $0x1a8] sm:$0xf]  ;;  %v10128_v18 = vld [vmem:[%s16328_s1 + $0x2f4] sm:$0xf0] }
 0x189   :  { %5555 = vmatpush.bf16.msrb.mxu3 %v9563_v42  ;;  %v13594_v42 = vpop.f32.mrf.mxu2  ;;  %v6959_v8 = vor.u32 %v10088_v28, %v6958_v23  ;;  %v6815_v23 = vor.u32 %v10052_v11, %v6814_v53  ;;  %v7119_v16 = vor.u32 %v10128_v18, %v7118_v7  ;;  %v10044_v7 = vld [vmem:[%s16328_s1 + $0x54] sm:$0xf0]  ;;  %v6910_v18 = vld [vmem:[%s16328_s1 + $0x148] sm:$0xf] }
 0x18a   :  { %5566 = vmatpush.bf16.msra.mxu0 %v9739_v49  ;;  %5528 = vmatmul.bf16.vlgmr.msrb.gmra.mxu1 %v12283_v26  ;;  %v10769_v49 = vld [vmem:[%s16328_s1 + $0x1704] sm:$0xf] }
 0x18b   :  { %5580 = vmatpush.bf16.msra.mxu1 %v9867_v9  ;;  %v6830_v9 = vld [vmem:[%s16328_s1 + $0xa8] sm:$0xf]  ;;  %5542 = vmatmul.bf16.vlgmr.msrb.gmra.mxu2 %v12296_v34 }
 0x18c   :  { %5590 = vmatpush.bf16.msra.mxu2 %v6863_v22  ;;  %v9832_v22 = vld [vmem:[%s16328_s1 + $0x1830] sm:$0xf0]  ;;  %5556 = vmatmul.bf16.vlgmr.msrb.gmra.mxu3 %v12294_v33  ;;  %v6831_v27 = vor.u32 %v10056_v20, %v6830_v9  ;;  %v10160_v9 = vld [vmem:[%s16328_s1 + $0x3f4] sm:$0xf0] }
 0x18d   :  { %5604 = vmatpush.bf16.msra.mxu3 %v6991_v25  ;;  %v9835_v14 = vor.u32 %v10805_v61, %v9832_v22  ;;  %v10801_v25 = vld [vmem:[%s16328_s1 + $0x1804] sm:$0xf]  ;;  %v7246_v22 = vld [vmem:[%s16328_s1 + $0x3e8] sm:$0xf] }
 0x18e   :  { %5567 = vmatpush.bf16.msra.mxu0 %v9723_v12  ;;  %v6942_v12 = vld [vmem:[%s16328_s1 + $0x188] sm:$0xf]  ;;  %v9819_v20 = vor.u32 %v10801_v25, %v9816_v3  ;;  %v10124_v25 = vld [vmem:[%s16328_s1 + $0x2d4] sm:$0xf0] }
 0x18f   :  { %5581 = vmatpush.bf16.msra.mxu1 %v9851_v54  ;;  %v5305_v54 = vpop.f32.mrf.mxu1  ;;  %v7230_v3 = vld [vmem:[%s16328_s1 + $0x3c8] sm:$0xf] }
 0x190   :  { %5591 = vmatpush.bf16.msra.mxu2 %v6847_v59  ;;  %v10084_v59 = vld [vmem:[%s16328_s1 + $0x194] sm:$0xf0]  ;;  %v5306_v61 = vadd.f32 %v5305_v54, %v13506_v6  ;;  %v6798_v6 = vld [vmem:[%s16328_s1 + $0x68] sm:$0xf] }
 0x191   :  { %5605 = vmatpush.bf16.msra.mxu3 %v6975_v2  ;;  %v9691_v2 = vor.u32 %v10769_v49, %v9688_v29  ;;  %v6943_v28 = vor.u32 %v10084_v59, %v6942_v12  ;;  %v6926_v49 = vld [vmem:[%s16328_s1 + $0x168] sm:$0xf]  ;;  %v5319_v12 = vpop.f32.mrf.mxu2 }
 0x192   :  { %5568 = vmatpush.bf16.msra.mxu0 %v9707_v0  ;;  %v10048_v0 = vld [vmem:[%s16328_s1 + $0x74] sm:$0xf0]  ;;  %v7102_v29 = vld [vmem:[%s16328_s1 + $0x2c8] sm:$0xf] }
 0x193   :  { %5582 = vmatpush.bf16.msra.mxu1 %v9835_v14  ;;  %v7247_v14 = vor.u32 %v10160_v9, %v7246_v22  ;;  %v6799_v53 = vor.u32 %v10048_v0, %v6798_v6  ;;  %v7103_v54 = vor.u32 %v10124_v25, %v7102_v29  ;;  %v6782_v59 = vld [vmem:[%s16328_s1 + $0x48] sm:$0xf]  ;;  %v10076_v22 = vld [vmem:[%s16328_s1 + $0x154] sm:$0xf0] }
 0x194   :  { %5592 = vmatpush.bf16.msra.mxu2 %v6831_v27  ;;  %v10080_v27 = vld [vmem:[%s16328_s1 + $0x174] sm:$0xf0]  ;;  %v7086_v9 = vld [vmem:[%s16328_s1 + $0x2a8] sm:$0xf]  ;;  %v6783_v0 = vor.u32 %v10044_v7, %v6782_v59 }
 0x195   :  { %5606 = vmatpush.bf16.msra.mxu3 %v6959_v8  ;;  %v10156_v8 = vld [vmem:[%s16328_s1 + $0x3d4] sm:$0xf0]  ;;  %v6927_v11 = vor.u32 %v10080_v27, %v6926_v49  ;;  %v6911_v49 = vor.u32 %v10076_v22, %v6910_v18  ;;  %v6766_v27 = vld [vmem:[%s16328_s1 + $0x28] sm:$0xf] }
 0x196   :  { %5569 = vmatpush.bf16.msra.mxu0 %v9691_v2  ;;  %v5320_v2 = vadd.f32 %v5319_v12, %v5306_v61  ;;  %v10152_v61 = vld [vmem:[%s16328_s1 + $0x3b4] sm:$0xf0]  ;;  %v6894_v25 = vld [vmem:[%s16328_s1 + $0x128] sm:$0xf]  ;;  %v5347_v12 = vpop.f32.mrf.mxu0 }
 0x197   :  { %5583 = vmatpush.bf16.msra.mxu1 %v9819_v20  ;;  %v10120_v20 = vld [vmem:[%s16328_s1 + $0x2b4] sm:$0xf0] }
 0x198   :  { %5593 = vmatpush.bf16.msra.mxu2 %v6815_v23  ;;  %v5333_v23 = vpop.f32.mrf.mxu3  ;;  %v10040_v29 = vld [vmem:[%s16328_s1 + $0x34] sm:$0xf0] }
 0x199   :  { %5607 = vmatpush.bf16.msra.mxu3 %v6943_v28  ;;  %5570 = vmatmul.bf16.vlgmr.msra.gmra.mxu0 %v12306_v48  ;;  %v7214_v28 = vld [vmem:[%s16328_s1 + $0x3a8] sm:$0xf]  ;;  %v5334_v6 = vadd.f32 %v5333_v23, %v5320_v2  ;;  %v10148_v59 = vld [vmem:[%s16328_s1 + $0x394] sm:$0xf0]  ;;  %v6767_v18 = vor.u32 %v10040_v29, %v6766_v27 }
 0x19a   :  { %5618 = vmatpush.bf16.msrb.mxu0 %v7119_v16  ;;  %v7231_v16 = vor.u32 %v10156_v8, %v7230_v3  ;;  %v7215_v3 = vor.u32 %v10152_v61, %v7214_v28  ;;  %v10072_v8 = vld [vmem:[%s16328_s1 + $0x134] sm:$0xf0]  ;;  %9877 = vmatmul.msk.bf16.vlgmr.msra.gmra.mxu1 %vm4886_vm0, %v12416_v19  ;;  %v6750_v2 = vld [vmem:[%s16328_s1 + $0x8] sm:$0xf] }
 0x19b   :  { %5632 = vmatpush.bf16.msrb.mxu1 %v7247_v14  ;;  %v7087_v14 = vor.u32 %v10120_v20, %v7086_v9  ;;  %v13712_v7 = vadd.f32 %v5347_v12, %v5334_v6  ;;  %v10036_v9 = vld [vmem:[%s16328_s1 + $0x14] sm:$0xf0]  ;;  %v6878_v20 = vld [vmem:[%s16328_s1 + $0x108] sm:$0xf] }
 0x19c   :  { %5594 = vmatpush.bf16.msra.mxu2 %v6799_v53  ;;  %v7070_v53 = vld [vmem:[%s16328_s1 + $0x288] sm:$0xf]  ;;  %v10068_v23 = vld [vmem:[%s16328_s1 + $0x114] sm:$0xf0]  ;;  %v6751_v29 = vor.u32 %v10036_v9, %v6750_v2 }
 0x19d   :  { %5608 = vmatpush.bf16.msra.mxu3 %v6927_v11  ;;  %v10116_v11 = vld [vmem:[%s16328_s1 + $0x294] sm:$0xf0]  ;;  %v7054_v61 = vld [vmem:[%s16328_s1 + $0x268] sm:$0xf] }
 0x19e   :  { %5619 = vmatpush.bf16.msrb.mxu0 %v7103_v54  ;;  %v7198_v54 = vld [vmem:[%s16328_s1 + $0x388] sm:$0xf]  ;;  %v7071_v22 = vor.u32 %v10116_v11, %v7070_v53  ;;  %v10112_v6 = vld [vmem:[%s16328_s1 + $0x274] sm:$0xf0] }
 0x19f   :  { %5633 = vmatpush.bf16.msrb.mxu1 %v7231_v16  ;;  %v6895_v16 = vor.u32 %v10072_v8, %v6894_v25  ;;  %v7199_v28 = vor.u32 %v10148_v59, %v7198_v54  ;;  %v10192_v27 = vld [vmem:[%s16328_s1 + $0x4f4] sm:$0xf0]  ;;  %v7502_v25 = vld [vmem:[%s16328_s1 + $0x5e8] sm:$0xf]  ;;  %v6879_v8 = vor.u32 %v10068_v23, %v6878_v20  ;;  %v7055_v53 = vor.u32 %v10112_v6, %v7054_v61  ;;  %v13768_v20 = vpop.f32.mrf.mxu1 }
 0x1a0   :  { %5595 = vmatpush.bf16.msra.mxu2 %v6783_v0  ;;  %v7182_v0 = vld [vmem:[%s16328_s1 + $0x368] sm:$0xf]  ;;  %v10108_v59 = vld [vmem:[%s16328_s1 + $0x254] sm:$0xf0] }
 0x1a1   :  { %5609 = vmatpush.bf16.msra.mxu3 %v6911_v49  ;;  %v10144_v49 = vld [vmem:[%s16328_s1 + $0x374] sm:$0xf0]  ;;  %v7038_v54 = vld [vmem:[%s16328_s1 + $0x248] sm:$0xf] }
 0x1a2   :  { %5620 = vmatpush.bf16.msrb.mxu0 %v7087_v14  ;;  %v7374_v14 = vld [vmem:[%s16328_s1 + $0x4e8] sm:$0xf]  ;;  %v7183_v11 = vor.u32 %v10144_v49, %v7182_v0  ;;  %v10188_v9 = vld [vmem:[%s16328_s1 + $0x4d4] sm:$0xf0]  ;;  %v7039_v61 = vor.u32 %v10108_v59, %v7038_v54 }
 0x1a3   :  { %5634 = vmatpush.bf16.msrb.mxu1 %v7215_v3  ;;  %v10224_v3 = vld [vmem:[%s16328_s1 + $0x5f4] sm:$0xf0]  ;;  %v7375_v12 = vor.u32 %v10192_v27, %v7374_v14  ;;  %v7486_v23 = vld [vmem:[%s16328_s1 + $0x5c8] sm:$0xf] }
 0x1a4   :  { %5596 = vmatpush.bf16.msra.mxu2 %v6767_v18  ;;  %v7166_v18 = vld [vmem:[%s16328_s1 + $0x348] sm:$0xf]  ;;  %v7503_v2 = vor.u32 %v10224_v3, %v7502_v25  ;;  %v10104_v14 = vld [vmem:[%s16328_s1 + $0x234] sm:$0xf0] }
 0x1a5   :  { %5610 = vmatpush.bf16.msra.mxu3 %v6895_v16  ;;  %v10140_v16 = vld [vmem:[%s16328_s1 + $0x354] sm:$0xf0]  ;;  %v7022_v49 = vld [vmem:[%s16328_s1 + $0x228] sm:$0xf] }
 0x1a6   :  { %5621 = vmatpush.bf16.msrb.mxu0 %v7071_v22  ;;  %v7358_v22 = vld [vmem:[%s16328_s1 + $0x4c8] sm:$0xf]  ;;  %v7167_v6 = vor.u32 %v10140_v16, %v7166_v18  ;;  %v10136_v25 = vld [vmem:[%s16328_s1 + $0x334] sm:$0xf0] }
 0x1a7   :  { %5635 = vmatpush.bf16.msrb.mxu1 %v7199_v28  ;;  %v10220_v28 = vld [vmem:[%s16328_s1 + $0x5d4] sm:$0xf0]  ;;  %v7359_v0 = vor.u32 %v10188_v9, %v7358_v22  ;;  %v7150_v27 = vld [vmem:[%s16328_s1 + $0x328] sm:$0xf]  ;;  %v13814_v9 = vpop.f32.mrf.mxu2 }
 0x1a8   :  { %5597 = vmatpush.bf16.msra.mxu2 %v6751_v29  ;;  %v7487_v29 = vor.u32 %v10220_v28, %v7486_v23  ;;  %v7342_v3 = vld [vmem:[%s16328_s1 + $0x4a8] sm:$0xf]  ;;  %v7151_v59 = vor.u32 %v10136_v25, %v7150_v27  ;;  %v10132_v22 = vld [vmem:[%s16328_s1 + $0x314] sm:$0xf0]  ;;  %16358 = vst [vmem:[#allocation21_spill] sm:$0xff] %v13814_v9  ;;  %v13816_v23 = vpop.f32.mrf.mxu3 }
 0x1a9   :  { %5611 = vmatpush.bf16.msra.mxu3 %v6879_v8  ;;  %v10184_v8 = vld [vmem:[%s16328_s1 + $0x4b4] sm:$0xf0]  ;;  %v7006_v54 = vld [vmem:[%s16328_s1 + $0x208] sm:$0xf]  ;;  %16359 = vst [vmem:[#allocation22_spill] sm:$0xff] %v13816_v23 }
 0x1aa   :  { %5622 = vmatpush.bf16.msrb.mxu0 %v7055_v53  ;;  %v7470_v53 = vld [vmem:[%s16328_s1 + $0x5a8] sm:$0xf]  ;;  %v7343_v18 = vor.u32 %v10184_v8, %v7342_v3 }
 0x1ab   :  { %5636 = vmatpush.bf16.msrb.mxu1 %v7183_v11  ;;  %5598 = vmatmul.bf16.vlgmr.msra.gmra.mxu2 %v11137_v58  ;;  %v10216_v11 = vld [vmem:[%s16328_s1 + $0x5b4] sm:$0xf0]  ;;  %v7134_v16 = vld [vmem:[%s16328_s1 + $0x308] sm:$0xf] }
 0x1ac   :  { %5646 = vmatpush.bf16.msrb.mxu2 %v7375_v12  ;;  %5612 = vmatmul.bf16.vlgmr.msra.gmra.mxu3 %v11173_v10  ;;  %v7023_v12 = vor.u32 %v10104_v14, %v7022_v49  ;;  %v7471_v28 = vor.u32 %v10216_v11, %v7470_v53  ;;  %v5361_v49 = vpop.f32.mrf.mxu1  ;;  %v10212_v14 = vld [vmem:[%s16328_s1 + $0x594] sm:$0xf0]  ;;  %v7630_v27 = vld [vmem:[%s16328_s1 + $0x6e8] sm:$0xf]  ;;  %v7135_v11 = vor.u32 %v10132_v22, %v7134_v16  ;;  %v13861_v22 = vpop.f32.mrf.mxu0 }
 0x1ad   :  { %5660 = vmatpush.bf16.msrb.mxu3 %v7503_v2  ;;  %v10100_v2 = vld [vmem:[%s16328_s1 + $0x214] sm:$0xf0]  ;;  %v5362_v25 = vadd.f32 %v5361_v49, %v13712_v7  ;;  %v7758_v8 = vld [vmem:[%s16328_s1 + $0x7e8] sm:$0xf]  ;;  %16360 = vst [vmem:[#allocation23_spill] sm:$0xff] %v13861_v22 }
 0x1ae   :  { %5623 = vmatpush.bf16.msrb.mxu0 %v7039_v61  ;;  %v7326_v61 = vld [vmem:[%s16328_s1 + $0x488] sm:$0xf]  ;;  %v7007_v3 = vor.u32 %v10100_v2, %v7006_v54  ;;  %v10288_v53 = vld [vmem:[%s16328_s1 + $0x7f4] sm:$0xf0] }
 0x1af   :  { %5637 = vmatpush.bf16.msrb.mxu1 %v7167_v6  ;;  %v10180_v6 = vld [vmem:[%s16328_s1 + $0x494] sm:$0xf0]  ;;  %v7310_v7 = vld [vmem:[%s16328_s1 + $0x468] sm:$0xf]  ;;  %v7759_v2 = vor.u32 %v10288_v53, %v7758_v8  ;;  %v5375_v49 = vpop.f32.mrf.mxu2 }
 0x1b0   :  { %5647 = vmatpush.bf16.msrb.mxu2 %v7359_v0  ;;  %v7454_v0 = vld [vmem:[%s16328_s1 + $0x588] sm:$0xf]  ;;  %v7327_v23 = vor.u32 %v10180_v6, %v7326_v61  ;;  %v10252_v16 = vld [vmem:[%s16328_s1 + $0x6d4] sm:$0xf0] }
 0x1b1   :  { %5661 = vmatpush.bf16.msrb.mxu3 %v7487_v29  ;;  %v10256_v29 = vld [vmem:[%s16328_s1 + $0x6f4] sm:$0xf0]  ;;  %v7455_v9 = vor.u32 %v10212_v14, %v7454_v0  ;;  %v7438_v54 = vld [vmem:[%s16328_s1 + $0x568] sm:$0xf] }
 0x1b2   :  { %5624 = vmatpush.bf16.msrb.mxu0 %v7023_v12  ;;  %v7631_v24 = vor.u32 %v10256_v29, %v7630_v27  ;;  %v10176_v12 = vld [vmem:[%s16328_s1 + $0x474] sm:$0xf0]  ;;  %v5389_v27 = vpop.f32.mrf.mxu3  ;;  %v7294_v29 = vld [vmem:[%s16328_s1 + $0x448] sm:$0xf] }
 0x1b3   :  { %5638 = vmatpush.bf16.msrb.mxu1 %v7151_v59  ;;  %v10208_v59 = vld [vmem:[%s16328_s1 + $0x574] sm:$0xf0]  ;;  %v7311_v6 = vor.u32 %v10176_v12, %v7310_v7  ;;  %v7422_v8 = vld [vmem:[%s16328_s1 + $0x548] sm:$0xf] }
 0x1b4   :  { %5648 = vmatpush.bf16.msrb.mxu2 %v7343_v18  ;;  %v7614_v18 = vld [vmem:[%s16328_s1 + $0x6c8] sm:$0xf]  ;;  %v10284_v61 = vld [vmem:[%s16328_s1 + $0x7d4] sm:$0xf0]  ;;  %v7439_v0 = vor.u32 %v10208_v59, %v7438_v54 }
 0x1b5   :  { %5662 = vmatpush.bf16.msrb.mxu3 %v7471_v28  ;;  %v7742_v28 = vld [vmem:[%s16328_s1 + $0x7c8] sm:$0xf]  ;;  %v7615_v14 = vor.u32 %v10252_v16, %v7614_v18  ;;  %v10168_v16 = vld [vmem:[%s16328_s1 + $0x434] sm:$0xf0] }
 0x1b6   :  { %5625 = vmatpush.bf16.msrb.mxu0 %v7007_v3  ;;  %v10172_v3 = vld [vmem:[%s16328_s1 + $0x454] sm:$0xf0]  ;;  %v7598_v53 = vld [vmem:[%s16328_s1 + $0x6a8] sm:$0xf] }
 0x1b7   :  { %5639 = vmatpush.bf16.msrb.mxu1 %v7135_v11  ;;  %v10248_v11 = vld [vmem:[%s16328_s1 + $0x6b4] sm:$0xf0]  ;;  %v7726_v7 = vld [vmem:[%s16328_s1 + $0x7a8] sm:$0xf]  ;;  %v7295_v54 = vor.u32 %v10172_v3, %v7294_v29 }
 0x1b8   :  { %5649 = vmatpush.bf16.msrb.mxu2 %v7327_v23  ;;  %v5376_v23 = vadd.f32 %v5375_v49, %v5362_v25  ;;  %v10280_v25 = vld [vmem:[%s16328_s1 + $0x7b4] sm:$0xf0]  ;;  %v7599_v59 = vor.u32 %v10248_v11, %v7598_v53  ;;  %v7278_v18 = vld [vmem:[%s16328_s1 + $0x428] sm:$0xf] }
 0x1b9   :  { %5663 = vmatpush.bf16.msrb.mxu3 %v7455_v9  ;;  %v7743_v9 = vor.u32 %v10284_v61, %v7742_v28  ;;  %5626 = vmatmul.bf16.vlgmr.msrb.gmra.mxu0 %v11151_v1  ;;  %v7406_v28 = vld [vmem:[%s16328_s1 + $0x528] sm:$0xf]  ;;  %v7727_v61 = vor.u32 %v10280_v25, %v7726_v7  ;;  %v10244_v49 = vld [vmem:[%s16328_s1 + $0x694] sm:$0xf0] }
 0x1ba   :  { %5674 = vmatpush.bf16.msra.mxu0 %v7631_v24  ;;  %v10204_v24 = vld [vmem:[%s16328_s1 + $0x554] sm:$0xf0]  ;;  %5640 = vmatmul.bf16.vlgmr.msrb.gmra.mxu1 %v11187_v17  ;;  %v5390_v12 = vadd.f32 %v5389_v27, %v5376_v23  ;;  %v7710_v27 = vld [vmem:[%s16328_s1 + $0x788] sm:$0xf] }
 0x1bb   :  { %5688 = vmatpush.bf16.msra.mxu1 %v7759_v2  ;;  %v7423_v2 = vor.u32 %v10204_v24, %v7422_v8  ;;  %v10276_v29 = vld [vmem:[%s16328_s1 + $0x794] sm:$0xf0]  ;;  %v7279_v8 = vor.u32 %v10168_v16, %v7278_v18  ;;  %v7262_v23 = vld [vmem:[%s16328_s1 + $0x408] sm:$0xf] }
 0x1bc   :  { %5650 = vmatpush.bf16.msrb.mxu2 %v7311_v6  ;;  %v10200_v6 = vld [vmem:[%s16328_s1 + $0x534] sm:$0xf0]  ;;  %v7390_v11 = vld [vmem:[%s16328_s1 + $0x508] sm:$0xf]  ;;  %v7711_v25 = vor.u32 %v10276_v29, %v7710_v27 }
 0x1bd   :  { %5664 = vmatpush.bf16.msrb.mxu3 %v7439_v0  ;;  %v7582_v0 = vld [vmem:[%s16328_s1 + $0x688] sm:$0xf]  ;;  %v10164_v53 = vld [vmem:[%s16328_s1 + $0x414] sm:$0xf0] }
 0x1be   :  { %5675 = vmatpush.bf16.msra.mxu0 %v7615_v14  ;;  %v5403_v14 = vpop.f32.mrf.mxu0  ;;  %v7583_v24 = vor.u32 %v10244_v49, %v7582_v0  ;;  %v10196_v7 = vld [vmem:[%s16328_s1 + $0x514] sm:$0xf0]  ;;  %v7886_v18 = vld [vmem:[%s16328_s1 + $0x8e8] sm:$0xf] }
 0x1bf   :  { %5689 = vmatpush.bf16.msra.mxu1 %v7743_v9  ;;  %v13919_v3 = vadd.f32 %v5403_v14, %v5390_v12  ;;  %v7407_v9 = vor.u32 %v10200_v6, %v7406_v28  ;;  %v7566_v12 = vld [vmem:[%s16328_s1 + $0x668] sm:$0xf]  ;;  %v10320_v16 = vld [vmem:[%s16328_s1 + $0x8f4] sm:$0xf0]  ;;  %v7263_v28 = vor.u32 %v10164_v53, %v7262_v23  ;;  %v7391_v0 = vor.u32 %v10196_v7, %v7390_v11  ;;  %v13975_v7 = vpop.f32.mrf.mxu1 }
 0x1c0   :  { %5651 = vmatpush.bf16.msrb.mxu2 %v7295_v54  ;;  %v10240_v54 = vld [vmem:[%s16328_s1 + $0x674] sm:$0xf0]  ;;  %v7887_v27 = vor.u32 %v10320_v16, %v7886_v18  ;;  %v7550_v29 = vld [vmem:[%s16328_s1 + $0x648] sm:$0xf]  ;;  %16361 = vst [vmem:[#allocation24_spill] sm:$0xff] %v13975_v7 }
 0x1c1   :  { %5665 = vmatpush.bf16.msrb.mxu3 %v7423_v2  ;;  %v7694_v2 = vld [vmem:[%s16328_s1 + $0x768] sm:$0xf]  ;;  %v10352_v6 = vld [vmem:[%s16328_s1 + $0x9f4] sm:$0xf0]  ;;  %v7567_v49 = vor.u32 %v10240_v54, %v7566_v12 }
 0x1c2   :  { %5676 = vmatpush.bf16.msra.mxu0 %v7599_v59  ;;  %v10272_v59 = vld [vmem:[%s16328_s1 + $0x774] sm:$0xf0]  ;;  %v7678_v23 = vld [vmem:[%s16328_s1 + $0x748] sm:$0xf] }
 0x1c3   :  { %5690 = vmatpush.bf16.msra.mxu1 %v7727_v61  ;;  %v8014_v61 = vld [vmem:[%s16328_s1 + $0x9e8] sm:$0xf]  ;;  %v7695_v14 = vor.u32 %v10272_v59, %v7694_v2  ;;  %v10316_v11 = vld [vmem:[%s16328_s1 + $0x8d4] sm:$0xf0] }
 0x1c4   :  { %5652 = vmatpush.bf16.msrb.mxu2 %v7279_v8  ;;  %v10236_v8 = vld [vmem:[%s16328_s1 + $0x654] sm:$0xf0]  ;;  %v8015_v53 = vor.u32 %v10352_v6, %v8014_v61  ;;  %v7534_v18 = vld [vmem:[%s16328_s1 + $0x628] sm:$0xf] }
 0x1c5   :  { %5666 = vmatpush.bf16.msrb.mxu3 %v7407_v9  ;;  %v10268_v9 = vld [vmem:[%s16328_s1 + $0x754] sm:$0xf0]  ;;  %v7551_v54 = vor.u32 %v10236_v8, %v7550_v29  ;;  %v7518_v8 = vld [vmem:[%s16328_s1 + $0x608] sm:$0xf] }
 0x1c6   :  { %5677 = vmatpush.bf16.msra.mxu0 %v7583_v24  ;;  %v7870_v24 = vld [vmem:[%s16328_s1 + $0x8c8] sm:$0xf]  ;;  %v10348_v12 = vld [vmem:[%s16328_s1 + $0x9d4] sm:$0xf0]  ;;  %v7679_v2 = vor.u32 %v10268_v9, %v7678_v23 }
 0x1c7   :  { %5691 = vmatpush.bf16.msra.mxu1 %v7711_v25  ;;  %v7998_v25 = vld [vmem:[%s16328_s1 + $0x9c8] sm:$0xf]  ;;  %v7871_v59 = vor.u32 %v10316_v11, %v7870_v24  ;;  %v10232_v16 = vld [vmem:[%s16328_s1 + $0x634] sm:$0xf0] }
 0x1c8   :  { %5653 = vmatpush.bf16.msrb.mxu2 %v7263_v28  ;;  %v7662_v28 = vld [vmem:[%s16328_s1 + $0x728] sm:$0xf]  ;;  %v7999_v61 = vor.u32 %v10348_v12, %v7998_v25  ;;  %v10264_v6 = vld [vmem:[%s16328_s1 + $0x734] sm:$0xf0]  ;;  %v7535_v29 = vor.u32 %v10232_v16, %v7534_v18  ;;  %v14021_v25 = vpop.f32.mrf.mxu2  ;;  %v14023_v12 = vpop.f32.mrf.mxu3 }
 0x1c9   :  { %5667 = vmatpush.bf16.msrb.mxu3 %v7391_v0  ;;  %v7854_v0 = vld [vmem:[%s16328_s1 + $0x8a8] sm:$0xf]  ;;  %v7663_v23 = vor.u32 %v10264_v6, %v7662_v28  ;;  %v10228_v9 = vld [vmem:[%s16328_s1 + $0x614] sm:$0xf0]  ;;  %16362 = vst [vmem:[#allocation25_spill] sm:$0xff] %v14021_v25  ;;  %v5417_v16 = vpop.f32.mrf.mxu1 }
 0x1ca   :  { %5678 = vmatpush.bf16.msra.mxu0 %v7567_v49  ;;  %v10312_v49 = vld [vmem:[%s16328_s1 + $0x8b4] sm:$0xf0]  ;;  %v7646_v24 = vld [vmem:[%s16328_s1 + $0x708] sm:$0xf]  ;;  %16363 = vst [vmem:[#allocation26_spill] sm:$0xff] %v14023_v12 }
 0x1cb   :  { %5692 = vmatpush.bf16.msra.mxu1 %v7695_v14  ;;  %5654 = vmatmul.bf16.vlgmr.msrb.gmra.mxu2 %v11359_v39  ;;  %v7982_v14 = vld [vmem:[%s16328_s1 + $0x9a8] sm:$0xf]  ;;  %v10260_v11 = vld [vmem:[%s16328_s1 + $0x714] sm:$0xf0] }
 0x1cc   :  { %5702 = vmatpush.bf16.msra.mxu2 %v7887_v27  ;;  %5668 = vmatmul.bf16.vlgmr.msrb.gmra.mxu3 %v11372_v44  ;;  %v10344_v27 = vld [vmem:[%s16328_s1 + $0x9b4] sm:$0xf0]  ;;  %v7966_v18 = vld [vmem:[%s16328_s1 + $0x988] sm:$0xf]  ;;  %v7647_v12 = vor.u32 %v10260_v11, %v7646_v24  ;;  %v14068_v11 = vpop.f32.mrf.mxu0 }
 0x1cd   :  { %5716 = vmatpush.bf16.msra.mxu3 %v8015_v53  ;;  %v7855_v53 = vor.u32 %v10312_v49, %v7854_v0  ;;  %v10340_v28 = vld [vmem:[%s16328_s1 + $0x994] sm:$0xf0]  ;;  %v5418_v0 = vadd.f32 %v5417_v16, %v13919_v3  ;;  %v7519_v49 = vor.u32 %v10228_v9, %v7518_v8  ;;  %v7822_v3 = vld [vmem:[%s16328_s1 + $0x868] sm:$0xf]  ;;  %16364 = vst [vmem:[#allocation27_spill] sm:$0xff] %v14068_v11 }
 0x1ce   :  { %5679 = vmatpush.bf16.msra.mxu0 %v7551_v54  ;;  %v7983_v54 = vor.u32 %v10344_v27, %v7982_v14  ;;  %v10384_v6 = vld [vmem:[%s16328_s1 + $0xaf4] sm:$0xf0]  ;;  %v8270_v14 = vld [vmem:[%s16328_s1 + $0xbe8] sm:$0xf]  ;;  %v7967_v7 = vor.u32 %v10340_v28, %v7966_v18 }
 0x1cf   :  { %5693 = vmatpush.bf16.msra.mxu1 %v7679_v2  ;;  %v7838_v2 = vld [vmem:[%s16328_s1 + $0x888] sm:$0xf]  ;;  %v10416_v27 = vld [vmem:[%s16328_s1 + $0xbf4] sm:$0xf0] }
 0x1d0   :  { %5703 = vmatpush.bf16.msra.mxu2 %v7871_v59  ;;  %v10308_v59 = vld [vmem:[%s16328_s1 + $0x894] sm:$0xf0]  ;;  %v7950_v8 = vld [vmem:[%s16328_s1 + $0x968] sm:$0xf]  ;;  %v8271_v9 = vor.u32 %v10416_v27, %v8270_v14  ;;  %v5431_v16 = vpop.f32.mrf.mxu2 }
 0x1d1   :  { %5717 = vmatpush.bf16.msra.mxu3 %v7999_v61  ;;  %v8142_v61 = vld [vmem:[%s16328_s1 + $0xae8] sm:$0xf]  ;;  %v7839_v25 = vor.u32 %v10308_v59, %v7838_v2  ;;  %v10380_v24 = vld [vmem:[%s16328_s1 + $0xad4] sm:$0xf0] }
 0x1d2   :  { %5680 = vmatpush.bf16.msra.mxu0 %v7535_v29  ;;  %v8143_v22 = vor.u32 %v10384_v6, %v8142_v61  ;;  %v10304_v29 = vld [vmem:[%s16328_s1 + $0x874] sm:$0xf0]  ;;  %v5445_v61 = vpop.f32.mrf.mxu3  ;;  %v7806_v6 = vld [vmem:[%s16328_s1 + $0x848] sm:$0xf] }
 0x1d3   :  { %5694 = vmatpush.bf16.msra.mxu1 %v7663_v23  ;;  %v10336_v23 = vld [vmem:[%s16328_s1 + $0x974] sm:$0xf0]  ;;  %v7823_v59 = vor.u32 %v10304_v29, %v7822_v3  ;;  %v8110_v14 = vld [vmem:[%s16328_s1 + $0xaa8] sm:$0xf] }
 0x1d4   :  { %5704 = vmatpush.bf16.msra.mxu2 %v7855_v53  ;;  %v8126_v53 = vld [vmem:[%s16328_s1 + $0xac8] sm:$0xf]  ;;  %v10412_v2 = vld [vmem:[%s16328_s1 + $0xbd4] sm:$0xf0]  ;;  %v7951_v18 = vor.u32 %v10336_v23, %v7950_v8 }
 0x1d5   :  { %5718 = vmatpush.bf16.msra.mxu3 %v7983_v54  ;;  %v8254_v54 = vld [vmem:[%s16328_s1 + $0xbc8] sm:$0xf]  ;;  %v8127_v28 = vor.u32 %v10380_v24, %v8126_v53  ;;  %v10376_v27 = vld [vmem:[%s16328_s1 + $0xab4] sm:$0xf0] }
 0x1d6   :  { %5681 = vmatpush.bf16.msra.mxu0 %v7519_v49  ;;  %v10300_v49 = vld [vmem:[%s16328_s1 + $0x854] sm:$0xf0]  ;;  %v8238_v3 = vld [vmem:[%s16328_s1 + $0xba8] sm:$0xf]  ;;  %v8111_v23 = vor.u32 %v10376_v27, %v8110_v14 }
 0x1d7   :  { %5695 = vmatpush.bf16.msra.mxu1 %v7647_v12  ;;  %v7934_v12 = vld [vmem:[%s16328_s1 + $0x948] sm:$0xf]  ;;  %v7807_v8 = vor.u32 %v10300_v49, %v7806_v6  ;;  %v10296_v24 = vld [vmem:[%s16328_s1 + $0x834] sm:$0xf0] }
 0x1d8   :  { %5705 = vmatpush.bf16.msra.mxu2 %v7839_v25  ;;  %v10332_v25 = vld [vmem:[%s16328_s1 + $0x954] sm:$0xf0]  ;;  %v7790_v53 = vld [vmem:[%s16328_s1 + $0x828] sm:$0xf] }
 0x1d9   :  { %5719 = vmatpush.bf16.msra.mxu3 %v7967_v7  ;;  %5682 = vmatmul.bf16.vlgmr.msra.gmra.mxu0 %v11370_v43  ;;  %v8255_v7 = vor.u32 %v10412_v2, %v8254_v54  ;;  %v7918_v54 = vld [vmem:[%s16328_s1 + $0x928] sm:$0xf]  ;;  %v10404_v6 = vld [vmem:[%s16328_s1 + $0xb94] sm:$0xf0] }
 0x1da   :  { %5730 = vmatpush.bf16.msrb.mxu0 %v8143_v22  ;;  %v5432_v22 = vadd.f32 %v5431_v16, %v5418_v0  ;;  %5696 = vmatmul.bf16.vlgmr.msra.gmra.mxu1 %v11380_v47  ;;  %v10408_v0 = vld [vmem:[%s16328_s1 + $0xbb4] sm:$0xf0]  ;;  %v7902_v27 = vld [vmem:[%s16328_s1 + $0x908] sm:$0xf] }
 0x1db   :  { %5744 = vmatpush.bf16.msrb.mxu1 %v8271_v9  ;;  %v7935_v9 = vor.u32 %v10332_v25, %v7934_v12  ;;  %v8239_v2 = vor.u32 %v10408_v0, %v8238_v3  ;;  %v10372_v16 = vld [vmem:[%s16328_s1 + $0xa94] sm:$0xf0]  ;;  %v7791_v12 = vor.u32 %v10296_v24, %v7790_v53  ;;  %v8398_v53 = vld [vmem:[%s16328_s1 + $0xce8] sm:$0xf] }
 0x1dc   :  { %5706 = vmatpush.bf16.msra.mxu2 %v7823_v59  ;;  %v5446_v29 = vadd.f32 %v5445_v61, %v5432_v22  ;;  %v10328_v59 = vld [vmem:[%s16328_s1 + $0x934] sm:$0xf0]  ;;  %v8222_v61 = vld [vmem:[%s16328_s1 + $0xb88] sm:$0xf] }
 0x1dd   :  { %5720 = vmatpush.bf16.msra.mxu3 %v7951_v18  ;;  %v8094_v18 = vld [vmem:[%s16328_s1 + $0xa88] sm:$0xf]  ;;  %v10292_v14 = vld [vmem:[%s16328_s1 + $0x814] sm:$0xf0]  ;;  %v8223_v0 = vor.u32 %v10404_v6, %v8222_v61 }
 0x1de   :  { %5731 = vmatpush.bf16.msrb.mxu0 %v8127_v28  ;;  %v5459_v28 = vpop.f32.mrf.mxu0  ;;  %v7774_v22 = vld [vmem:[%s16328_s1 + $0x808] sm:$0xf]  ;;  %v8095_v25 = vor.u32 %v10372_v16, %v8094_v18  ;;  %v10324_v3 = vld [vmem:[%s16328_s1 + $0x914] sm:$0xf0] }
 0x1df   :  { %5745 = vmatpush.bf16.msrb.mxu1 %v8255_v7  ;;  %v14126_v49 = vadd.f32 %v5459_v28, %v5446_v29  ;;  %v7919_v7 = vor.u32 %v10328_v59, %v7918_v54  ;;  %v8078_v29 = vld [vmem:[%s16328_s1 + $0xa68] sm:$0xf]  ;;  %v10448_v24 = vld [vmem:[%s16328_s1 + $0xcf4] sm:$0xf0]  ;;  %v7775_v54 = vor.u32 %v10292_v14, %v7774_v22  ;;  %v7903_v18 = vor.u32 %v10324_v3, %v7902_v27  ;;  %v14182_v3 = vpop.f32.mrf.mxu1 }
 0x1e0   :  { %5707 = vmatpush.bf16.msra.mxu2 %v7807_v8  ;;  %v10368_v8 = vld [vmem:[%s16328_s1 + $0xa74] sm:$0xf0]  ;;  %v8399_v61 = vor.u32 %v10448_v24, %v8398_v53  ;;  %v8062_v6 = vld [vmem:[%s16328_s1 + $0xa48] sm:$0xf]  ;;  %16365 = vst [vmem:[#allocation28_spill] sm:$0xff] %v14182_v3 }
 0x1e1   :  { %5721 = vmatpush.bf16.msra.mxu3 %v7935_v9  ;;  %v8206_v9 = vld [vmem:[%s16328_s1 + $0xb68] sm:$0xf]  ;;  %v10480_v59 = vld [vmem:[%s16328_s1 + $0xdf4] sm:$0xf0]  ;;  %v8079_v16 = vor.u32 %v10368_v8, %v8078_v29 }
 0x1e2   :  { %5732 = vmatpush.bf16.msrb.mxu0 %v8111_v23  ;;  %v10400_v23 = vld [vmem:[%s16328_s1 + $0xb74] sm:$0xf0]  ;;  %v8190_v22 = vld [vmem:[%s16328_s1 + $0xb48] sm:$0xf] }
 0x1e3   :  { %5746 = vmatpush.bf16.msrb.mxu1 %v8239_v2  ;;  %v8526_v2 = vld [vmem:[%s16328_s1 + $0xde8] sm:$0xf]  ;;  %v8207_v28 = vor.u32 %v10400_v23, %v8206_v9  ;;  %v10444_v27 = vld [vmem:[%s16328_s1 + $0xcd4] sm:$0xf0] }
 0x1e4   :  { %5708 = vmatpush.bf16.msra.mxu2 %v7791_v12  ;;  %v10364_v12 = vld [vmem:[%s16328_s1 + $0xa54] sm:$0xf0]  ;;  %v8527_v14 = vor.u32 %v10480_v59, %v8526_v2  ;;  %v8046_v53 = vld [vmem:[%s16328_s1 + $0xa28] sm:$0xf] }
 0x1e5   :  { %5722 = vmatpush.bf16.msra.mxu3 %v7919_v7  ;;  %v10396_v7 = vld [vmem:[%s16328_s1 + $0xb54] sm:$0xf0]  ;;  %v8063_v8 = vor.u32 %v10364_v12, %v8062_v6  ;;  %v8030_v12 = vld [vmem:[%s16328_s1 + $0xa08] sm:$0xf] }
 0x1e6   :  { %5733 = vmatpush.bf16.msrb.mxu0 %v8095_v25  ;;  %v8382_v25 = vld [vmem:[%s16328_s1 + $0xcc8] sm:$0xf]  ;;  %v10476_v29 = vld [vmem:[%s16328_s1 + $0xdd4] sm:$0xf0]  ;;  %v8191_v9 = vor.u32 %v10396_v7, %v8190_v22 }
 0x1e7   :  { %5747 = vmatpush.bf16.msrb.mxu1 %v8223_v0  ;;  %v8510_v0 = vld [vmem:[%s16328_s1 + $0xdc8] sm:$0xf]  ;;  %v8383_v23 = vor.u32 %v10444_v27, %v8382_v25  ;;  %v10360_v24 = vld [vmem:[%s16328_s1 + $0xa34] sm:$0xf0] }
 0x1e8   :  { %5709 = vmatpush.bf16.msra.mxu2 %v7775_v54  ;;  %v8174_v54 = vld [vmem:[%s16328_s1 + $0xb28] sm:$0xf]  ;;  %v8511_v2 = vor.u32 %v10476_v29, %v8510_v0  ;;  %v10392_v59 = vld [vmem:[%s16328_s1 + $0xb34] sm:$0xf0]  ;;  %v8047_v6 = vor.u32 %v10360_v24, %v8046_v53  ;;  %v14228_v0 = vpop.f32.mrf.mxu2  ;;  %v14230_v29 = vpop.f32.mrf.mxu3 }
 0x1e9   :  { %5723 = vmatpush.bf16.msra.mxu3 %v7903_v18  ;;  %v8366_v18 = vld [vmem:[%s16328_s1 + $0xca8] sm:$0xf]  ;;  %v8175_v22 = vor.u32 %v10392_v59, %v8174_v54  ;;  %v10356_v7 = vld [vmem:[%s16328_s1 + $0xa14] sm:$0xf0]  ;;  %16366 = vst [vmem:[#allocation29_spill] sm:$0xff] %v14228_v0  ;;  %v5473_v24 = vpop.f32.mrf.mxu1 }
 0x1ea   :  { %5734 = vmatpush.bf16.msrb.mxu0 %v8079_v16  ;;  %v10440_v16 = vld [vmem:[%s16328_s1 + $0xcb4] sm:$0xf0]  ;;  %v8158_v25 = vld [vmem:[%s16328_s1 + $0xb08] sm:$0xf]  ;;  %16367 = vst [vmem:[#allocation30_spill] sm:$0xff] %v14230_v29 }
 0x1eb   :  { %5748 = vmatpush.bf16.msrb.mxu1 %v8207_v28  ;;  %5710 = vmatmul.bf16.vlgmr.msra.gmra.mxu2 %v11587_v31  ;;  %v8494_v28 = vld [vmem:[%s16328_s1 + $0xda8] sm:$0xf]  ;;  %v10388_v27 = vld [vmem:[%s16328_s1 + $0xb14] sm:$0xf0] }
 0x1ec   :  { %5758 = vmatpush.bf16.msrb.mxu2 %v8399_v61  ;;  %5724 = vmatmul.bf16.vlgmr.msra.gmra.mxu3 %v11600_v36  ;;  %v10472_v61 = vld [vmem:[%s16328_s1 + $0xdb4] sm:$0xf0]  ;;  %v8478_v53 = vld [vmem:[%s16328_s1 + $0xd88] sm:$0xf]  ;;  %v8159_v29 = vor.u32 %v10388_v27, %v8158_v25  ;;  %v14275_v27 = vpop.f32.mrf.mxu0 }
 0x1ed   :  { %5772 = vmatpush.bf16.msrb.mxu3 %v8527_v14  ;;  %v8367_v14 = vor.u32 %v10440_v16, %v8366_v18  ;;  %v10468_v54 = vld [vmem:[%s16328_s1 + $0xd94] sm:$0xf0]  ;;  %v5474_v18 = vadd.f32 %v5473_v24, %v14126_v49  ;;  %v8031_v16 = vor.u32 %v10356_v7, %v8030_v12  ;;  %v8334_v49 = vld [vmem:[%s16328_s1 + $0xc68] sm:$0xf]  ;;  %16368 = vst [vmem:[#allocation31_spill] sm:$0xff] %v14275_v27 }
 0x1ee   :  { %5735 = vmatpush.bf16.msrb.mxu0 %v8063_v8  ;;  %v8495_v8 = vor.u32 %v10472_v61, %v8494_v28  ;;  %v10512_v59 = vld [vmem:[%s16328_s1 + $0xef4] sm:$0xf0]  ;;  %v8782_v28 = vld [vmem:[%s16328_s1 + $0xfe8] sm:$0xf]  ;;  %v8479_v3 = vor.u32 %v10468_v54, %v8478_v53 }
 0x1ef   :  { %5749 = vmatpush.bf16.msrb.mxu1 %v8191_v9  ;;  %v8350_v9 = vld [vmem:[%s16328_s1 + $0xc88] sm:$0xf]  ;;  %v10544_v61 = vld [vmem:[%s16328_s1 + $0xff4] sm:$0xf0] }
 0x1f0   :  { %5759 = vmatpush.bf16.msrb.mxu2 %v8383_v23  ;;  %v10436_v23 = vld [vmem:[%s16328_s1 + $0xc94] sm:$0xf0]  ;;  %v8462_v12 = vld [vmem:[%s16328_s1 + $0xd68] sm:$0xf]  ;;  %v8783_v7 = vor.u32 %v10544_v61, %v8782_v28  ;;  %v5487_v24 = vpop.f32.mrf.mxu2 }
 0x1f1   :  { %5773 = vmatpush.bf16.msrb.mxu3 %v8511_v2  ;;  %v8654_v2 = vld [vmem:[%s16328_s1 + $0xee8] sm:$0xf]  ;;  %v8351_v0 = vor.u32 %v10436_v23, %v8350_v9  ;;  %v10508_v25 = vld [vmem:[%s16328_s1 + $0xed4] sm:$0xf0] }
 0x1f2   :  { %5736 = vmatpush.bf16.msrb.mxu0 %v8047_v6  ;;  %v8655_v11 = vor.u32 %v10512_v59, %v8654_v2  ;;  %v10432_v6 = vld [vmem:[%s16328_s1 + $0xc74] sm:$0xf0]  ;;  %v5501_v2 = vpop.f32.mrf.mxu3  ;;  %v8318_v59 = vld [vmem:[%s16328_s1 + $0xc48] sm:$0xf] }
 0x1f3   :  { %5750 = vmatpush.bf16.msrb.mxu1 %v8175_v22  ;;  %v10464_v22 = vld [vmem:[%s16328_s1 + $0xd74] sm:$0xf0]  ;;  %v8335_v23 = vor.u32 %v10432_v6, %v8334_v49  ;;  %v8622_v28 = vld [vmem:[%s16328_s1 + $0xea8] sm:$0xf] }
 0x1f4   :  { %5760 = vmatpush.bf16.msrb.mxu2 %v8367_v14  ;;  %v8638_v14 = vld [vmem:[%s16328_s1 + $0xec8] sm:$0xf]  ;;  %v10540_v9 = vld [vmem:[%s16328_s1 + $0xfd4] sm:$0xf0]  ;;  %v8463_v53 = vor.u32 %v10464_v22, %v8462_v12 }
 0x1f5   :  { %5774 = vmatpush.bf16.msrb.mxu3 %v8495_v8  ;;  %v8766_v8 = vld [vmem:[%s16328_s1 + $0xfc8] sm:$0xf]  ;;  %v8639_v54 = vor.u32 %v10508_v25, %v8638_v14  ;;  %v10504_v61 = vld [vmem:[%s16328_s1 + $0xeb4] sm:$0xf0] }
 0x1f6   :  { %5737 = vmatpush.bf16.msrb.mxu0 %v8031_v16  ;;  %v10428_v16 = vld [vmem:[%s16328_s1 + $0xc54] sm:$0xf0]  ;;  %v8750_v49 = vld [vmem:[%s16328_s1 + $0xfa8] sm:$0xf]  ;;  %v8623_v22 = vor.u32 %v10504_v61, %v8622_v28 }
 0x1f7   :  { %5751 = vmatpush.bf16.msrb.mxu1 %v8159_v29  ;;  %v8446_v29 = vld [vmem:[%s16328_s1 + $0xd48] sm:$0xf]  ;;  %v8319_v12 = vor.u32 %v10428_v16, %v8318_v59  ;;  %v10424_v25 = vld [vmem:[%s16328_s1 + $0xc34] sm:$0xf0] }
 0x1f8   :  { %5761 = vmatpush.bf16.msrb.mxu2 %v8351_v0  ;;  %v10460_v0 = vld [vmem:[%s16328_s1 + $0xd54] sm:$0xf0]  ;;  %v8302_v14 = vld [vmem:[%s16328_s1 + $0xc28] sm:$0xf] }
 0x1f9   :  { %5775 = vmatpush.bf16.msrb.mxu3 %v8479_v3  ;;  %5738 = vmatmul.bf16.vlgmr.msrb.gmra.mxu0 %v11598_v35  ;;  %v8767_v3 = vor.u32 %v10540_v9, %v8766_v8  ;;  %v8430_v8 = vld [vmem:[%s16328_s1 + $0xd28] sm:$0xf]  ;;  %v10532_v59 = vld [vmem:[%s16328_s1 + $0xf94] sm:$0xf0] }
 0x1fa   :  { %5786 = vmatpush.bf16.msra.mxu0 %v8655_v11  ;;  %v5488_v11 = vadd.f32 %v5487_v24, %v5474_v18  ;;  %5752 = vmatmul.bf16.vlgmr.msrb.gmra.mxu1 %v11608_v40  ;;  %v10536_v18 = vld [vmem:[%s16328_s1 + $0xfb4] sm:$0xf0]  ;;  %v8414_v61 = vld [vmem:[%s16328_s1 + $0xd08] sm:$0xf] }
 0x1fb   :  { %5800 = vmatpush.bf16.msra.mxu1 %v8783_v7  ;;  %v8447_v7 = vor.u32 %v10460_v0, %v8446_v29  ;;  %v8751_v9 = vor.u32 %v10536_v18, %v8750_v49  ;;  %v10500_v24 = vld [vmem:[%s16328_s1 + $0xe94] sm:$0xf0]  ;;  %v8303_v29 = vor.u32 %v10424_v25, %v8302_v14  ;;  %v8910_v14 = vld [vmem:[%s16328_s1 + $0x10e8] sm:$0xf] }
 0x1fc   :  { %5762 = vmatpush.bf16.msrb.mxu2 %v8335_v23  ;;  %v5502_v6 = vadd.f32 %v5501_v2, %v5488_v11  ;;  %v10456_v23 = vld [vmem:[%s16328_s1 + $0xd34] sm:$0xf0]  ;;  %v8734_v2 = vld [vmem:[%s16328_s1 + $0xf88] sm:$0xf] }
 0x1fd   :  { %5776 = vmatpush.bf16.msrb.mxu3 %v8463_v53  ;;  %v8606_v53 = vld [vmem:[%s16328_s1 + $0xe88] sm:$0xf]  ;;  %v10420_v28 = vld [vmem:[%s16328_s1 + $0xc14] sm:$0xf0]  ;;  %v8735_v18 = vor.u32 %v10532_v59, %v8734_v2 }
 0x1fe   :  { %5787 = vmatpush.bf16.msra.mxu0 %v8639_v54  ;;  %v5515_v54 = vpop.f32.mrf.mxu0  ;;  %v8286_v11 = vld [vmem:[%s16328_s1 + $0xc08] sm:$0xf]  ;;  %v8607_v0 = vor.u32 %v10500_v24, %v8606_v53  ;;  %v10452_v49 = vld [vmem:[%s16328_s1 + $0xd14] sm:$0xf0] }
 0x1ff   :  { %5801 = vmatpush.bf16.msra.mxu1 %v8767_v3  ;;  %v14333_v16 = vadd.f32 %v5515_v54, %v5502_v6  ;;  %v8431_v3 = vor.u32 %v10456_v23, %v8430_v8  ;;  %v8590_v6 = vld [vmem:[%s16328_s1 + $0xe68] sm:$0xf]  ;;  %v10576_v25 = vld [vmem:[%s16328_s1 + $0x10f4] sm:$0xf0]  ;;  %v8287_v8 = vor.u32 %v10420_v28, %v8286_v11  ;;  %v8415_v53 = vor.u32 %v10452_v49, %v8414_v61  ;;  %v14389_v49 = vpop.f32.mrf.mxu1 }
 0x200   :  { %5763 = vmatpush.bf16.msrb.mxu2 %v8319_v12  ;;  %v10496_v12 = vld [vmem:[%s16328_s1 + $0xe74] sm:$0xf0]  ;;  %v8911_v2 = vor.u32 %v10576_v25, %v8910_v14  ;;  %v8574_v59 = vld [vmem:[%s16328_s1 + $0xe48] sm:$0xf]  ;;  %16369 = vst [vmem:[#allocation32_spill] sm:$0xff] %v14389_v49 }
 0x201   :  { %5777 = vmatpush.bf16.msrb.mxu3 %v8447_v7  ;;  %v8718_v7 = vld [vmem:[%s16328_s1 + $0xf68] sm:$0xf]  ;;  %v10608_v23 = vld [vmem:[%s16328_s1 + $0x11f4] sm:$0xf0]  ;;  %v8591_v24 = vor.u32 %v10496_v12, %v8590_v6 }
 0x202   :  { %5788 = vmatpush.bf16.msra.mxu0 %v8623_v22  ;;  %v10528_v22 = vld [vmem:[%s16328_s1 + $0xf74] sm:$0xf0]  ;;  %v8702_v11 = vld [vmem:[%s16328_s1 + $0xf48] sm:$0xf] }
 0x203   :  { %5802 = vmatpush.bf16.msra.mxu1 %v8751_v9  ;;  %v9038_v9 = vld [vmem:[%s16328_s1 + $0x11e8] sm:$0xf]  ;;  %v8719_v54 = vor.u32 %v10528_v22, %v8718_v7  ;;  %v10572_v61 = vld [vmem:[%s16328_s1 + $0x10d4] sm:$0xf0] }
 0x204   :  { %5764 = vmatpush.bf16.msrb.mxu2 %v8303_v29  ;;  %v10492_v29 = vld [vmem:[%s16328_s1 + $0xe54] sm:$0xf0]  ;;  %v9039_v28 = vor.u32 %v10608_v23, %v9038_v9  ;;  %v8558_v14 = vld [vmem:[%s16328_s1 + $0xe28] sm:$0xf] }
 0x205   :  { %5778 = vmatpush.bf16.msrb.mxu3 %v8431_v3  ;;  %v10524_v3 = vld [vmem:[%s16328_s1 + $0xf54] sm:$0xf0]  ;;  %v8575_v12 = vor.u32 %v10492_v29, %v8574_v59  ;;  %v8542_v29 = vld [vmem:[%s16328_s1 + $0xe08] sm:$0xf] }
 0x206   :  { %5789 = vmatpush.bf16.msra.mxu0 %v8607_v0  ;;  %v8894_v0 = vld [vmem:[%s16328_s1 + $0x10c8] sm:$0xf]  ;;  %v10604_v6 = vld [vmem:[%s16328_s1 + $0x11d4] sm:$0xf0]  ;;  %v8703_v7 = vor.u32 %v10524_v3, %v8702_v11 }
 0x207   :  { %5803 = vmatpush.bf16.msra.mxu1 %v8735_v18  ;;  %v9022_v18 = vld [vmem:[%s16328_s1 + $0x11c8] sm:$0xf]  ;;  %v8895_v22 = vor.u32 %v10572_v61, %v8894_v0  ;;  %v10488_v25 = vld [vmem:[%s16328_s1 + $0xe34] sm:$0xf0] }
 0x208   :  { %5765 = vmatpush.bf16.msrb.mxu2 %v8287_v8  ;;  %v8686_v8 = vld [vmem:[%s16328_s1 + $0xf28] sm:$0xf]  ;;  %v9023_v9 = vor.u32 %v10604_v6, %v9022_v18  ;;  %v10520_v23 = vld [vmem:[%s16328_s1 + $0xf34] sm:$0xf0]  ;;  %v8559_v59 = vor.u32 %v10488_v25, %v8558_v14  ;;  %v14435_v18 = vpop.f32.mrf.mxu2  ;;  %v14437_v6 = vpop.f32.mrf.mxu3 }
 0x209   :  { %5779 = vmatpush.bf16.msrb.mxu3 %v8415_v53  ;;  %v8878_v53 = vld [vmem:[%s16328_s1 + $0x10a8] sm:$0xf]  ;;  %v8687_v11 = vor.u32 %v10520_v23, %v8686_v8  ;;  %v10484_v3 = vld [vmem:[%s16328_s1 + $0xe14] sm:$0xf0]  ;;  %16370 = vst [vmem:[#allocation33_spill] sm:$0xff] %v14435_v18  ;;  %v5529_v25 = vpop.f32.mrf.mxu1 }
 0x20a   :  { %5790 = vmatpush.bf16.msra.mxu0 %v8591_v24  ;;  %v10568_v24 = vld [vmem:[%s16328_s1 + $0x10b4] sm:$0xf0]  ;;  %v8670_v0 = vld [vmem:[%s16328_s1 + $0xf08] sm:$0xf]  ;;  %16371 = vst [vmem:[#allocation34_spill] sm:$0xff] %v14437_v6 }
 0x20b   :  { %5804 = vmatpush.bf16.msra.mxu1 %v8719_v54  ;;  %5766 = vmatmul.bf16.vlgmr.msrb.gmra.mxu2 %v11815_v32  ;;  %v9006_v54 = vld [vmem:[%s16328_s1 + $0x11a8] sm:$0xf]  ;;  %v10516_v61 = vld [vmem:[%s16328_s1 + $0xf14] sm:$0xf0] }
 0x20c   :  { %5814 = vmatpush.bf16.msra.mxu2 %v8911_v2  ;;  %5780 = vmatmul.bf16.vlgmr.msrb.gmra.mxu3 %v11828_v41  ;;  %v10600_v2 = vld [vmem:[%s16328_s1 + $0x11b4] sm:$0xf0]  ;;  %v8990_v14 = vld [vmem:[%s16328_s1 + $0x1188] sm:$0xf]  ;;  %v8671_v6 = vor.u32 %v10516_v61, %v8670_v0  ;;  %v14482_v61 = vpop.f32.mrf.mxu0 }
 0x20d   :  { %5828 = vmatpush.bf16.msra.mxu3 %v9039_v28  ;;  %v8879_v28 = vor.u32 %v10568_v24, %v8878_v53  ;;  %v10596_v8 = vld [vmem:[%s16328_s1 + $0x1194] sm:$0xf0]  ;;  %v5530_v53 = vadd.f32 %v5529_v25, %v14333_v16  ;;  %v8543_v24 = vor.u32 %v10484_v3, %v8542_v29  ;;  %v8846_v16 = vld [vmem:[%s16328_s1 + $0x1068] sm:$0xf]  ;;  %16372 = vst [vmem:[#allocation35_spill] sm:$0xff] %v14482_v61 }
 0x20e   :  { %5791 = vmatpush.bf16.msra.mxu0 %v8575_v12  ;;  %v9007_v12 = vor.u32 %v10600_v2, %v9006_v54  ;;  %v10640_v23 = vld [vmem:[%s16328_s1 + $0x12f4] sm:$0xf0]  ;;  %v9294_v54 = vld [vmem:[%s16328_s1 + $0x13e8] sm:$0xf]  ;;  %v8991_v49 = vor.u32 %v10596_v8, %v8990_v14 }
 0x20f   :  { %5805 = vmatpush.bf16.msra.mxu1 %v8703_v7  ;;  %v8862_v7 = vld [vmem:[%s16328_s1 + $0x1088] sm:$0xf]  ;;  %v10672_v2 = vld [vmem:[%s16328_s1 + $0x13f4] sm:$0xf0] }
 0x210   :  { %5815 = vmatpush.bf16.msra.mxu2 %v8895_v22  ;;  %v10564_v22 = vld [vmem:[%s16328_s1 + $0x1094] sm:$0xf0]  ;;  %v8974_v29 = vld [vmem:[%s16328_s1 + $0x1168] sm:$0xf]  ;;  %v9295_v3 = vor.u32 %v10672_v2, %v9294_v54  ;;  %v5543_v25 = vpop.f32.mrf.mxu2 }
 0x211   :  { %5829 = vmatpush.bf16.msra.mxu3 %v9023_v9  ;;  %v9166_v9 = vld [vmem:[%s16328_s1 + $0x12e8] sm:$0xf]  ;;  %v8863_v18 = vor.u32 %v10564_v22, %v8862_v7  ;;  %v10636_v0 = vld [vmem:[%s16328_s1 + $0x12d4] sm:$0xf0] }
 0x212   :  { %5792 = vmatpush.bf16.msra.mxu0 %v8559_v59  ;;  %v9167_v27 = vor.u32 %v10640_v23, %v9166_v9  ;;  %v10560_v59 = vld [vmem:[%s16328_s1 + $0x1074] sm:$0xf0]  ;;  %v5557_v9 = vpop.f32.mrf.mxu3  ;;  %v8830_v23 = vld [vmem:[%s16328_s1 + $0x1048] sm:$0xf] }
 0x213   :  { %5806 = vmatpush.bf16.msra.mxu1 %v8687_v11  ;;  %v10592_v11 = vld [vmem:[%s16328_s1 + $0x1174] sm:$0xf0]  ;;  %v8847_v22 = vor.u32 %v10560_v59, %v8846_v16  ;;  %v9134_v2 = vld [vmem:[%s16328_s1 + $0x12a8] sm:$0xf] }
 0x214   :  { %5816 = vmatpush.bf16.msra.mxu2 %v8879_v28  ;;  %v9150_v28 = vld [vmem:[%s16328_s1 + $0x12c8] sm:$0xf]  ;;  %v10668_v7 = vld [vmem:[%s16328_s1 + $0x13d4] sm:$0xf0]  ;;  %v8975_v14 = vor.u32 %v10592_v11, %v8974_v29 }
 0x215   :  { %5830 = vmatpush.bf16.msra.mxu3 %v9007_v12  ;;  %v9278_v12 = vld [vmem:[%s16328_s1 + $0x13c8] sm:$0xf]  ;;  %v9151_v8 = vor.u32 %v10636_v0, %v9150_v28  ;;  %v10588_v54 = vld [vmem:[%s16328_s1 + $0x1154] sm:$0xf0] }
 0x216   :  { %5793 = vmatpush.bf16.msra.mxu0 %v8543_v24  ;;  %v10556_v24 = vld [vmem:[%s16328_s1 + $0x1054] sm:$0xf0]  ;;  %v8814_v0 = vld [vmem:[%s16328_s1 + $0x1028] sm:$0xf] }
 0x217   :  { %5807 = vmatpush.bf16.msra.mxu1 %v8671_v6  ;;  %v8958_v6 = vld [vmem:[%s16328_s1 + $0x1148] sm:$0xf]  ;;  %v10632_v16 = vld [vmem:[%s16328_s1 + $0x12b4] sm:$0xf0] }
 0x218   :  { %5817 = vmatpush.bf16.msra.mxu2 %v8863_v18  ;;  %v14500_v18 = vpop.f32.mrf.mxu1  ;;  %v10664_v59 = vld [vmem:[%s16328_s1 + $0x13b4] sm:$0xf0]  ;;  %v8959_v11 = vor.u32 %v10588_v54, %v8958_v6  ;;  %v9135_v28 = vor.u32 %v10632_v16, %v9134_v2 }
 0x219   :  { %5831 = vmatpush.bf16.msra.mxu3 %v8991_v49  ;;  %5794 = vmatmul.bf16.vlgmr.msra.gmra.mxu0 %v11826_v38  ;;  %v9279_v49 = vor.u32 %v10668_v7, %v9278_v12  ;;  %16373 = vst [vmem:[#allocation36_spill] sm:$0xff] %v14500_v18  ;;  %v10552_v12 = vld [vmem:[%s16328_s1 + $0x1034] sm:$0xf0]  ;;  %v8942_v7 = vld [vmem:[%s16328_s1 + $0x1128] sm:$0xf] }
 0x21a   :  { %5842 = vmatpush.bf16.msrb.mxu0 %v9167_v27  ;;  %v5544_v27 = vadd.f32 %v5543_v25, %v5530_v53  ;;  %5808 = vmatmul.bf16.vlgmr.msra.gmra.mxu1 %v11836_v46  ;;  %v9262_v53 = vld [vmem:[%s16328_s1 + $0x13a8] sm:$0xf]  ;;  %v10548_v16 = vld [vmem:[%s16328_s1 + $0x1014] sm:$0xf0] }
 0x21b   :  { %5856 = vmatpush.bf16.msrb.mxu1 %v9295_v3  ;;  %v8831_v3 = vor.u32 %v10556_v24, %v8830_v23  ;;  %v9118_v25 = vld [vmem:[%s16328_s1 + $0x1288] sm:$0xf]  ;;  %v10660_v24 = vld [vmem:[%s16328_s1 + $0x1394] sm:$0xf0] }
 0x21c   :  { %5818 = vmatpush.bf16.msra.mxu2 %v8847_v22  ;;  %v5558_v29 = vadd.f32 %v5557_v9, %v5544_v27  ;;  %v9263_v22 = vor.u32 %v10664_v59, %v9262_v53  ;;  %v5571_v9 = vpop.f32.mrf.mxu0  ;;  %v9246_v23 = vld [vmem:[%s16328_s1 + $0x1388] sm:$0xf]  ;;  %v8815_v27 = vor.u32 %v10552_v12, %v8814_v0  ;;  %v10580_v59 = vld [vmem:[%s16328_s1 + $0x1114] sm:$0xf0] }
 0x21d   :  { %5832 = vmatpush.bf16.msra.mxu3 %v8975_v14  ;;  %v10584_v14 = vld [vmem:[%s16328_s1 + $0x1134] sm:$0xf0]  ;;  %v8926_v53 = vld [vmem:[%s16328_s1 + $0x1108] sm:$0xf] }
 0x21e   :  { %5843 = vmatpush.bf16.msrb.mxu0 %v9151_v8  ;;  %v10628_v8 = vld [vmem:[%s16328_s1 + $0x1294] sm:$0xf0]  ;;  %v5572_v6 = vadd.f32 %v5571_v9, %v5558_v29  ;;  %v8943_v54 = vor.u32 %v10584_v14, %v8942_v7  ;;  %v9247_v29 = vor.u32 %v10660_v24, %v9246_v23  ;;  %v9422_v12 = vld [vmem:[%s16328_s1 + $0x14e8] sm:$0xf]  ;;  %v8927_v23 = vor.u32 %v10580_v59, %v8926_v53 }
 0x21f   :  { %5857 = vmatpush.bf16.msrb.mxu1 %v9279_v49  ;;  %v8798_v49 = vld [vmem:[%s16328_s1 + $0x1008] sm:$0xf]  ;;  %v9119_v2 = vor.u32 %v10628_v8, %v9118_v25  ;;  %v10656_v0 = vld [vmem:[%s16328_s1 + $0x1374] sm:$0xf0] }
 0x220   :  { %5819 = vmatpush.bf16.msra.mxu2 %v8831_v3  ;;  %v9102_v3 = vld [vmem:[%s16328_s1 + $0x1268] sm:$0xf]  ;;  %v10704_v7 = vld [vmem:[%s16328_s1 + $0x14f4] sm:$0xf0]  ;;  %v8799_v14 = vor.u32 %v10548_v16, %v8798_v49 }
 0x221   :  { %5833 = vmatpush.bf16.msra.mxu3 %v8959_v11  ;;  %v10624_v11 = vld [vmem:[%s16328_s1 + $0x1274] sm:$0xf0]  ;;  %v9550_v25 = vld [vmem:[%s16328_s1 + $0x15e8] sm:$0xf]  ;;  %v9423_v61 = vor.u32 %v10704_v7, %v9422_v12 }
 0x222   :  { %5844 = vmatpush.bf16.msrb.mxu0 %v9135_v28  ;;  %v9230_v28 = vld [vmem:[%s16328_s1 + $0x1368] sm:$0xf]  ;;  %v10736_v8 = vld [vmem:[%s16328_s1 + $0x15f4] sm:$0xf0]  ;;  %v9103_v24 = vor.u32 %v10624_v11, %v9102_v3 }
 0x223   :  { %5858 = vmatpush.bf16.msrb.mxu1 %v9263_v22  ;;  %v5585_v22 = vpop.f32.mrf.mxu1  ;;  %v9231_v18 = vor.u32 %v10656_v0, %v9230_v28  ;;  %v10620_v49 = vld [vmem:[%s16328_s1 + $0x1254] sm:$0xf0]  ;;  %v9406_v16 = vld [vmem:[%s16328_s1 + $0x14c8] sm:$0xf] }
 0x224   :  { %5820 = vmatpush.bf16.msra.mxu2 %v8815_v27  ;;  %v14578_v9 = vadd.f32 %v5585_v22, %v5572_v6  ;;  %v9086_v27 = vld [vmem:[%s16328_s1 + $0x1248] sm:$0xf]  ;;  %v10652_v6 = vld [vmem:[%s16328_s1 + $0x1354] sm:$0xf0] }
 0x225   :  { %5834 = vmatpush.bf16.msra.mxu3 %v8943_v54  ;;  %v9214_v54 = vld [vmem:[%s16328_s1 + $0x1348] sm:$0xf]  ;;  %v10700_v53 = vld [vmem:[%s16328_s1 + $0x14d4] sm:$0xf0]  ;;  %v9087_v3 = vor.u32 %v10620_v49, %v9086_v27 }
 0x226   :  { %5845 = vmatpush.bf16.msrb.mxu0 %v9119_v2  ;;  %16374 = vst [vmem:[#allocation37_spill] sm:$0xff] %v14578_v9  ;;  %v9551_v2 = vor.u32 %v10736_v8, %v9550_v25  ;;  %v9534_v59 = vld [vmem:[%s16328_s1 + $0x15c8] sm:$0xf]  ;;  %v9215_v11 = vor.u32 %v10652_v6, %v9214_v54  ;;  %v9407_v28 = vor.u32 %v10700_v53, %v9406_v16  ;;  %v10616_v12 = vld [vmem:[%s16328_s1 + $0x1234] sm:$0xf0] }
 0x227   :  { %5859 = vmatpush.bf16.msrb.mxu1 %v9247_v29  ;;  %v10732_v29 = vld [vmem:[%s16328_s1 + $0x15d4] sm:$0xf0]  ;;  %v9070_v0 = vld [vmem:[%s16328_s1 + $0x1228] sm:$0xf] }
 0x228   :  { %5821 = vmatpush.bf16.msra.mxu2 %v8799_v14  ;;  %v9198_v7 = vld [vmem:[%s16328_s1 + $0x1328] sm:$0xf]  ;;  %v9535_v22 = vor.u32 %v10732_v29, %v9534_v59  ;;  %v10696_v14 = vld [vmem:[%s16328_s1 + $0x14b4] sm:$0xf0] }
 0x229   :  { %5835 = vmatpush.bf16.msra.mxu3 %v8927_v23  ;;  %v9518_v25 = vld [vmem:[%s16328_s1 + $0x15a8] sm:$0xf]  ;;  %v10728_v8 = vld [vmem:[%s16328_s1 + $0x15b4] sm:$0xf0]  ;;  %v9071_v23 = vor.u32 %v10616_v12, %v9070_v0 }
 0x22a   :  { %5846 = vmatpush.bf16.msrb.mxu0 %v9103_v24  ;;  %v9054_v24 = vld [vmem:[%s16328_s1 + $0x1208] sm:$0xf]  ;;  %v10612_v54 = vld [vmem:[%s16328_s1 + $0x1214] sm:$0xf0]  ;;  %v9519_v16 = vor.u32 %v10728_v8, %v9518_v25 }
 0x22b   :  { %5860 = vmatpush.bf16.msrb.mxu1 %v9231_v18  ;;  %5822 = vmatmul.bf16.vlgmr.msra.gmra.mxu2 %v12043_v51  ;;  %v9390_v18 = vld [vmem:[%s16328_s1 + $0x14a8] sm:$0xf]  ;;  %v10644_v6 = vld [vmem:[%s16328_s1 + $0x1314] sm:$0xf0]  ;;  %v9055_v0 = vor.u32 %v10612_v54, %v9054_v24 }
 0x22c   :  { %5870 = vmatpush.bf16.msrb.mxu2 %v9423_v61  ;;  %v10648_v61 = vld [vmem:[%s16328_s1 + $0x1334] sm:$0xf0]  ;;  %5836 = vmatmul.bf16.vlgmr.msra.gmra.mxu3 %v12056_v56  ;;  %v9391_v49 = vor.u32 %v10696_v14, %v9390_v18  ;;  %v9374_v53 = vld [vmem:[%s16328_s1 + $0x1488] sm:$0xf] }
 0x22d   :  { %5884 = vmatpush.bf16.msrb.mxu3 %v9551_v2  ;;  %v9199_v27 = vor.u32 %v10648_v61, %v9198_v7  ;;  %v9182_v2 = vld [vmem:[%s16328_s1 + $0x1308] sm:$0xf]  ;;  %v10692_v59 = vld [vmem:[%s16328_s1 + $0x1494] sm:$0xf0] }
 0x22e   :  { %5847 = vmatpush.bf16.msrb.mxu0 %v9087_v3  ;;  %v9502_v29 = vld [vmem:[%s16328_s1 + $0x1588] sm:$0xf]  ;;  %v10724_v3 = vld [vmem:[%s16328_s1 + $0x1594] sm:$0xf0]  ;;  %v9375_v61 = vor.u32 %v10692_v59, %v9374_v53 }
 0x22f   :  { %5861 = vmatpush.bf16.msrb.mxu1 %v9215_v11  ;;  %v9678_v11 = vld [vmem:[%s16328_s1 + $0x16e8] sm:$0xf]  ;;  %v10800_v7 = vld [vmem:[%s16328_s1 + $0x17f4] sm:$0xf0]  ;;  %v9503_v18 = vor.u32 %v10724_v3, %v9502_v29 }
 0x230   :  { %5871 = vmatpush.bf16.msrb.mxu2 %v9407_v28  ;;  %v10768_v28 = vld [vmem:[%s16328_s1 + $0x16f4] sm:$0xf0]  ;;  %v9806_v12 = vld [vmem:[%s16328_s1 + $0x17e8] sm:$0xf] }
 0x231   :  { %5885 = vmatpush.bf16.msrb.mxu3 %v9535_v22  ;;  %v9183_v22 = vor.u32 %v10644_v6, %v9182_v2  ;;  %v9679_v14 = vor.u32 %v10768_v28, %v9678_v11  ;;  %v9358_v25 = vld [vmem:[%s16328_s1 + $0x1468] sm:$0xf]  ;;  %v10688_v8 = vld [vmem:[%s16328_s1 + $0x1474] sm:$0xf0]  ;;  %v9807_v24 = vor.u32 %v10800_v7, %v9806_v12 }
 0x232   :  { %5848 = vmatpush.bf16.msrb.mxu0 %v9071_v23  ;;  %v9486_v23 = vld [vmem:[%s16328_s1 + $0x1568] sm:$0xf]  ;;  %v10764_v54 = vld [vmem:[%s16328_s1 + $0x16d4] sm:$0xf0] }
 0x233   :  { %5862 = vmatpush.bf16.msrb.mxu1 %v9199_v27  ;;  %v10720_v27 = vld [vmem:[%s16328_s1 + $0x1574] sm:$0xf0]  ;;  %v9790_v2 = vld [vmem:[%s16328_s1 + $0x17c8] sm:$0xf] }
 0x234   :  { %5872 = vmatpush.bf16.msrb.mxu2 %v9391_v49  ;;  %v9662_v49 = vld [vmem:[%s16328_s1 + $0x16c8] sm:$0xf]  ;;  %v10796_v6 = vld [vmem:[%s16328_s1 + $0x17d4] sm:$0xf0]  ;;  %v9487_v53 = vor.u32 %v10720_v27, %v9486_v23 }
 0x235   :  { %5886 = vmatpush.bf16.msrb.mxu3 %v9519_v16  ;;  %v9359_v16 = vor.u32 %v10688_v8, %v9358_v25  ;;  %v9663_v59 = vor.u32 %v10764_v54, %v9662_v49  ;;  %v9342_v29 = vld [vmem:[%s16328_s1 + $0x1448] sm:$0xf]  ;;  %v10684_v3 = vld [vmem:[%s16328_s1 + $0x1454] sm:$0xf0]  ;;  %v9791_v28 = vor.u32 %v10796_v6, %v9790_v2 }
 0x236   :  { %5849 = vmatpush.bf16.msrb.mxu0 %v9055_v0  ;;  %v9470_v11 = vld [vmem:[%s16328_s1 + $0x1548] sm:$0xf]  ;;  %v10716_v0 = vld [vmem:[%s16328_s1 + $0x1554] sm:$0xf0] }
 0x237   :  { %5863 = vmatpush.bf16.msrb.mxu1 %v9183_v22  ;;  %v9646_v12 = vld [vmem:[%s16328_s1 + $0x16a8] sm:$0xf]  ;;  %v10760_v7 = vld [vmem:[%s16328_s1 + $0x16b4] sm:$0xf0] }
 0x238   :  { %5873 = vmatpush.bf16.msrb.mxu2 %v9375_v61  ;;  %v9774_v22 = vld [vmem:[%s16328_s1 + $0x17a8] sm:$0xf]  ;;  %v10792_v61 = vld [vmem:[%s16328_s1 + $0x17b4] sm:$0xf0]  ;;  %v9647_v25 = vor.u32 %v10760_v7, %v9646_v12 }
 0x239   :  { %5887 = vmatpush.bf16.msrb.mxu3 %v9503_v18  ;;  %5850 = vmatmul.bf16.vlgmr.msrb.gmra.mxu0 %v12054_v55  ;;  %v9343_v18 = vor.u32 %v10684_v3, %v9342_v29  ;;  %v9326_v8 = vld [vmem:[%s16328_s1 + $0x1428] sm:$0xf]  ;;  %v10680_v23 = vld [vmem:[%s16328_s1 + $0x1434] sm:$0xf0]  ;;  %v9775_v27 = vor.u32 %v10792_v61, %v9774_v22 }
 0x23a   :  { %5898 = vmatpush.bf16.msra.mxu0 %v9679_v14  ;;  %5864 = vmatmul.bf16.vlgmr.msrb.gmra.mxu1 %v12064_v60  ;;  %v9471_v14 = vor.u32 %v10716_v0, %v9470_v11  ;;  %v10712_v49 = vld [vmem:[%s16328_s1 + $0x1534] sm:$0xf0]  ;;  %v9630_v54 = vld [vmem:[%s16328_s1 + $0x1688] sm:$0xf] }
 0x23b   :  { %5912 = vmatpush.bf16.msra.mxu1 %v9807_v24  ;;  %v9454_v24 = vld [vmem:[%s16328_s1 + $0x1528] sm:$0xf]  ;;  %v10756_v2 = vld [vmem:[%s16328_s1 + $0x1694] sm:$0xf0] }
 0x23c   :  { %5874 = vmatpush.bf16.msrb.mxu2 %v9359_v16  ;;  %v9758_v6 = vld [vmem:[%s16328_s1 + $0x1788] sm:$0xf]  ;;  %v10788_v16 = vld [vmem:[%s16328_s1 + $0x1794] sm:$0xf0]  ;;  %v9455_v29 = vor.u32 %v10712_v49, %v9454_v24  ;;  %v9631_v3 = vor.u32 %v10756_v2, %v9630_v54  ;;  %v6864_v24 = vld [vmem:[%s16328_s1 + $0xf8] sm:$0xf0] }
 0x23d   :  { %5888 = vmatpush.bf16.msrb.mxu3 %v9487_v53  ;;  %v9327_v53 = vor.u32 %v10680_v23, %v9326_v8  ;;  %v10676_v11 = vld [vmem:[%s16328_s1 + $0x1414] sm:$0xf0]  ;;  %v9759_v12 = vor.u32 %v10788_v16, %v9758_v6  ;;  %v9614_v7 = vld [vmem:[%s16328_s1 + $0x1668] sm:$0xf]  ;;  %v10062_v23 = vld [vmem:[%s16328_s1 + $0xec] sm:$0xf] }
 0x23e   :  { %5899 = vmatpush.bf16.msra.mxu0 %v9663_v59  ;;  %v9310_v59 = vld [vmem:[%s16328_s1 + $0x1408] sm:$0xf]  ;;  %v10708_v0 = vld [vmem:[%s16328_s1 + $0x1514] sm:$0xf0] }
 0x23f   :  { %5913 = vmatpush.bf16.msra.mxu1 %v9791_v28  ;;  %v9438_v28 = vld [vmem:[%s16328_s1 + $0x1508] sm:$0xf]  ;;  %v10752_v22 = vld [vmem:[%s16328_s1 + $0x1674] sm:$0xf0]  ;;  %v9311_v8 = vor.u32 %v10676_v11, %v9310_v59  ;;  %v6867_v59 = vor.u32 %v10062_v23, %v6864_v24 }
 0x240   :  { %5875 = vmatpush.bf16.msrb.mxu2 %v9343_v18  ;;  %v9742_v61 = vld [vmem:[%s16328_s1 + $0x1768] sm:$0xf]  ;;  %v10784_v18 = vld [vmem:[%s16328_s1 + $0x1774] sm:$0xf0]  ;;  %v9615_v49 = vor.u32 %v10752_v22, %v9614_v7 }
 0x241   :  { %5889 = vmatpush.bf16.msrb.mxu3 %v9471_v14  ;;  %v9870_v14 = vld [vmem:[%s16328_s1 + $0x1868] sm:$0xf]  ;;  %v9743_v54 = vor.u32 %v10784_v18, %v9742_v61  ;;  %v10748_v16 = vld [vmem:[%s16328_s1 + $0x1654] sm:$0xf0] }
 0x242   :  { %5900 = vmatpush.bf16.msra.mxu0 %v9647_v25  ;;  %v10816_v25 = vld [vmem:[%s16328_s1 + $0x1874] sm:$0xf0]  ;;  %v9598_v6 = vld [vmem:[%s16328_s1 + $0x1648] sm:$0xf] }
 0x243   :  { %5914 = vmatpush.bf16.msra.mxu1 %v9775_v27  ;;  %v9439_v27 = vor.u32 %v10708_v0, %v9438_v28  ;;  %v9871_v2 = vor.u32 %v10816_v25, %v9870_v14  ;;  %v10812_v11 = vld [vmem:[%s16328_s1 + $0x1854] sm:$0xf0]  ;;  %v10058_v28 = vld [vmem:[%s16328_s1 + $0xcc] sm:$0xf]  ;;  %v6848_v0 = vld [vmem:[%s16328_s1 + $0xd8] sm:$0xf0] }
 0x244   :  { %5876 = vmatpush.bf16.msrb.mxu2 %v9327_v53  ;;  %v9726_v53 = vld [vmem:[%s16328_s1 + $0x1748] sm:$0xf]  ;;  %v10744_v18 = vld [vmem:[%s16328_s1 + $0x1634] sm:$0xf0]  ;;  %v6851_v25 = vor.u32 %v10058_v28, %v6848_v0  ;;  %v10050_v0 = vld [vmem:[%s16328_s1 + $0x8c] sm:$0xf] }
 0x245   :  { %5890 = vmatpush.bf16.msrb.mxu3 %v9455_v29  ;;  %v10780_v29 = vld [vmem:[%s16328_s1 + $0x1754] sm:$0xf0]  ;;  %v9582_v61 = vld [vmem:[%s16328_s1 + $0x1628] sm:$0xf] }
 0x246   :  { %5901 = vmatpush.bf16.msra.mxu0 %v9631_v3  ;;  %v9854_v3 = vld [vmem:[%s16328_s1 + $0x1848] sm:$0xf]  ;;  %v9727_v7 = vor.u32 %v10780_v29, %v9726_v53  ;;  %v10808_v24 = vld [vmem:[%s16328_s1 + $0x1834] sm:$0xf0] }
 0x247   :  { %5915 = vmatpush.bf16.msra.mxu1 %v9759_v12  ;;  %v9599_v12 = vor.u32 %v10748_v16, %v9598_v6  ;;  %v9855_v22 = vor.u32 %v10812_v11, %v9854_v3  ;;  %v9710_v14 = vld [vmem:[%s16328_s1 + $0x1728] sm:$0xf]  ;;  %v10740_v6 = vld [vmem:[%s16328_s1 + $0x1614] sm:$0xf0] }
 0x248   :  { %5877 = vmatpush.bf16.msrb.mxu2 %v9311_v8  ;;  %v10776_v8 = vld [vmem:[%s16328_s1 + $0x1734] sm:$0xf0]  ;;  %v9838_v23 = vld [vmem:[%s16328_s1 + $0x1828] sm:$0xf] }
 0x249   :  { %5891 = vmatpush.bf16.msrb.mxu3 %v9439_v27  ;;  %v10054_v27 = vld [vmem:[%s16328_s1 + $0xac] sm:$0xf]  ;;  %v9711_v16 = vor.u32 %v10776_v8, %v9710_v14  ;;  %v9839_v53 = vor.u32 %v10808_v24, %v9838_v23  ;;  %v10772_v29 = vld [vmem:[%s16328_s1 + $0x1714] sm:$0xf0]  ;;  %v9822_v3 = vld [vmem:[%s16328_s1 + $0x1808] sm:$0xf] }
 0x24a   :  { %5902 = vmatpush.bf16.msra.mxu0 %v9615_v49  ;;  %v6832_v49 = vld [vmem:[%s16328_s1 + $0xb8] sm:$0xf0]  ;;  %v10804_v28 = vld [vmem:[%s16328_s1 + $0x1814] sm:$0xf0] }
 0x24b   :  { %5916 = vmatpush.bf16.msra.mxu1 %v9743_v54  ;;  %5878 = vmatmul.bf16.vlgmr.msrb.gmra.mxu2 %v12283_v26  ;;  %v9583_v54 = vor.u32 %v10744_v18, %v9582_v61  ;;  %v6835_v11 = vor.u32 %v10054_v27, %v6832_v49  ;;  %v10126_v61 = vld [vmem:[%s16328_s1 + $0x2ec] sm:$0xf]  ;;  %v7120_v14 = vld [vmem:[%s16328_s1 + $0x2f8] sm:$0xf0]  ;;  %v9823_v24 = vor.u32 %v10804_v28, %v9822_v3 }
 0x24c   :  { %5930 = vmatpush.bf16.msra.mxu2 %v9871_v2  ;;  %5892 = vmatmul.bf16.vlgmr.msrb.gmra.mxu3 %v12296_v34  ;;  %v9566_v2 = vld [vmem:[%s16328_s1 + $0x1608] sm:$0xf]  ;;  %v7248_v8 = vld [vmem:[%s16328_s1 + $0x3f8] sm:$0xf0]  ;;  %v10154_v3 = vld [vmem:[%s16328_s1 + $0x3cc] sm:$0xf] }
 0x24d   :  { %5940 = vmatpush.bf16.msra.mxu3 %v6867_v59  ;;  %v9694_v59 = vld [vmem:[%s16328_s1 + $0x1708] sm:$0xf]  ;;  %v9567_v18 = vor.u32 %v10740_v6, %v9566_v2  ;;  %v6800_v2 = vld [vmem:[%s16328_s1 + $0x78] sm:$0xf0]  ;;  %v7123_v6 = vor.u32 %v10126_v61, %v7120_v14 }
 0x24e   :  { %5903 = vmatpush.bf16.msra.mxu0 %v9599_v12  ;;  %v6816_v12 = vld [vmem:[%s16328_s1 + $0x98] sm:$0xf0]  ;;  %v9695_v23 = vor.u32 %v10772_v29, %v9694_v59  ;;  %v10122_v59 = vld [vmem:[%s16328_s1 + $0x2cc] sm:$0xf] }
 0x24f   :  { %5917 = vmatpush.bf16.msra.mxu1 %v9727_v7  ;;  %v10094_v7 = vld [vmem:[%s16328_s1 + $0x1ec] sm:$0xf]  ;;  %v6819_v27 = vor.u32 %v10050_v0, %v6816_v12  ;;  %v7104_v29 = vld [vmem:[%s16328_s1 + $0x2d8] sm:$0xf0] }
 0x250   :  { %5931 = vmatpush.bf16.msra.mxu2 %v9855_v22  ;;  %v6992_v22 = vld [vmem:[%s16328_s1 + $0x1f8] sm:$0xf0]  ;;  %v10042_v12 = vld [vmem:[%s16328_s1 + $0x4c] sm:$0xf] }
 0x251   :  { %5941 = vmatpush.bf16.msra.mxu3 %v6851_v25  ;;  %v10158_v25 = vld [vmem:[%s16328_s1 + $0x3ec] sm:$0xf]  ;;  %v6995_v49 = vor.u32 %v10094_v7, %v6992_v22  ;;  %v6784_v7 = vld [vmem:[%s16328_s1 + $0x58] sm:$0xf0]  ;;  %v7107_v22 = vor.u32 %v10122_v59, %v7104_v29 }
 0x252   :  { %5904 = vmatpush.bf16.msra.mxu0 %v9583_v54  ;;  %v10046_v54 = vld [vmem:[%s16328_s1 + $0x6c] sm:$0xf]  ;;  %v7251_v9 = vor.u32 %v10158_v25, %v7248_v8  ;;  %v6960_v14 = vld [vmem:[%s16328_s1 + $0x1b8] sm:$0xf0] }
 0x253   :  { %5918 = vmatpush.bf16.msra.mxu1 %v9711_v16  ;;  %v10090_v16 = vld [vmem:[%s16328_s1 + $0x1cc] sm:$0xf]  ;;  %v6803_v28 = vor.u32 %v10046_v54, %v6800_v2  ;;  %v6768_v54 = vld [vmem:[%s16328_s1 + $0x38] sm:$0xf0] }
 0x254   :  { %5932 = vmatpush.bf16.msra.mxu2 %v9839_v53  ;;  %v6976_v53 = vld [vmem:[%s16328_s1 + $0x1d8] sm:$0xf0]  ;;  %v10118_v25 = vld [vmem:[%s16328_s1 + $0x2ac] sm:$0xf] }
 0x255   :  { %5942 = vmatpush.bf16.msra.mxu3 %v6835_v11  ;;  %v7232_v11 = vld [vmem:[%s16328_s1 + $0x3d8] sm:$0xf0]  ;;  %v6979_v0 = vor.u32 %v10090_v16, %v6976_v53  ;;  %v10150_v8 = vld [vmem:[%s16328_s1 + $0x3ac] sm:$0xf] }
 0x256   :  { %5905 = vmatpush.bf16.msra.mxu0 %v9567_v18  ;;  %v7235_v61 = vor.u32 %v10154_v3, %v7232_v11  ;;  %v10086_v18 = vld [vmem:[%s16328_s1 + $0x1ac] sm:$0xf]  ;;  %v6944_v53 = vld [vmem:[%s16328_s1 + $0x198] sm:$0xf0] }
 0x257   :  { %5919 = vmatpush.bf16.msra.mxu1 %v9695_v23  ;;  %v7216_v23 = vld [vmem:[%s16328_s1 + $0x3b8] sm:$0xf0]  ;;  %v10082_v16 = vld [vmem:[%s16328_s1 + $0x18c] sm:$0xf] }
 0x258   :  { %5933 = vmatpush.bf16.msra.mxu2 %v9823_v24  ;;  %v6787_v24 = vor.u32 %v10042_v12, %v6784_v7  ;;  %v10114_v59 = vld [vmem:[%s16328_s1 + $0x28c] sm:$0xf]  ;;  %v7072_v29 = vld [vmem:[%s16328_s1 + $0x298] sm:$0xf0] }
 0x259   :  { %5943 = vmatpush.bf16.msra.mxu3 %v6819_v27  ;;  %5906 = vmatmul.bf16.vlgmr.msra.gmra.mxu0 %v12294_v33  ;;  %v6963_v27 = vor.u32 %v10086_v18, %v6960_v14  ;;  %v10146_v3 = vld [vmem:[%s16328_s1 + $0x38c] sm:$0xf]  ;;  %v7200_v11 = vld [vmem:[%s16328_s1 + $0x398] sm:$0xf0] }
 0x25a   :  { %5954 = vmatpush.bf16.msrb.mxu0 %v6995_v49  ;;  %5920 = vmatmul.bf16.vlgmr.msra.gmra.mxu1 %v12306_v48  ;;  %v10038_v49 = vld [vmem:[%s16328_s1 + $0x2c] sm:$0xf]  ;;  %v6752_v7 = vld [vmem:[%s16328_s1 + $0x18] sm:$0xf0] }
 0x25b   :  { %5968 = vmatpush.bf16.msrb.mxu1 %v7123_v6  ;;  %v7219_v6 = vor.u32 %v10150_v8, %v7216_v23  ;;  %9878 = vmatmul.msk.bf16.vlgmr.msra.gmra.mxu2 %vm4886_vm0, %v12416_v19  ;;  %v10034_v12 = vld [vmem:[%s16328_s1 + $0xc] sm:$0xf]  ;;  %v6928_v14 = vld [vmem:[%s16328_s1 + $0x178] sm:$0xf0] }
 0x25c   :  { %5982 = vmatpush.bf16.msrb.mxu2 %v7251_v9  ;;  %v7088_v9 = vld [vmem:[%s16328_s1 + $0x2b8] sm:$0xf0]  ;;  %v10078_v18 = vld [vmem:[%s16328_s1 + $0x16c] sm:$0xf] }
 0x25d   :  { %5944 = vmatpush.bf16.msra.mxu3 %v6803_v28  ;;  %v7091_v2 = vor.u32 %v10118_v25, %v7088_v9  ;;  %v6771_v28 = vor.u32 %v10038_v49, %v6768_v54  ;;  %v10110_v25 = vld [vmem:[%s16328_s1 + $0x26c] sm:$0xf]  ;;  %v7056_v9 = vld [vmem:[%s16328_s1 + $0x278] sm:$0xf0]  ;;  %v6755_v49 = vor.u32 %v10034_v12, %v6752_v7  ;;  %v6931_v54 = vor.u32 %v10078_v18, %v6928_v14 }
 0x25e   :  { %5955 = vmatpush.bf16.msrb.mxu0 %v6979_v0  ;;  %v6947_v0 = vor.u32 %v10082_v16, %v6944_v53  ;;  %v10142_v8 = vld [vmem:[%s16328_s1 + $0x36c] sm:$0xf]  ;;  %v7184_v23 = vld [vmem:[%s16328_s1 + $0x378] sm:$0xf0] }
 0x25f   :  { %5969 = vmatpush.bf16.msrb.mxu1 %v7107_v22  ;;  %v7075_v22 = vor.u32 %v10114_v59, %v7072_v29  ;;  %v10074_v16 = vld [vmem:[%s16328_s1 + $0x14c] sm:$0xf]  ;;  %v6912_v53 = vld [vmem:[%s16328_s1 + $0x158] sm:$0xf0] }
 0x260   :  { %5983 = vmatpush.bf16.msrb.mxu2 %v7235_v61  ;;  %v7203_v61 = vor.u32 %v10146_v3, %v7200_v11  ;;  %v10106_v59 = vld [vmem:[%s16328_s1 + $0x24c] sm:$0xf]  ;;  %v7040_v3 = vld [vmem:[%s16328_s1 + $0x258] sm:$0xf0]  ;;  %v6915_v7 = vor.u32 %v10074_v16, %v6912_v53 }
 0x261   :  { %5945 = vmatpush.bf16.msra.mxu3 %v6787_v24  ;;  %v10190_v24 = vld [vmem:[%s16328_s1 + $0x4ec] sm:$0xf]  ;;  %v7360_v12 = vld [vmem:[%s16328_s1 + $0x4d8] sm:$0xf0] }
 0x262   :  { %5956 = vmatpush.bf16.msrb.mxu0 %v6963_v27  ;;  %v7376_v27 = vld [vmem:[%s16328_s1 + $0x4f8] sm:$0xf0]  ;;  %v10138_v11 = vld [vmem:[%s16328_s1 + $0x34c] sm:$0xf] }
 0x263   :  { %5970 = vmatpush.bf16.msrb.mxu1 %v7091_v2  ;;  %v7059_v2 = vor.u32 %v10110_v25, %v7056_v9  ;;  %v7379_v29 = vor.u32 %v10190_v24, %v7376_v27  ;;  %v10070_v18 = vld [vmem:[%s16328_s1 + $0x12c] sm:$0xf]  ;;  %v6896_v14 = vld [vmem:[%s16328_s1 + $0x138] sm:$0xf0] }
 0x264   :  { %5984 = vmatpush.bf16.msrb.mxu2 %v7219_v6  ;;  %v7187_v6 = vor.u32 %v10142_v8, %v7184_v23  ;;  %v10102_v25 = vld [vmem:[%s16328_s1 + $0x22c] sm:$0xf]  ;;  %v7024_v8 = vld [vmem:[%s16328_s1 + $0x238] sm:$0xf0] }
 0x265   :  { %5946 = vmatpush.bf16.msra.mxu3 %v6771_v28  ;;  %v7168_v28 = vld [vmem:[%s16328_s1 + $0x358] sm:$0xf0]  ;;  %v10134_v23 = vld [vmem:[%s16328_s1 + $0x32c] sm:$0xf]  ;;  %v7027_v16 = vor.u32 %v10102_v25, %v7024_v8 }
 0x266   :  { %5957 = vmatpush.bf16.msrb.mxu0 %v6947_v0  ;;  %v10186_v0 = vld [vmem:[%s16328_s1 + $0x4cc] sm:$0xf]  ;;  %v7152_v24 = vld [vmem:[%s16328_s1 + $0x338] sm:$0xf0] }
 0x267   :  { %5971 = vmatpush.bf16.msrb.mxu1 %v7075_v22  ;;  %v7043_v22 = vor.u32 %v10106_v59, %v7040_v3  ;;  %v7363_v9 = vor.u32 %v10186_v0, %v7360_v12  ;;  %v10182_v27 = vld [vmem:[%s16328_s1 + $0x4ac] sm:$0xf]  ;;  %v7155_v53 = vor.u32 %v10134_v23, %v7152_v24  ;;  %v7328_v0 = vld [vmem:[%s16328_s1 + $0x498] sm:$0xf0] }
 0x268   :  { %5985 = vmatpush.bf16.msrb.mxu2 %v7203_v61  ;;  %v7171_v61 = vor.u32 %v10138_v11, %v7168_v28  ;;  %v10098_v59 = vld [vmem:[%s16328_s1 + $0x20c] sm:$0xf]  ;;  %v7136_v11 = vld [vmem:[%s16328_s1 + $0x318] sm:$0xf0] }
 0x269   :  { %5947 = vmatpush.bf16.msra.mxu3 %v6755_v49  ;;  %v7344_v49 = vld [vmem:[%s16328_s1 + $0x4b8] sm:$0xf0]  ;;  %v10178_v28 = vld [vmem:[%s16328_s1 + $0x48c] sm:$0xf] }
 0x26a   :  { %5958 = vmatpush.bf16.msrb.mxu0 %v6931_v54  ;;  %v6899_v54 = vor.u32 %v10070_v18, %v6896_v14  ;;  %v7347_v3 = vor.u32 %v10182_v27, %v7344_v49  ;;  %v10222_v12 = vld [vmem:[%s16328_s1 + $0x5ec] sm:$0xf]  ;;  %v7632_v18 = vld [vmem:[%s16328_s1 + $0x6f8] sm:$0xf0]  ;;  %v7331_v23 = vor.u32 %v10178_v28, %v7328_v0 }
 0x26b   :  { %5972 = vmatpush.bf16.msrb.mxu1 %v7059_v2  ;;  %v10066_v2 = vld [vmem:[%s16328_s1 + $0x10c] sm:$0xf]  ;;  %v7760_v25 = vld [vmem:[%s16328_s1 + $0x7f8] sm:$0xf0] }
 0x26c   :  { %5986 = vmatpush.bf16.msrb.mxu2 %v7187_v6  ;;  %5948 = vmatmul.bf16.vlgmr.msra.gmra.mxu3 %v11137_v58  ;;  %v6880_v6 = vld [vmem:[%s16328_s1 + $0x118] sm:$0xf0]  ;;  %v10286_v14 = vld [vmem:[%s16328_s1 + $0x7ec] sm:$0xf] }
 0x26d   :  { %5996 = vmatpush.bf16.msrb.mxu3 %v7379_v29  ;;  %v7008_v58 = vld [vmem:[%s16328_s1 + $0x218] sm:$0xf0]  ;;  %v10130_v29 = vld [vmem:[%s16328_s1 + $0x30c] sm:$0xf] }
 0x26e   :  { %5959 = vmatpush.bf16.msrb.mxu0 %v6915_v7  ;;  %v7504_v7 = vld [vmem:[%s16328_s1 + $0x5f8] sm:$0xf0]  ;;  %v7139_v8 = vor.u32 %v10130_v29, %v7136_v11  ;;  %v10174_v27 = vld [vmem:[%s16328_s1 + $0x46c] sm:$0xf] }
 0x26f   :  { %5973 = vmatpush.bf16.msrb.mxu1 %v7043_v22  ;;  %v10254_v22 = vld [vmem:[%s16328_s1 + $0x6ec] sm:$0xf]  ;;  %v7507_v24 = vor.u32 %v10222_v12, %v7504_v7  ;;  %v7312_v49 = vld [vmem:[%s16328_s1 + $0x478] sm:$0xf0] }
 0x270   :  { %5987 = vmatpush.bf16.msrb.mxu2 %v7171_v61  ;;  %v6883_v61 = vor.u32 %v10066_v2, %v6880_v6  ;;  %v7763_v2 = vor.u32 %v10286_v14, %v7760_v25  ;;  %v10218_v6 = vld [vmem:[%s16328_s1 + $0x5cc] sm:$0xf]  ;;  %v7744_v29 = vld [vmem:[%s16328_s1 + $0x7d8] sm:$0xf0] }
 0x271   :  { %5997 = vmatpush.bf16.msrb.mxu3 %v7363_v9  ;;  %v7011_v9 = vor.u32 %v10098_v59, %v7008_v58  ;;  %v7616_v59 = vld [vmem:[%s16328_s1 + $0x6d8] sm:$0xf0]  ;;  %v10282_v58 = vld [vmem:[%s16328_s1 + $0x7cc] sm:$0xf] }
 0x272   :  { %5960 = vmatpush.bf16.msrb.mxu0 %v6899_v54  ;;  %v7635_v54 = vor.u32 %v10254_v22, %v7632_v18  ;;  %v10170_v28 = vld [vmem:[%s16328_s1 + $0x44c] sm:$0xf]  ;;  %v7296_v0 = vld [vmem:[%s16328_s1 + $0x458] sm:$0xf0]  ;;  %v7747_v7 = vor.u32 %v10282_v58, %v7744_v29 }
 0x273   :  { %5974 = vmatpush.bf16.msrb.mxu1 %v7027_v16  ;;  %v7488_v16 = vld [vmem:[%s16328_s1 + $0x5d8] sm:$0xf0]  ;;  %v10214_v22 = vld [vmem:[%s16328_s1 + $0x5ac] sm:$0xf] }
 0x274   :  { %5988 = vmatpush.bf16.msrb.mxu2 %v7155_v53  ;;  %v10250_v53 = vld [vmem:[%s16328_s1 + $0x6cc] sm:$0xf]  ;;  %v7491_v11 = vor.u32 %v10218_v6, %v7488_v16  ;;  %v7600_v14 = vld [vmem:[%s16328_s1 + $0x6b8] sm:$0xf0] }
 0x275   :  { %5998 = vmatpush.bf16.msrb.mxu3 %v7347_v3  ;;  %v7315_v3 = vor.u32 %v10174_v27, %v7312_v49  ;;  %v7619_v12 = vor.u32 %v10250_v53, %v7616_v59  ;;  %v10246_v18 = vld [vmem:[%s16328_s1 + $0x6ac] sm:$0xf]  ;;  %v7280_v27 = vld [vmem:[%s16328_s1 + $0x438] sm:$0xf0] }
 0x276   :  { %5961 = vmatpush.bf16.msrb.mxu0 %v6883_v61  ;;  %v7472_v61 = vld [vmem:[%s16328_s1 + $0x5b8] sm:$0xf0]  ;;  %v10278_v25 = vld [vmem:[%s16328_s1 + $0x7ac] sm:$0xf]  ;;  %v7603_v49 = vor.u32 %v10246_v18, %v7600_v14 }
 0x277   :  { %5975 = vmatpush.bf16.msrb.mxu1 %v7011_v9  ;;  %v7728_v9 = vld [vmem:[%s16328_s1 + $0x7b8] sm:$0xf0]  ;;  %v10274_v6 = vld [vmem:[%s16328_s1 + $0x78c] sm:$0xf] }
 0x278   :  { %5989 = vmatpush.bf16.msrb.mxu2 %v7139_v8  ;;  %v7299_v8 = vor.u32 %v10170_v28, %v7296_v0  ;;  %v7712_v16 = vld [vmem:[%s16328_s1 + $0x798] sm:$0xf0]  ;;  %v10162_v58 = vld [vmem:[%s16328_s1 + $0x40c] sm:$0xf] }
 0x279   :  { %5999 = vmatpush.bf16.msrb.mxu3 %v7331_v23  ;;  %5962 = vmatmul.bf16.vlgmr.msrb.gmra.mxu0 %v11173_v10  ;;  %v7475_v23 = vor.u32 %v10214_v22, %v7472_v61  ;;  %v7456_v10 = vld [vmem:[%s16328_s1 + $0x598] sm:$0xf0]  ;;  %v10206_v28 = vld [vmem:[%s16328_s1 + $0x56c] sm:$0xf] }
 0x27a   :  { %6010 = vmatpush.bf16.msra.mxu0 %v7507_v24  ;;  %5976 = vmatmul.bf16.vlgmr.msrb.gmra.mxu1 %v11151_v1  ;;  %v10166_v24 = vld [vmem:[%s16328_s1 + $0x42c] sm:$0xf]  ;;  %v7264_v29 = vld [vmem:[%s16328_s1 + $0x418] sm:$0xf0] }
 0x27b   :  { %6024 = vmatpush.bf16.msra.mxu1 %v7635_v54  ;;  %5990 = vmatmul.bf16.vlgmr.msrb.gmra.mxu2 %v11187_v17  ;;  %v7731_v17 = vor.u32 %v10278_v25, %v7728_v9  ;;  %v10210_v1 = vld [vmem:[%s16328_s1 + $0x58c] sm:$0xf]  ;;  %v7283_v53 = vor.u32 %v10166_v24, %v7280_v27  ;;  %v7440_v0 = vld [vmem:[%s16328_s1 + $0x578] sm:$0xf0]  ;;  %v7267_v25 = vor.u32 %v10162_v58, %v7264_v29 }
 0x27c   :  { %6038 = vmatpush.bf16.msra.mxu2 %v7763_v2  ;;  %v10242_v54 = vld [vmem:[%s16328_s1 + $0x68c] sm:$0xf]  ;;  %v7584_v2 = vld [vmem:[%s16328_s1 + $0x698] sm:$0xf0]  ;;  %v7459_v59 = vor.u32 %v10210_v1, %v7456_v10  ;;  %v7443_v9 = vor.u32 %v10206_v28, %v7440_v0 }
 0x27d   :  { %6000 = vmatpush.bf16.msrb.mxu3 %v7315_v3  ;;  %v7587_v3 = vor.u32 %v10242_v54, %v7584_v2  ;;  %v10270_v22 = vld [vmem:[%s16328_s1 + $0x76c] sm:$0xf]  ;;  %v7696_v61 = vld [vmem:[%s16328_s1 + $0x778] sm:$0xf0] }
 0x27e   :  { %6011 = vmatpush.bf16.msra.mxu0 %v7491_v11  ;;  %v7715_v11 = vor.u32 %v10274_v6, %v7712_v16  ;;  %v10318_v18 = vld [vmem:[%s16328_s1 + $0x8ec] sm:$0xf]  ;;  %v7888_v14 = vld [vmem:[%s16328_s1 + $0x8f8] sm:$0xf0] }
 0x27f   :  { %6025 = vmatpush.bf16.msra.mxu1 %v7619_v12  ;;  %v10238_v12 = vld [vmem:[%s16328_s1 + $0x66c] sm:$0xf]  ;;  %v7424_v27 = vld [vmem:[%s16328_s1 + $0x558] sm:$0xf0] }
 0x280   :  { %6039 = vmatpush.bf16.msra.mxu2 %v7747_v7  ;;  %v7568_v7 = vld [vmem:[%s16328_s1 + $0x678] sm:$0xf0]  ;;  %v10202_v24 = vld [vmem:[%s16328_s1 + $0x54c] sm:$0xf] }
 0x281   :  { %6001 = vmatpush.bf16.msrb.mxu3 %v7299_v8  ;;  %v7571_v8 = vor.u32 %v10238_v12, %v7568_v7  ;;  %v7552_v1 = vld [vmem:[%s16328_s1 + $0x658] sm:$0xf0]  ;;  %v10266_v10 = vld [vmem:[%s16328_s1 + $0x74c] sm:$0xf]  ;;  %v7427_v16 = vor.u32 %v10202_v24, %v7424_v27 }
 0x282   :  { %6012 = vmatpush.bf16.msra.mxu0 %v7475_v23  ;;  %v7699_v23 = vor.u32 %v10270_v22, %v7696_v61  ;;  %v7680_v54 = vld [vmem:[%s16328_s1 + $0x758] sm:$0xf0]  ;;  %v10314_v2 = vld [vmem:[%s16328_s1 + $0x8cc] sm:$0xf] }
 0x283   :  { %6026 = vmatpush.bf16.msra.mxu1 %v7603_v49  ;;  %v10234_v49 = vld [vmem:[%s16328_s1 + $0x64c] sm:$0xf]  ;;  %v7872_v6 = vld [vmem:[%s16328_s1 + $0x8d8] sm:$0xf0] }
 0x284   :  { %6040 = vmatpush.bf16.msra.mxu2 %v7731_v17  ;;  %v7891_v17 = vor.u32 %v10318_v18, %v7888_v14  ;;  %v10198_v58 = vld [vmem:[%s16328_s1 + $0x52c] sm:$0xf]  ;;  %v7408_v29 = vld [vmem:[%s16328_s1 + $0x538] sm:$0xf0] }
 0x285   :  { %6002 = vmatpush.bf16.msrb.mxu3 %v7283_v53  ;;  %v7555_v53 = vor.u32 %v10234_v49, %v7552_v1  ;;  %v7536_v28 = vld [vmem:[%s16328_s1 + $0x638] sm:$0xf0]  ;;  %v10262_v0 = vld [vmem:[%s16328_s1 + $0x72c] sm:$0xf]  ;;  %v7411_v61 = vor.u32 %v10198_v58, %v7408_v29 }
 0x286   :  { %6013 = vmatpush.bf16.msra.mxu0 %v7459_v59  ;;  %v7683_v59 = vor.u32 %v10266_v10, %v7680_v54  ;;  %v7664_v12 = vld [vmem:[%s16328_s1 + $0x738] sm:$0xf0]  ;;  %v10310_v7 = vld [vmem:[%s16328_s1 + $0x8ac] sm:$0xf] }
 0x287   :  { %6027 = vmatpush.bf16.msra.mxu1 %v7587_v3  ;;  %v10230_v3 = vld [vmem:[%s16328_s1 + $0x62c] sm:$0xf]  ;;  %v7856_v22 = vld [vmem:[%s16328_s1 + $0x8b8] sm:$0xf0] }
 0x288   :  { %6041 = vmatpush.bf16.msra.mxu2 %v7715_v11  ;;  %v7875_v11 = vor.u32 %v10314_v2, %v7872_v6  ;;  %v10194_v18 = vld [vmem:[%s16328_s1 + $0x50c] sm:$0xf]  ;;  %v7392_v14 = vld [vmem:[%s16328_s1 + $0x518] sm:$0xf0]  ;;  %v7859_v24 = vor.u32 %v10310_v7, %v7856_v22 }
 0x289   :  { %6003 = vmatpush.bf16.msrb.mxu3 %v7267_v25  ;;  %v7667_v25 = vor.u32 %v10262_v0, %v7664_v12  ;;  %v7648_v27 = vld [vmem:[%s16328_s1 + $0x718] sm:$0xf0]  ;;  %v10306_v49 = vld [vmem:[%s16328_s1 + $0x88c] sm:$0xf]  ;;  %v7395_v2 = vor.u32 %v10194_v18, %v7392_v14 }
 0x28a   :  { %6014 = vmatpush.bf16.msra.mxu0 %v7443_v9  ;;  %v10226_v9 = vld [vmem:[%s16328_s1 + $0x60c] sm:$0xf]  ;;  %v8016_v10 = vld [vmem:[%s16328_s1 + $0x9f8] sm:$0xf0] }
 0x28b   :  { %6028 = vmatpush.bf16.msra.mxu1 %v7571_v8  ;;  %v7520_v8 = vld [vmem:[%s16328_s1 + $0x618] sm:$0xf0]  ;;  %v10350_v1 = vld [vmem:[%s16328_s1 + $0x9ec] sm:$0xf] }
 0x28c   :  { %6042 = vmatpush.bf16.msra.mxu2 %v7699_v23  ;;  %6004 = vmatmul.bf16.vlgmr.msrb.gmra.mxu3 %v11359_v39  ;;  %v7539_v39 = vor.u32 %v10230_v3, %v7536_v28  ;;  %v10258_v23 = vld [vmem:[%s16328_s1 + $0x70c] sm:$0xf]  ;;  %v8144_v6 = vld [vmem:[%s16328_s1 + $0xaf8] sm:$0xf0]  ;;  %v8019_v3 = vor.u32 %v10350_v1, %v8016_v10 }
 0x28d   :  { %6052 = vmatpush.bf16.msra.mxu3 %v7891_v17  ;;  %v7840_v17 = vld [vmem:[%s16328_s1 + $0x898] sm:$0xf0]  ;;  %v10382_v54 = vld [vmem:[%s16328_s1 + $0xaec] sm:$0xf]  ;;  %v7651_v58 = vor.u32 %v10258_v23, %v7648_v27 }
 0x28e   :  { %6015 = vmatpush.bf16.msra.mxu0 %v7427_v16  ;;  %v10414_v16 = vld [vmem:[%s16328_s1 + $0xbec] sm:$0xf]  ;;  %v7843_v29 = vor.u32 %v10306_v49, %v7840_v17  ;;  %v7824_v28 = vld [vmem:[%s16328_s1 + $0x878] sm:$0xf0]  ;;  %v8147_v0 = vor.u32 %v10382_v54, %v8144_v6 }
 0x28f   :  { %6029 = vmatpush.bf16.msra.mxu1 %v7555_v53  ;;  %v8272_v53 = vld [vmem:[%s16328_s1 + $0xbf8] sm:$0xf0]  ;;  %v10346_v7 = vld [vmem:[%s16328_s1 + $0x9cc] sm:$0xf] }
 0x290   :  { %6043 = vmatpush.bf16.msra.mxu2 %v7683_v59  ;;  %v7523_v59 = vor.u32 %v10226_v9, %v7520_v8  ;;  %v8275_v12 = vor.u32 %v10414_v16, %v8272_v53  ;;  %v8000_v22 = vld [vmem:[%s16328_s1 + $0x9d8] sm:$0xf0]  ;;  %v10410_v14 = vld [vmem:[%s16328_s1 + $0xbcc] sm:$0xf] }
 0x291   :  { %6053 = vmatpush.bf16.msra.mxu3 %v7875_v11  ;;  %v10302_v11 = vld [vmem:[%s16328_s1 + $0x86c] sm:$0xf]  ;;  %v8128_v18 = vld [vmem:[%s16328_s1 + $0xad8] sm:$0xf0]  ;;  %v8003_v9 = vor.u32 %v10346_v7, %v8000_v22 }
 0x292   :  { %6016 = vmatpush.bf16.msra.mxu0 %v7411_v61  ;;  %v10378_v61 = vld [vmem:[%s16328_s1 + $0xacc] sm:$0xf]  ;;  %v7808_v23 = vld [vmem:[%s16328_s1 + $0x858] sm:$0xf0] }
 0x293   :  { %6030 = vmatpush.bf16.msra.mxu1 %v7539_v39  ;;  %v8256_v39 = vld [vmem:[%s16328_s1 + $0xbd8] sm:$0xf0]  ;;  %v10298_v8 = vld [vmem:[%s16328_s1 + $0x84c] sm:$0xf] }
 0x294   :  { %6044 = vmatpush.bf16.msra.mxu2 %v7667_v25  ;;  %v7827_v25 = vor.u32 %v10302_v11, %v7824_v28  ;;  %v8259_v27 = vor.u32 %v10410_v14, %v8256_v39  ;;  %v10342_v49 = vld [vmem:[%s16328_s1 + $0x9ac] sm:$0xf]  ;;  %v7984_v17 = vld [vmem:[%s16328_s1 + $0x9b8] sm:$0xf0]  ;;  %v7811_v6 = vor.u32 %v10298_v8, %v7808_v23 }
 0x295   :  { %6054 = vmatpush.bf16.msra.mxu3 %v7859_v24  ;;  %v8131_v24 = vor.u32 %v10378_v61, %v8128_v18  ;;  %v10374_v1 = vld [vmem:[%s16328_s1 + $0xaac] sm:$0xf]  ;;  %v8112_v10 = vld [vmem:[%s16328_s1 + $0xab8] sm:$0xf0] }
 0x296   :  { %6017 = vmatpush.bf16.msra.mxu0 %v7395_v2  ;;  %v10406_v54 = vld [vmem:[%s16328_s1 + $0xbac] sm:$0xf]  ;;  %v8240_v2 = vld [vmem:[%s16328_s1 + $0xbb8] sm:$0xf0]  ;;  %v8115_v53 = vor.u32 %v10374_v1, %v8112_v10 }
 0x297   :  { %6031 = vmatpush.bf16.msra.mxu1 %v7523_v59  ;;  %v7792_v16 = vld [vmem:[%s16328_s1 + $0x838] sm:$0xf0]  ;;  %v8243_v59 = vor.u32 %v10406_v54, %v8240_v2  ;;  %v10402_v28 = vld [vmem:[%s16328_s1 + $0xb8c] sm:$0xf] }
 0x298   :  { %6045 = vmatpush.bf16.msra.mxu2 %v7651_v58  ;;  %v7968_v58 = vld [vmem:[%s16328_s1 + $0x998] sm:$0xf0]  ;;  %v10290_v22 = vld [vmem:[%s16328_s1 + $0x80c] sm:$0xf] }
 0x299   :  { %6055 = vmatpush.bf16.msra.mxu3 %v7843_v29  ;;  %6018 = vmatmul.bf16.vlgmr.msra.gmra.mxu0 %v11372_v44  ;;  %v7987_v44 = vor.u32 %v10342_v49, %v7984_v17  ;;  %v10370_v29 = vld [vmem:[%s16328_s1 + $0xa8c] sm:$0xf]  ;;  %v8096_v11 = vld [vmem:[%s16328_s1 + $0xa98] sm:$0xf0] }
 0x29a   :  { %6066 = vmatpush.bf16.msrb.mxu0 %v8019_v3  ;;  %6032 = vmatmul.bf16.vlgmr.msra.gmra.mxu1 %v11370_v43  ;;  %v10338_v43 = vld [vmem:[%s16328_s1 + $0x98c] sm:$0xf]  ;;  %v15327_v3 = vpop.f32.mrf.mxu2  ;;  %v7776_v61 = vld [vmem:[%s16328_s1 + $0x818] sm:$0xf0]  ;;  %v8099_v18 = vor.u32 %v10370_v29, %v8096_v11 }
 0x29b   :  { %6080 = vmatpush.bf16.msrb.mxu1 %v8147_v0  ;;  %6046 = vmatmul.bf16.vlgmr.msra.gmra.mxu2 %v11380_v47  ;;  %v10294_v47 = vld [vmem:[%s16328_s1 + $0x82c] sm:$0xf]  ;;  %16375 = vst [vmem:[#allocation38_spill] sm:$0xff] %v15327_v3  ;;  %v8224_v0 = vld [vmem:[%s16328_s1 + $0xb98] sm:$0xf0]  ;;  %v7971_v7 = vor.u32 %v10338_v43, %v7968_v58  ;;  %v7779_v17 = vor.u32 %v10290_v22, %v7776_v61  ;;  %v15403_v61 = vpop.f32.mrf.mxu3 }
 0x29c   :  { %6094 = vmatpush.bf16.msrb.mxu2 %v8275_v12  ;;  %v7795_v12 = vor.u32 %v10294_v47, %v7792_v16  ;;  %v8227_v14 = vor.u32 %v10402_v28, %v8224_v0  ;;  %v10334_v39 = vld [vmem:[%s16328_s1 + $0x96c] sm:$0xf]  ;;  %v8080_v8 = vld [vmem:[%s16328_s1 + $0xa78] sm:$0xf0]  ;;  %16376 = vst [vmem:[#allocation39_spill] sm:$0xff] %v15403_v61 }
 0x29d   :  { %6056 = vmatpush.bf16.msra.mxu3 %v7827_v25  ;;  %v7952_v25 = vld [vmem:[%s16328_s1 + $0x978] sm:$0xf0]  ;;  %v10398_v23 = vld [vmem:[%s16328_s1 + $0xb6c] sm:$0xf] }
 0x29e   :  { %6067 = vmatpush.bf16.msrb.mxu0 %v8003_v9  ;;  %v10366_v9 = vld [vmem:[%s16328_s1 + $0xa6c] sm:$0xf]  ;;  %v8400_v49 = vld [vmem:[%s16328_s1 + $0xcf8] sm:$0xf0]  ;;  %v7955_v1 = vor.u32 %v10334_v39, %v7952_v25 }
 0x29f   :  { %6081 = vmatpush.bf16.msrb.mxu1 %v8131_v24  ;;  %v8208_v24 = vld [vmem:[%s16328_s1 + $0xb78] sm:$0xf0]  ;;  %v8083_v10 = vor.u32 %v10366_v9, %v8080_v8  ;;  %v10330_v2 = vld [vmem:[%s16328_s1 + $0x94c] sm:$0xf] }
 0x2a0   :  { %6095 = vmatpush.bf16.msrb.mxu2 %v8259_v27  ;;  %v10446_v27 = vld [vmem:[%s16328_s1 + $0xcec] sm:$0xf]  ;;  %v8211_v54 = vor.u32 %v10398_v23, %v8208_v24  ;;  %v8192_v43 = vld [vmem:[%s16328_s1 + $0xb58] sm:$0xf0]  ;;  %v15421_v23 = vpop.f32.mrf.mxu0 }
 0x2a1   :  { %6057 = vmatpush.bf16.msra.mxu3 %v7811_v6  ;;  %v7936_v6 = vld [vmem:[%s16328_s1 + $0x958] sm:$0xf0]  ;;  %v8403_v16 = vor.u32 %v10446_v27, %v8400_v49  ;;  %v10442_v58 = vld [vmem:[%s16328_s1 + $0xccc] sm:$0xf]  ;;  %16377 = vst [vmem:[#allocation40_spill] sm:$0xff] %v15421_v23 }
 0x2a2   :  { %6068 = vmatpush.bf16.msrb.mxu0 %v7987_v44  ;;  %v10362_v44 = vld [vmem:[%s16328_s1 + $0xa4c] sm:$0xf]  ;;  %v15377_v47 = vpop.f32.mrf.mxu2  ;;  %v8384_v29 = vld [vmem:[%s16328_s1 + $0xcd8] sm:$0xf0]  ;;  %v7939_v11 = vor.u32 %v10330_v2, %v7936_v6 }
 0x2a3   :  { %6082 = vmatpush.bf16.msrb.mxu1 %v8115_v53  ;;  %v8064_v53 = vld [vmem:[%s16328_s1 + $0xa58] sm:$0xf0]  ;;  %v10358_v22 = vld [vmem:[%s16328_s1 + $0xa2c] sm:$0xf] }
 0x2a4   :  { %6096 = vmatpush.bf16.msrb.mxu2 %v8243_v59  ;;  %v10394_v59 = vld [vmem:[%s16328_s1 + $0xb4c] sm:$0xf]  ;;  %v8067_v28 = vor.u32 %v10362_v44, %v8064_v53  ;;  %v8176_v25 = vld [vmem:[%s16328_s1 + $0xb38] sm:$0xf0] }
 0x2a5   :  { %6058 = vmatpush.bf16.msra.mxu3 %v7795_v12  ;;  %v8195_v0 = vor.u32 %v10394_v59, %v8192_v43  ;;  %v10326_v12 = vld [vmem:[%s16328_s1 + $0x92c] sm:$0xf]  ;;  %v8368_v8 = vld [vmem:[%s16328_s1 + $0xcb8] sm:$0xf0] }
 0x2a6   :  { %6069 = vmatpush.bf16.msrb.mxu0 %v7971_v7  ;;  %v7920_v7 = vld [vmem:[%s16328_s1 + $0x938] sm:$0xf0]  ;;  %v10390_v39 = vld [vmem:[%s16328_s1 + $0xb2c] sm:$0xf] }
 0x2a7   :  { %6083 = vmatpush.bf16.msrb.mxu1 %v8099_v18  ;;  %v8387_v18 = vor.u32 %v10442_v58, %v8384_v29  ;;  %v10438_v9 = vld [vmem:[%s16328_s1 + $0xcac] sm:$0xf]  ;;  %v7923_v24 = vor.u32 %v10326_v12, %v7920_v7  ;;  %v8160_v6 = vld [vmem:[%s16328_s1 + $0xb18] sm:$0xf0]  ;;  %v15456_v58 = vpop.f32.mrf.mxu1 }
 0x2a8   :  { %6097 = vmatpush.bf16.msrb.mxu2 %v8227_v14  ;;  %v8048_v14 = vld [vmem:[%s16328_s1 + $0xa38] sm:$0xf0]  ;;  %v10322_v27 = vld [vmem:[%s16328_s1 + $0x90c] sm:$0xf]  ;;  %v8371_v2 = vor.u32 %v10438_v9, %v8368_v8  ;;  %16378 = vst [vmem:[#allocation41_spill] sm:$0xff] %v15456_v58 }
 0x2a9   :  { %6059 = vmatpush.bf16.msra.mxu3 %v7779_v17  ;;  %v8051_v49 = vor.u32 %v10358_v22, %v8048_v14  ;;  %v8179_v17 = vor.u32 %v10390_v39, %v8176_v25  ;;  %v10434_v44 = vld [vmem:[%s16328_s1 + $0xc8c] sm:$0xf]  ;;  %v8528_v59 = vld [vmem:[%s16328_s1 + $0xdf8] sm:$0xf0] }
 0x2aa   :  { %6070 = vmatpush.bf16.msrb.mxu0 %v7955_v1  ;;  %v10354_v1 = vld [vmem:[%s16328_s1 + $0xa0c] sm:$0xf]  ;;  %v15458_v29 = vpop.f32.mrf.mxu2  ;;  %v8784_v12 = vld [vmem:[%s16328_s1 + $0xff8] sm:$0xf0] }
 0x2ab   :  { %6084 = vmatpush.bf16.msrb.mxu1 %v8083_v10  ;;  %v8032_v10 = vld [vmem:[%s16328_s1 + $0xa18] sm:$0xf0]  ;;  %v10478_v53 = vld [vmem:[%s16328_s1 + $0xdec] sm:$0xf] }
 0x2ac   :  { %6098 = vmatpush.bf16.msrb.mxu2 %v8211_v54  ;;  %6060 = vmatmul.bf16.vlgmr.msra.gmra.mxu3 %v11587_v31  ;;  %v7904_v31 = vld [vmem:[%s16328_s1 + $0x918] sm:$0xf0]  ;;  %v10386_v54 = vld [vmem:[%s16328_s1 + $0xb0c] sm:$0xf]  ;;  %v8035_v7 = vor.u32 %v10354_v1, %v8032_v10  ;;  %v8531_v39 = vor.u32 %v10478_v53, %v8528_v59 }
 0x2ad   :  { %6108 = vmatpush.bf16.msrb.mxu3 %v8403_v16  ;;  %v8352_v16 = vld [vmem:[%s16328_s1 + $0xc98] sm:$0xf0]  ;;  %v10510_v43 = vld [vmem:[%s16328_s1 + $0xeec] sm:$0xf]  ;;  %v8163_v22 = vor.u32 %v10386_v54, %v8160_v6 }
 0x2ae   :  { %6071 = vmatpush.bf16.msrb.mxu0 %v7939_v11  ;;  %v7907_v11 = vor.u32 %v10322_v27, %v7904_v31  ;;  %v8355_v14 = vor.u32 %v10434_v44, %v8352_v16  ;;  %v10430_v25 = vld [vmem:[%s16328_s1 + $0xc6c] sm:$0xf]  ;;  %v8336_v9 = vld [vmem:[%s16328_s1 + $0xc78] sm:$0xf0] }
 0x2af   :  { %6085 = vmatpush.bf16.msrb.mxu1 %v8067_v28  ;;  %v8656_v28 = vld [vmem:[%s16328_s1 + $0xef8] sm:$0xf0]  ;;  %v10474_v27 = vld [vmem:[%s16328_s1 + $0xdcc] sm:$0xf] }
 0x2b0   :  { %6099 = vmatpush.bf16.msrb.mxu2 %v8195_v0  ;;  %v10542_v0 = vld [vmem:[%s16328_s1 + $0xfec] sm:$0xf]  ;;  %v8659_v8 = vor.u32 %v10510_v43, %v8656_v28  ;;  %v8512_v31 = vld [vmem:[%s16328_s1 + $0xdd8] sm:$0xf0] }
 0x2b1   :  { %6109 = vmatpush.bf16.msrb.mxu3 %v8387_v18  ;;  %v15469_v18 = vpop.f32.mrf.mxu3  ;;  %v8640_v1 = vld [vmem:[%s16328_s1 + $0xed8] sm:$0xf0]  ;;  %v10538_v10 = vld [vmem:[%s16328_s1 + $0xfcc] sm:$0xf]  ;;  %v8515_v6 = vor.u32 %v10474_v27, %v8512_v31 }
 0x2b2   :  { %6072 = vmatpush.bf16.msrb.mxu0 %v7923_v24  ;;  %v8787_v24 = vor.u32 %v10542_v0, %v8784_v12  ;;  %v8768_v54 = vld [vmem:[%s16328_s1 + $0xfd8] sm:$0xf0]  ;;  %v10426_v44 = vld [vmem:[%s16328_s1 + $0xc4c] sm:$0xf]  ;;  %v15512_v0 = vpop.f32.mrf.mxu1 }
 0x2b3   :  { %6086 = vmatpush.bf16.msrb.mxu1 %v8051_v49  ;;  %v10506_v49 = vld [vmem:[%s16328_s1 + $0xecc] sm:$0xf]  ;;  %v8320_v16 = vld [vmem:[%s16328_s1 + $0xc58] sm:$0xf0]  ;;  %v8771_v59 = vor.u32 %v10538_v10, %v8768_v54 }
 0x2b4   :  { %6100 = vmatpush.bf16.msrb.mxu2 %v8179_v17  ;;  %v15486_v17 = vpop.f32.mrf.mxu0  ;;  %v8643_v53 = vor.u32 %v10506_v49, %v8640_v1  ;;  %v10470_v43 = vld [vmem:[%s16328_s1 + $0xdac] sm:$0xf]  ;;  %v8624_v12 = vld [vmem:[%s16328_s1 + $0xeb8] sm:$0xf0] }
 0x2b5   :  { %6110 = vmatpush.bf16.msrb.mxu3 %v8371_v2  ;;  %v8339_v2 = vor.u32 %v10430_v25, %v8336_v9  ;;  %v10502_v28 = vld [vmem:[%s16328_s1 + $0xeac] sm:$0xf]  ;;  %v8304_v25 = vld [vmem:[%s16328_s1 + $0xc38] sm:$0xf0] }
 0x2b6   :  { %6073 = vmatpush.bf16.msrb.mxu0 %v7907_v11  ;;  %v8496_v11 = vld [vmem:[%s16328_s1 + $0xdb8] sm:$0xf0]  ;;  %v8627_v9 = vor.u32 %v10502_v28, %v8624_v12  ;;  %v10498_v27 = vld [vmem:[%s16328_s1 + $0xe8c] sm:$0xf] }
 0x2b7   :  { %6087 = vmatpush.bf16.msrb.mxu1 %v8035_v7  ;;  %v10534_v7 = vld [vmem:[%s16328_s1 + $0xfac] sm:$0xf]  ;;  %v8608_v49 = vld [vmem:[%s16328_s1 + $0xe98] sm:$0xf0] }
 0x2b8   :  { %6101 = vmatpush.bf16.msrb.mxu2 %v8163_v22  ;;  %v8752_v22 = vld [vmem:[%s16328_s1 + $0xfb8] sm:$0xf0]  ;;  %v10530_v1 = vld [vmem:[%s16328_s1 + $0xf8c] sm:$0xf] }
 0x2b9   :  { %6111 = vmatpush.bf16.msrb.mxu3 %v8355_v14  ;;  %6074 = vmatmul.bf16.vlgmr.msrb.gmra.mxu0 %v11600_v36  ;;  %v15526_v14 = vpop.f32.mrf.mxu2  ;;  %v8323_v36 = vor.u32 %v10426_v44, %v8320_v16  ;;  %v15543_v31 = vpop.f32.mrf.mxu3  ;;  %v8736_v10 = vld [vmem:[%s16328_s1 + $0xf98] sm:$0xf0]  ;;  %v10418_v44 = vld [vmem:[%s16328_s1 + $0xc0c] sm:$0xf] }
 0x2ba   :  { %6122 = vmatpush.bf16.msra.mxu0 %v8531_v39  ;;  %6088 = vmatmul.bf16.vlgmr.msrb.gmra.mxu1 %v11598_v35  ;;  %v10422_v39 = vld [vmem:[%s16328_s1 + $0xc2c] sm:$0xf]  ;;  %v8288_v16 = vld [vmem:[%s16328_s1 + $0xc18] sm:$0xf0] }
 0x2bb   :  { %6136 = vmatpush.bf16.msra.mxu1 %v8659_v8  ;;  %6102 = vmatmul.bf16.vlgmr.msrb.gmra.mxu2 %v11608_v40  ;;  %v8499_v40 = vor.u32 %v10470_v43, %v8496_v11  ;;  %v8755_v8 = vor.u32 %v10534_v7, %v8752_v22  ;;  %v10466_v35 = vld [vmem:[%s16328_s1 + $0xd8c] sm:$0xf]  ;;  %v8464_v11 = vld [vmem:[%s16328_s1 + $0xd78] sm:$0xf0] }
 0x2bc   :  { %6150 = vmatpush.bf16.msra.mxu2 %v8787_v24  ;;  %v8480_v24 = vld [vmem:[%s16328_s1 + $0xd98] sm:$0xf0]  ;;  %v15554_v54 = vpop.f32.mrf.mxu0  ;;  %v10462_v43 = vld [vmem:[%s16328_s1 + $0xd6c] sm:$0xf] }
 0x2bd   :  { %6112 = vmatpush.bf16.msrb.mxu3 %v8339_v2  ;;  %v8307_v2 = vor.u32 %v10422_v39, %v8304_v25  ;;  %v10494_v28 = vld [vmem:[%s16328_s1 + $0xe6c] sm:$0xf]  ;;  %v8592_v12 = vld [vmem:[%s16328_s1 + $0xe78] sm:$0xf0]  ;;  %v15586_v39 = vpop.f32.mrf.mxu1  ;;  %v8291_v25 = vor.u32 %v10418_v44, %v8288_v16 }
 0x2be   :  { %6123 = vmatpush.bf16.msra.mxu0 %v8515_v6  ;;  %v8483_v6 = vor.u32 %v10466_v35, %v8480_v24  ;;  %v10526_v7 = vld [vmem:[%s16328_s1 + $0xf6c] sm:$0xf]  ;;  %v8720_v22 = vld [vmem:[%s16328_s1 + $0xf78] sm:$0xf0] }
 0x2bf   :  { %6137 = vmatpush.bf16.msra.mxu1 %v8643_v53  ;;  %v8611_v53 = vor.u32 %v10498_v27, %v8608_v49  ;;  %v8723_v35 = vor.u32 %v10526_v7, %v8720_v22  ;;  %v10458_v24 = vld [vmem:[%s16328_s1 + $0xd4c] sm:$0xf]  ;;  %v8448_v27 = vld [vmem:[%s16328_s1 + $0xd58] sm:$0xf0] }
 0x2c0   :  { %6151 = vmatpush.bf16.msra.mxu2 %v8771_v59  ;;  %v8739_v59 = vor.u32 %v10530_v1, %v8736_v10  ;;  %v10490_v49 = vld [vmem:[%s16328_s1 + $0xe4c] sm:$0xf]  ;;  %v8704_v44 = vld [vmem:[%s16328_s1 + $0xf58] sm:$0xf0] }
 0x2c1   :  { %6113 = vmatpush.bf16.msrb.mxu3 %v8323_v36  ;;  %v10574_v36 = vld [vmem:[%s16328_s1 + $0x10ec] sm:$0xf]  ;;  %v15597_v1 = vpop.f32.mrf.mxu2  ;;  %v8432_v7 = vld [vmem:[%s16328_s1 + $0xd38] sm:$0xf0] }
 0x2c2   :  { %6124 = vmatpush.bf16.msra.mxu0 %v8499_v40  ;;  %v8912_v40 = vld [vmem:[%s16328_s1 + $0x10f8] sm:$0xf0]  ;;  %v10570_v16 = vld [vmem:[%s16328_s1 + $0x10cc] sm:$0xf] }
 0x2c3   :  { %6138 = vmatpush.bf16.msra.mxu1 %v8627_v9  ;;  %v8467_v9 = vor.u32 %v10462_v43, %v8464_v11  ;;  %v8915_v10 = vor.u32 %v10574_v36, %v8912_v40  ;;  %v8451_v43 = vor.u32 %v10458_v24, %v8448_v27  ;;  %v10486_v22 = vld [vmem:[%s16328_s1 + $0xe2c] sm:$0xf]  ;;  %v8880_v24 = vld [vmem:[%s16328_s1 + $0x10b8] sm:$0xf0] }
 0x2c4   :  { %6152 = vmatpush.bf16.msra.mxu2 %v8755_v8  ;;  %v8595_v8 = vor.u32 %v10494_v28, %v8592_v12  ;;  %v10454_v12 = vld [vmem:[%s16328_s1 + $0xd2c] sm:$0xf]  ;;  %v15625_v36 = vpop.f32.mrf.mxu0 }
 0x2c5   :  { %6114 = vmatpush.bf16.msrb.mxu3 %v8307_v2  ;;  %v8576_v2 = vld [vmem:[%s16328_s1 + $0xe58] sm:$0xf0]  ;;  %v8435_v27 = vor.u32 %v10454_v12, %v8432_v7  ;;  %v10562_v12 = vld [vmem:[%s16328_s1 + $0x108c] sm:$0xf] }
 0x2c6   :  { %6125 = vmatpush.bf16.msra.mxu0 %v8483_v6  ;;  %v10522_v6 = vld [vmem:[%s16328_s1 + $0xf4c] sm:$0xf]  ;;  %v8579_v11 = vor.u32 %v10490_v49, %v8576_v2  ;;  %v8864_v7 = vld [vmem:[%s16328_s1 + $0x1098] sm:$0xf0] }
 0x2c7   :  { %6139 = vmatpush.bf16.msra.mxu1 %v8611_v53  ;;  %v8896_v53 = vld [vmem:[%s16328_s1 + $0x10d8] sm:$0xf0]  ;;  %v8707_v28 = vor.u32 %v10522_v6, %v8704_v44  ;;  %v10450_v49 = vld [vmem:[%s16328_s1 + $0xd0c] sm:$0xf]  ;;  %v8867_v61 = vor.u32 %v10562_v12, %v8864_v7 }
 0x2c8   :  { %6153 = vmatpush.bf16.msra.mxu2 %v8739_v59  ;;  %v15614_v59 = vpop.f32.mrf.mxu3  ;;  %v8899_v40 = vor.u32 %v10570_v16, %v8896_v53  ;;  %v10482_v6 = vld [vmem:[%s16328_s1 + $0xe0c] sm:$0xf]  ;;  %v8544_v44 = vld [vmem:[%s16328_s1 + $0xe18] sm:$0xf0]  ;;  %v15658_v53 = vpop.f32.mrf.mxu1 }
 0x2c9   :  { %6115 = vmatpush.bf16.msrb.mxu3 %v8291_v25  ;;  %v8560_v25 = vld [vmem:[%s16328_s1 + $0xe38] sm:$0xf0]  ;;  %v10514_v16 = vld [vmem:[%s16328_s1 + $0xf0c] sm:$0xf]  ;;  %v8547_v58 = vor.u32 %v10482_v6, %v8544_v44 }
 0x2ca   :  { %6126 = vmatpush.bf16.msra.mxu0 %v8467_v9  ;;  %v10518_v9 = vld [vmem:[%s16328_s1 + $0xf2c] sm:$0xf] }
 0x2cb   :  { %6140 = vmatpush.bf16.msra.mxu1 %v8595_v8  ;;  %v8688_v8 = vld [vmem:[%s16328_s1 + $0xf38] sm:$0xf0]  ;;  %v10558_v19 = vld [vmem:[%s16328_s1 + $0x106c] sm:$0xf] }
 0x2cc   :  { %6154 = vmatpush.bf16.msra.mxu2 %v8723_v35  ;;  %6116 = vmatmul.bf16.vlgmr.msrb.gmra.mxu3 %v11815_v32  ;;  %v10566_v35 = vld [vmem:[%s16328_s1 + $0x10ac] sm:$0xf]  ;;  %v8563_v32 = vor.u32 %v10486_v22, %v8560_v25  ;;  %v8691_v2 = vor.u32 %v10518_v9, %v8688_v8  ;;  %v9168_v8 = vld [vmem:[%s16328_s1 + $0x12f8] sm:$0xf0]  ;;  %v15715_v7 = vpop.f32.mrf.mxu0 }
 0x2cd   :  { %6164 = vmatpush.bf16.msra.mxu3 %v8915_v10  ;;  %v8416_v10 = vld [vmem:[%s16328_s1 + $0xd18] sm:$0xf0]  ;;  %v10606_v22 = vld [vmem:[%s16328_s1 + $0x11ec] sm:$0xf] }
 0x2ce   :  { %6127 = vmatpush.bf16.msra.mxu0 %v8451_v43  ;;  %v15660_v43 = vpop.f32.mrf.mxu2  ;;  %v10638_v25 = vld [vmem:[%s16328_s1 + $0x12ec] sm:$0xf]  ;;  %v8419_v9 = vor.u32 %v10450_v49, %v8416_v10 }
 0x2cf   :  { %6141 = vmatpush.bf16.msra.mxu1 %v8579_v11  ;;  %v8883_v11 = vor.u32 %v10566_v35, %v8880_v24  ;;  %v10670_v35 = vld [vmem:[%s16328_s1 + $0x13ec] sm:$0xf]  ;;  %v9296_v24 = vld [vmem:[%s16328_s1 + $0x13f8] sm:$0xf0] }
 0x2d0   :  { %6155 = vmatpush.bf16.msra.mxu2 %v8707_v28  ;;  %v8672_v28 = vld [vmem:[%s16328_s1 + $0xf18] sm:$0xf0]  ;;  %v15695_v10 = vpop.f32.mrf.mxu3  ;;  %v9299_v6 = vor.u32 %v10670_v35, %v9296_v24  ;;  %v10602_v44 = vld [vmem:[%s16328_s1 + $0x11cc] sm:$0xf] }
 0x2d1   :  { %6165 = vmatpush.bf16.msra.mxu3 %v8899_v40  ;;  %v9040_v40 = vld [vmem:[%s16328_s1 + $0x11f8] sm:$0xf0]  ;;  %v8675_v23 = vor.u32 %v10514_v16, %v8672_v28  ;;  %v16379_v28 = vperm.slane %v12078_v4, 0 }
 0x2d2   :  { %6128 = vmatpush.bf16.msra.mxu0 %v8435_v27  ;;  %v15692_v27 = vld [vmem:[%s16330_s2] sm:$0xf]  ;;  %v9043_v3 = vor.u32 %v10606_v22, %v9040_v40  ;;  %v9024_v16 = vld [vmem:[%s16328_s1 + $0x11d8] sm:$0xf0]  ;;  %v10666_v40 = vld [vmem:[%s16328_s1 + $0x13cc] sm:$0xf] }
 0x2d3   :  { %6142 = vmatpush.bf16.msra.mxu1 %v8563_v32  ;;  %v835_v49 = vperm.slane %v15692_v27, 2  ;;  %v8848_v32 = vld [vmem:[%s16328_s1 + $0x1078] sm:$0xf0]  ;;  %v4902_v12 = vadd.f32 %v12272_v21, %v16379_v28  ;;  %v9027_v21 = vor.u32 %v10602_v44, %v9024_v16  ;;  %v10662_v44 = vld [vmem:[%s16328_s1 + $0x13ac] sm:$0xf] }
 0x2d4   :  { %6156 = vmatpush.bf16.msra.mxu2 %v8691_v2  ;;  %v9171_v2 = vor.u32 %v10638_v25, %v9168_v8  ;;  %v9152_v22 = vld [vmem:[%s16328_s1 + $0x12d8] sm:$0xf0]  ;;  %v8851_v4 = vor.u32 %v10558_v19, %v8848_v32  ;;  %v15743_v32 = vpop.f32.mrf.mxu1  ;;  %v10550_v16 = vld [vmem:[%s16328_s1 + $0x102c] sm:$0xf] }
 0x2d5   :  { %6166 = vmatpush.bf16.msra.mxu3 %v8883_v11  ;;  %v10634_v11 = vld [vmem:[%s16328_s1 + $0x12cc] sm:$0xf]  ;;  %v9280_v25 = vld [vmem:[%s16328_s1 + $0x13d8] sm:$0xf0]  ;;  %v5602_v28 = vadd.f32 %v15458_v29, %v835_v49  ;;  %v16380_v29 = vperm.slane %v13415_v50, 1 }
 0x2d6   :  { %6129 = vmatpush.bf16.msra.mxu0 %v8419_v9  ;;  %v10554_v9 = vld [vmem:[%s16328_s1 + $0x104c] sm:$0xf]  ;;  %v8832_v8 = vld [vmem:[%s16328_s1 + $0x1058] sm:$0xf0]  ;;  %v9155_v35 = vor.u32 %v10634_v11, %v9152_v22  ;;  %v9283_v24 = vor.u32 %v10666_v40, %v9280_v25 }
 0x2d7   :  { %6143 = vmatpush.bf16.msra.mxu1 %v8547_v58  ;;  %v9008_v19 = vld [vmem:[%s16328_s1 + $0x11b8] sm:$0xf0]  ;;  %v5600_v58 = vadd.f32 %v15377_v47, %v835_v49  ;;  %v10594_v22 = vld [vmem:[%s16328_s1 + $0x118c] sm:$0xf]  ;;  %v5252_v49 = vadd.f32 %v13541_v63, %v16380_v29 }
 0x2d8   :  { %6157 = vmatpush.bf16.msra.mxu2 %v8675_v23  ;;  %v10598_v23 = vld [vmem:[%s16328_s1 + $0x11ac] sm:$0xf]  ;;  %v15759_v47 = vpop.f32.mrf.mxu3  ;;  %v8816_v11 = vld [vmem:[%s16328_s1 + $0x1038] sm:$0xf0] }
 0x2d9   :  { %6167 = vmatpush.bf16.msra.mxu3 %v8867_v61  ;;  %v4916_v61 = vadd.f32 %v12304_v45, %v4902_v12  ;;  %6130 = vmatmul.bf16.vlgmr.msra.gmra.mxu0 %v11828_v41  ;;  %v9264_v45 = vld [vmem:[%s16328_s1 + $0x13b8] sm:$0xf0]  ;;  %v8835_v41 = vor.u32 %v10554_v9, %v8832_v8  ;;  %v10626_v25 = vld [vmem:[%s16328_s1 + $0x128c] sm:$0xf]  ;;  %v15782_v9 = vpop.f32.mrf.mxu0  ;;  %v8819_v50 = vor.u32 %v10550_v16, %v8816_v11 }
 0x2da   :  { %6178 = vmatpush.bf16.msrb.mxu0 %v9043_v3  ;;  %v10630_v3 = vld [vmem:[%s16328_s1 + $0x12ac] sm:$0xf]  ;;  %6144 = vmatmul.bf16.vlgmr.msra.gmra.mxu1 %v11826_v38  ;;  %v9267_v38 = vor.u32 %v10662_v44, %v9264_v45  ;;  %v8992_v40 = vld [vmem:[%s16328_s1 + $0x1198] sm:$0xf0] }
 0x2db   :  { %6192 = vmatpush.bf16.msrb.mxu1 %v9171_v2  ;;  %v15745_v2 = vpop.f32.mrf.mxu2  ;;  %6158 = vmatmul.bf16.vlgmr.msra.gmra.mxu2 %v11836_v46  ;;  %v9011_v46 = vor.u32 %v10598_v23, %v9008_v19  ;;  %v9120_v8 = vld [vmem:[%s16328_s1 + $0x1298] sm:$0xf0]  ;;  %v8995_v63 = vor.u32 %v10594_v22, %v8992_v40  ;;  %v5616_v23 = vadd.f32 %v15543_v31, %v5602_v28  ;;  %v10654_v11 = vld [vmem:[%s16328_s1 + $0x136c] sm:$0xf] }
 0x2dc   :  { %6206 = vmatpush.bf16.msrb.mxu2 %v9299_v6  ;;  %v9136_v6 = vld [vmem:[%s16328_s1 + $0x12b8] sm:$0xf0]  ;;  %v9123_v19 = vor.u32 %v10626_v25, %v9120_v8  ;;  %v5266_v31 = vadd.f32 %v13594_v42, %v5252_v49  ;;  %v10702_v42 = vld [vmem:[%s16328_s1 + $0x14ec] sm:$0xf] }
 0x2dd   :  { %6168 = vmatpush.bf16.msra.mxu3 %v8851_v4  ;;  %v9139_v12 = vor.u32 %v10630_v3, %v9136_v6  ;;  %v4930_v4 = vadd.f32 %v12336_v5, %v4916_v61  ;;  %v9248_v5 = vld [vmem:[%s16328_s1 + $0x1398] sm:$0xf0]  ;;  %v10590_v61 = vld [vmem:[%s16328_s1 + $0x116c] sm:$0xf]  ;;  %v5630_v22 = vadd.f32 %v15554_v54, %v5616_v23 }
 0x2de   :  { %6179 = vmatpush.bf16.msrb.mxu0 %v9027_v21  ;;  %v5614_v21 = vadd.f32 %v15469_v18, %v5600_v58  ;;  %v10546_v18 = vld [vmem:[%s16328_s1 + $0x100c] sm:$0xf]  ;;  %v8976_v58 = vld [vmem:[%s16328_s1 + $0x1178] sm:$0xf0]  ;;  %v5280_v49 = vadd.f32 %v13608_v13, %v5266_v31 }
 0x2df   :  { %6193 = vmatpush.bf16.msrb.mxu1 %v9155_v35  ;;  %v10658_v35 = vld [vmem:[%s16328_s1 + $0x138c] sm:$0xf]  ;;  %v4944_v44 = vadd.f32 %v12350_v15, %v4930_v4  ;;  %v9104_v16 = vld [vmem:[%s16328_s1 + $0x1278] sm:$0xf0]  ;;  %v5644_v23 = vadd.f32 %v15586_v39, %v5630_v22 }
 0x2e0   :  { %6207 = vmatpush.bf16.msrb.mxu2 %v9283_v24  ;;  %v8800_v24 = vld [vmem:[%s16328_s1 + $0x1018] sm:$0xf0]  ;;  %v9251_v3 = vor.u32 %v10658_v35, %v9248_v5  ;;  %v10622_v6 = vld [vmem:[%s16328_s1 + $0x126c] sm:$0xf]  ;;  %v5628_v45 = vadd.f32 %v15486_v17, %v5614_v21  ;;  %v15844_v21 = vpop.f32.mrf.mxu3  ;;  %v5294_v39 = vadd.f32 %v13635_v37, %v5280_v49 }
 0x2e1   :  { %6169 = vmatpush.bf16.msra.mxu3 %v8835_v41  ;;  %v15812_v41 = vpop.f32.mrf.mxu1  ;;  %v9232_v15 = vld [vmem:[%s16328_s1 + $0x1378] sm:$0xf0]  ;;  %v4958_v28 = vadd.f32 %v12515_v57, %v4944_v44  ;;  %v9107_v40 = vor.u32 %v10622_v6, %v9104_v16  ;;  %v10586_v4 = vld [vmem:[%s16328_s1 + $0x114c] sm:$0xf] }
 0x2e2   :  { %6180 = vmatpush.bf16.msrb.mxu0 %v9011_v46  ;;  %v9424_v17 = vld [vmem:[%s16328_s1 + $0x14f8] sm:$0xf0]  ;;  %v9235_v25 = vor.u32 %v10654_v11, %v9232_v15  ;;  %v10618_v57 = vld [vmem:[%s16328_s1 + $0x124c] sm:$0xf]  ;;  %v5642_v54 = vadd.f32 %v15512_v0, %v5628_v45 }
 0x2e3   :  { %6194 = vmatpush.bf16.msrb.mxu1 %v9139_v12  ;;  %v15814_v46 = vpop.f32.mrf.mxu2  ;;  %v8803_v12 = vor.u32 %v10546_v18, %v8800_v24  ;;  %v8960_v29 = vld [vmem:[%s16328_s1 + $0x1158] sm:$0xf0]  ;;  %v9427_v8 = vor.u32 %v10702_v42, %v9424_v17  ;;  %v10650_v5 = vld [vmem:[%s16328_s1 + $0x134c] sm:$0xf]  ;;  %v15862_v18 = vpop.f32.mrf.mxu0 }
 0x2e4   :  { %6208 = vmatpush.bf16.msrb.mxu2 %v9267_v38  ;;  %v8979_v38 = vor.u32 %v10590_v61, %v8976_v58  ;;  %v9088_v35 = vld [vmem:[%s16328_s1 + $0x1258] sm:$0xf0]  ;;  %v10698_v13 = vld [vmem:[%s16328_s1 + $0x14cc] sm:$0xf]  ;;  %v8963_v24 = vor.u32 %v10586_v4, %v8960_v29  ;;  %v5656_v44 = vadd.f32 %v15526_v14, %v5642_v54  ;;  %v5308_v4 = vadd.f32 %v13768_v20, %v5294_v39 }
 0x2e5   :  { %6170 = vmatpush.bf16.msra.mxu3 %v8819_v50  ;;  %v9216_v50 = vld [vmem:[%s16328_s1 + $0x1358] sm:$0xf0]  ;;  %v10582_v61 = vld [vmem:[%s16328_s1 + $0x112c] sm:$0xf] }
 0x2e6   :  { %6181 = vmatpush.bf16.msrb.mxu0 %v8995_v63  ;;  %v9408_v0 = vld [vmem:[%s16328_s1 + $0x14d8] sm:$0xf0]  ;;  %v4972_v63 = vadd.f32 %v12523_v62, %v4958_v28  ;;  %v10614_v62 = vld [vmem:[%s16328_s1 + $0x122c] sm:$0xf]  ;;  %v5670_v29 = vadd.f32 %v15614_v59, %v5656_v44 }
 0x2e7   :  { %6195 = vmatpush.bf16.msrb.mxu1 %v9123_v19  ;;  %v9091_v19 = vor.u32 %v10618_v57, %v9088_v35  ;;  %v8944_v58 = vld [vmem:[%s16328_s1 + $0x1138] sm:$0xf0]  ;;  %v9411_v31 = vor.u32 %v10698_v13, %v9408_v0  ;;  %v10646_v16 = vld [vmem:[%s16328_s1 + $0x132c] sm:$0xf] }
 0x2e8   :  { %6209 = vmatpush.bf16.msrb.mxu2 %v9251_v3  ;;  %v9219_v3 = vor.u32 %v10650_v5, %v9216_v50  ;;  %v4986_v6 = vadd.f32 %v12564_v30, %v4972_v63  ;;  %v9072_v45 = vld [vmem:[%s16328_s1 + $0x1238] sm:$0xf0]  ;;  %v5658_v30 = vadd.f32 %v15597_v1, %v5644_v23  ;;  %v10694_v37 = vld [vmem:[%s16328_s1 + $0x14ac] sm:$0xf]  ;;  %v8947_v17 = vor.u32 %v10582_v61, %v8944_v58  ;;  %v15916_v57 = vpop.f32.mrf.mxu3 }
 0x2e9   :  { %6171 = vmatpush.bf16.msra.mxu3 %v8803_v12  ;;  %v9200_v11 = vld [vmem:[%s16328_s1 + $0x1338] sm:$0xf0]  ;;  %v15894_v15 = vpop.f32.mrf.mxu1  ;;  %v10578_v1 = vld [vmem:[%s16328_s1 + $0x110c] sm:$0xf]  ;;  %v9075_v28 = vor.u32 %v10614_v62, %v9072_v45 }
 0x2ea   :  { %6182 = vmatpush.bf16.msrb.mxu0 %v8979_v38  ;;  %v9392_v14 = vld [vmem:[%s16328_s1 + $0x14b8] sm:$0xf0]  ;;  %v9203_v12 = vor.u32 %v10646_v16, %v9200_v11  ;;  %v10610_v38 = vld [vmem:[%s16328_s1 + $0x120c] sm:$0xf]  ;;  %v5672_v20 = vadd.f32 %v15695_v10, %v5658_v30 }
 0x2eb   :  { %6196 = vmatpush.bf16.msrb.mxu1 %v9107_v40  ;;  %v15896_v42 = vpop.f32.mrf.mxu2  ;;  %v9056_v22 = vld [vmem:[%s16328_s1 + $0x1218] sm:$0xf0]  ;;  %v10642_v40 = vld [vmem:[%s16328_s1 + $0x130c] sm:$0xf]  ;;  %v9395_v49 = vor.u32 %v10694_v37, %v9392_v14 }
 0x2ec   :  { %6210 = vmatpush.bf16.msrb.mxu2 %v9235_v25  ;;  %6172 = vmatmul.bf16.vlgmr.msra.gmra.mxu3 %v12043_v51  ;;  %v8928_v51 = vld [vmem:[%s16328_s1 + $0x1118] sm:$0xf0]  ;;  %v5000_v25 = vadd.f32 %v12575_v52, %v4986_v6  ;;  %v10734_v59 = vld [vmem:[%s16328_s1 + $0x15ec] sm:$0xf]  ;;  %v5686_v61 = vadd.f32 %v15715_v7, %v5672_v20  ;;  %v9059_v58 = vor.u32 %v10610_v38, %v9056_v22  ;;  %v16384_v38 = vld [vmem:[#allocation22_spill] sm:$0xff] }
 0x2ed   :  { %6220 = vmatpush.bf16.msrb.mxu3 %v9427_v8  ;;  %v9184_v54 = vld [vmem:[%s16328_s1 + $0x1318] sm:$0xf0]  ;;  %v10690_v8 = vld [vmem:[%s16328_s1 + $0x148c] sm:$0xf]  ;;  %v8931_v10 = vor.u32 %v10578_v1, %v8928_v51  ;;  %v5684_v6 = vadd.f32 %v15625_v36, %v5670_v29 }
 0x2ee   :  { %6183 = vmatpush.bf16.msrb.mxu0 %v8963_v24  ;;  %v9376_v52 = vld [vmem:[%s16328_s1 + $0x1498] sm:$0xf0]  ;;  %v10766_v5 = vld [vmem:[%s16328_s1 + $0x16ec] sm:$0xf]  ;;  %v15939_v24 = vpop.f32.mrf.mxu0  ;;  %v9187_v62 = vor.u32 %v10642_v40, %v9184_v54  ;;  %v5700_v40 = vadd.f32 %v15743_v32, %v5686_v61 }
 0x2ef   :  { %6197 = vmatpush.bf16.msrb.mxu1 %v9091_v19  ;;  %v9552_v35 = vld [vmem:[%s16328_s1 + $0x15f8] sm:$0xf0]  ;;  %v16381_v50 = vld [vmem:[#allocation3_spill] sm:$0xff]  ;;  %v9379_v39 = vor.u32 %v10690_v8, %v9376_v52 }
 0x2f0   :  { %6211 = vmatpush.bf16.msrb.mxu2 %v9219_v3  ;;  %v5014_v13 = vadd.f32 %v16381_v50, %v5000_v25  ;;  %v16382_v0 = vld [vmem:[#allocation21_spill] sm:$0xff]  ;;  %v10798_v19 = vld [vmem:[%s16328_s1 + $0x17ec] sm:$0xf]  ;;  %v9555_v44 = vor.u32 %v10734_v59, %v9552_v35  ;;  %v5698_v25 = vadd.f32 %v15658_v53, %v5684_v6  ;;  %v5714_v8 = vadd.f32 %v15745_v2, %v5700_v40  ;;  %v16002_v50 = vpop.f32.mrf.mxu3 }
 0x2f1   :  { %6221 = vmatpush.bf16.msrb.mxu3 %v9411_v31  ;;  %v5322_v63 = vadd.f32 %v16382_v0, %v5308_v4  ;;  %v9680_v23 = vld [vmem:[%s16328_s1 + $0x16f8] sm:$0xf0]  ;;  %v10686_v31 = vld [vmem:[%s16328_s1 + $0x146c] sm:$0xf]  ;;  %v15967_v37 = vpop.f32.mrf.mxu1 }
 0x2f2   :  { %6184 = vmatpush.bf16.msrb.mxu0 %v8947_v17  ;;  %v9808_v3 = vld [vmem:[%s16328_s1 + $0x17f8] sm:$0xf0]  ;;  %v9683_v16 = vor.u32 %v10766_v5, %v9680_v23  ;;  %v10730_v7 = vld [vmem:[%s16328_s1 + $0x15cc] sm:$0xf]  ;;  %v5712_v2 = vadd.f32 %v15660_v43, %v5698_v25  ;;  %v16387_v23 = vld [vmem:[#allocation24_spill] sm:$0xff] }
 0x2f3   :  { %6198 = vmatpush.bf16.msrb.mxu1 %v9075_v28  ;;  %v9360_v45 = vld [vmem:[%s16328_s1 + $0x1478] sm:$0xf0]  ;;  %v9811_v11 = vor.u32 %v10798_v19, %v9808_v3  ;;  %v10762_v30 = vld [vmem:[%s16328_s1 + $0x16cc] sm:$0xf]  ;;  %v15969_v14 = vpop.f32.mrf.mxu2  ;;  %v16383_v28 = vld [vmem:[#allocation4_spill] sm:$0xff]  ;;  %v5336_v22 = vadd.f32 %v16384_v38, %v5322_v63 }
 0x2f4   :  { %6212 = vmatpush.bf16.msrb.mxu2 %v9203_v12  ;;  %v9536_v36 = vld [vmem:[%s16328_s1 + $0x15d8] sm:$0xf0]  ;;  %v10794_v1 = vld [vmem:[%s16328_s1 + $0x17cc] sm:$0xf]  ;;  %v5028_v12 = vadd.f32 %v16383_v28, %v5014_v13  ;;  %v9363_v4 = vor.u32 %v10686_v31, %v9360_v45  ;;  %v5726_v45 = vadd.f32 %v15759_v47, %v5712_v2 }
 0x2f5   :  { %6222 = vmatpush.bf16.msrb.mxu3 %v9395_v49  ;;  %v9664_v17 = vld [vmem:[%s16328_s1 + $0x16d8] sm:$0xf0]  ;;  %v9539_v29 = vor.u32 %v10730_v7, %v9536_v36  ;;  %v10682_v49 = vld [vmem:[%s16328_s1 + $0x144c] sm:$0xf] }
 0x2f6   :  { %6185 = vmatpush.bf16.msrb.mxu0 %v8931_v10  ;;  %v9792_v51 = vld [vmem:[%s16328_s1 + $0x17d8] sm:$0xf0]  ;;  %v9667_v32 = vor.u32 %v10762_v30, %v9664_v17  ;;  %v10726_v53 = vld [vmem:[%s16328_s1 + $0x15ac] sm:$0xf]  ;;  %v16018_v19 = vpop.f32.mrf.mxu0  ;;  %v5740_v17 = vadd.f32 %v15782_v9, %v5726_v45  ;;  %v16394_v45 = vld [vmem:[#allocation28_spill] sm:$0xff] }
 0x2f7   :  { %6199 = vmatpush.bf16.msrb.mxu1 %v9059_v58  ;;  %v9344_v54 = vld [vmem:[%s16328_s1 + $0x1458] sm:$0xf0]  ;;  %v9795_v52 = vor.u32 %v10794_v1, %v9792_v51  ;;  %v10758_v59 = vld [vmem:[%s16328_s1 + $0x16ac] sm:$0xf] }
 0x2f8   :  { %6213 = vmatpush.bf16.msrb.mxu2 %v9187_v62  ;;  %v9520_v20 = vld [vmem:[%s16328_s1 + $0x15b8] sm:$0xf0]  ;;  %v16385_v35 = vld [vmem:[#allocation23_spill] sm:$0xff]  ;;  %v5728_v62 = vadd.f32 %v15844_v21, %v5714_v8 }
 0x2f9   :  { %6223 = vmatpush.bf16.msrb.mxu3 %v9379_v39  ;;  %v5350_v5 = vadd.f32 %v16385_v35, %v5336_v22  ;;  %6186 = vmatmul.bf16.vlgmr.msrb.gmra.mxu0 %v12056_v56  ;;  %v9648_v13 = vld [vmem:[%s16328_s1 + $0x16b8] sm:$0xf0]  ;;  %v10790_v0 = vld [vmem:[%s16328_s1 + $0x17ac] sm:$0xf]  ;;  %v9523_v3 = vor.u32 %v10726_v53, %v9520_v20  ;;  %v16049_v1 = vpop.f32.mrf.mxu1  ;;  %v16389_v22 = vld [vmem:[#allocation6_spill] sm:$0xff] }
 0x2fa   :  { %6234 = vmatpush.bf16.msra.mxu0 %v9555_v44  ;;  %v9776_v63 = vld [vmem:[%s16328_s1 + $0x17b8] sm:$0xf0]  ;;  %6200 = vmatmul.bf16.vlgmr.msrb.gmra.mxu1 %v12054_v55  ;;  %v10678_v61 = vld [vmem:[%s16328_s1 + $0x142c] sm:$0xf]  ;;  %v9651_v55 = vor.u32 %v10758_v59, %v9648_v13  ;;  %v5742_v30 = vadd.f32 %v15862_v18, %v5728_v62  ;;  %v16391_v20 = vld [vmem:[#allocation26_spill] sm:$0xff]  ;;  %v5754_v13 = vadd.f32 %v15812_v41, %v5740_v17 }
 0x2fb   :  { %6248 = vmatpush.bf16.msra.mxu1 %v9683_v16  ;;  %6214 = vmatmul.bf16.vlgmr.msrb.gmra.mxu2 %v12064_v60  ;;  %v16386_v10 = vld [vmem:[#allocation5_spill] sm:$0xff]  ;;  %v5364_v56 = vadd.f32 %v16387_v23, %v5350_v5  ;;  %v9347_v60 = vor.u32 %v10682_v49, %v9344_v54  ;;  %v9779_v6 = vor.u32 %v10790_v0, %v9776_v63  ;;  %v10722_v39 = vld [vmem:[%s16328_s1 + $0x158c] sm:$0xf]  ;;  %v16051_v47 = vpop.f32.mrf.mxu2  ;;  %v16069_v49 = vpop.f32.mrf.mxu3 }
 0x2fc   :  { %6262 = vmatpush.bf16.msra.mxu2 %v9811_v11  ;;  %v5042_v43 = vadd.f32 %v16386_v10, %v5028_v12  ;;  %v9328_v58 = vld [vmem:[%s16328_s1 + $0x1438] sm:$0xf0]  ;;  %v10754_v31 = vld [vmem:[%s16328_s1 + $0x168c] sm:$0xf]  ;;  %v5756_v35 = vadd.f32 %v15894_v15, %v5742_v30 }
 0x2fd   :  { %6224 = vmatpush.bf16.msrb.mxu3 %v9363_v4  ;;  %v9504_v44 = vld [vmem:[%s16328_s1 + $0x1598] sm:$0xf0]  ;;  %v10786_v16 = vld [vmem:[%s16328_s1 + $0x178c] sm:$0xf]  ;;  %v9331_v51 = vor.u32 %v10678_v61, %v9328_v58 }
 0x2fe   :  { %6235 = vmatpush.bf16.msra.mxu0 %v9539_v29  ;;  %v9632_v21 = vld [vmem:[%s16328_s1 + $0x1698] sm:$0xf0]  ;;  %v9507_v28 = vor.u32 %v10722_v39, %v9504_v44  ;;  %v10674_v12 = vld [vmem:[%s16328_s1 + $0x140c] sm:$0xf]  ;;  %v5056_v18 = vadd.f32 %v16389_v22, %v5042_v43  ;;  %v16090_v0 = vpop.f32.mrf.mxu0  ;;  %v5770_v43 = vadd.f32 %v15896_v42, %v5756_v35  ;;  %v5768_v42 = vadd.f32 %v15814_v46, %v5754_v13  ;;  %v16393_v44 = vld [vmem:[#allocation8_spill] sm:$0xff] }
 0x2ff   :  { %6249 = vmatpush.bf16.msra.mxu1 %v9667_v32  ;;  %v9760_v11 = vld [vmem:[%s16328_s1 + $0x1798] sm:$0xf0]  ;;  %v9635_v9 = vor.u32 %v10754_v31, %v9632_v21  ;;  %v10718_v25 = vld [vmem:[%s16328_s1 + $0x156c] sm:$0xf] }
 0x300   :  { %6263 = vmatpush.bf16.msra.mxu2 %v9795_v52  ;;  %v16388_v7 = vld [vmem:[#allocation25_spill] sm:$0xff]  ;;  %v9763_v40 = vor.u32 %v10786_v16, %v9760_v11  ;;  %v10750_v29 = vld [vmem:[%s16328_s1 + $0x166c] sm:$0xf] }
 0x301   :  { %v5378_v36 = vadd.f32 %v16388_v7, %v5364_v56  ;;  %6225 = vmatpush.bf16.msrb.mxu3 %v9347_v60  ;;  %v9312_v38 = vld [vmem:[%s16328_s1 + $0x1418] sm:$0xf0]  ;;  %v10782_v8 = vld [vmem:[%s16328_s1 + $0x176c] sm:$0xf]  ;;  %v16121_v16 = vpop.f32.mrf.mxu1 }
 0x302   :  { %6236 = vmatpush.bf16.msra.mxu0 %v9523_v3  ;;  %v9488_v4 = vld [vmem:[%s16328_s1 + $0x1578] sm:$0xf0]  ;;  %v16390_v52 = vld [vmem:[#allocation7_spill] sm:$0xff]  ;;  %v9315_v63 = vor.u32 %v10674_v12, %v9312_v38 }
 0x303   :  { %6250 = vmatpush.bf16.msra.mxu1 %v9651_v55  ;;  %v9616_v54 = vld [vmem:[%s16328_s1 + $0x1678] sm:$0xf0]  ;;  %v5070_v53 = vadd.f32 %v16390_v52, %v5056_v18  ;;  %v5392_v59 = vadd.f32 %v16391_v20, %v5378_v36  ;;  %v10814_v5 = vld [vmem:[%s16328_s1 + $0x186c] sm:$0xf]  ;;  %v9491_v10 = vor.u32 %v10718_v25, %v9488_v4  ;;  %v16123_v11 = vpop.f32.mrf.mxu2  ;;  %v5784_v36 = vadd.f32 %v16002_v50, %v5770_v43  ;;  %v5839_v52 = vpop.f32.mrf.mxu3 }
 0x304   :  { %6264 = vmatpush.bf16.msra.mxu2 %v9779_v6  ;;  %v9744_v32 = vld [vmem:[%s16328_s1 + $0x1778] sm:$0xf0]  ;;  %v9619_v15 = vor.u32 %v10750_v29, %v9616_v54  ;;  %v10714_v56 = vld [vmem:[%s16328_s1 + $0x154c] sm:$0xf] }
 0x305   :  { %v9872_v2 = vld [vmem:[%s16328_s1 + $0x1878] sm:$0xf0]  ;;  %6226 = vmatpush.bf16.msrb.mxu3 %v9331_v51  ;;  %v9747_v23 = vor.u32 %v10782_v8, %v9744_v32  ;;  %v10746_v60 = vld [vmem:[%s16328_s1 + $0x164c] sm:$0xf]  ;;  %v5084_v31 = vadd.f32 %v16393_v44, %v5070_v53  ;;  %v5798_v54 = vadd.f32 %v16018_v19, %v5784_v36 }
 0x306   :  { %6237 = vmatpush.bf16.msra.mxu0 %v9507_v28  ;;  %v9472_v41 = vld [vmem:[%s16328_s1 + $0x1558] sm:$0xf0]  ;;  %v16392_v3 = vld [vmem:[#allocation27_spill] sm:$0xff]  ;;  %v9875_v58 = vor.u32 %v10814_v5, %v9872_v2  ;;  %v16398_v2 = vld [vmem:[#allocation30_spill] sm:$0xff] }
 0x307   :  { %6251 = vmatpush.bf16.msra.mxu1 %v9635_v9  ;;  %v5406_v61 = vadd.f32 %v16392_v3, %v5392_v59  ;;  %v9600_v62 = vld [vmem:[%s16328_s1 + $0x1658] sm:$0xf0]  ;;  %v10778_v55 = vld [vmem:[%s16328_s1 + $0x174c] sm:$0xf]  ;;  %v9475_v7 = vor.u32 %v10714_v56, %v9472_v41  ;;  %v5782_v9 = vadd.f32 %v15916_v57, %v5768_v42  ;;  %v5812_v56 = vadd.f32 %v16049_v1, %v5798_v54 }
 0x308   :  { %6265 = vmatpush.bf16.msra.mxu2 %v9763_v40  ;;  %v9728_v6 = vld [vmem:[%s16328_s1 + $0x1758] sm:$0xf0]  ;;  %v10810_v39 = vld [vmem:[%s16328_s1 + $0x184c] sm:$0xf]  ;;  %v9603_v30 = vor.u32 %v10746_v60, %v9600_v62 }
 0x309   :  { %v9856_v46 = vld [vmem:[%s16328_s1 + $0x1858] sm:$0xf0]  ;;  %v5420_v21 = vadd.f32 %v16394_v45, %v5406_v61  ;;  %6227 = vmatpush.bf16.msrb.mxu3 %v9315_v63  ;;  %v9731_v17 = vor.u32 %v10778_v55, %v9728_v6  ;;  %v10710_v51 = vld [vmem:[%s16328_s1 + $0x152c] sm:$0xf]  ;;  %v5796_v32 = vadd.f32 %v15939_v24, %v5782_v9  ;;  %v16397_v24 = vld [vmem:[#allocation10_spill] sm:$0xff]  ;;  %v5853_v63 = vpop.f32.mrf.mxu0  ;;  %v5826_v6 = vadd.f32 %v16051_v47, %v5812_v56 }
 0x30a   :  { %6238 = vmatpush.bf16.msra.mxu0 %v9491_v10  ;;  %v9456_v28 = vld [vmem:[%s16328_s1 + $0x1538] sm:$0xf0]  ;;  %v10742_v12 = vld [vmem:[%s16328_s1 + $0x162c] sm:$0xf]  ;;  %v9859_v40 = vor.u32 %v10810_v39, %v9856_v46  ;;  %v16401_v46 = vld [vmem:[#allocation32_spill] sm:$0xff] }
 0x30b   :  { %6252 = vmatpush.bf16.msra.mxu1 %v9619_v15  ;;  %v16395_v38 = vld [vmem:[#allocation9_spill] sm:$0xff]  ;;  %v10774_v4 = vld [vmem:[%s16328_s1 + $0x172c] sm:$0xf]  ;;  %v9459_v53 = vor.u32 %v10710_v51, %v9456_v28  ;;  %v5810_v42 = vadd.f32 %v15967_v37, %v5796_v32  ;;  %v5881_v37 = vpop.f32.mrf.mxu2  ;;  %v10831_v9 = vld [vmem:[%s16331_s3 + $0x70] sm:$0xff] }
 0x30c   :  { %6266 = vmatpush.bf16.msra.mxu2 %v9747_v23  ;;  %v5098_v22 = vadd.f32 %v16395_v38, %v5084_v31  ;;  %v16396_v18 = vld [vmem:[#allocation29_spill] sm:$0xff]  ;;  %6228 = vmatmul.bf16.vlgmr.msrb.gmra.mxu3 %v12283_v26  ;;  %v10806_v57 = vld [vmem:[%s16328_s1 + $0x182c] sm:$0xf]  ;;  %v5867_v31 = vpop.f32.mrf.mxu1  ;;  %v5840_v38 = vadd.f32 %v5839_v52, %v5826_v6 }
 0x30d   :  { %v5434_v50 = vadd.f32 %v16396_v18, %v5420_v21  ;;  %6280 = vmatpush.bf16.msra.mxu3 %v9875_v58  ;;  %v9584_v25 = vld [vmem:[%s16328_s1 + $0x1638] sm:$0xf0]  ;;  %v10706_v26 = vld [vmem:[%s16328_s1 + $0x150c] sm:$0xf] }
 0x30e   :  { %v9712_v29 = vld [vmem:[%s16328_s1 + $0x1738] sm:$0xf0]  ;;  %6239 = vmatpush.bf16.msra.mxu0 %v9475_v7  ;;  %v9587_v20 = vor.u32 %v10742_v12, %v9584_v25  ;;  %v10738_v35 = vld [vmem:[%s16328_s1 + $0x160c] sm:$0xf]  ;;  %v5112_v5 = vadd.f32 %v16397_v24, %v5098_v22  ;;  %v5824_v7 = vadd.f32 %v15969_v14, %v5810_v42  ;;  %v5893_v12 = vpop.f32.mrf.mxu3  ;;  %v10823_v14 = vld [vmem:[%s16331_s3 + $0x30] sm:$0xff]  ;;  %v5854_v25 = vadd.f32 %v5853_v63, %v5840_v38 }
 0x30f   :  { %v9840_v8 = vld [vmem:[%s16328_s1 + $0x1838] sm:$0xf0]  ;;  %6253 = vmatpush.bf16.msra.mxu1 %v9603_v30  ;;  %v9715_v59 = vor.u32 %v10774_v4, %v9712_v29  ;;  %v5448_v13 = vadd.f32 %v16398_v2, %v5434_v50  ;;  %v10770_v15 = vld [vmem:[%s16328_s1 + $0x170c] sm:$0xf]  ;;  %v16402_v30 = vld [vmem:[#allocation12_spill] sm:$0xff] }
 0x310   :  { %6267 = vmatpush.bf16.msra.mxu2 %v9731_v17  ;;  %v9440_v19 = vld [vmem:[%s16328_s1 + $0x1518] sm:$0xf0]  ;;  %v9843_v10 = vor.u32 %v10806_v57, %v9840_v8  ;;  %v16399_v41 = vld [vmem:[#allocation11_spill] sm:$0xff]  ;;  %v10839_v4 = vld [vmem:[%s16331_s3 + $0xb0] sm:$0xff] }
 0x311   :  { %6281 = vmatpush.bf16.msra.mxu3 %v9859_v40  ;;  %v9568_v43 = vld [vmem:[%s16328_s1 + $0x1618] sm:$0xf0]  ;;  %v5126_v60 = vadd.f32 %v16399_v41, %v5112_v5  ;;  %v16400_v3 = vld [vmem:[#allocation31_spill] sm:$0xff]  ;;  %v9443_v58 = vor.u32 %v10706_v26, %v9440_v19  ;;  %v5907_v50 = vpop.f32.mrf.mxu0  ;;  %v5838_v40 = vadd.f32 %v16069_v49, %v5824_v7  ;;  %v16405_v29 = vld [vmem:[#allocation34_spill] sm:$0xff] }
 0x312   :  { %v9696_v23 = vld [vmem:[%s16328_s1 + $0x1718] sm:$0xf0]  ;;  %v5462_v61 = vadd.f32 %v16400_v3, %v5448_v13  ;;  %6240 = vmatpush.bf16.msra.mxu0 %v9459_v53  ;;  %v10802_v62 = vld [vmem:[%s16328_s1 + $0x180c] sm:$0xf]  ;;  %v9571_v1 = vor.u32 %v10738_v35, %v9568_v43  ;;  %v16406_v8 = vld [vmem:[#allocation14_spill] sm:$0xff] }
 0x313   :  { %v9824_v55 = vld [vmem:[%s16328_s1 + $0x1818] sm:$0xf0]  ;;  %6254 = vmatpush.bf16.msra.mxu1 %v9587_v20  ;;  %v9699_v39 = vor.u32 %v10770_v15, %v9696_v23  ;;  %v5140_v17 = vadd.f32 %v16402_v30, %v5126_v60  ;;  %v5852_v57 = vadd.f32 %v16090_v0, %v5838_v40  ;;  %v16407_v49 = vld [vmem:[#allocation35_spill] sm:$0xff]  ;;  %v16408_v0 = vld [vmem:[#allocation2_spill] sm:$0xff]  ;;  %v5935_v24 = vpop.f32.mrf.mxu2 }
 0x314   :  { %6268 = vmatpush.bf16.msra.mxu2 %v9715_v59  ;;  %v5476_v44 = vadd.f32 %v16401_v46, %v5462_v61  ;;  %v10824_v45 = vld [vmem:[%s16331_s3 + $0x38] sm:$0xff]  ;;  %v9827_v36 = vor.u32 %v10802_v62, %v9824_v55  ;;  %v5921_v53 = vpop.f32.mrf.mxu1  ;;  %v10822_v20 = vld [vmem:[%s16331_s3 + $0x28] sm:$0xff]  ;;  %v16410_v19 = vld [vmem:[#allocation36_spill] sm:$0xff] }
 0x315   :  { %6282 = vmatpush.bf16.msra.mxu3 %v9843_v10  ;;  %v10832_v21 = vld [vmem:[%s16331_s3 + $0x78] sm:$0xff]  ;;  %v16409_v59 = vld [vmem:[#allocation15_spill] sm:$0xff]  ;;  %v5866_v5 = vadd.f32 %v16121_v16, %v5852_v57  ;;  %v16411_v13 = vld [vmem:[#allocation38_spill] sm:$0xff] }
 0x316   :  { %v10840_v47 = vld [vmem:[%s16331_s3 + $0xb8] sm:$0xff]  ;;  %6241 = vmatpush.bf16.msra.mxu0 %v9443_v58  ;;  %v5895_v10 = vpop.f32.mrf.mxu3  ;;  %v10821_v43 = vld [vmem:[%s16331_s3 + $0x20] sm:$0xff]  ;;  %v16414_v58 = vld [vmem:[#allocation39_spill] sm:$0xff] }
 0x317   :  { %v16403_v51 = vld [vmem:[#allocation33_spill] sm:$0xff]  ;;  %6255 = vmatpush.bf16.msra.mxu1 %v9571_v1  ;;  %v10829_v15 = vld [vmem:[%s16331_s3 + $0x60] sm:$0xff]  ;;  %v5880_v23 = vadd.f32 %v16123_v11, %v5866_v5  ;;  %v16415_v46 = vld [vmem:[#allocation40_spill] sm:$0xff] }
 0x318   :  { %v5490_v28 = vadd.f32 %v16403_v51, %v5476_v44  ;;  %6269 = vmatpush.bf16.msra.mxu2 %v9699_v39  ;;  %v16404_v22 = vld [vmem:[#allocation13_spill] sm:$0xff]  ;;  %v10837_v16 = vld [vmem:[%s16331_s3 + $0xa0] sm:$0xff]  ;;  %v16417_v51 = vld [vmem:[#allocation20_spill] sm:$0xff] }
 0x319   :  { %v5154_v18 = vadd.f32 %v16404_v22, %v5140_v17  ;;  %6283 = vmatpush.bf16.msra.mxu3 %v9827_v36  ;;  %6242 = vmatmul.bf16.vlgmr.msra.gmra.mxu0 %v12296_v34  ;;  %v10830_v34 = vld [vmem:[%s16331_s3 + $0x68] sm:$0xff]  ;;  %v16412_v56 = vld [vmem:[#allocation17_spill] sm:$0xff]  ;;  %v5909_v60 = vpop.f32.mrf.mxu0  ;;  %v16413_v61 = vld [vmem:[#allocation18_spill] sm:$0xff]  ;;  %v5894_v6 = vadd.f32 %v5893_v12, %v5880_v23 }
 0x31a   :  { %6578 = vmatpush.bf16.msrb.mxu0 %v10824_v45  ;;  %v5504_v54 = vadd.f32 %v16405_v29, %v5490_v28  ;;  %6256 = vmatmul.bf16.vlgmr.msra.gmra.mxu1 %v12294_v33  ;;  %v5868_v33 = vadd.f32 %v5867_v31, %v5854_v25  ;;  %v10820_v55 = vld [vmem:[%s16331_s3 + $0x18] sm:$0xff]  ;;  %v16416_v45 = vld [vmem:[#allocation19_spill] sm:$0xff]  ;;  %v10827_v36 = vld [vmem:[%s16331_s3 + $0x50] sm:$0xff] }
 0x31b   :  { %6592 = vmatpush.bf16.msrb.mxu1 %v10832_v21  ;;  %6270 = vmatmul.bf16.vlgmr.msra.gmra.mxu2 %v12306_v48  ;;  %v5168_v32 = vadd.f32 %v16406_v8, %v5154_v18  ;;  %v10838_v48 = vld [vmem:[%s16331_s3 + $0xa8] sm:$0xff]  ;;  %v10828_v11 = vld [vmem:[%s16331_s3 + $0x58] sm:$0xff]  ;;  %v5937_v7 = vpop.f32.mrf.mxu2  ;;  %v10835_v17 = vld [vmem:[%s16331_s3 + $0x90] sm:$0xff] }
 0x31c   :  { %6606 = vmatpush.bf16.msrb.mxu2 %v10840_v47  ;;  %v5518_v52 = vadd.f32 %v16407_v49, %v5504_v54  ;;  %9879 = vmatmul.msk.bf16.vlgmr.msra.gmra.mxu3 %vm4886_vm0, %v16408_v0  ;;  %v5882_v2 = vadd.f32 %v5881_v37, %v5868_v33  ;;  %v10836_v39 = vld [vmem:[%s16331_s3 + $0x98] sm:$0xff]  ;;  %v5923_v31 = vpop.f32.mrf.mxu1  ;;  %v5908_v37 = vadd.f32 %v5907_v50, %v5894_v6  ;;  %v10819_v47 = vld [vmem:[%s16331_s3 + $0x10] sm:$0xff]  ;;  %v10818_v50 = vld [vmem:[%s16331_s3 + $0x8] sm:$0xff] }
 0x31d   :  { %v5182_v26 = vadd.f32 %v16409_v59, %v5168_v32  ;;  %v16418_v12 = vld [vmem:[#allocation41_spill] sm:$0xff]  ;;  %v10834_v40 = vld [vmem:[%s16331_s3 + $0x88] sm:$0xff]  ;;  %v16419_v29 = vld [vmem:[#allocation16_spill] sm:$0xff] }
 0x31e   :  { %6579 = vmatpush.bf16.msrb.mxu0 %v10823_v14  ;;  %v5532_v35 = vadd.f32 %v16410_v19, %v5518_v52  ;;  %v5896_v3 = vadd.f32 %v5895_v10, %v5882_v2  ;;  %v5922_v22 = vadd.f32 %v5921_v53, %v5908_v37  ;;  %v10826_v14 = vld [vmem:[%s16331_s3 + $0x48] sm:$0xff]  ;;  %v6298_v54 = vmul.f32 0.01, %v16419_v29  ;;  %v16420_v8 = vld [vmem:[#allocation37_spill] sm:$0xff]  ;;  %v10817_v49 = vld [vmem:[%s16331_s3] sm:$0xff] }
 0x31f   :  { %6593 = vmatpush.bf16.msrb.mxu1 %v10831_v9  ;;  %v5196_v41 = vadd.f32 %v16412_v56, %v5182_v26  ;;  %vm6290_vm3 = vcmp.gt.f32.partialorder %v16419_v29, 0.0  ;;  %v6299_v32 = vmul.f32 0.01, %v16420_v8  ;;  %v10825_v52 = vld [vmem:[%s16331_s3 + $0x40] sm:$0xff]  ;;  %vm6291_vm5 = vcmp.gt.f32.partialorder %v16420_v8, 0.0  ;;  %v5949_v26 = vpop.f32.mrf.mxu3 }
 0x320   :  { %6607 = vmatpush.bf16.msrb.mxu2 %v10839_v4  ;;  %v5546_v63 = vadd.f32 %v16411_v13, %v5532_v35  ;;  %v5910_v1 = vadd.f32 %v5909_v60, %v5896_v3  ;;  %v5936_v9 = vadd.f32 %v5935_v24, %v5922_v22 }
 0x321   :  { %v5210_v42 = vadd.f32 %v16413_v61, %v5196_v41  ;;  %v6307_v59 = vsel %vm6291_vm5, %v16420_v8, %v6299_v32  ;;  %v5963_v2 = vpop.f32.mrf.mxu0  ;;  %v836_v61 = vperm.slane %v15692_v27, 3  ;;  %v10848_v27 = vld [vmem:[%s16331_s3 + $0xf8] sm:$0xff] }
 0x322   :  { %6580 = vmatpush.bf16.msrb.mxu0 %v10822_v20  ;;  %v5560_v62 = vadd.f32 %v16414_v58, %v5546_v63  ;;  %v5924_v30 = vadd.f32 %v5923_v31, %v5910_v1  ;;  %v6300_v53 = vmul.f32 0.01, %v5936_v9  ;;  %v10833_v20 = vld [vmem:[%s16331_s3 + $0x80] sm:$0xff]  ;;  %vm6292_vm6 = vcmp.gt.f32.partialorder %v5936_v9, 0.0  ;;  %6620 = vmatpush.bf16.msrb.mxu3 %v10848_v27 }
 0x323   :  { %6594 = vmatpush.bf16.msrb.mxu1 %v10830_v34  ;;  %v5224_v21 = vadd.f32 %v16416_v45, %v5210_v42  ;;  %v5991_v10 = vpop.f32.mrf.mxu2 }
 0x324   :  { %6608 = vmatpush.bf16.msrb.mxu2 %v10838_v48  ;;  %v5574_v44 = vadd.f32 %v16415_v46, %v5560_v62  ;;  %v5938_v18 = vadd.f32 %v5937_v7, %v5924_v30  ;;  %v6306_v48 = vsel %vm6290_vm3, %v16419_v29, %v6298_v54  ;;  %v6308_v24 = vsel %vm6292_vm6, %v5936_v9, %v6300_v53  ;;  %v5977_v63 = vpop.f32.mrf.mxu1 }
 0x325   :  { %v5238_v28 = vadd.f32 %v16417_v51, %v5224_v21 }
 0x326   :  { %6581 = vmatpush.bf16.msrb.mxu0 %v10821_v43  ;;  %v5588_v38 = vadd.f32 %v16418_v12, %v5574_v44  ;;  %v6304_v57 = vmul.f32 0.01, %v5938_v18  ;;  %vm6296_vm4 = vcmp.gt.f32.partialorder %v5938_v18, 0.0  ;;  %v10847_v12 = vld [vmem:[%s16331_s3 + $0xf0] sm:$0xff] }
 0x327   :  { %6595 = vmatpush.bf16.msrb.mxu1 %v10829_v15  ;;  %v6302_v25 = vmul.f32 0.01, %v5238_v28  ;;  %vm6294_vm1 = vcmp.gt.f32.partialorder %v5238_v28, 0.0  ;;  %v5951_v13 = vpop.f32.mrf.mxu3  ;;  %6621 = vmatpush.bf16.msrb.mxu3 %v10847_v12 }
 0x328   :  { %6609 = vmatpush.bf16.msrb.mxu2 %v10837_v16  ;;  %v6303_v4 = vmul.f32 0.01, %v5588_v38  ;;  %vm6295_vm2 = vcmp.gt.f32.partialorder %v5588_v38, 0.0  ;;  %v6312_v0 = vsel %vm6296_vm4, %v5938_v18, %v6304_v57  ;;  %v5952_v37 = vadd.f32 %v5951_v13, %v836_v61  ;;  %v10845_v57 = vld [vmem:[%s16331_s3 + $0xe0] sm:$0xff] }
 0x329   :  { %v6310_v34 = vsel %vm6294_vm1, %v5238_v28, %v6302_v25  ;;  %v6316_v5 = vpack.c.bf16 %v6312_v0, %v6308_v24  ;;  %v5965_v43 = vpop.f32.mrf.mxu0 }
 0x32a   :  { %6582 = vmatpush.bf16.msrb.mxu0 %v10820_v55  ;;  %v6311_v33 = vsel %vm6295_vm2, %v5588_v38, %v6303_v4  ;;  %v6314_v19 = vpack.c.bf16 %v6310_v34, %v6306_v48  ;;  %v5950_v55 = vadd.f32 %v5949_v26, %v836_v61  ;;  %v10844_v34 = vld [vmem:[%s16331_s3 + $0xd8] sm:$0xff] }
 0x32b   :  { %6596 = vmatpush.bf16.msrb.mxu1 %v10828_v11  ;;  %v6315_v35 = vpack.c.bf16 %v6311_v33, %v6307_v59  ;;  %v5993_v16 = vpop.f32.mrf.mxu2 }
 0x32c   :  { %6610 = vmatpush.bf16.msrb.mxu2 %v10836_v39  ;;  %v5979_v23 = vpop.f32.mrf.mxu1  ;;  %v5964_v6 = vadd.f32 %v5963_v2, %v5950_v55 }
 0x32e   :  { %6583 = vmatpush.bf16.msrb.mxu0 %v10819_v47  ;;  %v5978_v44 = vadd.f32 %v5977_v63, %v5964_v6  ;;  %v5966_v47 = vadd.f32 %v5965_v43, %v5952_v37 }
 0x32f   :  { %6597 = vmatpush.bf16.msrb.mxu1 %v10827_v36  ;;  %v6005_v15 = vpop.f32.mrf.mxu3 }
 0x330   :  { %6611 = vmatpush.bf16.msrb.mxu2 %v10835_v17  ;;  %v5992_v45 = vadd.f32 %v5991_v10, %v5978_v44  ;;  %v5980_v17 = vadd.f32 %v5979_v23, %v5966_v47  ;;  %v10842_v10 = vld [vmem:[%s16331_s3 + $0xc8] sm:$0xff] }
 0x331   :  { %v6019_v56 = vpop.f32.mrf.mxu0 }
 0x332   :  { %6584 = vmatpush.bf16.msrb.mxu0 %v10818_v50  ;;  %v6006_v36 = vadd.f32 %v6005_v15, %v5992_v45  ;;  %v5994_v22 = vadd.f32 %v5993_v16, %v5980_v17 }
 0x333   :  { %6598 = vmatpush.bf16.msrb.mxu1 %v10826_v14  ;;  %v6047_v3 = vpop.f32.mrf.mxu2 }
 0x334   :  { %6612 = vmatpush.bf16.msrb.mxu2 %v10834_v40  ;;  %v6033_v60 = vpop.f32.mrf.mxu1  ;;  %v6020_v51 = vadd.f32 %v6019_v56, %v6006_v36  ;;  %v10846_v40 = vld [vmem:[%s16331_s3 + $0xe8] sm:$0xff]  ;;  %v10841_v56 = vld [vmem:[%s16331_s3 + $0xc0] sm:$0xff] }
 0x335   :  { %6622 = vmatpush.bf16.msrb.mxu3 %v10846_v40 }
 0x336   :  { %6585 = vmatpush.bf16.msrb.mxu0 %v10817_v49  ;;  %v6034_v18 = vadd.f32 %v6033_v60, %v6020_v51 }
 0x337   :  { %6599 = vmatpush.bf16.msrb.mxu1 %v10825_v52  ;;  %v6007_v41 = vpop.f32.mrf.mxu3 }
 0x338   :  { %6613 = vmatpush.bf16.msrb.mxu2 %v10833_v20  ;;  %v6008_v9 = vadd.f32 %v6007_v41, %v5994_v22  ;;  %v6048_v25 = vadd.f32 %v6047_v3, %v6034_v18 }
 0x339   :  { %6586 = vmatmul.bf16.vlgmr.msrb.gmra.mxu0 %v6314_v19  ;;  %v6021_v42 = vpop.f32.mrf.mxu0  ;;  %6623 = vmatpush.bf16.msrb.mxu3 %v10845_v57  ;;  %v10843_v19 = vld [vmem:[%s16331_s3 + $0xd0] sm:$0xff] }
 0x33a   :  { %6600 = vmatmul.bf16.vlgmr.msrb.gmra.mxu1 %v6315_v35  ;;  %v6022_v4 = vadd.f32 %v6021_v42, %v6008_v9 }
 0x33b   :  { %6614 = vmatmul.bf16.vlgmr.msrb.gmra.mxu2 %v6316_v5  ;;  %v6049_v11 = vpop.f32.mrf.mxu2 }
 0x33c   :  { %v6035_v62 = vpop.f32.mrf.mxu1 }
 0x33d   :  { %v6036_v8 = vadd.f32 %v6035_v62, %v6022_v4  ;;  %6624 = vmatpush.bf16.msrb.mxu3 %v10844_v34 }
 0x33f   :  { %v6061_v58 = vpop.f32.mrf.mxu3  ;;  %v6050_v53 = vadd.f32 %v6049_v11, %v6036_v8 }
 0x340   :  { %v6062_v54 = vadd.f32 %v6061_v58, %v6048_v25 }
 0x341   :  { %v6075_v1 = vpop.f32.mrf.mxu0  ;;  %6625 = vmatpush.bf16.msrb.mxu3 %v10843_v19 }
 0x342   :  { %v6076_v32 = vadd.f32 %v6075_v1, %v6062_v54 }
 0x343   :  { %v6103_v31 = vpop.f32.mrf.mxu2 }
 0x344   :  { %v6089_v46 = vpop.f32.mrf.mxu1 }
 0x345   :  { %v6090_v0 = vadd.f32 %v6089_v46, %v6076_v32  ;;  %6626 = vmatpush.bf16.msrb.mxu3 %v10842_v10 }
 0x347   :  { %v6063_v39 = vpop.f32.mrf.mxu3  ;;  %v6104_v48 = vadd.f32 %v6103_v31, %v6090_v0 }
 0x348   :  { %v6064_v33 = vadd.f32 %v6063_v39, %v6050_v53 }
 0x349   :  { %v6077_v21 = vpop.f32.mrf.mxu0  ;;  %6627 = vmatpush.bf16.msrb.mxu3 %v10841_v56 }
 0x34a   :  { %v6078_v59 = vadd.f32 %v6077_v21, %v6064_v33 }
 0x34b   :  { %v6105_v28 = vpop.f32.mrf.mxu2 }
 0x34c   :  { %v6091_v30 = vpop.f32.mrf.mxu1 }
 0x34d   :  { %v6092_v5 = vadd.f32 %v6091_v30, %v6078_v59 }
 0x34f   :  { %v6117_v7 = vpop.f32.mrf.mxu3  ;;  %v6106_v43 = vadd.f32 %v6105_v28, %v6092_v5 }
 0x350   :  { %v6118_v35 = vadd.f32 %v6117_v7, %v6104_v48 }
 0x356   :  { %v6131_v38 = vpop.f32.mrf.mxu0 }
 0x357   :  { %v6119_v50 = vpop.f32.mrf.mxu3  ;;  %v6145_v14 = vpop.f32.mrf.mxu1  ;;  %v6132_v2 = vadd.f32 %v6131_v38, %v6118_v35 }
 0x358   :  { %v6120_v15 = vadd.f32 %v6119_v50, %v6106_v43 }
 0x359   :  { %v6146_v23 = vadd.f32 %v6145_v14, %v6132_v2 }
 0x35e   :  { %v6159_v29 = vpop.f32.mrf.mxu2  ;;  %v6133_v49 = vpop.f32.mrf.mxu0 }
 0x35f   :  { %v6147_v20 = vpop.f32.mrf.mxu1  ;;  %v6160_v41 = vadd.f32 %v6159_v29, %v6146_v23  ;;  %v6134_v60 = vadd.f32 %v6133_v49, %v6120_v15  ;;  %v10849_v49 = vld [vmem:[%s16332_s4] ss:$0 sm:$0xff] }
 0x361   :  { %v6148_v58 = vadd.f32 %v6147_v20, %v6134_v60 }
 0x366   :  { %v6161_v26 = vpop.f32.mrf.mxu2 }
 0x367   :  { %v6162_v11 = vadd.f32 %v6161_v26, %v6148_v58 }
 0x36f   :  { %v6173_v52 = vpop.f32.mrf.mxu3 }
 0x370   :  { %v6174_v3 = vadd.f32 %v6173_v52, %v6160_v41 }
 0x376   :  { %v6187_v24 = vpop.f32.mrf.mxu0 }
 0x377   :  { %v6175_v13 = vpop.f32.mrf.mxu3  ;;  %v6201_v63 = vpop.f32.mrf.mxu1  ;;  %v6188_v62 = vadd.f32 %v6187_v24, %v6174_v3 }
 0x378   :  { %v6176_v6 = vadd.f32 %v6175_v13, %v6162_v11 }
 0x379   :  { %v6202_v1 = vadd.f32 %v6201_v63, %v6188_v62 }
 0x37e   :  { %v6215_v16 = vpop.f32.mrf.mxu2  ;;  %v6189_v61 = vpop.f32.mrf.mxu0 }
 0x37f   :  { %v6203_v55 = vpop.f32.mrf.mxu1  ;;  %v6216_v46 = vadd.f32 %v6215_v16, %v6202_v1  ;;  %v6190_v44 = vadd.f32 %v6189_v61, %v6176_v6 }
 0x381   :  { %v6204_v7 = vadd.f32 %v6203_v55, %v6190_v44 }
 0x386   :  { %v6217_v39 = vpop.f32.mrf.mxu2 }
 0x387   :  { %v6218_v36 = vadd.f32 %v6217_v39, %v6204_v7 }
 0x38f   :  { %v6229_v42 = vpop.f32.mrf.mxu3 }
 0x390   :  { %v6230_v45 = vadd.f32 %v6229_v42, %v6216_v46 }
 0x396   :  { %v6243_v31 = vpop.f32.mrf.mxu0 }
 0x397   :  { %v6231_v37 = vpop.f32.mrf.mxu3  ;;  %v6257_v21 = vpop.f32.mrf.mxu1  ;;  %v6244_v47 = vadd.f32 %v6243_v31, %v6230_v45 }
 0x398   :  { %v6232_v17 = vadd.f32 %v6231_v37, %v6218_v36 }
 0x399   :  { %v6258_v27 = vadd.f32 %v6257_v21, %v6244_v47 }
 0x39e   :  { %v6271_v30 = vpop.f32.mrf.mxu2  ;;  %v6245_v51 = vpop.f32.mrf.mxu0 }
 0x39f   :  { %v6285_v28 = vpop.f32.mrf.mxu3  ;;  %v6272_v12 = vadd.f32 %v6271_v30, %v6258_v27  ;;  %v6246_v38 = vadd.f32 %v6245_v51, %v6232_v17  ;;  %v6259_v22 = vpop.f32.mrf.mxu1 }
 0x3a1   :  { %v6260_v18 = vadd.f32 %v6259_v22, %v6246_v38  ;;  %v6286_v50 = vadd.f32 %v6285_v28, %v6272_v12 }
 0x3a3   :  { %v6301_v25 = vmul.f32 0.01, %v6286_v50  ;;  %vm6293_vm7 = vcmp.gt.f32.partialorder %v6286_v50, 0.0 }
 0x3a5   :  { %v6309_v54 = vsel %vm6293_vm7, %v6286_v50, %v6301_v25 }
 0x3a6   :  { %v6273_v14 = vpop.f32.mrf.mxu2 }
 0x3a7   :  { %v6274_v9 = vadd.f32 %v6273_v14, %v6260_v18  ;;  %v6287_v40 = vpop.f32.mrf.mxu3 }
 0x3a9   :  { %v6288_v4 = vadd.f32 %v6287_v40, %v6274_v9 }
 0x3ab   :  { %vm6297_vm8 = vcmp.gt.f32.partialorder %v6288_v4, 0.0  ;;  %v6305_v29 = vmul.f32 0.01, %v6288_v4 }
 0x3ad   :  { %v6313_v57 = vsel %vm6297_vm8, %v6288_v4, %v6305_v29 }
 0x3ae   :  { %v6317_v8 = vpack.c.bf16 %v6313_v57, %v6309_v54 }
 0x3b0   :  { %6628 = vmatmul.bf16.vlgmr.msrb.gmra.mxu3 %v6317_v8 }
 0x3b6   :  { %v6587_v32 = vpop.f32.mrf.mxu0 }
 0x3b7   :  { %v6588_v52 = vadd.f32 %v10849_v49, %v6587_v32  ;;  %v6601_v53 = vpop.f32.mrf.mxu1 }
 0x3b9   :  { %v6602_v34 = vadd.f32 %v6601_v53, %v6588_v52 }
 0x3be   :  { %v6615_v20 = vpop.f32.mrf.mxu2  ;;  %v6589_v33 = vpop.f32.mrf.mxu0 }
 0x3bf   :  { %v6616_v0 = vadd.f32 %v6615_v20, %v6602_v34  ;;  %v6590_v59 = vadd.f32 %v10849_v49, %v6589_v33  ;;  %v6603_v19 = vpop.f32.mrf.mxu1 }
 0x3c1   :  { %v6604_v24 = vadd.f32 %v6603_v19, %v6590_v59 }
 0x3c6   :  { %v6617_v35 = vpop.f32.mrf.mxu2 }
 0x3c7   :  { %v6618_v5 = vadd.f32 %v6617_v35, %v6604_v24 }
 0x433   :  { %v6629_v48 = vpop.f32.mrf.mxu3 }
 0x434   :  { %v6630_v26 = vadd.f32 %v6629_v48, %v6616_v0 }
 0x436   :  { %6634 = vst [vmem:[%s16333_s5] sm:$0xff] %v6630_v26 }
 0x43b   :  { %v6631_v2 = vpop.f32.mrf.mxu3 }
 0x43c   :  { %v6632_v13 = vadd.f32 %v6631_v2, %v6618_v5 }
 0x43e   :  { %6635 = vst [vmem:[%s16333_s5 + $0x8] sm:$0xff] %v6632_v13 }

</bundles_post_ra>
